<compile_context>
chip_gen: v5e
topology: v5e:2x2
jax: 0.10.0
libtpu: 0.0.40
codegen_flags: <defaults>
</compile_context>

<pallas_src>
import jax
import jax.numpy as jnp
from jax import lax
from jax.experimental import pallas as pl
from jax.experimental.pallas import tpu as pltpu

# ---- static problem geometry (input board 9x9 -> Flatten size 108) -----------------
H0 = 9                               # input spatial, NCHW (1, 1, 9, 9)
K1, PAD1 = 4, 1
H1 = H0 + 2 * PAD1 - K1 + 1          # 8   conv1 output
K2, PAD2 = 5, 2
H2 = H1 + 2 * PAD2 - K2 + 1          # 8   conv2 output
K3, PAD3 = 5, 1
H3 = H2 + 2 * PAD3 - K3 + 1          # 6   conv3 output
FLAT = 3 * H3 * H3                   # 108 (matches nn.Linear(108, 32))
LEAK = 0.01                          # nn.LeakyReLU default slope

# All in-kernel activation maps are channels-last with the spatial grid flattened
# row-major on a common row pitch of 12: flat = row * PITCH + col.
PITCH = 12
A1_ROWS = PITCH * PITCH              # 144: conv1 output zero-padded by 2 -> 12x12 grid
A2_ROWS = (H2 + 2 * PAD3) * PITCH    # 120: conv2 output zero-padded by 1 -> 10x12 grid
M1 = H1 * PITCH                      # 96 : conv1 output slab rows
M2 = (H2 - 1) * PITCH + H2           # 92 : conv2 output slab rows
M3 = (H3 - 1) * PITCH + H3           # 66 : conv3 output slab rows
A1_OFF = 2 * PITCH + 2               # 26 : interior offset of the pad-2 ring in a1
A2_OFF = 1 * PITCH + 1               # 13 : interior offset of the pad-1 ring in a2
C1, C2 = 64, 128                     # channel counts of conv1 / conv2 outputs
K2SQ, K3SQ = K2 * K2, K3 * K3        # 25 taps each


def _lrelu(v):
    return jnp.where(v >= 0, v, LEAK * v)


# ----------------------------------- Pallas kernel ----------------------------------
def c4q_kernel(col_ref, mask_ref, w1_ref, w2_ref, w3_ref, aux_ref, fc1w_ref,
               o_ref,
               a1_ref, a2_ref, im2_ref, im3_ref):
    # Packed small-operand slab (one DMA instead of 13 tiny ones).
    s1 = aux_ref[0:1, 0:64]
    t1 = aux_ref[1:2, 0:64]
    s2 = aux_ref[2:3, :]
    t2 = aux_ref[3:4, :]
    s3 = aux_ref[4:5, :]
    t3 = aux_ref[5:6, :]
    s4 = aux_ref[6:7, 0:3]
    t4 = aux_ref[7:8, 0:3]
    fc1b = aux_ref[8:9, 0:32]
    fc2w = aux_ref[9:10, 0:32]
    fc2b = aux_ref[10:11, 0:1]
    w4t = aux_ref[11:14, :]                     # (3, 128): 1x1 head conv, transposed

    # Zero-padded activation buffers: the pad ring must be exactly 0 for the next conv.
    a1_ref[...] = jnp.zeros_like(a1_ref)
    a2_ref[...] = jnp.zeros_like(a2_ref)

    # ---- conv1 (1->64, k=4, pad=1): single bf16 MXU matmul on the wrapper im2col ----
    act1 = jnp.dot(col_ref[...], w1_ref[...],
                   preferred_element_type=jnp.float32)           # (96, 64) f32
    act1 = _lrelu(act1 * s1 + t1)
    # Masked slab store (mask kills the pitch-padding columns exactly), cast once.
    a1_ref[A1_OFF:A1_OFF + M1, :] = (act1 * mask_ref[...]).astype(jnp.bfloat16)

    # ---- conv2 (64->128, k=5, pad=2): bf16 im2col (92,1600) + ONE MXU matmul --------
    # Taps are written in pairs so every lane store starts at a 128-aligned offset.
    for t in range(0, K2SQ - 1, 2):
        oa = (t // K2) * PITCH + (t % K2)
        ob = ((t + 1) // K2) * PITCH + ((t + 1) % K2)
        im2_ref[:, t * C1:(t + 2) * C1] = jnp.concatenate(
            [a1_ref[oa:oa + M2, :], a1_ref[ob:ob + M2, :]], axis=-1)
    tl = K2SQ - 1
    ol = (tl // K2) * PITCH + (tl % K2)
    im2_ref[:, tl * C1:(tl + 1) * C1] = a1_ref[ol:ol + M2, :]

    act2 = jnp.dot(im2_ref[...], w2_ref[...],
                   preferred_element_type=jnp.float32)           # (92, 128) f32
    act2 = _lrelu(act2 * s2 + t2)
    a2_ref[A2_OFF:A2_OFF + M2, :] = (act2 * mask_ref[0:M2, :]).astype(jnp.bfloat16)

    # ---- conv3 (128->128, k=5, pad=1): bf16 im2col (66,3200) + ONE MXU matmul -------
    for t in range(K3SQ):
        off = (t // K3) * PITCH + (t % K3)
        im3_ref[:, t * C2:(t + 1) * C2] = a2_ref[off:off + M3, :]

    act3 = jnp.dot(im3_ref[...], w3_ref[...],
                   preferred_element_type=jnp.float32)           # (66, 128) f32
    act3 = _lrelu(act3 * s3 + t3)

    # ---- value head: 1x1 conv 128->3 (contract last dims vs w4t) + BN + LeakyReLU ---
    v = lax.dot_general(act3, w4t, (((1,), (1,)), ((), ())),
                        preferred_element_type=jnp.float32)      # (66, 3)
    v = _lrelu(v * s4 + t4)

    # ---- Flatten(0,-1) + Linear(108, 32) + LeakyReLU --------------------------------
    # fc1 weights are pre-scattered onto the pitch-12 grid with zero rows at the
    # non-output positions, so garbage slab rows contribute nothing; one reduction.
    p_acc = (v[:, 0:1] * fc1w_ref[0]
             + v[:, 1:2] * fc1w_ref[1]
             + v[:, 2:3] * fc1w_ref[2])                          # (66, 32)
    h = _lrelu(fc1b + jnp.sum(p_acc, axis=0, keepdims=True))     # (1, 32)

    # ---- Linear(32, 1) ---------------------------------------------------------------
    o_ref[...] = jnp.sum(h * fc2w, axis=1, keepdims=True) + fc2b  # (1, 1)


# ------------------------------------- JAX glue --------------------------------------
def fold_bn(conv_b, bn, eps=1e-5):
    """Fold conv bias + eval-mode BatchNorm into per-channel scale/shift."""
    gamma, beta, mean, var = bn
    s = gamma / jnp.sqrt(var + eps)
    t = (conv_b - mean) * s + beta
    return s, t


def init_params(key):
    ks = jax.random.split(key, 16)

    def conv_w(k, cout, cin, kh, kw):
        fan = cin * kh * kw
        return jax.random.normal(k, (cout, cin, kh, kw), jnp.float32) / jnp.sqrt(fan)

    def bn(k, c):
        k1, k2, k3, k4 = jax.random.split(k, 4)
        gamma = 1.0 + 0.1 * jax.random.normal(k1, (c,), jnp.float32)
        beta = 0.1 * jax.random.normal(k2, (c,), jnp.float32)
        mean = 0.1 * jax.random.normal(k3, (c,), jnp.float32)
        var = 1.0 + 0.1 * jax.random.uniform(k4, (c,), jnp.float32)
        return gamma, beta, mean, var

    return {
        'w1': conv_w(ks[0], 64, 1, 4, 4),
        'b1': 0.1 * jax.random.normal(ks[1], (64,), jnp.float32),
        'bn1': bn(ks[2], 64),
        'w2': conv_w(ks[3], 128, 64, 5, 5),
        'b2': 0.1 * jax.random.normal(ks[4], (128,), jnp.float32),
        'bn2': bn(ks[5], 128),
        'w3': conv_w(ks[6], 128, 128, 5, 5),
        'b3': 0.1 * jax.random.normal(ks[7], (128,), jnp.float32),
        'bn3': bn(ks[8], 128),
        'w4': conv_w(ks[9], 3, 128, 1, 1),
        'b4': 0.1 * jax.random.normal(ks[10], (3,), jnp.float32),
        'bn4': bn(ks[11], 3),
        'fc1W': jax.random.normal(ks[12], (32, FLAT), jnp.float32) / jnp.sqrt(FLAT),
        'fc1b': 0.1 * jax.random.normal(ks[13], (32,), jnp.float32),
        'fc2W': jax.random.normal(ks[14], (1, 32), jnp.float32) / jnp.sqrt(32.0),
        'fc2b': 0.1 * jax.random.normal(ks[15], (1,), jnp.float32),
    }


def kernel_params(p):
    def taps(w):  # (Cout, Cin, KH, KW) -> (KH*KW, Cin, Cout), tap-major then cin
        cout, cin, kh, kw = w.shape
        return jnp.transpose(w, (2, 3, 1, 0)).reshape(kh * kw, cin, cout)

    s1, t1 = fold_bn(p['b1'], p['bn1'])
    s2, t2 = fold_bn(p['b2'], p['bn2'])
    s3, t3 = fold_bn(p['b3'], p['bn3'])
    s4, t4 = fold_bn(p['b4'], p['bn4'])

    # Packed small-operand slab (BN scale/shift, head 1x1 conv, fc biases/weights).
    aux = jnp.zeros((16, 128), jnp.float32)
    aux = aux.at[0, 0:64].set(s1).at[1, 0:64].set(t1)
    aux = aux.at[2, :].set(s2).at[3, :].set(t2)
    aux = aux.at[4, :].set(s3).at[5, :].set(t3)
    aux = aux.at[6, 0:3].set(s4).at[7, 0:3].set(t4)
    aux = aux.at[8, 0:32].set(p['fc1b'])
    aux = aux.at[9, 0:32].set(p['fc2W'][0])
    aux = aux.at[10, 0].set(p['fc2b'][0])
    aux = aux.at[11:14, :].set(p['w4'].reshape(3, 128))          # w4 transposed

    # fc1 W^T scattered onto the pitch-12 conv3-output grid.
    # torch flat index = c*36 + (y*6 + x); kernel slab row for (y, x) is y*12 + x.
    wt = p['fc1W'].T.reshape(3, H3 * H3, 32)
    rows = (jnp.arange(H3)[:, None] * PITCH + jnp.arange(H3)[None, :]).reshape(-1)
    fc1w = jnp.zeros((3, M3, 32), jnp.float32).at[:, rows, :].set(wt)

    # Shared column-validity mask: flat index valid iff (i % 12) < 8 (M1 >= M2).
    mask = ((jnp.arange(M1) % PITCH) < H1).astype(jnp.float32).reshape(M1, 1)

    return dict(
        mask=mask,
        w1=taps(p['w1']).reshape(K1 * K1, 64).astype(jnp.bfloat16),     # (16, 64)
        w2=taps(p['w2']).reshape(K2SQ * C1, 128).astype(jnp.bfloat16),  # (1600, 128)
        w3=taps(p['w3']).reshape(K3SQ * C2, 128).astype(jnp.bfloat16),  # (3200, 128)
        aux=aux,                                                        # (16, 128)
        fc1w=fc1w,                                                      # (3, 66, 32)
    )


def c4q_forward(x, kp):
    """x: (1, 1, 9, 9) NCHW float32 -> (1,) float32 (matches the torch module)."""
    xs = x[0, 0]                                        # (9, 9)
    xp = jnp.pad(xs, ((1, 1), (1, 1)))                  # (11, 11): conv1 padding
    # conv1 im2col, rows laid out on the pitch-12 grid (columns >= 8 are don't-care,
    # the in-kernel mask zeroes them before the next layer reads them).
    pat = jnp.stack([xp[ky:ky + H1, kx:kx + H1]
                     for ky in range(K1) for kx in range(K1)], axis=-1)   # (8, 8, 16)
    col = jnp.zeros((H1, PITCH, K1 * K1), jnp.float32).at[:, :H1, :].set(pat)
    col = col.reshape(M1, K1 * K1).astype(jnp.bfloat16)  # (96, 16) bf16

    out = pl.pallas_call(
        c4q_kernel,
        out_shape=jax.ShapeDtypeStruct((1, 1), jnp.float32),
        scratch_shapes=[
            pltpu.VMEM((A1_ROWS, C1), jnp.bfloat16),     # zero-padded conv1 out (12x12)
            pltpu.VMEM((A2_ROWS, C2), jnp.bfloat16),     # zero-padded conv2 out (10x12)
            pltpu.VMEM((M2, K2SQ * C1), jnp.bfloat16),   # conv2 im2col (92, 1600)
            pltpu.VMEM((M3, K3SQ * C2), jnp.bfloat16),   # conv3 im2col (66, 3200)
        ],
    )(col, kp['mask'], kp['w1'], kp['w2'], kp['w3'], kp['aux'], kp['fc1w'])
    return out.reshape(1)


# -------------------------- pure-JAX reference (for checking) ------------------------
def ref_forward(x, p):
    def conv(h, w, pad):
        return lax.conv_general_dilated(
            h, w, window_strides=(1, 1),
            padding=[(pad, pad), (pad, pad)],
            dimension_numbers=('NCHW', 'OIHW', 'NCHW'))

    def bn_act(h, st):
        s, t = st
        h = h * s[None, :, None, None] + t[None, :, None, None]
        return jnp.where(h >= 0, h, LEAK * h)

    h = bn_act(conv(x, p['w1'], 1), fold_bn(p['b1'], p['bn1']))
    h = bn_act(conv(h, p['w2'], 2), fold_bn(p['b2'], p['bn2']))
    h = bn_act(conv(h, p['w3'], 1), fold_bn(p['b3'], p['bn3']))
    h = bn_act(conv(h, p['w4'], 0), fold_bn(p['b4'], p['bn4']))
    flat = h.reshape(-1)                                # torch Flatten(0,-1), NCHW order
    h1 = p['fc1W'] @ flat + p['fc1b']
    h1 = jnp.where(h1 >= 0, h1, LEAK * h1)
    return p['fc2W'] @ h1 + p['fc2b']                   # shape (1,)


if __name__ == "__main__":
    key = jax.random.PRNGKey(0)
    pkey, xkey = jax.random.split(key)

    params = init_params(pkey)
    kp = kernel_params(params)
    x = jax.random.normal(xkey, (1, 1, 9, 9), jnp.float32)

    out = jax.jit(c4q_forward)(x, kp)
    out = jax.block_until_ready(out)

    ref = ref_forward(x, params)
    # Tolerance loosened vs. pure-f32 because the conv trunk runs with bf16 weights
    # and bf16 activations (f32 accumulation); reference stays full f32.
    if not bool(jnp.allclose(out, ref, rtol=5e-2, atol=5e-2)):
        raise SystemExit(f"mismatch: kernel={out} ref={ref}")
    print("KERNEL_OK")
</pallas_src>

<mosaic_0001>
module attributes {stable_mosaic.version = 11 : i64} {
  func.func @c4q_kernel(%arg0: memref<96x16xbf16, #tpu.memory_space<vmem>>, %arg1: memref<96x1xf32, #tpu.memory_space<vmem>>, %arg2: memref<16x64xbf16, #tpu.memory_space<vmem>>, %arg3: memref<1600x128xbf16, #tpu.memory_space<vmem>>, %arg4: memref<3200x128xbf16, #tpu.memory_space<vmem>>, %arg5: memref<16x128xf32, #tpu.memory_space<vmem>>, %arg6: memref<3x66x32xf32, #tpu.memory_space<vmem>>, %arg7: memref<1x1xf32, #tpu.memory_space<vmem>>, %arg8: memref<144x64xbf16, #tpu.memory_space<vmem>>, %arg9: memref<120x128xbf16, #tpu.memory_space<vmem>>, %arg10: memref<92x1600xbf16, #tpu.memory_space<vmem>>, %arg11: memref<66x3200xbf16, #tpu.memory_space<vmem>>) attributes {dimension_semantics = [], scalar_prefetch = 0 : i64, scratch_operands = 4 : i64, tpu.core_type = #tpu.core_type<tc>} {
    %c0 = arith.constant 0 : index
    %c0_0 = arith.constant 0 : index
    %0 = vector.load %arg5[%c0, %c0_0] : memref<16x128xf32, #tpu.memory_space<vmem>>, vector<1x64xf32>
    %c1 = arith.constant 1 : index
    %c0_1 = arith.constant 0 : index
    %1 = vector.load %arg5[%c1, %c0_1] : memref<16x128xf32, #tpu.memory_space<vmem>>, vector<1x64xf32>
    %c2 = arith.constant 2 : index
    %c0_2 = arith.constant 0 : index
    %2 = vector.load %arg5[%c2, %c0_2] : memref<16x128xf32, #tpu.memory_space<vmem>>, vector<1x128xf32>
    %c3 = arith.constant 3 : index
    %c0_3 = arith.constant 0 : index
    %3 = vector.load %arg5[%c3, %c0_3] : memref<16x128xf32, #tpu.memory_space<vmem>>, vector<1x128xf32>
    %c4 = arith.constant 4 : index
    %c0_4 = arith.constant 0 : index
    %4 = vector.load %arg5[%c4, %c0_4] : memref<16x128xf32, #tpu.memory_space<vmem>>, vector<1x128xf32>
    %c5 = arith.constant 5 : index
    %c0_5 = arith.constant 0 : index
    %5 = vector.load %arg5[%c5, %c0_5] : memref<16x128xf32, #tpu.memory_space<vmem>>, vector<1x128xf32>
    %c6 = arith.constant 6 : index
    %c0_6 = arith.constant 0 : index
    %6 = vector.load %arg5[%c6, %c0_6] : memref<16x128xf32, #tpu.memory_space<vmem>>, vector<1x3xf32>
    %c7 = arith.constant 7 : index
    %c0_7 = arith.constant 0 : index
    %7 = vector.load %arg5[%c7, %c0_7] : memref<16x128xf32, #tpu.memory_space<vmem>>, vector<1x3xf32>
    %c8 = arith.constant 8 : index
    %c0_8 = arith.constant 0 : index
    %8 = vector.load %arg5[%c8, %c0_8] : memref<16x128xf32, #tpu.memory_space<vmem>>, vector<1x32xf32>
    %c9 = arith.constant 9 : index
    %c0_9 = arith.constant 0 : index
    %9 = vector.load %arg5[%c9, %c0_9] : memref<16x128xf32, #tpu.memory_space<vmem>>, vector<1x32xf32>
    %c10 = arith.constant 10 : index
    %c0_10 = arith.constant 0 : index
    %10 = vector.load %arg5[%c10, %c0_10] : memref<16x128xf32, #tpu.memory_space<vmem>>, vector<1x1xf32>
    %c11 = arith.constant 11 : index
    %c0_11 = arith.constant 0 : index
    %11 = vector.load %arg5[%c11, %c0_11] : memref<16x128xf32, #tpu.memory_space<vmem>>, vector<3x128xf32>
    %cst = arith.constant 0.000000e+00 : bf16
    %12 = vector.broadcast %cst : bf16 to vector<144x64xbf16>
    %c0_12 = arith.constant 0 : index
    %c0_13 = arith.constant 0 : index
    %13 = vector.load %arg8[%c0_12, %c0_13] : memref<144x64xbf16, #tpu.memory_space<vmem>>, vector<144x64xbf16>
    tpu.vector_store %arg8[%c0_12, %c0_13], %12 {strides = array<i32>} : memref<144x64xbf16, #tpu.memory_space<vmem>>, vector<144x64xbf16>,
    %cst_14 = arith.constant 0.000000e+00 : bf16
    %14 = vector.broadcast %cst_14 : bf16 to vector<120x128xbf16>
    %c0_15 = arith.constant 0 : index
    %c0_16 = arith.constant 0 : index
    %15 = vector.load %arg9[%c0_15, %c0_16] : memref<120x128xbf16, #tpu.memory_space<vmem>>, vector<120x128xbf16>
    tpu.vector_store %arg9[%c0_15, %c0_16], %14 {strides = array<i32>} : memref<120x128xbf16, #tpu.memory_space<vmem>>, vector<120x128xbf16>,
    %c0_17 = arith.constant 0 : index
    %c0_18 = arith.constant 0 : index
    %16 = vector.load %arg0[%c0_17, %c0_18] : memref<96x16xbf16, #tpu.memory_space<vmem>>, vector<96x16xbf16>
    %c0_19 = arith.constant 0 : index
    %c0_20 = arith.constant 0 : index
    %17 = vector.load %arg2[%c0_19, %c0_20] : memref<16x64xbf16, #tpu.memory_space<vmem>>, vector<16x64xbf16>
    %cst_21 = arith.constant dense<0.000000e+00> : vector<96x64xf32>
    %18 = tpu.matmul %16, %17, %cst_21 {dimension_numbers = #tpu.dot_dimension_numbers<[1], [0], [0], [1], [0, 0, 1, 1], [], []>} : vector<96x16xbf16>, vector<16x64xbf16>, vector<96x64xf32> -> vector<96x64xf32>
    %19 = vector.broadcast %0 : vector<1x64xf32> to vector<96x64xf32>
    %20 = arith.mulf %18, %19 : vector<96x64xf32>
    %21 = vector.broadcast %1 : vector<1x64xf32> to vector<96x64xf32>
    %22 = arith.addf %20, %21 : vector<96x64xf32>
    %cst_22 = arith.constant 0.000000e+00 : f32
    %23 = vector.broadcast %cst_22 : f32 to vector<96x64xf32>
    %24 = arith.cmpf oge, %22, %23 : vector<96x64xf32>
    %cst_23 = arith.constant 0.00999999977 : f32
    %25 = vector.broadcast %cst_23 : f32 to vector<96x64xf32>
    %26 = arith.mulf %25, %22 : vector<96x64xf32>
    %27 = arith.select %24, %22, %26 : vector<96x64xi1>, vector<96x64xf32>
    %c0_24 = arith.constant 0 : index
    %c0_25 = arith.constant 0 : index
    %28 = vector.load %arg1[%c0_24, %c0_25] : memref<96x1xf32, #tpu.memory_space<vmem>>, vector<96x1xf32>
    %29 = vector.broadcast %28 : vector<96x1xf32> to vector<96x64xf32>
    %30 = arith.mulf %27, %29 : vector<96x64xf32>
    %31 = arith.truncf %30 : vector<96x64xf32> to vector<96x64xbf16>
    %c26 = arith.constant 26 : index
    %c0_26 = arith.constant 0 : index
    %32 = vector.load %arg8[%c26, %c0_26] : memref<144x64xbf16, #tpu.memory_space<vmem>>, vector<96x64xbf16>
    tpu.vector_store %arg8[%c26, %c0_26], %31 {strides = array<i32>} : memref<144x64xbf16, #tpu.memory_space<vmem>>, vector<96x64xbf16>,
    %c0_27 = arith.constant 0 : index
    %c0_28 = arith.constant 0 : index
    %33 = vector.load %arg8[%c0_27, %c0_28] : memref<144x64xbf16, #tpu.memory_space<vmem>>, vector<92x64xbf16>
    %c1_29 = arith.constant 1 : index
    %c0_30 = arith.constant 0 : index
    %34 = vector.load %arg8[%c1_29, %c0_30] : memref<144x64xbf16, #tpu.memory_space<vmem>>, vector<92x64xbf16>
    %35 = tpu.concatenate %33, %34 in 1 : vector<92x64xbf16>, vector<92x64xbf16> -> vector<92x128xbf16>
    %c0_31 = arith.constant 0 : index
    %c0_32 = arith.constant 0 : index
    %36 = vector.load %arg10[%c0_31, %c0_32] : memref<92x1600xbf16, #tpu.memory_space<vmem>>, vector<92x128xbf16>
    tpu.vector_store %arg10[%c0_31, %c0_32], %35 {strides = array<i32>} : memref<92x1600xbf16, #tpu.memory_space<vmem>>, vector<92x128xbf16>,
    %c2_33 = arith.constant 2 : index
    %c0_34 = arith.constant 0 : index
    %37 = vector.load %arg8[%c2_33, %c0_34] : memref<144x64xbf16, #tpu.memory_space<vmem>>, vector<92x64xbf16>
    %c3_35 = arith.constant 3 : index
    %c0_36 = arith.constant 0 : index
    %38 = vector.load %arg8[%c3_35, %c0_36] : memref<144x64xbf16, #tpu.memory_space<vmem>>, vector<92x64xbf16>
    %39 = tpu.concatenate %37, %38 in 1 : vector<92x64xbf16>, vector<92x64xbf16> -> vector<92x128xbf16>
    %c0_37 = arith.constant 0 : index
    %c128 = arith.constant 128 : index
    %40 = vector.load %arg10[%c0_37, %c128] : memref<92x1600xbf16, #tpu.memory_space<vmem>>, vector<92x128xbf16>
    tpu.vector_store %arg10[%c0_37, %c128], %39 {strides = array<i32>} : memref<92x1600xbf16, #tpu.memory_space<vmem>>, vector<92x128xbf16>,
    %c4_38 = arith.constant 4 : index
    %c0_39 = arith.constant 0 : index
    %41 = vector.load %arg8[%c4_38, %c0_39] : memref<144x64xbf16, #tpu.memory_space<vmem>>, vector<92x64xbf16>
    %c12 = arith.constant 12 : index
    %c0_40 = arith.constant 0 : index
    %42 = vector.load %arg8[%c12, %c0_40] : memref<144x64xbf16, #tpu.memory_space<vmem>>, vector<92x64xbf16>
    %43 = tpu.concatenate %41, %42 in 1 : vector<92x64xbf16>, vector<92x64xbf16> -> vector<92x128xbf16>
    %c0_41 = arith.constant 0 : index
    %c256 = arith.constant 256 : index
    %44 = vector.load %arg10[%c0_41, %c256] : memref<92x1600xbf16, #tpu.memory_space<vmem>>, vector<92x128xbf16>
    tpu.vector_store %arg10[%c0_41, %c256], %43 {strides = array<i32>} : memref<92x1600xbf16, #tpu.memory_space<vmem>>, vector<92x128xbf16>,
    %c13 = arith.constant 13 : index
    %c0_42 = arith.constant 0 : index
    %45 = vector.load %arg8[%c13, %c0_42] : memref<144x64xbf16, #tpu.memory_space<vmem>>, vector<92x64xbf16>
    %c14 = arith.constant 14 : index
    %c0_43 = arith.constant 0 : index
    %46 = vector.load %arg8[%c14, %c0_43] : memref<144x64xbf16, #tpu.memory_space<vmem>>, vector<92x64xbf16>
    %47 = tpu.concatenate %45, %46 in 1 : vector<92x64xbf16>, vector<92x64xbf16> -> vector<92x128xbf16>
    %c0_44 = arith.constant 0 : index
    %c384 = arith.constant 384 : index
    %48 = vector.load %arg10[%c0_44, %c384] : memref<92x1600xbf16, #tpu.memory_space<vmem>>, vector<92x128xbf16>
    tpu.vector_store %arg10[%c0_44, %c384], %47 {strides = array<i32>} : memref<92x1600xbf16, #tpu.memory_space<vmem>>, vector<92x128xbf16>,
    %c15 = arith.constant 15 : index
    %c0_45 = arith.constant 0 : index
    %49 = vector.load %arg8[%c15, %c0_45] : memref<144x64xbf16, #tpu.memory_space<vmem>>, vector<92x64xbf16>
    %c16 = arith.constant 16 : index
    %c0_46 = arith.constant 0 : index
    %50 = vector.load %arg8[%c16, %c0_46] : memref<144x64xbf16, #tpu.memory_space<vmem>>, vector<92x64xbf16>
    %51 = tpu.concatenate %49, %50 in 1 : vector<92x64xbf16>, vector<92x64xbf16> -> vector<92x128xbf16>
    %c0_47 = arith.constant 0 : index
    %c512 = arith.constant 512 : index
    %52 = vector.load %arg10[%c0_47, %c512] : memref<92x1600xbf16, #tpu.memory_space<vmem>>, vector<92x128xbf16>
    tpu.vector_store %arg10[%c0_47, %c512], %51 {strides = array<i32>} : memref<92x1600xbf16, #tpu.memory_space<vmem>>, vector<92x128xbf16>,
    %c24 = arith.constant 24 : index
    %c0_48 = arith.constant 0 : index
    %53 = vector.load %arg8[%c24, %c0_48] : memref<144x64xbf16, #tpu.memory_space<vmem>>, vector<92x64xbf16>
    %c25 = arith.constant 25 : index
    %c0_49 = arith.constant 0 : index
    %54 = vector.load %arg8[%c25, %c0_49] : memref<144x64xbf16, #tpu.memory_space<vmem>>, vector<92x64xbf16>
    %55 = tpu.concatenate %53, %54 in 1 : vector<92x64xbf16>, vector<92x64xbf16> -> vector<92x128xbf16>
    %c0_50 = arith.constant 0 : index
    %c640 = arith.constant 640 : index
    %56 = vector.load %arg10[%c0_50, %c640] : memref<92x1600xbf16, #tpu.memory_space<vmem>>, vector<92x128xbf16>
    tpu.vector_store %arg10[%c0_50, %c640], %55 {strides = array<i32>} : memref<92x1600xbf16, #tpu.memory_space<vmem>>, vector<92x128xbf16>,
    %c26_51 = arith.constant 26 : index
    %c0_52 = arith.constant 0 : index
    %57 = vector.load %arg8[%c26_51, %c0_52] : memref<144x64xbf16, #tpu.memory_space<vmem>>, vector<92x64xbf16>
    %c27 = arith.constant 27 : index
    %c0_53 = arith.constant 0 : index
    %58 = vector.load %arg8[%c27, %c0_53] : memref<144x64xbf16, #tpu.memory_space<vmem>>, vector<92x64xbf16>
    %59 = tpu.concatenate %57, %58 in 1 : vector<92x64xbf16>, vector<92x64xbf16> -> vector<92x128xbf16>
    %c0_54 = arith.constant 0 : index
    %c768 = arith.constant 768 : index
    %60 = vector.load %arg10[%c0_54, %c768] : memref<92x1600xbf16, #tpu.memory_space<vmem>>, vector<92x128xbf16>
    tpu.vector_store %arg10[%c0_54, %c768], %59 {strides = array<i32>} : memref<92x1600xbf16, #tpu.memory_space<vmem>>, vector<92x128xbf16>,
    %c28 = arith.constant 28 : index
    %c0_55 = arith.constant 0 : index
    %61 = vector.load %arg8[%c28, %c0_55] : memref<144x64xbf16, #tpu.memory_space<vmem>>, vector<92x64xbf16>
    %c36 = arith.constant 36 : index
    %c0_56 = arith.constant 0 : index
    %62 = vector.load %arg8[%c36, %c0_56] : memref<144x64xbf16, #tpu.memory_space<vmem>>, vector<92x64xbf16>
    %63 = tpu.concatenate %61, %62 in 1 : vector<92x64xbf16>, vector<92x64xbf16> -> vector<92x128xbf16>
    %c0_57 = arith.constant 0 : index
    %c896 = arith.constant 896 : index
    %64 = vector.load %arg10[%c0_57, %c896] : memref<92x1600xbf16, #tpu.memory_space<vmem>>, vector<92x128xbf16>
    tpu.vector_store %arg10[%c0_57, %c896], %63 {strides = array<i32>} : memref<92x1600xbf16, #tpu.memory_space<vmem>>, vector<92x128xbf16>,
    %c37 = arith.constant 37 : index
    %c0_58 = arith.constant 0 : index
    %65 = vector.load %arg8[%c37, %c0_58] : memref<144x64xbf16, #tpu.memory_space<vmem>>, vector<92x64xbf16>
    %c38 = arith.constant 38 : index
    %c0_59 = arith.constant 0 : index
    %66 = vector.load %arg8[%c38, %c0_59] : memref<144x64xbf16, #tpu.memory_space<vmem>>, vector<92x64xbf16>
    %67 = tpu.concatenate %65, %66 in 1 : vector<92x64xbf16>, vector<92x64xbf16> -> vector<92x128xbf16>
    %c0_60 = arith.constant 0 : index
    %c1024 = arith.constant 1024 : index
    %68 = vector.load %arg10[%c0_60, %c1024] : memref<92x1600xbf16, #tpu.memory_space<vmem>>, vector<92x128xbf16>
    tpu.vector_store %arg10[%c0_60, %c1024], %67 {strides = array<i32>} : memref<92x1600xbf16, #tpu.memory_space<vmem>>, vector<92x128xbf16>,
    %c39 = arith.constant 39 : index
    %c0_61 = arith.constant 0 : index
    %69 = vector.load %arg8[%c39, %c0_61] : memref<144x64xbf16, #tpu.memory_space<vmem>>, vector<92x64xbf16>
    %c40 = arith.constant 40 : index
    %c0_62 = arith.constant 0 : index
    %70 = vector.load %arg8[%c40, %c0_62] : memref<144x64xbf16, #tpu.memory_space<vmem>>, vector<92x64xbf16>
    %71 = tpu.concatenate %69, %70 in 1 : vector<92x64xbf16>, vector<92x64xbf16> -> vector<92x128xbf16>
    %c0_63 = arith.constant 0 : index
    %c1152 = arith.constant 1152 : index
    %72 = vector.load %arg10[%c0_63, %c1152] : memref<92x1600xbf16, #tpu.memory_space<vmem>>, vector<92x128xbf16>
    tpu.vector_store %arg10[%c0_63, %c1152], %71 {strides = array<i32>} : memref<92x1600xbf16, #tpu.memory_space<vmem>>, vector<92x128xbf16>,
    %c48 = arith.constant 48 : index
    %c0_64 = arith.constant 0 : index
    %73 = vector.load %arg8[%c48, %c0_64] : memref<144x64xbf16, #tpu.memory_space<vmem>>, vector<92x64xbf16>
    %c49 = arith.constant 49 : index
    %c0_65 = arith.constant 0 : index
    %74 = vector.load %arg8[%c49, %c0_65] : memref<144x64xbf16, #tpu.memory_space<vmem>>, vector<92x64xbf16>
    %75 = tpu.concatenate %73, %74 in 1 : vector<92x64xbf16>, vector<92x64xbf16> -> vector<92x128xbf16>
    %c0_66 = arith.constant 0 : index
    %c1280 = arith.constant 1280 : index
    %76 = vector.load %arg10[%c0_66, %c1280] : memref<92x1600xbf16, #tpu.memory_space<vmem>>, vector<92x128xbf16>
    tpu.vector_store %arg10[%c0_66, %c1280], %75 {strides = array<i32>} : memref<92x1600xbf16, #tpu.memory_space<vmem>>, vector<92x128xbf16>,
    %c50 = arith.constant 50 : index
    %c0_67 = arith.constant 0 : index
    %77 = vector.load %arg8[%c50, %c0_67] : memref<144x64xbf16, #tpu.memory_space<vmem>>, vector<92x64xbf16>
    %c51 = arith.constant 51 : index
    %c0_68 = arith.constant 0 : index
    %78 = vector.load %arg8[%c51, %c0_68] : memref<144x64xbf16, #tpu.memory_space<vmem>>, vector<92x64xbf16>
    %79 = tpu.concatenate %77, %78 in 1 : vector<92x64xbf16>, vector<92x64xbf16> -> vector<92x128xbf16>
    %c0_69 = arith.constant 0 : index
    %c1408 = arith.constant 1408 : index
    %80 = vector.load %arg10[%c0_69, %c1408] : memref<92x1600xbf16, #tpu.memory_space<vmem>>, vector<92x128xbf16>
    tpu.vector_store %arg10[%c0_69, %c1408], %79 {strides = array<i32>} : memref<92x1600xbf16, #tpu.memory_space<vmem>>, vector<92x128xbf16>,
    %c52 = arith.constant 52 : index
    %c0_70 = arith.constant 0 : index
    %81 = vector.load %arg8[%c52, %c0_70] : memref<144x64xbf16, #tpu.memory_space<vmem>>, vector<92x64xbf16>
    %c0_71 = arith.constant 0 : index
    %c1536 = arith.constant 1536 : index
    %82 = vector.load %arg10[%c0_71, %c1536] : memref<92x1600xbf16, #tpu.memory_space<vmem>>, vector<92x64xbf16>
    tpu.vector_store %arg10[%c0_71, %c1536], %81 {strides = array<i32>} : memref<92x1600xbf16, #tpu.memory_space<vmem>>, vector<92x64xbf16>,
    %c0_72 = arith.constant 0 : index
    %c0_73 = arith.constant 0 : index
    %83 = vector.load %arg10[%c0_72, %c0_73] : memref<92x1600xbf16, #tpu.memory_space<vmem>>, vector<92x1600xbf16>
    %c0_74 = arith.constant 0 : index
    %c0_75 = arith.constant 0 : index
    %84 = vector.load %arg3[%c0_74, %c0_75] : memref<1600x128xbf16, #tpu.memory_space<vmem>>, vector<1600x128xbf16>
    %cst_76 = arith.constant dense<0.000000e+00> : vector<92x128xf32>
    %85 = tpu.matmul %83, %84, %cst_76 {dimension_numbers = #tpu.dot_dimension_numbers<[1], [0], [0], [1], [0, 0, 1, 1], [], []>} : vector<92x1600xbf16>, vector<1600x128xbf16>, vector<92x128xf32> -> vector<92x128xf32>
    %86 = vector.broadcast %2 : vector<1x128xf32> to vector<92x128xf32>
    %87 = arith.mulf %85, %86 : vector<92x128xf32>
    %88 = vector.broadcast %3 : vector<1x128xf32> to vector<92x128xf32>
    %89 = arith.addf %87, %88 : vector<92x128xf32>
    %cst_77 = arith.constant 0.000000e+00 : f32
    %90 = vector.broadcast %cst_77 : f32 to vector<92x128xf32>
    %91 = arith.cmpf oge, %89, %90 : vector<92x128xf32>
    %cst_78 = arith.constant 0.00999999977 : f32
    %92 = vector.broadcast %cst_78 : f32 to vector<92x128xf32>
    %93 = arith.mulf %92, %89 : vector<92x128xf32>
    %94 = arith.select %91, %89, %93 : vector<92x128xi1>, vector<92x128xf32>
    %c0_79 = arith.constant 0 : index
    %c0_80 = arith.constant 0 : index
    %95 = vector.load %arg1[%c0_79, %c0_80] : memref<96x1xf32, #tpu.memory_space<vmem>>, vector<92x1xf32>
    %96 = vector.broadcast %95 : vector<92x1xf32> to vector<92x128xf32>
    %97 = arith.mulf %94, %96 : vector<92x128xf32>
    %98 = arith.truncf %97 : vector<92x128xf32> to vector<92x128xbf16>
    %c13_81 = arith.constant 13 : index
    %c0_82 = arith.constant 0 : index
    %99 = vector.load %arg9[%c13_81, %c0_82] : memref<120x128xbf16, #tpu.memory_space<vmem>>, vector<92x128xbf16>
    tpu.vector_store %arg9[%c13_81, %c0_82], %98 {strides = array<i32>} : memref<120x128xbf16, #tpu.memory_space<vmem>>, vector<92x128xbf16>,
    %c0_83 = arith.constant 0 : index
    %c0_84 = arith.constant 0 : index
    %100 = vector.load %arg9[%c0_83, %c0_84] : memref<120x128xbf16, #tpu.memory_space<vmem>>, vector<66x128xbf16>
    %c0_85 = arith.constant 0 : index
    %c0_86 = arith.constant 0 : index
    %101 = vector.load %arg11[%c0_85, %c0_86] : memref<66x3200xbf16, #tpu.memory_space<vmem>>, vector<66x128xbf16>
    tpu.vector_store %arg11[%c0_85, %c0_86], %100 {strides = array<i32>} : memref<66x3200xbf16, #tpu.memory_space<vmem>>, vector<66x128xbf16>,
    %c1_87 = arith.constant 1 : index
    %c0_88 = arith.constant 0 : index
    %102 = vector.load %arg9[%c1_87, %c0_88] : memref<120x128xbf16, #tpu.memory_space<vmem>>, vector<66x128xbf16>
    %c0_89 = arith.constant 0 : index
    %c128_90 = arith.constant 128 : index
    %103 = vector.load %arg11[%c0_89, %c128_90] : memref<66x3200xbf16, #tpu.memory_space<vmem>>, vector<66x128xbf16>
    tpu.vector_store %arg11[%c0_89, %c128_90], %102 {strides = array<i32>} : memref<66x3200xbf16, #tpu.memory_space<vmem>>, vector<66x128xbf16>,
    %c2_91 = arith.constant 2 : index
    %c0_92 = arith.constant 0 : index
    %104 = vector.load %arg9[%c2_91, %c0_92] : memref<120x128xbf16, #tpu.memory_space<vmem>>, vector<66x128xbf16>
    %c0_93 = arith.constant 0 : index
    %c256_94 = arith.constant 256 : index
    %105 = vector.load %arg11[%c0_93, %c256_94] : memref<66x3200xbf16, #tpu.memory_space<vmem>>, vector<66x128xbf16>
    tpu.vector_store %arg11[%c0_93, %c256_94], %104 {strides = array<i32>} : memref<66x3200xbf16, #tpu.memory_space<vmem>>, vector<66x128xbf16>,
    %c3_95 = arith.constant 3 : index
    %c0_96 = arith.constant 0 : index
    %106 = vector.load %arg9[%c3_95, %c0_96] : memref<120x128xbf16, #tpu.memory_space<vmem>>, vector<66x128xbf16>
    %c0_97 = arith.constant 0 : index
    %c384_98 = arith.constant 384 : index
    %107 = vector.load %arg11[%c0_97, %c384_98] : memref<66x3200xbf16, #tpu.memory_space<vmem>>, vector<66x128xbf16>
    tpu.vector_store %arg11[%c0_97, %c384_98], %106 {strides = array<i32>} : memref<66x3200xbf16, #tpu.memory_space<vmem>>, vector<66x128xbf16>,
    %c4_99 = arith.constant 4 : index
    %c0_100 = arith.constant 0 : index
    %108 = vector.load %arg9[%c4_99, %c0_100] : memref<120x128xbf16, #tpu.memory_space<vmem>>, vector<66x128xbf16>
    %c0_101 = arith.constant 0 : index
    %c512_102 = arith.constant 512 : index
    %109 = vector.load %arg11[%c0_101, %c512_102] : memref<66x3200xbf16, #tpu.memory_space<vmem>>, vector<66x128xbf16>
    tpu.vector_store %arg11[%c0_101, %c512_102], %108 {strides = array<i32>} : memref<66x3200xbf16, #tpu.memory_space<vmem>>, vector<66x128xbf16>,
    %c12_103 = arith.constant 12 : index
    %c0_104 = arith.constant 0 : index
    %110 = vector.load %arg9[%c12_103, %c0_104] : memref<120x128xbf16, #tpu.memory_space<vmem>>, vector<66x128xbf16>
    %c0_105 = arith.constant 0 : index
    %c640_106 = arith.constant 640 : index
    %111 = vector.load %arg11[%c0_105, %c640_106] : memref<66x3200xbf16, #tpu.memory_space<vmem>>, vector<66x128xbf16>
    tpu.vector_store %arg11[%c0_105, %c640_106], %110 {strides = array<i32>} : memref<66x3200xbf16, #tpu.memory_space<vmem>>, vector<66x128xbf16>,
    %c13_107 = arith.constant 13 : index
    %c0_108 = arith.constant 0 : index
    %112 = vector.load %arg9[%c13_107, %c0_108] : memref<120x128xbf16, #tpu.memory_space<vmem>>, vector<66x128xbf16>
    %c0_109 = arith.constant 0 : index
    %c768_110 = arith.constant 768 : index
    %113 = vector.load %arg11[%c0_109, %c768_110] : memref<66x3200xbf16, #tpu.memory_space<vmem>>, vector<66x128xbf16>
    tpu.vector_store %arg11[%c0_109, %c768_110], %112 {strides = array<i32>} : memref<66x3200xbf16, #tpu.memory_space<vmem>>, vector<66x128xbf16>,
    %c14_111 = arith.constant 14 : index
    %c0_112 = arith.constant 0 : index
    %114 = vector.load %arg9[%c14_111, %c0_112] : memref<120x128xbf16, #tpu.memory_space<vmem>>, vector<66x128xbf16>
    %c0_113 = arith.constant 0 : index
    %c896_114 = arith.constant 896 : index
    %115 = vector.load %arg11[%c0_113, %c896_114] : memref<66x3200xbf16, #tpu.memory_space<vmem>>, vector<66x128xbf16>
    tpu.vector_store %arg11[%c0_113, %c896_114], %114 {strides = array<i32>} : memref<66x3200xbf16, #tpu.memory_space<vmem>>, vector<66x128xbf16>,
    %c15_115 = arith.constant 15 : index
    %c0_116 = arith.constant 0 : index
    %116 = vector.load %arg9[%c15_115, %c0_116] : memref<120x128xbf16, #tpu.memory_space<vmem>>, vector<66x128xbf16>
    %c0_117 = arith.constant 0 : index
    %c1024_118 = arith.constant 1024 : index
    %117 = vector.load %arg11[%c0_117, %c1024_118] : memref<66x3200xbf16, #tpu.memory_space<vmem>>, vector<66x128xbf16>
    tpu.vector_store %arg11[%c0_117, %c1024_118], %116 {strides = array<i32>} : memref<66x3200xbf16, #tpu.memory_space<vmem>>, vector<66x128xbf16>,
    %c16_119 = arith.constant 16 : index
    %c0_120 = arith.constant 0 : index
    %118 = vector.load %arg9[%c16_119, %c0_120] : memref<120x128xbf16, #tpu.memory_space<vmem>>, vector<66x128xbf16>
    %c0_121 = arith.constant 0 : index
    %c1152_122 = arith.constant 1152 : index
    %119 = vector.load %arg11[%c0_121, %c1152_122] : memref<66x3200xbf16, #tpu.memory_space<vmem>>, vector<66x128xbf16>
    tpu.vector_store %arg11[%c0_121, %c1152_122], %118 {strides = array<i32>} : memref<66x3200xbf16, #tpu.memory_space<vmem>>, vector<66x128xbf16>,
    %c24_123 = arith.constant 24 : index
    %c0_124 = arith.constant 0 : index
    %120 = vector.load %arg9[%c24_123, %c0_124] : memref<120x128xbf16, #tpu.memory_space<vmem>>, vector<66x128xbf16>
    %c0_125 = arith.constant 0 : index
    %c1280_126 = arith.constant 1280 : index
    %121 = vector.load %arg11[%c0_125, %c1280_126] : memref<66x3200xbf16, #tpu.memory_space<vmem>>, vector<66x128xbf16>
    tpu.vector_store %arg11[%c0_125, %c1280_126], %120 {strides = array<i32>} : memref<66x3200xbf16, #tpu.memory_space<vmem>>, vector<66x128xbf16>,
    %c25_127 = arith.constant 25 : index
    %c0_128 = arith.constant 0 : index
    %122 = vector.load %arg9[%c25_127, %c0_128] : memref<120x128xbf16, #tpu.memory_space<vmem>>, vector<66x128xbf16>
    %c0_129 = arith.constant 0 : index
    %c1408_130 = arith.constant 1408 : index
    %123 = vector.load %arg11[%c0_129, %c1408_130] : memref<66x3200xbf16, #tpu.memory_space<vmem>>, vector<66x128xbf16>
    tpu.vector_store %arg11[%c0_129, %c1408_130], %122 {strides = array<i32>} : memref<66x3200xbf16, #tpu.memory_space<vmem>>, vector<66x128xbf16>,
    %c26_131 = arith.constant 26 : index
    %c0_132 = arith.constant 0 : index
    %124 = vector.load %arg9[%c26_131, %c0_132] : memref<120x128xbf16, #tpu.memory_space<vmem>>, vector<66x128xbf16>
    %c0_133 = arith.constant 0 : index
    %c1536_134 = arith.constant 1536 : index
    %125 = vector.load %arg11[%c0_133, %c1536_134] : memref<66x3200xbf16, #tpu.memory_space<vmem>>, vector<66x128xbf16>
    tpu.vector_store %arg11[%c0_133, %c1536_134], %124 {strides = array<i32>} : memref<66x3200xbf16, #tpu.memory_space<vmem>>, vector<66x128xbf16>,
    %c27_135 = arith.constant 27 : index
    %c0_136 = arith.constant 0 : index
    %126 = vector.load %arg9[%c27_135, %c0_136] : memref<120x128xbf16, #tpu.memory_space<vmem>>, vector<66x128xbf16>
    %c0_137 = arith.constant 0 : index
    %c1664 = arith.constant 1664 : index
    %127 = vector.load %arg11[%c0_137, %c1664] : memref<66x3200xbf16, #tpu.memory_space<vmem>>, vector<66x128xbf16>
    tpu.vector_store %arg11[%c0_137, %c1664], %126 {strides = array<i32>} : memref<66x3200xbf16, #tpu.memory_space<vmem>>, vector<66x128xbf16>,
    %c28_138 = arith.constant 28 : index
    %c0_139 = arith.constant 0 : index
    %128 = vector.load %arg9[%c28_138, %c0_139] : memref<120x128xbf16, #tpu.memory_space<vmem>>, vector<66x128xbf16>
    %c0_140 = arith.constant 0 : index
    %c1792 = arith.constant 1792 : index
    %129 = vector.load %arg11[%c0_140, %c1792] : memref<66x3200xbf16, #tpu.memory_space<vmem>>, vector<66x128xbf16>
    tpu.vector_store %arg11[%c0_140, %c1792], %128 {strides = array<i32>} : memref<66x3200xbf16, #tpu.memory_space<vmem>>, vector<66x128xbf16>,
    %c36_141 = arith.constant 36 : index
    %c0_142 = arith.constant 0 : index
    %130 = vector.load %arg9[%c36_141, %c0_142] : memref<120x128xbf16, #tpu.memory_space<vmem>>, vector<66x128xbf16>
    %c0_143 = arith.constant 0 : index
    %c1920 = arith.constant 1920 : index
    %131 = vector.load %arg11[%c0_143, %c1920] : memref<66x3200xbf16, #tpu.memory_space<vmem>>, vector<66x128xbf16>
    tpu.vector_store %arg11[%c0_143, %c1920], %130 {strides = array<i32>} : memref<66x3200xbf16, #tpu.memory_space<vmem>>, vector<66x128xbf16>,
    %c37_144 = arith.constant 37 : index
    %c0_145 = arith.constant 0 : index
    %132 = vector.load %arg9[%c37_144, %c0_145] : memref<120x128xbf16, #tpu.memory_space<vmem>>, vector<66x128xbf16>
    %c0_146 = arith.constant 0 : index
    %c2048 = arith.constant 2048 : index
    %133 = vector.load %arg11[%c0_146, %c2048] : memref<66x3200xbf16, #tpu.memory_space<vmem>>, vector<66x128xbf16>
    tpu.vector_store %arg11[%c0_146, %c2048], %132 {strides = array<i32>} : memref<66x3200xbf16, #tpu.memory_space<vmem>>, vector<66x128xbf16>,
    %c38_147 = arith.constant 38 : index
    %c0_148 = arith.constant 0 : index
    %134 = vector.load %arg9[%c38_147, %c0_148] : memref<120x128xbf16, #tpu.memory_space<vmem>>, vector<66x128xbf16>
    %c0_149 = arith.constant 0 : index
    %c2176 = arith.constant 2176 : index
    %135 = vector.load %arg11[%c0_149, %c2176] : memref<66x3200xbf16, #tpu.memory_space<vmem>>, vector<66x128xbf16>
    tpu.vector_store %arg11[%c0_149, %c2176], %134 {strides = array<i32>} : memref<66x3200xbf16, #tpu.memory_space<vmem>>, vector<66x128xbf16>,
    %c39_150 = arith.constant 39 : index
    %c0_151 = arith.constant 0 : index
    %136 = vector.load %arg9[%c39_150, %c0_151] : memref<120x128xbf16, #tpu.memory_space<vmem>>, vector<66x128xbf16>
    %c0_152 = arith.constant 0 : index
    %c2304 = arith.constant 2304 : index
    %137 = vector.load %arg11[%c0_152, %c2304] : memref<66x3200xbf16, #tpu.memory_space<vmem>>, vector<66x128xbf16>
    tpu.vector_store %arg11[%c0_152, %c2304], %136 {strides = array<i32>} : memref<66x3200xbf16, #tpu.memory_space<vmem>>, vector<66x128xbf16>,
    %c40_153 = arith.constant 40 : index
    %c0_154 = arith.constant 0 : index
    %138 = vector.load %arg9[%c40_153, %c0_154] : memref<120x128xbf16, #tpu.memory_space<vmem>>, vector<66x128xbf16>
    %c0_155 = arith.constant 0 : index
    %c2432 = arith.constant 2432 : index
    %139 = vector.load %arg11[%c0_155, %c2432] : memref<66x3200xbf16, #tpu.memory_space<vmem>>, vector<66x128xbf16>
    tpu.vector_store %arg11[%c0_155, %c2432], %138 {strides = array<i32>} : memref<66x3200xbf16, #tpu.memory_space<vmem>>, vector<66x128xbf16>,
    %c48_156 = arith.constant 48 : index
    %c0_157 = arith.constant 0 : index
    %140 = vector.load %arg9[%c48_156, %c0_157] : memref<120x128xbf16, #tpu.memory_space<vmem>>, vector<66x128xbf16>
    %c0_158 = arith.constant 0 : index
    %c2560 = arith.constant 2560 : index
    %141 = vector.load %arg11[%c0_158, %c2560] : memref<66x3200xbf16, #tpu.memory_space<vmem>>, vector<66x128xbf16>
    tpu.vector_store %arg11[%c0_158, %c2560], %140 {strides = array<i32>} : memref<66x3200xbf16, #tpu.memory_space<vmem>>, vector<66x128xbf16>,
    %c49_159 = arith.constant 49 : index
    %c0_160 = arith.constant 0 : index
    %142 = vector.load %arg9[%c49_159, %c0_160] : memref<120x128xbf16, #tpu.memory_space<vmem>>, vector<66x128xbf16>
    %c0_161 = arith.constant 0 : index
    %c2688 = arith.constant 2688 : index
    %143 = vector.load %arg11[%c0_161, %c2688] : memref<66x3200xbf16, #tpu.memory_space<vmem>>, vector<66x128xbf16>
    tpu.vector_store %arg11[%c0_161, %c2688], %142 {strides = array<i32>} : memref<66x3200xbf16, #tpu.memory_space<vmem>>, vector<66x128xbf16>,
    %c50_162 = arith.constant 50 : index
    %c0_163 = arith.constant 0 : index
    %144 = vector.load %arg9[%c50_162, %c0_163] : memref<120x128xbf16, #tpu.memory_space<vmem>>, vector<66x128xbf16>
    %c0_164 = arith.constant 0 : index
    %c2816 = arith.constant 2816 : index
    %145 = vector.load %arg11[%c0_164, %c2816] : memref<66x3200xbf16, #tpu.memory_space<vmem>>, vector<66x128xbf16>
    tpu.vector_store %arg11[%c0_164, %c2816], %144 {strides = array<i32>} : memref<66x3200xbf16, #tpu.memory_space<vmem>>, vector<66x128xbf16>,
    %c51_165 = arith.constant 51 : index
    %c0_166 = arith.constant 0 : index
    %146 = vector.load %arg9[%c51_165, %c0_166] : memref<120x128xbf16, #tpu.memory_space<vmem>>, vector<66x128xbf16>
    %c0_167 = arith.constant 0 : index
    %c2944 = arith.constant 2944 : index
    %147 = vector.load %arg11[%c0_167, %c2944] : memref<66x3200xbf16, #tpu.memory_space<vmem>>, vector<66x128xbf16>
    tpu.vector_store %arg11[%c0_167, %c2944], %146 {strides = array<i32>} : memref<66x3200xbf16, #tpu.memory_space<vmem>>, vector<66x128xbf16>,
    %c52_168 = arith.constant 52 : index
    %c0_169 = arith.constant 0 : index
    %148 = vector.load %arg9[%c52_168, %c0_169] : memref<120x128xbf16, #tpu.memory_space<vmem>>, vector<66x128xbf16>
    %c0_170 = arith.constant 0 : index
    %c3072 = arith.constant 3072 : index
    %149 = vector.load %arg11[%c0_170, %c3072] : memref<66x3200xbf16, #tpu.memory_space<vmem>>, vector<66x128xbf16>
    tpu.vector_store %arg11[%c0_170, %c3072], %148 {strides = array<i32>} : memref<66x3200xbf16, #tpu.memory_space<vmem>>, vector<66x128xbf16>,
    %c0_171 = arith.constant 0 : index
    %c0_172 = arith.constant 0 : index
    %150 = vector.load %arg11[%c0_171, %c0_172] : memref<66x3200xbf16, #tpu.memory_space<vmem>>, vector<66x3200xbf16>
    %c0_173 = arith.constant 0 : index
    %c0_174 = arith.constant 0 : index
    %151 = vector.load %arg4[%c0_173, %c0_174] : memref<3200x128xbf16, #tpu.memory_space<vmem>>, vector<3200x128xbf16>
    %cst_175 = arith.constant dense<0.000000e+00> : vector<66x128xf32>
    %152 = tpu.matmul %150, %151, %cst_175 {dimension_numbers = #tpu.dot_dimension_numbers<[1], [0], [0], [1], [0, 0, 1, 1], [], []>} : vector<66x3200xbf16>, vector<3200x128xbf16>, vector<66x128xf32> -> vector<66x128xf32>
    %153 = vector.broadcast %4 : vector<1x128xf32> to vector<66x128xf32>
    %154 = arith.mulf %152, %153 : vector<66x128xf32>
    %155 = vector.broadcast %5 : vector<1x128xf32> to vector<66x128xf32>
    %156 = arith.addf %154, %155 : vector<66x128xf32>
    %cst_176 = arith.constant 0.000000e+00 : f32
    %157 = vector.broadcast %cst_176 : f32 to vector<66x128xf32>
    %158 = arith.cmpf oge, %156, %157 : vector<66x128xf32>
    %cst_177 = arith.constant 0.00999999977 : f32
    %159 = vector.broadcast %cst_177 : f32 to vector<66x128xf32>
    %160 = arith.mulf %159, %156 : vector<66x128xf32>
    %161 = arith.select %158, %156, %160 : vector<66x128xi1>, vector<66x128xf32>
    %cst_178 = arith.constant dense<0.000000e+00> : vector<66x3xf32>
    %162 = tpu.matmul %161, %11, %cst_178 {dimension_numbers = #tpu.dot_dimension_numbers<[1], [1], [0], [0], [0, 0, 1, 0], [], []>} : vector<66x128xf32>, vector<3x128xf32>, vector<66x3xf32> -> vector<66x3xf32>
    %163 = vector.broadcast %6 : vector<1x3xf32> to vector<66x3xf32>
    %164 = arith.mulf %162, %163 : vector<66x3xf32>
    %165 = vector.broadcast %7 : vector<1x3xf32> to vector<66x3xf32>
    %166 = arith.addf %164, %165 : vector<66x3xf32>
    %cst_179 = arith.constant 0.000000e+00 : f32
    %167 = vector.broadcast %cst_179 : f32 to vector<66x3xf32>
    %168 = arith.cmpf oge, %166, %167 : vector<66x3xf32>
    %cst_180 = arith.constant 0.00999999977 : f32
    %169 = vector.broadcast %cst_180 : f32 to vector<66x3xf32>
    %170 = arith.mulf %169, %166 : vector<66x3xf32>
    %171 = arith.select %168, %166, %170 : vector<66x3xi1>, vector<66x3xf32>
    %172 = vector.extract_strided_slice %171 {offsets = [0, 0], sizes = [66, 1], strides = [1, 1]} : vector<66x3xf32> to vector<66x1xf32>
    %c0_181 = arith.constant 0 : index
    %c0_182 = arith.constant 0 : index
    %c0_183 = arith.constant 0 : index
    %173 = vector.load %arg6[%c0_181, %c0_182, %c0_183] : memref<3x66x32xf32, #tpu.memory_space<vmem>>, vector<1x66x32xf32>
    %174 = vector.shape_cast %173 : vector<1x66x32xf32> to vector<66x32xf32>
    %175 = vector.broadcast %172 : vector<66x1xf32> to vector<66x32xf32>
    %176 = arith.mulf %175, %174 : vector<66x32xf32>
    %177 = vector.extract_strided_slice %171 {offsets = [0, 1], sizes = [66, 1], strides = [1, 1]} : vector<66x3xf32> to vector<66x1xf32>
    %c1_184 = arith.constant 1 : index
    %c0_185 = arith.constant 0 : index
    %c0_186 = arith.constant 0 : index
    %178 = vector.load %arg6[%c1_184, %c0_185, %c0_186] : memref<3x66x32xf32, #tpu.memory_space<vmem>>, vector<1x66x32xf32>
    %179 = vector.shape_cast %178 : vector<1x66x32xf32> to vector<66x32xf32>
    %180 = vector.broadcast %177 : vector<66x1xf32> to vector<66x32xf32>
    %181 = arith.mulf %180, %179 : vector<66x32xf32>
    %182 = arith.addf %176, %181 : vector<66x32xf32>
    %183 = vector.extract_strided_slice %171 {offsets = [0, 2], sizes = [66, 1], strides = [1, 1]} : vector<66x3xf32> to vector<66x1xf32>
    %c2_187 = arith.constant 2 : index
    %c0_188 = arith.constant 0 : index
    %c0_189 = arith.constant 0 : index
    %184 = vector.load %arg6[%c2_187, %c0_188, %c0_189] : memref<3x66x32xf32, #tpu.memory_space<vmem>>, vector<1x66x32xf32>
    %185 = vector.shape_cast %184 : vector<1x66x32xf32> to vector<66x32xf32>
    %186 = vector.broadcast %183 : vector<66x1xf32> to vector<66x32xf32>
    %187 = arith.mulf %186, %185 : vector<66x32xf32>
    %188 = arith.addf %182, %187 : vector<66x32xf32>
    %cst_190 = arith.constant dense<0.000000e+00> : vector<32xf32>
    %189 = vector.multi_reduction <add>, %188, %cst_190 [0] : vector<66x32xf32> to vector<32xf32>
    %190 = vector.shape_cast %189 : vector<32xf32> to vector<1x32xf32>
    %191 = arith.addf %8, %190 : vector<1x32xf32>
    %cst_191 = arith.constant 0.000000e+00 : f32
    %192 = vector.broadcast %cst_191 : f32 to vector<1x32xf32>
    %193 = arith.cmpf oge, %191, %192 : vector<1x32xf32>
    %cst_192 = arith.constant 0.00999999977 : f32
    %194 = vector.broadcast %cst_192 : f32 to vector<1x32xf32>
    %195 = arith.mulf %194, %191 : vector<1x32xf32>
    %196 = arith.select %193, %191, %195 : vector<1x32xi1>, vector<1x32xf32>
    %197 = arith.mulf %196, %9 : vector<1x32xf32>
    %cst_193 = arith.constant dense<0.000000e+00> : vector<1xf32>
    %198 = vector.multi_reduction <add>, %197, %cst_193 [1] : vector<1x32xf32> to vector<1xf32>
    %199 = vector.shape_cast %198 : vector<1xf32> to vector<1x1xf32>
    %200 = arith.addf %199, %10 : vector<1x1xf32>
    %c0_194 = arith.constant 0 : index
    %c0_195 = arith.constant 0 : index
    %201 = vector.load %arg7[%c0_194, %c0_195] : memref<1x1xf32, #tpu.memory_space<vmem>>, vector<1x1xf32>
    tpu.vector_store %arg7[%c0_194, %c0_195], %200 {strides = array<i32>} : memref<1x1xf32, #tpu.memory_space<vmem>>, vector<1x1xf32>,
    return
  }
}

</mosaic_0001>

<bundles_post_ra>
// kernel: c4q_forward.1
= control target key start
LH: loop header
LB: loop body
LE: loop exit
PB: predicated region body
PF: predicated region fallthrough
CT: control target
= control target key end

     0   :  { %12 = vsyncpa [#allocation7], 0  ;;  %s17206_s0 = inlined_call_operand.vmem [shape: bf16[96,16], index: 0, kind: input, shape index: {}]   ;;  %s17207_s1 = inlined_call_operand.vmem [shape: f32[96,1], index: 1, kind: input, shape index: {}]   ;;  %s17208_s2 = inlined_call_operand.vmem [shape: bf16[16,64], index: 2, kind: input, shape index: {}]   ;;  %s17209_s3 = inlined_call_operand.hbm [shape: bf16[1600,128], index: 3, kind: input, shape index: {}]   ;;  %s17210_s4 = inlined_call_operand.hbm [shape: bf16[3200,128], index: 4, kind: input, shape index: {}]   ;;  %s17211_s5 = inlined_call_operand.vmem [shape: f32[16,128], index: 5, kind: input, shape index: {}]   ;;  %s17212_s6 = inlined_call_operand.vmem [shape: f32[3,66,32], index: 6, kind: input, shape index: {}]   ;;  %s17213_s7 = inlined_call_operand.hbm [shape: f32[1,1], index: 7, kind: output, shape index: {}]  }
   0x1   :  { %13 = vsyncpa [#allocation10], 0 }
   0x2   :  { %14 = vsyncpa [#allocation8], 0  ;;  %s25_s26 = sshll.u32 %s17209_s3, 4  ;;  %s13858_s27 = smov [#allocation6]   ;;  %s26_s26 = int_to_ptr.hbm [resolvable:$true] %s25_s26 }
   0x3   :  { %s27_s28 = sshll.u32 %s13858_s27, 4  ;;  %s38_s8 = sshll.u32 %s17210_s4, 4  ;;  %s28_s28 = int_to_ptr.vmem [resolvable:$true] %s27_s28  ;;  %s39_s8 = int_to_ptr.hbm [resolvable:$true] %s38_s8 }
   0x4   :  { %s13859_s9 = smov 64   ;;  %s13860_s10 = smov 4  }
   0x5   :  { %33 = dma.hbm_to_vmem [thread:$0]  %s26_s26, 12800, %s28_s28, [#allocation7], %s13859_s9, %s13859_s9, %s13860_s10  }
   0x6   :  { %s13861_s11 = smov [#allocation9]  }
   0x7   :  { %s40_s12 = sshll.u32 %s13861_s11, 4  ;;  %s41_s12 = int_to_ptr.vmem [resolvable:$true] %s40_s12 }
   0x8   :  { %46 = dma.hbm_to_vmem [thread:$0]  %s39_s8, 25600, %s41_s12, [#allocation10], %s13859_s9, %s13859_s9, %s13860_s10  }
   0x9   :  { %13852 = dma.done.wait [#allocation7], 12800  }
   0xa   :  { %13853 = vsyncadd [#allocation7], 4294954496 }
   0xb   :  { %13854 = dma.done.wait [#allocation10], 25600  }
   0xc   :  { %13855 = vsyncadd [#allocation10], 4294941696  ;;  %v17214_v0 = vmov 0   ;;  %v12931_v1 = vld [vmem:[%s17208_s2] sm:$0xff]  ;;  %vm156_vm0 = vcmask 130048   ;;  %v278_v4 = vld [vmem:[%s17207_s1 + $0x10] sm:$0xff] }
   0xd   :  { %13710 = vset.pattern.permute.xlu0 %v17214_v0  ;;  %91 = vst [vmem:[#allocation3] sm:$0xf] %v17214_v0  ;;  %13711 = vset.pattern.permute.xlu1 %v17214_v0  ;;  %v12925_v2 = vld [vmem:[%s17206_s0] sm:$0xff]  ;;  %v277_v5 = vld [vmem:[%s17207_s1 + $0x8] sm:$0xff]  ;;  %v279_v6 = vld [vmem:[%s17207_s1 + $0x18] sm:$0xff]  ;;  %vm72_vm1 = vcmask 519168  }
   0xe   :  { %92 = vst [vmem:[#allocation3 + $0x4] sm:$0xf] %v17214_v0  ;;  %13712 = vset.pattern.permute.xlu2 %v17214_v0  ;;  %v276_v3 = vld [vmem:[%s17207_s1] sm:$0xff]  ;;  %182 = vmatpush.bf16.msra.mxu0 %v12931_v1  ;;  %v12926_v7 = vld [vmem:[%s17206_s0 + $0x8] sm:$0xff]  ;;  %v282_v8 = vld [vmem:[%s17207_s1 + $0x30] sm:$0xff]  ;;  %vm435_vm3 = vcmask 519169  }
   0xf   :  { %93 = vst [vmem:[#allocation3 + $0x8] sm:$0xf] %v17214_v0  ;;  %290 = vperm.xlu0 %13710, %v276_v3   ;;  %300 = vperm.xlu1 %13711, %v278_v4   ;;  %v283_v9 = vld [vmem:[%s17207_s1 + $0x38] sm:$0xff]  ;;  %v284_v10 = vld [vmem:[%s17207_s1 + $0x40] sm:$0xff]  ;;  %v12927_v11 = vld [vmem:[%s17206_s0 + $0x10] sm:$0xff]  ;;  %vm384_vm5 = vcmask 1040384  }
  0x10   :  { %94 = vst [vmem:[#allocation3 + $0xc] sm:$0xf] %v17214_v0  ;;  %v280_v12 = vld [vmem:[%s17207_s1 + $0x20] sm:$0xff]  ;;  %v281_v13 = vld [vmem:[%s17207_s1 + $0x28] sm:$0xff]  ;;  %v12928_v14 = vld [vmem:[%s17206_s0 + $0x18] sm:$0xff]  ;;  %vm385_vm6 = vcmask 1044484  }
  0x11   :  { %95 = vst [vmem:[#allocation3 + $0x10] sm:$0xf] %v17214_v0  ;;  %10795 = vmatmul.msk.bf16.vlgmr.msra.gmra.mxu0 %vm156_vm0, %v12925_v2  ;;  %310 = vperm.xlu2 %13712, %v280_v12   ;;  %v12929_v15 = vld [vmem:[%s17206_s0 + $0x20] sm:$0xff]  ;;  %vm14039_vm7 = vmor %vm384_vm5, %vm385_vm6  ;;  %v17249_v39 = vmov 0  ;;  %vm496_vm9 = vsmask.f32 7424 }
  0x12   :  { %96 = vst [vmem:[#allocation3 + $0x14] sm:$0xf] %v17214_v0  ;;  %v14023_v16 = vld [vmem:[%s17211_s5] ss:$0 sm:$0xff]  ;;  %v14028_v17 = vld [vmem:[%s17211_s5 + $0x1] ss:$0 sm:$0xff] }
  0x13   :  { %97 = vst [vmem:[#allocation3 + $0x18] sm:$0xf] %v17214_v0  ;;  %v17250_v39 = vsel %vm14039_vm7, 4294967295, %v17249_v39  ;;  %vm948_vm13 = vcmask 1041408   ;;  %vm949_vm14 = vcmask 1045508   ;;  %vm556_vm6 = vcmask 523264  }
  0x14   :  { %98 = vst [vmem:[#allocation3 + $0x1c] sm:$0xf] %v17214_v0  ;;  %s10756_s24 = sshll.u32 %s17213_s7, 4  ;;  %s10757_s24 = int_to_ptr.hbm [resolvable:$true] %s10756_s24 }
  0x15   :  { %99 = vst [vmem:[#allocation3 + $0x20] sm:$0xf] %v17214_v0 }
  0x16   :  { %100 = vst [vmem:[#allocation3 + $0x24] sm:$0xf] %v17214_v0 }
  0x17   :  { %101 = vst [vmem:[#allocation3 + $0x28] sm:$0xf] %v17214_v0  ;;  %295 = vperm.xlu0 %13710, %v277_v5   ;;  %305 = vperm.xlu1 %13711, %v279_v6  }
  0x18   :  { %102 = vst [vmem:[#allocation3 + $0x2c] sm:$0xf] %v17214_v0 }
  0x19   :  { %103 = vst [vmem:[#allocation3 + $0x30] sm:$0xf] %v17214_v0  ;;  %315 = vperm.xlu2 %13712, %v281_v13  }
  0x1a   :  { %104 = vst [vmem:[#allocation3 + $0x34] sm:$0xf] %v17214_v0 }
  0x1b   :  { %105 = vst [vmem:[#allocation3 + $0x38] sm:$0xf] %v17214_v0 }
  0x1c   :  { %76 = vst.msk [vmem:[#allocation2 + $0xc] sm:$0xf] %vm72_vm1, %v17214_v0 }
  0x1d   :  { %73 = vst.msk [vmem:[#allocation2] sm:$0xf] %vm72_vm1, %v17214_v0 }
  0x1e   :  { %74 = vst.msk [vmem:[#allocation2 + $0x4] sm:$0xf] %vm72_vm1, %v17214_v0 }
  0x1f   :  { %320 = vperm.xlu0 %13710, %v282_v8   ;;  %325 = vperm.xlu1 %13711, %v283_v9   ;;  %75 = vst.msk [vmem:[#allocation2 + $0x8] sm:$0xf] %vm72_vm1, %v17214_v0 }
  0x20   :  { %77 = vst.msk [vmem:[#allocation2 + $0x10] sm:$0xf] %vm72_vm1, %v17214_v0 }
  0x21   :  { %10796 = vmatmul.msk.bf16.gmra.mxu0 %vm156_vm0, %v12926_v7  ;;  %78 = vst.msk [vmem:[#allocation2 + $0x14] sm:$0xf] %vm72_vm1, %v17214_v0 }
  0x22   :  { %79 = vst.msk [vmem:[#allocation2 + $0x18] sm:$0xf] %vm72_vm1, %v17214_v0 }
  0x23   :  { %80 = vst.msk [vmem:[#allocation2 + $0x1c] sm:$0xf] %vm72_vm1, %v17214_v0 }
  0x24   :  { %81 = vst.msk [vmem:[#allocation2 + $0x20] sm:$0xf] %vm72_vm1, %v17214_v0 }
  0x25   :  { %82 = vst.msk [vmem:[#allocation2 + $0x24] sm:$0xf] %vm72_vm1, %v17214_v0  ;;  %v14034_v29 = vld [vmem:[#allocation2] sm:$0xff] }
  0x26   :  { %83 = vst.msk [vmem:[#allocation2 + $0x28] sm:$0xf] %vm72_vm1, %v17214_v0  ;;  %v500_v34 = vshll.u32 %v14034_v29, 16  ;;  %v498_v42 = vshrl.u32 %v14034_v29, 16 }
  0x27   :  { %330 = vperm.xlu0 %13710, %v284_v10   ;;  %84 = vst.msk [vmem:[#allocation2 + $0x2c] sm:$0xf] %vm72_vm1, %v17214_v0 }
  0x28   :  { %85 = vst.msk [vmem:[#allocation2 + $0x30] sm:$0xf] %vm72_vm1, %v17214_v0  ;;  %v502_v43 = vrot.slane %v500_v34, 1 }
  0x29   :  { %86 = vst.msk [vmem:[#allocation2 + $0x34] sm:$0xf] %vm72_vm1, %v17214_v0 }
  0x2a   :  { %87 = vst.msk [vmem:[#allocation2 + $0x38] sm:$0xf] %vm72_vm1, %v17214_v0  ;;  %v503_v50 = vor.u32 %v502_v43, %v498_v42  ;;  %v12930_v43 = vld [vmem:[%s17206_s0 + $0x28] sm:$0xff]  ;;  %s13865_s0 = smov [#allocation11]  }
  0x2b   :  { %88 = vst.msk [vmem:[#allocation2 + $0x3c] sm:$0xf] %vm72_vm1, %v17214_v0  ;;  %s10754_s21 = sshll.u32 %s13865_s0, 4  ;;  %s10755_s21 = int_to_ptr.vmem [resolvable:$true] %s10754_s21 }
  0x2c   :  { %89 = vst.msk [vmem:[#allocation2 + $0x40] sm:$0xf] %vm72_vm1, %v17214_v0 }
  0x2d   :  { %90 = vst.msk [vmem:[#allocation2 + $0x44] sm:$0xf] %vm72_vm1, %v17214_v0 }
  0x2e   :  { %17251 = vst [vmem:[#allocation15_spill] sm:$0xff] %v17250_v39  ;;  %v13117_v39 = vld [vmem:[#allocation6 + $0x208] sm:$0xff] }
  0x31   :  { %10797 = vmatmul.msk.bf16.gmra.mxu0 %vm156_vm0, %v12927_v11 }
  0x41   :  { %10798 = vmatmul.msk.bf16.gmra.mxu0 %vm156_vm0, %v12928_v14 }
  0x51   :  { %10799 = vmatmul.msk.bf16.gmra.mxu0 %vm156_vm0, %v12929_v15 }
  0x61   :  { %10800 = vmatmul.msk.bf16.gmra.mxu0 %vm156_vm0, %v12930_v43 }
  0x6b   :  { %v311_v7 = vpop.permute.xlu2 %310 }
  0x81   :  { %v291_v21 = vpop.permute.xlu0 %290  ;;  %v301_v41 = vpop.permute.xlu1 %300 }
  0x89   :  { %v296_v31 = vpop.permute.xlu0 %295  ;;  %v306_v61 = vpop.permute.xlu1 %305 }
  0x8e   :  { %v184_v18 = vpop.f32.mrf.mxu0 }
  0x8f   :  { %v215_v19 = vmul.f32 %v14023_v16, %v184_v18 }
  0x91   :  { %v228_v20 = vadd.f32 %v14028_v17, %v215_v19 }
  0x93   :  { %vm240_vm2 = vcmp.ge.f32.partialorder %v228_v20, 0.0  ;;  %v252_v22 = vmul.f32 0.01, %v228_v20 }
  0x95   :  { %v264_v23 = vsel %vm240_vm2, %v228_v20, %v252_v22  ;;  %vm14079_vm2 = vmor %vm948_vm13, %vm949_vm14  ;;  %vm1176_vm13 = vsmask.f32 1280  ;;  %vm1177_vm14 = vsmask.f32 5392 }
  0x96   :  { %v348_v24 = vmul.f32 %v291_v21, %v264_v23  ;;  %v186_v25 = vpop.f32.mrf.mxu0 }
  0x97   :  { %v216_v26 = vmul.f32 %v14023_v16, %v186_v25 }
  0x98   :  { %v360_v27 = vpack.c.bf16 %v348_v24, %v348_v24 }
  0x99   :  { %v229_v28 = vadd.f32 %v14028_v17, %v216_v26 }
  0x9a   :  { %v387_v30 = vrot.slane %v360_v27, 7 }
  0x9b   :  { %vm241_vm4 = vcmp.ge.f32.partialorder %v229_v28, 0.0  ;;  %v253_v32 = vmul.f32 0.01, %v229_v28 }
  0x9c   :  { %436 = vst.msk [vmem:[#allocation2 + $0xc] sm:$0xe] %vm435_vm3, %v387_v30  ;;  %v388_v44 = vrot.slane %v387_v30, 4 }
  0x9d   :  { %v265_v33 = vsel %vm241_vm4, %v229_v28, %v253_v32  ;;  %v316_v28 = vpop.permute.xlu2 %315  ;;  %vm1379_vm4 = vsmask.f32 3328 }
  0x9e   :  { %v349_v35 = vmul.f32 %v296_v31, %v265_v33  ;;  %v189_v36 = vpop.f32.mrf.mxu0 }
  0x9f   :  { %v217_v37 = vmul.f32 %v14023_v16, %v189_v36 }
  0xa0   :  { %v361_v38 = vpack.c.bf16 %v349_v35, %v349_v35 }
  0xa1   :  { %v230_v40 = vadd.f32 %v14028_v17, %v217_v37 }
  0xa2   :  { %v389_v45 = vrot.slane %v361_v38, 7 }
  0xa3   :  { %vm242_vm8 = vcmp.ge.f32.partialorder %v230_v40, 0.0  ;;  %v254_v46 = vmul.f32 0.01, %v230_v40  ;;  %v14045_v47 = vld [vmem:[#allocation2 + $0x8] sm:$0xff] }
  0xa4   :  { %v390_v48 = vsel %vm14039_vm7, %v388_v44, %v389_v45  ;;  %v505_v51 = vshll.u32 %v14045_v47, 16  ;;  %v391_v59 = vrot.slane %v389_v45, 4  ;;  %v509_v18 = vshrl.u32 %v14045_v47, 16 }
  0xa5   :  { %437 = vst.msk [vmem:[#allocation2 + $0x10] sm:$0xf] %vm72_vm1, %v390_v48  ;;  %v266_v49 = vsel %vm242_vm8, %v230_v40, %v254_v46  ;;  %v17252_v44 = vmov 0 }
  0xa6   :  { %v350_v52 = vmul.f32 %v301_v41, %v266_v49  ;;  %v191_v53 = vpop.f32.mrf.mxu0  ;;  %v507_v55 = vrot.slane %v505_v51, 1  ;;  %v17253_v44 = vsel %vm14079_vm2, 4294967295, %v17252_v44  ;;  %v321_v51 = vpop.permute.xlu0 %320 }
  0xa7   :  { %v218_v54 = vmul.f32 %v14023_v16, %v191_v53  ;;  %17254 = vst [vmem:[#allocation16_spill] sm:$0xff] %v17253_v44  ;;  %v13255_v44 = vld [vmem:[#allocation9 + $0x18] sm:$0xff] }
  0xa8   :  { %v362_v56 = vpack.c.bf16 %v350_v52, %v350_v52  ;;  %v508_v58 = vsel %vm496_vm9, %v503_v50, %v507_v55  ;;  %v511_v22 = vor.u32 %v509_v18, %v507_v55  ;;  %v326_v18 = vpop.permute.xlu1 %325 }
  0xa9   :  { %v231_v57 = vadd.f32 %v14028_v17, %v218_v54  ;;  %544 = vrot.lane.b32.xlu2 %v508_v58, %s13859_s9 }
  0xaa   :  { %v392_v60 = vrot.slane %v362_v56, 7 }
  0xab   :  { %vm243_vm10 = vcmp.ge.f32.partialorder %v231_v57, 0.0  ;;  %v255_v62 = vmul.f32 0.01, %v231_v57 }
  0xac   :  { %v393_v63 = vsel %vm14039_vm7, %v391_v59, %v392_v60  ;;  %v394_v8 = vrot.slane %v392_v60, 4 }
  0xad   :  { %438 = vst.msk [vmem:[#allocation2 + $0x14] sm:$0xf] %vm72_vm1, %v393_v63  ;;  %v267_v1 = vsel %vm243_vm10, %v231_v57, %v255_v62  ;;  %v14098_v63 = vld [vmem:[#allocation2 + $0x8] sm:$0xf]  ;;  %vm772_vm10 = vcmask 1042432  }
  0xae   :  { %v351_v2 = vmul.f32 %v306_v61, %v267_v1  ;;  %v194_v3 = vpop.f32.mrf.mxu0  ;;  %v1023_v1 = vld [vmem:[#allocation2 + $0x4] sm:$0x8] }
  0xaf   :  { %v219_v4 = vmul.f32 %v14023_v16, %v194_v3 }
  0xb0   :  { %v363_v5 = vpack.c.bf16 %v351_v2, %v351_v2 }
  0xb1   :  { %v232_v6 = vadd.f32 %v14028_v17, %v219_v4 }
  0xb2   :  { %v395_v9 = vrot.slane %v363_v5, 7 }
  0xb3   :  { %vm244_vm11 = vcmp.ge.f32.partialorder %v232_v6, 0.0  ;;  %v256_v10 = vmul.f32 0.01, %v232_v6 }
  0xb4   :  { %v396_v11 = vsel %vm14039_vm7, %v394_v8, %v395_v9  ;;  %v14062_v12 = vld [vmem:[#allocation2 + $0x10] sm:$0xff]  ;;  %v397_v25 = vrot.slane %v395_v9, 4  ;;  %v10823_v9 = vld [vmem:[#allocation2] sm:$0xe] }
  0xb5   :  { %439 = vst.msk [vmem:[#allocation2 + $0x18] sm:$0xf] %vm72_vm1, %v396_v11  ;;  %v268_v13 = vsel %vm244_vm11, %v232_v6, %v256_v10  ;;  %v513_v19 = vshll.u32 %v14062_v12, 16  ;;  %v517_v55 = vshrl.u32 %v14062_v12, 16  ;;  %v14103_v6 = vld [vmem:[#allocation2 + $0x8] sm:$0xff]  ;;  %v1038_v11 = vunpack.c.l.b16 %v14098_v63  ;;  %v13063_v63 = vld [vmem:[#allocation6 + $0x58] sm:$0xff] }
  0xb6   :  { %v352_v14 = vmul.f32 %v311_v7, %v268_v13  ;;  %v196_v15 = vpop.f32.mrf.mxu0  ;;  %v12937_v10 = vld [vmem:[#allocation2] sm:$0xf0]  ;;  %v1058_v13 = vunpack.c.l.b16 %v1023_v1  ;;  %vm773_vm11 = vcmask 1046532  }
  0xb7   :  { %v220_v20 = vmul.f32 %v14023_v16, %v196_v15  ;;  %v515_v23 = vrot.slane %v513_v19, 1 }
  0xb8   :  { %v364_v21 = vpack.c.bf16 %v352_v14, %v352_v14 }
  0xb9   :  { %v233_v24 = vadd.f32 %v14028_v17, %v220_v20  ;;  %v516_v27 = vsel %vm496_vm9, %v511_v22, %v515_v23  ;;  %v519_v60 = vor.u32 %v517_v55, %v515_v23  ;;  %v14112_v20 = vld [vmem:[#allocation2 + $0x10] sm:$0xff] }
  0xba   :  { %v398_v26 = vrot.slane %v364_v21, 7  ;;  %546 = vrot.lane.b32.xlu1 %v516_v27, %s13859_s9  ;;  %v14120_v27 = vor.u32 %v12937_v10, %v10823_v9 }
  0xbb   :  { %vm245_vm12 = vcmp.ge.f32.partialorder %v233_v24, 0.0  ;;  %v257_v30 = vmul.f32 0.01, %v233_v24 }
  0xbc   :  { %v399_v31 = vsel %vm14039_vm7, %v397_v25, %v398_v26  ;;  %v3194_v38 = vld [vmem:[#allocation2 + $0x18] sm:$0xc]  ;;  %v400_v40 = vrot.slane %v398_v26, 4  ;;  %v678_v26 = vshll.u32 %v14103_v6, 16 }
  0xbd   :  { %440 = vst.msk [vmem:[#allocation2 + $0x1c] sm:$0xf] %vm72_vm1, %v399_v31  ;;  %v269_v32 = vsel %vm245_vm12, %v233_v24, %v257_v30  ;;  %v10976_v49 = vrot.slane %v3194_v38, 10  ;;  %v285_v30 = vld [vmem:[%s17207_s1 + $0x48] sm:$0xff]  ;;  %v1059_v31 = vpack.c.b16 %v1038_v11, %v1058_v13  ;;  %vm14304_vm12 = vmor %vm772_vm10, %vm773_vm11 }
  0xbe   :  { %v353_v33 = vmul.f32 %v316_v28, %v269_v32  ;;  %v199_v34 = vpop.f32.mrf.mxu0  ;;  %v680_v38 = vrot.slane %v678_v26, 1 }
  0xbf   :  { %v221_v35 = vmul.f32 %v14023_v16, %v199_v34  ;;  %v1061_v1 = vshrl.u32 %v1059_v31, 16 }
  0xc0   :  { %v365_v36 = vpack.c.bf16 %v353_v33, %v353_v33  ;;  %v686_v33 = vshll.u32 %v14112_v20, 16 }
  0xc1   :  { %v234_v37 = vadd.f32 %v14028_v17, %v221_v35 }
  0xc2   :  { %v401_v41 = vrot.slane %v365_v36, 7 }
  0xc3   :  { %vm246_vm15 = vcmp.ge.f32.partialorder %v234_v37, 0.0  ;;  %v258_v42 = vmul.f32 0.01, %v234_v37 }
  0xc4   :  { %v3195_v45 = vld [vmem:[#allocation2 + $0x1c] sm:$0xf]  ;;  %v402_v46 = vsel %vm14039_vm7, %v400_v40, %v401_v41  ;;  %v403_v2 = vrot.slane %v401_v41, 4  ;;  %v673_v40 = vshll.u32 %v14120_v27, 16  ;;  %v13059_v41 = vld [vmem:[#allocation6 + $0x38] sm:$0xff] }
  0xc5   :  { %v14085_v48 = vld [vmem:[#allocation2 + $0x18] sm:$0xff]  ;;  %v3220_v50 = vrot.slane %v3195_v45, 6  ;;  %441 = vst.msk [vmem:[#allocation2 + $0x20] sm:$0xf] %vm72_vm1, %v402_v46  ;;  %v270_v52 = vsel %vm246_vm15, %v234_v37, %v258_v42  ;;  %v682_v45 = vshrl.u32 %v14103_v6, 16  ;;  %v1063_v46 = vshll.u32 %v1059_v31, 16  ;;  %4570 = vmatpush.bf16.msra.mxu1 %v13059_v41  ;;  %vm14331_vm15 = vmor %vm1176_vm13, %vm1177_vm14 }
  0xc6   :  { %v354_v53 = vmul.f32 %v321_v51, %v270_v52  ;;  %v201_v54 = vpop.f32.mrf.mxu0  ;;  %v521_v56 = vshll.u32 %v14085_v48, 16  ;;  %v12959_v21 = vld [vmem:[#allocation2 + $0x18] sm:$0xff]  ;;  %v14137_v51 = vrot.slane %v686_v33, 1  ;;  %v14139_v52 = vld [vmem:[#allocation2 + $0xc] sm:$0xff]  ;;  %vm448_vm13 = vcmask 516096  }
  0xc7   :  { %v3221_v57 = vsel %vm14079_vm2, %v10976_v49, %v3220_v50  ;;  %v222_v58 = vmul.f32 %v14023_v16, %v201_v54  ;;  %v3222_v14 = vrot.slane %v3220_v50, 4  ;;  %v2250_v34 = vshll.u32 %v12959_v21, 16  ;;  %v331_v49 = vpop.permute.xlu0 %330  ;;  %v13056_v31 = vld [vmem:[#allocation6 + $0x20] sm:$0xff] }
  0xc8   :  { %3265 = vst.msk [vmem:[#allocation4 + $0x30] sm:$0xf] %vm72_vm1, %v3221_v57  ;;  %v366_v59 = vpack.c.bf16 %v354_v53, %v354_v53  ;;  %v14095_v61 = vrot.slane %v521_v56, 1  ;;  %v525_v56 = vshrl.u32 %v14085_v48, 16  ;;  %v1065_v10 = vrot.slane %v1063_v46, 1 }
  0xc9   :  { %v235_v62 = vadd.f32 %v14028_v17, %v222_v58  ;;  %v14141_v53 = vrot.slane %v2250_v34, 1  ;;  %v671_v58 = vshrl.u32 %v14120_v27, 16  ;;  %v1068_v13 = vshll.u32 %v14139_v52, 16 }
  0xca   :  { %v404_v3 = vrot.slane %v366_v59, 7  ;;  %v524_v4 = vsel %vm496_vm9, %v519_v60, %v14095_v61  ;;  %v13058_v59 = vld [vmem:[#allocation6 + $0x30] sm:$0xff]  ;;  %v684_v60 = vor.u32 %v682_v45, %v680_v38  ;;  %v1066_v26 = vor.u32 %v1065_v10, %v1061_v1 }
  0xcb   :  { %vm247_vm0 = vcmp.ge.f32.partialorder %v235_v62, 0.0  ;;  %v259_v5 = vmul.f32 0.01, %v235_v62  ;;  %548 = vrot.lane.b32.xlu2 %v524_v4, %s13859_s9  ;;  %v527_v4 = vor.u32 %v525_v56, %v14095_v61  ;;  %4571 = vmatpush.bf16.msra.mxu1 %v13058_v59  ;;  %v13057_v61 = vld [vmem:[#allocation6 + $0x28] sm:$0xff]  ;;  %v13055_v56 = vld [vmem:[#allocation6 + $0x18] sm:$0xff] }
  0xcc   :  { %v14105_v7 = vld [vmem:[#allocation2 + $0x20] sm:$0xf]  ;;  %v405_v8 = vsel %vm14039_vm7, %v403_v2, %v404_v3  ;;  %v406_v35 = vrot.slane %v404_v3, 4  ;;  %v2254_v2 = vshrl.u32 %v12959_v21, 16  ;;  %v689_v9 = vsel %vm496_vm9, %v684_v60, %v14137_v51 }
  0xcd   :  { %v3223_v15 = vrot.slane %v14105_v7, 6  ;;  %442 = vst.msk [vmem:[#allocation2 + $0x24] sm:$0xf] %vm72_vm1, %v405_v8  ;;  %v271_v19 = vsel %vm247_vm0, %v235_v62, %v259_v5  ;;  %v675_v62 = vrot.slane %v673_v40, 1  ;;  %v13548_v40 = vld [vmem:[#allocation2 + $0x4] sm:$0xc] }
  0xce   :  { %v355_v22 = vmul.f32 %v326_v18, %v271_v19  ;;  %v204_v23 = vpop.f32.mrf.mxu0  ;;  %v690_v7 = vshrl.u32 %v14112_v20, 16  ;;  %vm1501_vm0 = vsmask.f32 256  ;;  %vm5371_vm14 = vsmask.f32 7946 }
  0xcf   :  { %v3224_v24 = vsel %vm14079_vm2, %v3222_v14, %v3223_v15  ;;  %v223_v25 = vmul.f32 %v14023_v16, %v204_v23  ;;  %v2256_v14 = vor.u32 %v2254_v2, %v14141_v53  ;;  %4572 = vmatpush.bf16.msra.mxu1 %v13057_v61 }
  0xd0   :  { %3266 = vst.msk [vmem:[#allocation4 + $0x64] sm:$0xf] %vm72_vm1, %v3224_v24  ;;  %v367_v28 = vpack.c.bf16 %v355_v22, %v355_v22 }
  0xd1   :  { %v236_v32 = vadd.f32 %v14028_v17, %v223_v25  ;;  %v676_v25 = vor.u32 %v675_v62, %v671_v58  ;;  %v14186_v62 = vld [vmem:[#allocation2 + $0x10] sm:$0xff]  }
  0xd2   :  { %v407_v36 = vrot.slane %v367_v28, 7  ;;  %v1070_v28 = vrot.slane %v1068_v13, 1  ;;  %v1392_v10 = vshll.u32 %v14186_v62, 16  ;;  %v13053_v13 = vld [vmem:[#allocation6 + $0x8] sm:$0xff] }
  0xd3   :  { %vm248_vm3 = vcmp.ge.f32.partialorder %v236_v32, 0.0  ;;  %v260_v37 = vmul.f32 0.01, %v236_v32  ;;  %335 = vperm.xlu2 %13712, %v285_v30   ;;  %v14169_v30 = vld [vmem:[#allocation2 + $0x8] sm:$0xff]   ;;  %4573 = vmatpush.bf16.msra.mxu1 %v13056_v31  ;;  %v681_v34 = vsel %vm496_vm9, %v676_v25, %v680_v38  ;;  %v13052_v31 = vld [vmem:[#allocation6] sm:$0xff] }
  0xd4   :  { %v408_v42 = vsel %vm14039_vm7, %v406_v35, %v407_v36  ;;  %v14133_v43 = vld [vmem:[#allocation2 + $0x20] sm:$0xff]  ;;  %v409_v18 = vrot.slane %v407_v36, 4  ;;  %v1384_v33 = vshll.u32 %v14169_v30, 16  ;;  %v1071_v35 = vsel %vm496_vm9, %v1066_v26, %v1070_v28 }
  0xd5   :  { %443 = vst.msk [vmem:[#allocation2 + $0x28] sm:$0xf] %vm72_vm1, %v408_v42  ;;  %v272_v50 = vsel %vm248_vm3, %v236_v32, %v260_v37  ;;  %v14143_v54 = vld [vmem:[#allocation2 + $0x20] sm:$0xff]  ;;  %v529_v57 = vshll.u32 %v14133_v43, 16  ;;  %v1381_v32 = vshrl.u32 %v14169_v30, 16  ;;  %v533_v58 = vshrl.u32 %v14133_v43, 16 }
  0xd6   :  { %v356_v55 = vmul.f32 %v331_v49, %v272_v50  ;;  %v2258_v8 = vshll.u32 %v14143_v54, 16  ;;  %v13616_v37 = vld [vmem:[#allocation2 + $0x4] sm:$0xf0]   ;;  %v1386_v45 = vrot.slane %v1384_v33, 5  ;;  %v14180_v50 = vld [vmem:[#allocation2 + $0x14] sm:$0xff]  ;;  %v1394_v26 = vrot.slane %v1392_v10, 5 }
  0xd7   :  { %v531_v5 = vrot.slane %v529_v57, 1  ;;  %v1383_v42 = vrot.slane %v1381_v32, 4  ;;  %4574 = vmatpush.bf16.msra.mxu1 %v13055_v56  ;;  %v1076_v60 = vshll.u32 %v14180_v50, 16  ;;  %vm1502_vm3 = vsmask.f32 4368 }
  0xd8   :  { %v368_v3 = vpack.c.bf16 %v356_v55, %v356_v55  ;;  %v14157_v22 = vrot.slane %v2258_v8, 1  ;;  %v13549_v55 = vor.u32 %v13616_v37, %v13548_v40  ;;  %v14206_v40 = vld [vmem:[#allocation2 + $0x1c] sm:$0xff] }
  0xd9   :  { %v532_v21 = vsel %vm496_vm9, %v527_v4, %v531_v5  ;;  %v1387_v57 = vor.u32 %v1386_v45, %v1383_v42  ;;  %v535_v1 = vor.u32 %v533_v58, %v531_v5  ;;  %v14190_v4 = vld [vmem:[#allocation2 + $0x18] sm:$0xff] }
  0xda   :  { %v14154_v19 = vrot.slane %v368_v3, 7  ;;  %550 = vrot.lane.b32.xlu0 %v532_v21, %s13859_s9  ;;  %v14166_v24 = vsel %vm496_vm9, %v2256_v14, %v14157_v22  ;;  %v13054_v3 = vld [vmem:[#allocation6 + $0x10] sm:$0xff]  ;;  %v1072_v14 = vshrl.u32 %v14139_v52, 16  ;;  %v14197_v21 = vld [vmem:[#allocation2 + $0x20] sm:$0xff]  ;;  %v694_v61 = vshll.u32 %v14190_v4, 16 }
  0xdb   :  { %719 = vrot.lane.b32.xlu2 %v689_v9, %s13859_s9  ;;  %v1389_v9 = vshrl.u32 %v14186_v62, 16  ;;  %4575 = vmatpush.bf16.msra.mxu1 %v13054_v3  ;;  %v702_v33 = vshll.u32 %v14197_v21, 16  ;;  %v698_v42 = vshrl.u32 %v14190_v4, 16 }
  0xdc   :  { %v411_v23 = vsel %vm14039_vm7, %v409_v18, %v14154_v19  ;;  %v14175_v36 = vld [vmem:[#allocation2 + $0x28] sm:$0xf]  ;;  %v1078_v18 = vrot.slane %v1076_v60, 1  ;;  %v1074_v5 = vor.u32 %v1072_v14, %v1070_v28  ;;  %v696_v37 = vrot.slane %v694_v61, 1 }
  0xdd   :  { %444 = vst.msk [vmem:[#allocation2 + $0x2c] sm:$0xf] %vm72_vm1, %v411_v23  ;;  %v485_v46 = vunpack.c.l.b16 %v14175_v36  ;;  %v13620_v23 = vld [vmem:[#allocation2 + $0x14] sm:$0xff]   ;;  %v1391_v25 = vrot.slane %v1389_v9, 4  ;;  %v704_v45 = vrot.slane %v702_v33, 1  ;;  %v1080_v61 = vshrl.u32 %v14180_v50, 16 }
  0xde   :  { %v1079_v32 = vsel %vm496_vm9, %v1074_v5, %v1078_v18  ;;  %v700_v56 = vor.u32 %v698_v42, %v696_v37  ;;  %v3197_v33 = vld [vmem:[#allocation2 + $0x24] sm:$0xf] }
  0xdf   :  { %4576 = vmatpush.bf16.msra.mxu1 %v13053_v13  ;;  %v14204_v28 = vor.u32 %v1394_v26, %v1391_v25  ;;  %v1082_v25 = vor.u32 %v1080_v61, %v1078_v18  ;;  %v3225_v18 = vrot.slane %v3223_v15, 4 }
  0xe0   :  { %v705_v3 = vsel %vm496_vm9, %v700_v56, %v704_v45 }
  0xe1   :  { %v1396_v60 = vsel %vm1379_vm4, %v1387_v57, %v14204_v28 }
  0xe2   :  { %717 = vrot.lane.b32.xlu0 %v681_v34, %s13859_s9  ;;  %v13578_v34 = vld [vmem:[#allocation2 + $0x20] sm:$0xff]  }
  0xe3   :  { %1114 = vrot.lane.b32.xlu2 %v1071_v35, %s13859_s9  ;;  %v13618_v35 = vld [vmem:[#allocation2 + $0xc] sm:$0xff]   ;;  %4577 = vmatpush.bf16.msra.mxu1 %v13052_v31 }
  0xe4   :  { %v462_v41 = vld [vmem:[#allocation2 + $0x2c] sm:$0x7] }
  0xe5   :  { %v494_v49 = vunpack.c.l.b16 %v462_v41  ;;  %v14208_v41 = vld [vmem:[#allocation2 + $0x18] sm:$0xff]  }
  0xe6   :  { %v1398_v58 = vshrl.u32 %v14208_v41, 16 }
  0xe7   :  { %v495_v38 = vpack.c.b16 %v494_v49, %v485_v46  ;;  %v1407_v49 = vshrl.u32 %v13578_v34, 16 }
  0xe8   :  { %v1400_v14 = vrot.slane %v1398_v58, 4 }
  0xe9   :  { %v537_v59 = vshll.u32 %v495_v38, 16  ;;  %v1409_v9 = vrot.slane %v1407_v49, 4 }
  0xea   :  { %888 = vrot.lane.b32.xlu0 %v13549_v55, %s13859_s9  ;;  %v1410_v55 = vshll.u32 %v13578_v34, 16 }
  0xeb   :  { %1433 = vrot.lane.b32.xlu2 %v1387_v57, %s13859_s9  ;;  %v539_v2 = vrot.slane %v537_v59, 1  ;;  %v1401_v59 = vshll.u32 %v14208_v41, 16 }
  0xec   :  { %v1412_v10 = vrot.slane %v1410_v55, 5  ;;  %v14236_v55 = vld [vmem:[#allocation2 + $0x28] sm:$0xff]  }
  0xed   :  { %v540_v8 = vsel %vm496_vm9, %v535_v1, %v539_v2  ;;  %v1084_v1 = vshll.u32 %v14206_v40, 16  ;;  %v1403_v5 = vrot.slane %v1401_v59, 5  ;;  %v710_v15 = vshll.u32 %v14236_v55, 16 }
  0xee   :  { %552 = vrot.lane.b32.xlu1 %v540_v8, %s13859_s9  ;;  %v541_v8 = vshrl.u32 %v495_v38, 16  ;;  %v1413_v57 = vor.u32 %v1412_v10, %v1409_v9  ;;  %v706_v10 = vshrl.u32 %v14197_v21, 16  ;;  %v1416_v20 = vshrl.u32 %v14236_v55, 16 }
  0xef   :  { %v1404_v26 = vor.u32 %v1403_v5, %v1400_v14 }
  0xf0   :  { %v543_v13 = vor.u32 %v541_v8, %v539_v2  ;;  %v286_v2 = vld [vmem:[%s17207_s1 + $0x50] sm:$0xff]  ;;  %v708_v5 = vor.u32 %v706_v10, %v704_v45 }
  0xf1   :  { %v1414_v31 = vsel %vm1379_vm4, %v1404_v26, %v1413_v57  ;;  %v13067_v10 = vld [vmem:[#allocation6 + $0x78] sm:$0xff] }
  0xf2   :  { %1116 = vrot.lane.b32.xlu0 %v1079_v32, %s13859_s9  ;;  %4609 = vmatpush.bf16.msra.mxu2 %v13067_v10  ;;  %v13685_v10 = vld [vmem:[#allocation2 + $0x4] sm:$0xf0]  }
  0xf3   :  { %892 = vrot.lane.b32.xlu2 %v13620_v23, %s13859_s9  ;;  %v14222_v23 = vrot.slane %v1084_v1, 1  ;;  %v3198_v1 = vld [vmem:[#allocation2 + $0x28] sm:$0xf] }
  0xf4   :  { %v3229_v9 = vrot.slane %v3198_v1, 6 }
  0xf5   :  { %v1087_v38 = vsel %vm496_vm9, %v1082_v25, %v14222_v23 }
  0xf6   :  { %890 = vrot.lane.b32.xlu1 %v13618_v35, %s13859_s9  ;;  %v3226_v35 = vrot.slane %v3197_v33, 6  ;;  %v3231_v33 = vrot.slane %v3229_v9, 4 }
  0xf8   :  { %v3227_v56 = vsel %vm14079_vm2, %v3225_v18, %v3226_v35  ;;  %v3228_v8 = vrot.slane %v3226_v35, 4 }
  0xf9   :  { %3267 = vst.msk [vmem:[#allocation4 + $0x98] sm:$0xf] %vm72_vm1, %v3227_v56  ;;  %v206_v56 = vpop.f32.mrf.mxu0 }
  0xfa   :  { %1435 = vrot.lane.b32.xlu0 %v1396_v60, %s13859_s9  ;;  %v13622_v60 = vld [vmem:[#allocation2 + $0x1c] sm:$0xff]   ;;  %v3230_v14 = vsel %vm14079_vm2, %v3228_v8, %v3229_v9 }
  0xfb   :  { %723 = vrot.lane.b32.xlu2 %v705_v3, %s13859_s9  ;;  %3268 = vst.msk [vmem:[#allocation4 + $0xcc] sm:$0xf] %vm72_vm1, %v3230_v14 }
  0xfe   :  { %554 = vrot.lane.b32.xlu1 %v543_v13, %s13859_s9  ;;  %v712_v13 = vrot.slane %v710_v15, 1 }
 0x102   :  { %1118 = vrot.lane.b32.xlu0 %v1087_v38, %s13859_s9  ;;  %v1418_v38 = vrot.slane %v1416_v20, 4 }
 0x103   :  { %1439 = vrot.lane.b32.xlu2 %v1414_v31, %s13859_s9  ;;  %v545_v32 = vpop.permute.xlu2 %544  ;;  %v1421_v31 = vrot.slane %v710_v15, 5 }
 0x104   :  { %v558_v34 = vsel %vm556_vm6, %v14034_v29, %v545_v32  ;;  %v692_v29 = vor.u32 %v690_v7, %v14137_v51  ;;  %v14252_v51 = vld [vmem:[#allocation2 + $0x24] sm:$0xff]  ;;  %v1405_v32 = vsel %vm1379_vm4, %v14204_v28, %v1404_v26 }
 0x105   :  { %v576_v42 = vunpack.c.l.b16 %v558_v34  ;;  %v577_v49 = vunpack.c.h.b16 %v558_v34  ;;  %v1092_v45 = vshll.u32 %v14252_v51, 16  ;;  %v14263_v34 = vor.u32 %v1421_v31, %v1418_v38  ;;  %v13066_v38 = vld [vmem:[#allocation6 + $0x70] sm:$0xff] }
 0x106   :  { %340 = vperm.xlu1 %13711, %v286_v2   ;;  %v697_v3 = vsel %vm496_vm9, %v692_v29, %v696_v37  ;;  %v713_v37 = vsel %vm496_vm9, %v708_v5, %v712_v13  ;;  %v14256_v2 = vld [vmem:[#allocation2 + $0x2c] sm:$0xf]  ;;  %v412_v31 = vrot.slane %v14154_v19, 4  ;;  %4610 = vmatpush.bf16.msra.mxu2 %v13066_v38 }
 0x107   :  { %v588_v58 = vpack.c.b16 %v576_v42, %v576_v42  ;;  %v589_v59 = vpack.c.b16 %v577_v49, %v577_v49  ;;  %v3232_v18 = vrot.slane %v14256_v2, 6  ;;  %v1088_v42 = vshrl.u32 %v14206_v40, 16  ;;  %v13074_v38 = vld [vmem:[#allocation6 + $0xb0] sm:$0xff] }
 0x108   :  { %v14271_v49 = vrot.slane %v1092_v45, 1  ;;  %v1423_v28 = vsel %vm1379_vm4, %v1413_v57, %v14263_v34 }
 0x109   :  { %612 = vst [vmem:[#allocation4] sm:$0xf] %v588_v58  ;;  %v3233_v35 = vsel %vm14079_vm2, %v3231_v33, %v3232_v18  ;;  %v1090_v26 = vor.u32 %v1088_v42, %v14222_v23  ;;  %v224_v58 = vmul.f32 %v14023_v16, %v206_v56 }
 0x10a   :  { %613 = vst [vmem:[#allocation4 + $0x34] sm:$0xf] %v589_v59  ;;  %894 = vrot.lane.b32.xlu0 %v13622_v60, %s13859_s9  ;;  %v13624_v59 = vld [vmem:[#allocation2 + $0x24] sm:$0xff]  }
 0x10b   :  { %3269 = vst.msk [vmem:[#allocation4 + $0x100] sm:$0xf] %vm72_vm1, %v3233_v35  ;;  %v1095_v55 = vsel %vm496_vm9, %v1090_v26, %v14271_v49  ;;  %v237_v40 = vadd.f32 %v14028_v17, %v224_v58  ;;  %v13064_v26 = vld [vmem:[#allocation6 + $0x60] sm:$0xff] }
 0x10d   :  { %v261_v1 = vmul.f32 0.01, %v237_v40  ;;  %vm249_vm8 = vcmp.ge.f32.partialorder %v237_v40, 0.0 }
 0x10e   :  { %721 = vrot.lane.b32.xlu1 %v697_v3, %s13859_s9  ;;  %v716_v3 = vor.u32 %v1416_v20, %v712_v13  ;;  %v1010_v20 = vld [vmem:[#allocation2 + $0x4] sm:$0xc] }
 0x10f   :  { %v273_v8 = vsel %vm249_vm8, %v237_v40, %v261_v1  ;;  %v1037_v33 = vunpack.c.l.b16 %v1010_v20  ;;  %v13075_v1 = vld [vmem:[#allocation6 + $0xb8] sm:$0xff]  ;;  %vm14354_vm8 = vmor %vm1501_vm0, %vm1502_vm3 }
 0x110   :  { %v10979_v61 = vld [vmem:[#allocation4] sm:$0xf]  ;;  %4648 = vmatpush.bf16.msra.mxu3 %v13075_v1 }
 0x111   :  { %v12980_v25 = vld [vmem:[#allocation4 + $0x30] sm:$0xf0] }
 0x112   :  { %725 = vrot.lane.b32.xlu0 %v713_v37, %s13859_s9  ;;  %v10980_v21 = vor.u32 %v12980_v25, %v10979_v61 }
 0x114   :  { %4578 = vmatmul.bf16.vlgmr.msra.gmra.mxu1 %v10980_v21  ;;  %4649 = vmatpush.bf16.msra.mxu3 %v13074_v38  ;;  %v13060_v38 = vld [vmem:[#allocation6 + $0x40] sm:$0xff] }
 0x116   :  { %1437 = vrot.lane.b32.xlu1 %v1405_v32, %s13859_s9  ;;  %v13065_v32 = vld [vmem:[#allocation6 + $0x68] sm:$0xff] }
 0x117   :  { %4611 = vmatpush.bf16.msra.mxu2 %v13065_v32  ;;  %v14326_v32 = vld [vmem:[#allocation2 + $0x14] sm:$0xf] }
 0x118   :  { %v17216_v1 = vunpack.c.l.b16 %v14326_v32 }
 0x11a   :  { %1441 = vrot.lane.b32.xlu0 %v1423_v28, %s13859_s9 }
 0x11b   :  { %4612 = vmatpush.bf16.msra.mxu2 %v13064_v26 }
 0x11e   :  { %1120 = vrot.lane.b32.xlu1 %v1095_v55, %s13859_s9  ;;  %v1050_v55 = vpack.c.b16 %v1038_v11, %v1037_v33 }
 0x11f   :  { %4613 = vmatpush.bf16.msra.mxu2 %v13063_v63  ;;  %v2205_v63 = vld [vmem:[#allocation2 + $0x10] sm:$0x8] }
 0x125   :  { %v549_v60 = vpop.permute.xlu2 %548 }
 0x126   :  { %v562_v7 = vsel %vm556_vm6, %v14062_v12, %v549_v60  ;;  %896 = vrot.lane.b32.xlu1 %v13624_v59, %s13859_s9 }
 0x127   :  { %v580_v57 = vunpack.c.l.b16 %v562_v7  ;;  %v581_v15 = vunpack.c.h.b16 %v562_v7 }
 0x129   :  { %v592_v23 = vpack.c.b16 %v580_v57, %v580_v57  ;;  %v593_v29 = vpack.c.b16 %v581_v15, %v581_v15 }
 0x12b   :  { %616 = vst [vmem:[#allocation4 + $0xd0] sm:$0xf] %v592_v23  ;;  %v1096_v23 = vshrl.u32 %v14252_v51, 16 }
 0x12c   :  { %617 = vst [vmem:[#allocation4 + $0x104] sm:$0xf] %v593_v29  ;;  %v547_v9 = vpop.permute.xlu1 %546 }
 0x12d   :  { %v336_v16 = vpop.permute.xlu2 %335  ;;  %v560_v12 = vsel %vm556_vm6, %v14045_v47, %v547_v9  ;;  %v13628_v9 = vld [vmem:[#allocation2 + $0x4] sm:$0x8] }
 0x12e   :  { %v357_v17 = vmul.f32 %v336_v16, %v273_v8  ;;  %727 = vrot.lane.b32.xlu1 %v716_v3, %s13859_s9  ;;  %v578_v14 = vunpack.c.l.b16 %v560_v12  ;;  %v579_v5 = vunpack.c.h.b16 %v560_v12  ;;  %v1098_v12 = vor.u32 %v1096_v23, %v14271_v49  ;;  %v13082_v49 = vld [vmem:[#allocation6 + $0xf0] sm:$0xff] }
 0x130   :  { %v369_v61 = vpack.c.bf16 %v357_v17, %v357_v17  ;;  %v590_v37 = vpack.c.b16 %v578_v14, %v578_v14  ;;  %v591_v25 = vpack.c.b16 %v579_v5, %v579_v5  ;;  %v13083_v17 = vld [vmem:[#allocation6 + $0xf8] sm:$0xff] }
 0x131   :  { %4687 = vmatpush.bf16.msrb.mxu0 %v13083_v17 }
 0x132   :  { %v14289_v13 = vrot.slane %v369_v61, 7  ;;  %614 = vst [vmem:[#allocation4 + $0x68] sm:$0xf] %v590_v37  ;;  %v13062_v61 = vld [vmem:[#allocation6 + $0x50] sm:$0xff]  ;;  %v11083_v23 = vld [vmem:[#allocation4 + $0xd0] sm:$0xf] }
 0x133   :  { %615 = vst [vmem:[#allocation4 + $0x9c] sm:$0xf] %v591_v25  ;;  %v13629_v25 = vor.u32 %v13685_v10, %v13628_v9  ;;  %4614 = vmatpush.bf16.msra.mxu2 %v13062_v61  ;;  %v13006_v17 = vld [vmem:[#allocation4 + $0x100] sm:$0xf0] }
 0x134   :  { %v414_v21 = vsel %vm14039_vm7, %v412_v31, %v14289_v13 }
 0x135   :  { %445 = vst.msk [vmem:[#allocation2 + $0x30] sm:$0xf] %vm72_vm1, %v414_v21  ;;  %v720_v47 = vpop.permute.xlu2 %719  ;;  %4688 = vmatpush.bf16.msrb.mxu0 %v13082_v49 }
 0x136   :  { %v732_v45 = vsel %vm556_vm6, %v14103_v6, %v720_v47 }
 0x137   :  { %v750_v35 = vunpack.c.l.b16 %v732_v45  ;;  %v751_v19 = vunpack.c.h.b16 %v732_v45 }
 0x139   :  { %v14297_v42 = vpack.c.b16 %v750_v35, %v750_v35  ;;  %v14299_v28 = vpack.c.b16 %v751_v19, %v751_v19  ;;  %v11031_v56 = vld [vmem:[#allocation4 + $0x68] sm:$0xf] }
 0x13a   :  { %v12993_v59 = vld [vmem:[#allocation4 + $0x98] sm:$0xf0] }
 0x13b   :  { %v780_v58 = vrot.slane %v14297_v42, 5  ;;  %v11032_v40 = vor.u32 %v12993_v59, %v11031_v56  ;;  %v17219_v57 = vrot.slane %v14299_v28, 5  ;;  %v13073_v59 = vld [vmem:[#allocation6 + $0xa8] sm:$0xff] }
 0x13c   :  { %v14308_v60 = vld [vmem:[#allocation2 + $0x2c] sm:$0xff]  ;;  %4650 = vmatpush.bf16.msra.mxu3 %v13073_v59 }
 0x13d   :  { %v782_v7 = vrot.slane %v780_v58, 4  ;;  %v1115_v15 = vpop.permute.xlu2 %1114  ;;  %4583 = vmatmul.bf16.gmra.mxu1 %v11032_v40  ;;  %v1100_v29 = vshll.u32 %v14308_v60, 16  ;;  %v13625_v10 = vld [vmem:[#allocation2 + $0x2c] sm:$0xff] }
 0x13e   :  { %v1130_v11 = vsel %vm556_vm6, %v1050_v55, %v1115_v15  ;;  %v13061_v55 = vld [vmem:[#allocation6 + $0x48] sm:$0xff]  ;;  %v14462_v36 = vld [vmem:[#allocation2 + $0x30] sm:$0xf] }
 0x13f   :  { %v784_v3 = vsel %vm14304_vm12, %v782_v7, %v17219_v57  ;;  %v1150_v8 = vunpack.c.l.b16 %v1130_v11  ;;  %v1151_v16 = vunpack.c.h.b16 %v1130_v11  ;;  %v14321_v14 = vrot.slane %v1100_v29, 1  ;;  %4615 = vmatpush.bf16.msra.mxu2 %v13061_v55  ;;  %v12953_v29 = vld [vmem:[#allocation2 + $0xc] sm:$0xf0] }
 0x140   :  { %824 = vst [vmem:[#allocation4 + $0x6c] sm:$0xf] %v784_v3  ;;  %v17257_v11 = vmov 0  ;;  %v17260_v55 = vmov 0 }
 0x141   :  { %v1163_v51 = vpack.c.b16 %v1150_v8, %v1150_v8  ;;  %v1164_v5 = vpack.c.b16 %v1151_v16, %v1151_v16  ;;  %v1103_v37 = vsel %vm496_vm9, %v1098_v12, %v14321_v14  ;;  %v17258_v11 = vsel %vm14331_vm15, 4294967295, %v17257_v11  ;;  %v13081_v12 = vld [vmem:[#allocation6 + $0xe8] sm:$0xff] }
 0x142   :  { %1122 = vrot.lane.b32.xlu2 %v1103_v37, %s13859_s9  ;;  %17259 = vst [vmem:[#allocation17_spill] sm:$0xff] %v17258_v11  ;;  %4689 = vmatpush.bf16.msrb.mxu0 %v13081_v12  ;;  %v17261_v55 = vsel %vm14354_vm8, 4294967295, %v17260_v55 }
 0x143   :  { %v1180_v31 = vshrl.u32 %v1163_v51, 16  ;;  %v1183_v20 = vshll.u32 %v1163_v51, 16  ;;  %v1189_v21 = vshrl.u32 %v1164_v5, 16  ;;  %v1192_v47 = vshll.u32 %v1164_v5, 16  ;;  %v10890_v51 = vld [vmem:[#allocation2 + $0xc] sm:$0xe]  ;;  %4616 = vmatpush.bf16.msra.mxu2 %v13060_v38 }
 0x144   :  { %v2240_v5 = vunpack.c.l.b16 %v2205_v63  ;;  %17262 = vst [vmem:[#allocation18_spill] sm:$0xff] %v17261_v55  ;;  %v13070_v38 = vld [vmem:[#allocation6 + $0x90] sm:$0xff] }
 0x145   :  { %v1182_v45 = vrot.slane %v1180_v31, 6  ;;  %v1185_v33 = vrot.slane %v1183_v20, 7  ;;  %v1191_v35 = vrot.slane %v1189_v21, 6  ;;  %v1194_v19 = vrot.slane %v1192_v47, 7  ;;  %v1434_v26 = vpop.permute.xlu2 %1433  ;;  %v14342_v20 = vld [vmem:[#allocation2 + $0x14] sm:$0xff] }
 0x146   :  { %v1449_v56 = vsel %vm556_vm6, %v13629_v25, %v1434_v26  ;;  %v11084_v31 = vor.u32 %v13006_v17, %v11083_v23  ;;  %v14344_v21 = vor.u32 %v12953_v29, %v10890_v51  ;;  %v13072_v47 = vld [vmem:[#allocation6 + $0xa0] sm:$0xff]  ;;  %v13079_v51 = vld [vmem:[#allocation6 + $0xd8] sm:$0xff] }
 0x147   :  { %v1186_v40 = vor.u32 %v1185_v33, %v1182_v45  ;;  %v1475_v7 = vunpack.c.l.b16 %v1449_v56  ;;  %v1476_v15 = vunpack.c.h.b16 %v1449_v56  ;;  %v14336_v8 = vor.u32 %v1194_v19, %v1191_v35  ;;  %v13080_v26 = vld [vmem:[#allocation6 + $0xe0] sm:$0xff]  ;;  %4651 = vmatpush.bf16.msra.mxu3 %v13072_v47 }
 0x148   :  { %v14350_v19 = vpack.c.b16 %v17216_v1, %v2240_v5  ;;  %4690 = vmatpush.bf16.msrb.mxu0 %v13080_v26  ;;  %v13091_v26 = vld [vmem:[#allocation6 + $0x138] sm:$0xff] }
 0x149   :  { %v1187_v3 = vrot.slane %v1186_v40, 4  ;;  %v1488_v16 = vpack.c.b16 %v1475_v7, %v1475_v7  ;;  %v1489_v9 = vpack.c.b16 %v1476_v15, %v1476_v15  ;;  %4726 = vmatpush.bf16.msrb.mxu1 %v13091_v26 }
 0x14a   :  { %898 = vrot.lane.b32.xlu2 %v13625_v10, %s13859_s9  ;;  %v2245_v12 = vshll.u32 %v14350_v19, 16 }
 0x14b   :  { %v1196_v61 = vsel %vm14331_vm15, %v1187_v3, %v14336_v8  ;;  %v1505_v37 = vshrl.u32 %v1488_v16, 16  ;;  %v1510_v25 = vshrl.u32 %v1489_v9, 16  ;;  %v1513_v45 = vshll.u32 %v1489_v9, 16  ;;  %v287_v3 = vld [vmem:[%s17207_s1 + $0x58] sm:$0xff]  ;;  %v13071_v9 = vld [vmem:[#allocation6 + $0x98] sm:$0xff] }
 0x14c   :  { %1315 = vst [vmem:[#allocation4 + $0xc] sm:$0xf] %v1196_v61  ;;  %v551_v33 = vpop.permute.xlu0 %550  ;;  %v1861_v16 = vshll.u32 %v14344_v21, 16  ;;  %4652 = vmatpush.bf16.msra.mxu3 %v13071_v9  ;;  %4691 = vmatpush.bf16.msrb.mxu0 %v13079_v51 }
 0x14d   :  { %v14346_v49 = vrot.slane %v1510_v25, 7  ;;  %v893_v35 = vpop.permute.xlu2 %892  ;;  %v564_v56 = vsel %vm556_vm6, %v14085_v48, %v551_v33  ;;  %4588 = vmatmul.bf16.gmra.mxu1 %v11084_v31  ;;  %v10867_v40 = vrot.slane %v1505_v37, 11  ;;  %v1866_v48 = vshll.u32 %v14342_v20, 16 }
 0x14e   :  { %v908_v59 = vsel %vm556_vm6, %v14186_v62, %v893_v35  ;;  %v582_v15 = vunpack.c.l.b16 %v564_v56  ;;  %v583_v63 = vunpack.c.h.b16 %v564_v56  ;;  %v1863_v25 = vrot.slane %v1861_v16, 1  ;;  %v13078_v56 = vld [vmem:[#allocation6 + $0xd0] sm:$0xff]  ;;  %v10844_v16 = vld [vmem:[#allocation2] sm:$0xc] }
 0x14f   :  { %v1515_v7 = vor.u32 %v1513_v45, %v14346_v49  ;;  %v928_v23 = vunpack.c.l.b16 %v908_v59  ;;  %v929_v29 = vunpack.c.h.b16 %v908_v59  ;;  %v1859_v45 = vshrl.u32 %v14344_v21, 16 }
 0x150   :  { %v594_v10 = vpack.c.b16 %v582_v15, %v582_v15  ;;  %v595_v17 = vpack.c.b16 %v583_v63, %v583_v63  ;;  %v14377_v33 = vrot.slane %v1866_v48, 1  ;;  %v2247_v35 = vrot.slane %v2245_v12, 1  ;;  %4653 = vmatpush.bf16.msra.mxu3 %v13070_v38  ;;  %v12942_v48 = vld [vmem:[#allocation2] sm:$0xf0]  ;;  %4692 = vmatpush.bf16.msrb.mxu0 %v13078_v56  ;;  %v13090_v38 = vld [vmem:[#allocation6 + $0x130] sm:$0xff] }
 0x151   :  { %v1516_v62 = vsel %vm14354_vm8, %v10867_v40, %v1515_v7  ;;  %v14371_v5 = vpack.c.b16 %v928_v23, %v928_v23  ;;  %v14373_v61 = vpack.c.b16 %v929_v29, %v929_v29  ;;  %v10845_v26 = vor.u32 %v12942_v48, %v10844_v16  ;;  %4727 = vmatpush.bf16.msrb.mxu1 %v13090_v38  ;;  %v12961_v16 = vld [vmem:[#allocation2 + $0x28] sm:$0xff]  ;;  %v13076_v38 = vld [vmem:[#allocation6 + $0xc0] sm:$0xff] }
 0x152   :  { %1628 = vst [vmem:[#allocation4 + $0x10] sm:$0xf] %v1516_v62  ;;  %345 = vperm.xlu2 %13712, %v287_v3   ;;  %v1864_v62 = vor.u32 %v1863_v25, %v1859_v45  ;;  %v14397_v25 = vld [vmem:[#allocation2 + $0x1c] sm:$0xff] }
 0x153   :  { %618 = vst [vmem:[#allocation4 + $0x138] sm:$0xf] %v594_v10  ;;  %v962_v37 = vrot.slane %v14371_v5, 6  ;;  %v965_v40 = vrot.slane %v14373_v61, 6  ;;  %v13069_v10 = vld [vmem:[#allocation6 + $0x88] sm:$0xff]  ;;  %v1706_v42 = vshrl.u32 %v14397_v25, 16 }
 0x154   :  { %619 = vst [vmem:[#allocation4 + $0x16c] sm:$0xf] %v595_v17  ;;  %v718_v31 = vpop.permute.xlu0 %717  ;;  %4654 = vmatpush.bf16.msra.mxu3 %v13069_v10  ;;  %v17263_v61 = vrot.slane %v14299_v28, 5 }
 0x155   :  { %v724_v47 = vpop.permute.xlu2 %723  ;;  %v964_v59 = vrot.slane %v962_v37, 4  ;;  %v730_v7 = vsel %vm556_vm6, %v14120_v27, %v718_v31  ;;  %v2243_v27 = vshrl.u32 %v14350_v19, 16  ;;  %v13077_v31 = vld [vmem:[#allocation6 + $0xc8] sm:$0xff]  ;;  %v14399_v19 = vld [vmem:[#allocation2 + $0xc] sm:$0xff] }
 0x156   :  { %v736_v15 = vsel %vm556_vm6, %v14190_v4, %v724_v47  ;;  %v748_v63 = vunpack.c.l.b16 %v730_v7  ;;  %v749_v23 = vunpack.c.h.b16 %v730_v7  ;;  %v1869_v47 = vsel %vm496_vm9, %v1864_v62, %v14377_v33  ;;  %4693 = vmatpush.bf16.msrb.mxu0 %v13077_v31 }
 0x157   :  { %v754_v29 = vunpack.c.l.b16 %v736_v15  ;;  %v755_v3 = vunpack.c.h.b16 %v736_v15  ;;  %v966_v9 = vsel %vm14079_vm2, %v964_v59, %v965_v40  ;;  %v2248_v7 = vor.u32 %v2247_v35, %v2243_v27  ;;  %v13068_v35 = vld [vmem:[#allocation6 + $0x80] sm:$0xff] }
 0x158   :  { %1002 = vst [vmem:[#allocation4 + $0xd8] sm:$0xf] %v966_v9  ;;  %v760_v4 = vpack.c.b16 %v748_v63, %v748_v63  ;;  %v761_v17 = vpack.c.b16 %v749_v23, %v749_v23  ;;  %v13691_v23 = vld [vmem:[#allocation2 + $0x1c] sm:$0xff]   ;;  %4655 = vmatpush.bf16.msra.mxu3 %v13068_v35  ;;  %v1702_v31 = vshll.u32 %v14397_v25, 16 }
 0x159   :  { %v14391_v12 = vpack.c.b16 %v754_v29, %v754_v29  ;;  %v14393_v51 = vpack.c.b16 %v755_v3, %v755_v3  ;;  %v2253_v3 = vsel %vm496_vm9, %v2248_v7, %v14141_v53 }
 0x15a   :  { %v11135_v56 = vld [vmem:[#allocation4 + $0x138] sm:$0xf]  ;;  %v10841_v45 = vrot.slane %v760_v4, 9  ;;  %v777_v59 = vrot.slane %v761_v17, 5  ;;  %1905 = vrot.lane.b32.xlu2 %v1869_v47, %s13859_s9  ;;  %v13089_v17 = vld [vmem:[#allocation6 + $0x128] sm:$0xff]  ;;  %4694 = vmatpush.bf16.msrb.mxu0 %v13076_v38 }
 0x15b   :  { %v17217_v15 = vrot.slane %v14391_v12, 5  ;;  %v13019_v63 = vld [vmem:[#allocation4 + $0x168] sm:$0xf0]  ;;  %v17218_v27 = vrot.slane %v14393_v51, 5  ;;  %4728 = vmatpush.bf16.msrb.mxu1 %v13089_v17  ;;  %v13088_v17 = vld [vmem:[#allocation6 + $0x120] sm:$0xff] }
 0x15c   :  { %v11136_v29 = vor.u32 %v13019_v63, %v11135_v56  ;;  %v778_v48 = vsel %vm14304_vm12, %v10841_v45, %v777_v59  ;;  %v779_v9 = vrot.slane %v777_v59, 4  ;;  %v889_v10 = vpop.permute.xlu0 %888  ;;  %v12951_v63 = vld [vmem:[#allocation2 + $0x24] sm:$0xff] }
 0x15d   :  { %v794_v62 = vrot.slane %v17217_v15, 4  ;;  %v1440_v4 = vpop.permute.xlu2 %1439  ;;  %822 = vst [vmem:[#allocation4 + $0x4] sm:$0xf] %v778_v48  ;;  %v902_v47 = vsel %vm556_vm6, %v10845_v26, %v889_v10  ;;  %v461_v48 = vld [vmem:[#allocation2 + $0x2c] sm:$0x3]  ;;  %v2266_v10 = vshll.u32 %v12961_v16, 16 }
 0x15e   :  { %v1458_v53 = vsel %vm556_vm6, %v13691_v23, %v1440_v4  ;;  %4593 = vmatmul.bf16.gmra.mxu1 %v11136_v29  ;;  %v781_v7 = vsel %vm14304_vm12, %v779_v9, %v780_v58  ;;  %v924_v59 = vunpack.c.l.b16 %v902_v47  ;;  %v925_v26 = vunpack.c.h.b16 %v902_v47 }
 0x15f   :  { %v796_v45 = vsel %vm14304_vm12, %v794_v62, %v17218_v27  ;;  %823 = vst [vmem:[#allocation4 + $0x38] sm:$0xf] %v781_v7  ;;  %v1481_v23 = vunpack.c.l.b16 %v1458_v53  ;;  %v1482_v29 = vunpack.c.h.b16 %v1458_v53  ;;  %v2262_v4 = vshrl.u32 %v14143_v54, 16  ;;  %4729 = vmatpush.bf16.msrb.mxu1 %v13088_v17 }
 0x160   :  { %v553_v35 = vpop.permute.xlu1 %552  ;;  %828 = vst [vmem:[#allocation4 + $0x13c] sm:$0xf] %v796_v45  ;;  %v936_v58 = vpack.c.b16 %v924_v59, %v924_v59  ;;  %v14423_v9 = vpack.c.b16 %v925_v26, %v925_v26  ;;  %v486_v38 = vunpack.c.l.b16 %v461_v48  ;;  %v1710_v45 = vshll.u32 %v12951_v63, 16 }
 0x161   :  { %v566_v62 = vsel %vm556_vm6, %v14133_v43, %v553_v35  ;;  %v14428_v47 = vpack.c.b16 %v1481_v23, %v1481_v23  ;;  %v1495_v7 = vpack.c.b16 %v1482_v29, %v1482_v29  ;;  %v14433_v43 = vrot.slane %v2266_v10, 1 }
 0x162   :  { %v584_v53 = vunpack.c.l.b16 %v566_v62  ;;  %v585_v0 = vunpack.c.h.b16 %v566_v62  ;;  %v10846_v1 = vrot.slane %v936_v58, 10  ;;  %v953_v16 = vrot.slane %v14423_v9, 6  ;;  %2296 = vrot.lane.b32.xlu2 %v2253_v3, %s13859_s9  ;;  %v13087_v62 = vld [vmem:[#allocation6 + $0x118] sm:$0xff] }
 0x163   :  { %v1555_v59 = vshrl.u32 %v14428_v47, 16  ;;  %v1564_v26 = vshrl.u32 %v1495_v7, 16  ;;  %v14435_v54 = vrot.slane %v1702_v31, 1  ;;  %v2264_v9 = vor.u32 %v2262_v4, %v14157_v22  ;;  %4730 = vmatpush.bf16.msrb.mxu1 %v13087_v62 }
 0x164   :  { %v954_v23 = vsel %vm14079_vm2, %v10846_v1, %v953_v16  ;;  %v596_v29 = vpack.c.b16 %v584_v53, %v584_v53  ;;  %v597_v35 = vpack.c.b16 %v585_v0, %v585_v0  ;;  %v1117_v58 = vpop.permute.xlu0 %1116  ;;  %v1567_v48 = vshll.u32 %v1495_v7, 16  ;;  %v12974_v53 = vld [vmem:[#allocation4 + $0x4] sm:$0xf] }
 0x165   :  { %998 = vst [vmem:[#allocation4 + $0x8] sm:$0xf] %v954_v23  ;;  %v14440_v3 = vrot.slane %v1555_v59, 7  ;;  %v14442_v63 = vrot.slane %v1564_v26, 7  ;;  %v1132_v10 = vsel %vm556_vm6, %v14139_v52, %v1117_v58  ;;  %v14448_v0 = vpack.c.b16 %v486_v38, %v485_v46  ;;  %v14471_v58 = vld [vmem:[%s17211_s5] ss:$0 sm:$0xff] }
 0x166   :  { %620 = vst [vmem:[#allocation4 + $0x1a0] sm:$0xf] %v596_v29  ;;  %v1152_v31 = vunpack.c.l.b16 %v1132_v10  ;;  %v1153_v17 = vunpack.c.h.b16 %v1132_v10  ;;  %v10981_v56 = vld [vmem:[#allocation4 + $0x34] sm:$0xf0]  ;;  %v14450_v1 = vrot.slane %v1710_v45, 1  ;;  %v14456_v52 = vsel %vm496_vm9, %v2264_v9, %v14433_v43  ;;  %v209_v45 = vpop.f32.mrf.mxu0  ;;  %v13086_v29 = vld [vmem:[#allocation6 + $0x110] sm:$0xff] }
 0x167   :  { %v1562_v22 = vrot.slane %v14440_v3, 4  ;;  %v1569_v4 = vor.u32 %v1567_v48, %v14442_v63  ;;  %621 = vst [vmem:[#allocation4 + $0x1d4] sm:$0xf] %v597_v35  ;;  %v14460_v59 = vrot.slane %v3232_v18, 4  ;;  %v10984_v23 = vor.u32 %v12974_v53, %v10981_v56  ;;  %4731 = vmatpush.bf16.msrb.mxu1 %v13086_v29 }
 0x168   :  { %v891_v7 = vpop.permute.xlu1 %890  ;;  %v1165_v46 = vpack.c.b16 %v1152_v31, %v1152_v31  ;;  %v1166_v38 = vpack.c.b16 %v1153_v17, %v1153_v17  ;;  %v225_v2 = vmul.f32 %v14471_v58, %v209_v45  ;;  %v955_v56 = vrot.slane %v953_v16, 4  ;;  %v14482_v16 = vld [vmem:[%s17211_s5 + $0x1] ss:$0 sm:$0xff] }
 0x169   :  { %v905_v26 = vsel %vm556_vm6, %v14169_v30, %v891_v7  ;;  %v1570_v35 = vsel %vm14354_vm8, %v1562_v22, %v1569_v4  ;;  %4617 = vmatmul.bf16.vlgmr.msra.gmra.mxu2 %v10984_v23  ;;  %v17220_v30 = vrot.slane %v14462_v36, 6  ;;  %v13687_v4 = vld [vmem:[#allocation2 + $0xc] sm:$0xff]  }
 0x16a   :  { %v926_v18 = vunpack.c.l.b16 %v905_v26  ;;  %v927_v9 = vunpack.c.h.b16 %v905_v26  ;;  %1634 = vst [vmem:[#allocation4 + $0x148] sm:$0xf] %v1570_v35  ;;  %v1199_v62 = vshrl.u32 %v1165_v46, 16  ;;  %v1202_v48 = vshll.u32 %v1165_v46, 16  ;;  %2075 = vrot.lane.b32.xlu2 %v14208_v41, %s13859_s9  ;;  %v13085_v41 = vld [vmem:[#allocation6 + $0x108] sm:$0xff] }
 0x16b   :  { %v1209_v10 = vshrl.u32 %v1166_v38, 16  ;;  %v1212_v31 = vshll.u32 %v1166_v38, 16  ;;  %v1197_v46 = vrot.slane %v14336_v8, 4  ;;  %v238_v29 = vadd.f32 %v14482_v16, %v225_v2  ;;  %4732 = vmatpush.bf16.msrb.mxu1 %v13085_v41  ;;  %v13084_v2 = vld [vmem:[#allocation6 + $0x100] sm:$0xff] }
 0x16c   :  { %v938_v17 = vpack.c.b16 %v926_v18, %v926_v18  ;;  %v939_v22 = vpack.c.b16 %v927_v9, %v927_v9  ;;  %v1201_v7 = vrot.slane %v1199_v62, 6  ;;  %v1204_v53 = vrot.slane %v1202_v48, 7  ;;  %v1436_v35 = vpop.permute.xlu0 %1435 }
 0x16d   :  { %v1211_v45 = vrot.slane %v1209_v10, 6  ;;  %v1214_v26 = vrot.slane %v1212_v31, 7  ;;  %v1452_v23 = vsel %vm556_vm6, %v13687_v4, %v1436_v35  ;;  %v11187_v27 = vld [vmem:[#allocation4 + $0x1a0] sm:$0xf]  ;;  %v1517_v35 = vrot.slane %v14346_v49, 4 }
 0x16e   :  { %v956_v15 = vrot.slane %v938_v17, 6  ;;  %v959_v38 = vrot.slane %v939_v22, 6  ;;  %v1205_v57 = vor.u32 %v1204_v53, %v1201_v7  ;;  %v1477_v18 = vunpack.c.l.b16 %v1452_v23  ;;  %v13032_v62 = vld [vmem:[#allocation4 + $0x1d0] sm:$0xf0] }
 0x16f   :  { %v1478_v9 = vunpack.c.h.b16 %v1452_v23  ;;  %v11188_v31 = vor.u32 %v13032_v62, %v11187_v27  ;;  %v14489_v7 = vor.u32 %v1214_v26, %v1211_v45  ;;  %v262_v26 = vmul.f32 0.01, %v238_v29  ;;  %4733 = vmatpush.bf16.msrb.mxu1 %v13084_v2 }
 0x170   :  { %v957_v8 = vsel %vm14079_vm2, %v955_v56, %v956_v15  ;;  %v958_v48 = vrot.slane %v956_v15, 4  ;;  %v961_v10 = vrot.slane %v959_v38, 4  ;;  %v555_v17 = vpop.permute.xlu1 %554  ;;  %v1206_v22 = vsel %vm14331_vm15, %v1197_v46, %v1205_v57 }
 0x171   :  { %v1207_v4 = vrot.slane %v1205_v57, 4  ;;  %999 = vst [vmem:[#allocation4 + $0x3c] sm:$0xf] %v957_v8  ;;  %v1490_v53 = vpack.c.b16 %v1477_v18, %v1477_v18  ;;  %v1491_v27 = vpack.c.b16 %v1478_v9, %v1478_v9  ;;  %4598 = vmatmul.bf16.gmra.mxu1 %v11188_v31  ;;  %v569_v49 = vsel %vm556_vm6, %v14448_v0, %v555_v17 }
 0x172   :  { %1316 = vst [vmem:[#allocation4 + $0x40] sm:$0xf] %v1206_v22  ;;  %v960_v56 = vsel %vm14079_vm2, %v958_v48, %v959_v38  ;;  %v963_v15 = vsel %vm14079_vm2, %v961_v10, %v962_v37  ;;  %2300 = vrot.lane.b32.xlu2 %v14456_v52, %s13859_s9  ;;  %v586_v46 = vunpack.c.l.b16 %v569_v49  ;;  %v587_v38 = vunpack.c.h.b16 %v569_v49  ;;  %v14515_v48 = vld [vmem:[#allocation2 + $0x14] sm:$0xf] }
 0x173   :  { %v1216_v57 = vsel %vm14331_vm15, %v1207_v4, %v14489_v7  ;;  %1000 = vst [vmem:[#allocation4 + $0x70] sm:$0xf] %v960_v56  ;;  %v1519_v45 = vshrl.u32 %v1490_v53, 16  ;;  %v1528_v5 = vshrl.u32 %v1491_v27, 16  ;;  %vm250_vm10 = vcmp.ge.f32.partialorder %v238_v29, 0.0 }
 0x174   :  { %1317 = vst [vmem:[#allocation4 + $0x74] sm:$0xf] %v1216_v57  ;;  %v1522_v23 = vshll.u32 %v1490_v53, 16  ;;  %v1531_v41 = vshll.u32 %v1491_v27, 16  ;;  %v1119_v18 = vpop.permute.xlu0 %1118  ;;  %v3236_v0 = vsel %vm14079_vm2, %v14460_v59, %v17220_v30  ;;  %v598_v52 = vpack.c.b16 %v586_v46, %v586_v46  ;;  %v10987_v4 = vld [vmem:[#allocation4 + $0x8] sm:$0xf] }
 0x175   :  { %1001 = vst [vmem:[#allocation4 + $0xa4] sm:$0xf] %v963_v15  ;;  %v1521_v37 = vrot.slane %v1519_v45, 7  ;;  %v14510_v9 = vrot.slane %v1528_v5, 7  ;;  %v599_v62 = vpack.c.b16 %v587_v38, %v587_v38  ;;  %v1134_v8 = vsel %vm556_vm6, %v14180_v50, %v1119_v18  ;;  %v14517_v53 = vld [vmem:[#allocation2 + $0x10] sm:$0xc] }
 0x176   :  { %3270 = vst.msk [vmem:[#allocation4 + $0x134] sm:$0xf] %vm72_vm1, %v3236_v0  ;;  %v1154_v17 = vunpack.c.l.b16 %v1134_v8  ;;  %v1155_v22 = vunpack.c.h.b16 %v1134_v8  ;;  %v274_v2 = vsel %vm250_vm10, %v238_v29, %v262_v26  ;;  %v1708_v50 = vor.u32 %v1706_v42, %v14435_v54  ;;  %v14524_v27 = vld [vmem:[#allocation2 + $0x1c] sm:$0xff]  ;;  %v12975_v38 = vld [vmem:[#allocation4 + $0xc] sm:$0xf]  ;;  %v14536_v8 = vld [vmem:[#allocation2 + $0x14] sm:$0xff] }
 0x177   :  { %v1524_v10 = vor.u32 %v1522_v23, %v1521_v37  ;;  %v1526_v31 = vrot.slane %v1521_v37, 4  ;;  %v1533_v59 = vor.u32 %v1531_v41, %v14510_v9  ;;  %622 = vst [vmem:[#allocation4 + $0x208] sm:$0xf] %v598_v52 }
 0x178   :  { %v341_v56 = vpop.permute.xlu1 %340  ;;  %v12981_v15 = vld [vmem:[#allocation4 + $0x38] sm:$0xf0]  ;;  %623 = vst [vmem:[#allocation4 + $0x23c] sm:$0x3] %v599_v62  ;;  %v1167_v49 = vpack.c.b16 %v1154_v17, %v1154_v17  ;;  %v1168_v5 = vpack.c.b16 %v1155_v22, %v1155_v22  ;;  %v1713_v25 = vsel %vm496_vm9, %v1708_v50, %v14450_v1  ;;  %v1874_v62 = vshll.u32 %v14524_v27, 16 }
 0x179   :  { %v1525_v45 = vsel %vm14354_vm8, %v1517_v35, %v1524_v10  ;;  %v358_v46 = vmul.f32 %v341_v56, %v274_v2  ;;  %v10989_v37 = vld [vmem:[#allocation4 + $0x3c] sm:$0xf0]  ;;  %v1534_v29 = vsel %vm14354_vm8, %v1526_v31, %v1533_v59  ;;  %v10988_v26 = vor.u32 %v12981_v15, %v10987_v4  ;;  %v13543_v59 = vld [vmem:[#allocation2 + $0x18] sm:$0xff]  }
 0x17a   :  { %1629 = vst [vmem:[#allocation4 + $0x44] sm:$0xf] %v1525_v45  ;;  %v10992_v42 = vor.u32 %v12975_v38, %v10989_v37  ;;  %v1219_v23 = vshrl.u32 %v1167_v49, 16  ;;  %v1222_v41 = vshll.u32 %v1167_v49, 16  ;;  %v1229_v18 = vshrl.u32 %v1168_v5, 16  ;;  %1737 = vrot.lane.b32.xlu2 %v1713_v25, %s13859_s9 }
 0x17b   :  { %1630 = vst [vmem:[#allocation4 + $0x78] sm:$0xf] %v1534_v29  ;;  %v1232_v35 = vshll.u32 %v1168_v5, 16  ;;  %v370_v52 = vpack.c.bf16 %v358_v46, %v358_v46  ;;  %4656 = vmatmul.bf16.vlgmr.msra.gmra.mxu3 %v10988_v26  ;;  %v415_v56 = vrot.slane %v14289_v13, 4  ;;  %v1870_v45 = vshrl.u32 %v14342_v20, 16 }
 0x17c   :  { %4695 = vmatmul.bf16.vlgmr.msrb.gmra.mxu0 %v10992_v42  ;;  %v1221_v31 = vrot.slane %v1219_v23, 6  ;;  %v1224_v17 = vrot.slane %v1222_v41, 7  ;;  %v1231_v22 = vrot.slane %v1229_v18, 6  ;;  %v895_v2 = vpop.permute.xlu0 %894  ;;  %v1217_v49 = vrot.slane %v14489_v7, 4 }
 0x17d   :  { %v1234_v4 = vrot.slane %v1232_v35, 7  ;;  %v14540_v15 = vrot.slane %v370_v52, 7  ;;  %v911_v50 = vsel %vm556_vm6, %v13543_v59, %v895_v2  ;;  %v14549_v13 = vor.u32 %v1870_v45, %v14377_v33 }
 0x17e   :  { %v1225_v5 = vor.u32 %v1224_v17, %v1221_v31  ;;  %v930_v46 = vunpack.c.l.b16 %v911_v50  ;;  %v931_v38 = vunpack.c.h.b16 %v911_v50  ;;  %v11239_v37 = vld [vmem:[#allocation4 + $0x208] sm:$0xf]  ;;  %v14551_v42 = vrot.slane %v1874_v62, 1  ;;  %v13743_v62 = vld [vmem:[#allocation2 + $0x10] sm:$0xff]  ;;  %v211_v17 = vpop.f32.mrf.mxu0 }
 0x17f   :  { %v417_v29 = vsel %vm14039_vm7, %v415_v56, %v14540_v15  ;;  %v13045_v26 = vld [vmem:[#allocation4 + $0x238] sm:$0x30]  ;;  %v14556_v41 = vor.u32 %v1234_v4, %v1231_v22  ;;  %v967_v35 = vrot.slane %v965_v40, 4  ;;  %v14567_v56 = vld [vmem:[#allocation2 + $0x28] sm:$0x70]  ;;  %v785_v40 = vrot.slane %v17263_v61, 4 }
 0x180   :  { %v722_v25 = vpop.permute.xlu1 %721  ;;  %v1226_v20 = vsel %vm14331_vm15, %v1217_v49, %v1225_v5  ;;  %v1227_v7 = vrot.slane %v1225_v5, 4  ;;  %446 = vst.msk [vmem:[#allocation2 + $0x34] sm:$0xf] %vm72_vm1, %v417_v29  ;;  %v942_v18 = vpack.c.b16 %v930_v46, %v930_v46  ;;  %v14561_v52 = vpack.c.b16 %v931_v38, %v931_v38  ;;  %v12988_v61 = vld [vmem:[#allocation4 + $0x74] sm:$0xf] }
 0x181   :  { %1318 = vst [vmem:[#allocation4 + $0xa8] sm:$0xf] %v1226_v20  ;;  %v11240_v33 = vor.u32 %v13045_v26, %v11239_v37  ;;  %v734_v31 = vsel %vm556_vm6, %v13743_v62, %v722_v25  ;;  %v1558_v50 = vshll.u32 %v14428_v47, 16  ;;  %v1104_v49 = vshrl.u32 %v14308_v60, 16  ;;  %v14576_v26 = vld [vmem:[#allocation2 + $0x28] sm:$0xf]  }
 0x182   :  { %v1236_v59 = vsel %vm14331_vm15, %v1227_v7, %v14556_v41  ;;  %v968_v22 = vrot.slane %v942_v18, 6  ;;  %v752_v4 = vunpack.c.l.b16 %v734_v31  ;;  %v753_v2 = vunpack.c.h.b16 %v734_v31  ;;  %v13744_v47 = vld [vmem:[#allocation2 + $0x20] sm:$0xff]  ;;  %v11039_v20 = vld [vmem:[#allocation4 + $0x70] sm:$0xf]  ;;  %v12994_v7 = vld [vmem:[#allocation4 + $0xa0] sm:$0xf0] }
 0x183   :  { %1319 = vst [vmem:[#allocation4 + $0xdc] sm:$0xf] %v1236_v59  ;;  %v971_v45 = vrot.slane %v14561_v52, 6  ;;  %4603 = vmatmul.bf16.gmra.mxu1 %v11240_v33  ;;  %v14579_v28 = vmul.f32 %v14471_v58, %v211_v17  ;;  %v14583_v60 = vor.u32 %v1104_v49, %v14321_v14  ;;  %v13689_v31 = vld [vmem:[#allocation2 + $0x14] sm:$0xff]   ;;  %v17264_v17 = vrot.slane %v14393_v51, 5 }
 0x184   :  { %v969_v5 = vsel %vm14079_vm2, %v967_v35, %v968_v22  ;;  %v970_v46 = vrot.slane %v968_v22, 4  ;;  %v764_v38 = vpack.c.b16 %v752_v4, %v752_v4  ;;  %v765_v37 = vpack.c.b16 %v753_v2, %v753_v2  ;;  %v726_v29 = vpop.permute.xlu0 %725 }
 0x185   :  { %1003 = vst [vmem:[#allocation4 + $0x10c] sm:$0xf] %v969_v5  ;;  %v738_v25 = vsel %vm556_vm6, %v13744_v47, %v726_v29  ;;  %v797_v59 = vrot.slane %v17264_v17, 4  ;;  %v14594_v22 = vor.u32 %v1558_v50, %v14440_v3  ;;  %v1571_v14 = vrot.slane %v14442_v63, 4  ;;  %v12982_v17 = vld [vmem:[#allocation4 + $0x40] sm:$0xf0] }
 0x186   :  { %v972_v35 = vsel %vm14079_vm2, %v970_v46, %v971_v45  ;;  %v786_v33 = vrot.slane %v764_v38, 5  ;;  %v789_v58 = vrot.slane %v765_v37, 5  ;;  %v756_v62 = vunpack.c.l.b16 %v738_v25 }
 0x187   :  { %1004 = vst [vmem:[#allocation4 + $0x140] sm:$0xf] %v972_v35  ;;  %v757_v4 = vunpack.c.h.b16 %v738_v25  ;;  %v11040_v38 = vor.u32 %v12994_v7, %v11039_v20  ;;  %v1022_v29 = vld [vmem:[#allocation2 + $0x34] sm:$0x1]  ;;  %v1535_v25 = vrot.slane %v14510_v9, 4 }
 0x188   :  { %v1438_v2 = vpop.permute.xlu1 %1437  ;;  %v787_v49 = vsel %vm14304_vm12, %v785_v40, %v786_v33  ;;  %v788_v5 = vrot.slane %v786_v33, 4  ;;  %v791_v46 = vrot.slane %v789_v58, 4  ;;  %v11041_v37 = vld [vmem:[#allocation4 + $0xa4] sm:$0xf0]  ;;  %v768_v51 = vpack.c.b16 %v756_v62, %v756_v62  ;;  %v14602_v35 = vld [vmem:[#allocation2 + $0x30] sm:$0xff]  }
 0x189   :  { %825 = vst [vmem:[#allocation4 + $0xa0] sm:$0xf] %v787_v49  ;;  %v14599_v47 = vpack.c.b16 %v757_v4, %v757_v4  ;;  %v1455_v3 = vsel %vm556_vm6, %v13689_v31, %v1438_v2  ;;  %v11044_v50 = vor.u32 %v12988_v61, %v11041_v37  ;;  %v17265_v33 = vrot.slane %v14391_v12, 5  ;;  %v1339_v62 = vld [vmem:[#allocation2 + $0x34] sm:$0x3] }
 0x18a   :  { %v790_v40 = vsel %vm14304_vm12, %v788_v5, %v789_v58  ;;  %v1479_v7 = vunpack.c.l.b16 %v1455_v3  ;;  %v798_v31 = vrot.slane %v768_v51, 5  ;;  %v1480_v2 = vunpack.c.h.b16 %v1455_v3  ;;  %v10995_v61 = vld [vmem:[#allocation4 + $0x10] sm:$0xf]  ;;  %v13692_v5 = vld [vmem:[#allocation2 + $0x24] sm:$0xff]  }
 0x18b   :  { %v793_v20 = vsel %vm14304_vm12, %v791_v46, %v17265_v33  ;;  %826 = vst [vmem:[#allocation4 + $0xd4] sm:$0xf] %v790_v40  ;;  %4661 = vmatmul.bf16.gmra.mxu3 %v11040_v38  ;;  %v1049_v49 = vunpack.c.l.b16 %v1022_v29  ;;  %v17221_v9 = vrot.slane %v14599_v47, 5  ;;  %v10996_v37 = vor.u32 %v12982_v17, %v10995_v61 }
 0x18c   :  { %4700 = vmatmul.bf16.gmra.mxu0 %v11044_v50  ;;  %827 = vst [vmem:[#allocation4 + $0x108] sm:$0xf] %v793_v20  ;;  %v1492_v58 = vpack.c.b16 %v1479_v7, %v1479_v7  ;;  %v1442_v12 = vpop.permute.xlu0 %1441  ;;  %v1364_v46 = vunpack.c.l.b16 %v14602_v35  ;;  %v799_v33 = vsel %vm14304_vm12, %v797_v59, %v798_v31  ;;  %v800_v30 = vrot.slane %v798_v31, 4 }
 0x18d   :  { %v1493_v40 = vpack.c.b16 %v1480_v2, %v1480_v2  ;;  %v14616_v51 = vunpack.c.l.b16 %v1339_v62  ;;  %829 = vst [vmem:[#allocation4 + $0x170] sm:$0xf] %v799_v33  ;;  %v1461_v29 = vsel %vm556_vm6, %v13692_v5, %v1442_v12  ;;  %v14619_v50 = vpack.c.b16 %v1049_v49, %v1049_v49  ;;  %v13745_v2 = vld [vmem:[#allocation2 + $0x1c] sm:$0xff] }
 0x18e   :  { %v1537_v38 = vshrl.u32 %v1492_v58, 16  ;;  %v1540_v3 = vshll.u32 %v1492_v58, 16  ;;  %v802_v17 = vsel %vm14304_vm12, %v800_v30, %v17221_v9  ;;  %v1483_v61 = vunpack.c.l.b16 %v1461_v29 }
 0x18f   :  { %v1546_v20 = vshrl.u32 %v1493_v40, 16  ;;  %v1549_v7 = vshll.u32 %v1493_v40, 16  ;;  %830 = vst [vmem:[#allocation4 + $0x1a4] sm:$0xf] %v802_v17  ;;  %v1484_v62 = vunpack.c.h.b16 %v1461_v29  ;;  %v1108_v58 = vshll.u32 %v14619_v50, 16 }
 0x190   :  { %v1121_v59 = vpop.permute.xlu1 %1120  ;;  %v1539_v31 = vrot.slane %v1537_v38, 7  ;;  %v1496_v49 = vpack.c.b16 %v1483_v61, %v1483_v61 }
 0x191   :  { %v1136_v33 = vsel %vm556_vm6, %v13745_v2, %v1121_v59  ;;  %v1548_v5 = vrot.slane %v1546_v20, 7  ;;  %v1497_v57 = vpack.c.b16 %v1484_v62, %v1484_v62  ;;  %v1110_v30 = vrot.slane %v1108_v58, 1 }
 0x192   :  { %v1156_v12 = vunpack.c.l.b16 %v1136_v33  ;;  %v1157_v23 = vunpack.c.h.b16 %v1136_v33  ;;  %v1542_v0 = vor.u32 %v1540_v3, %v1539_v31  ;;  %v1544_v10 = vrot.slane %v1539_v31, 4  ;;  %v11033_v31 = vld [vmem:[#allocation4 + $0x9c] sm:$0xf0] }
 0x193   :  { %v1551_v9 = vor.u32 %v1549_v7, %v1548_v5  ;;  %v1553_v40 = vrot.slane %v1548_v5, 4  ;;  %v1573_v18 = vshrl.u32 %v1496_v49, 16  ;;  %v1576_v4 = vshll.u32 %v1496_v49, 16  ;;  %4734 = vmatmul.bf16.vlgmr.msrb.gmra.mxu1 %v10996_v37 }
 0x194   :  { %v1543_v38 = vsel %vm14354_vm8, %v1535_v25, %v1542_v0  ;;  %v1582_v29 = vshrl.u32 %v1497_v57, 16  ;;  %v1585_v17 = vshll.u32 %v1497_v57, 16  ;;  %v1169_v59 = vpack.c.b16 %v1156_v12, %v1156_v12  ;;  %v12987_v12 = vld [vmem:[#allocation4 + $0x6c] sm:$0xf] }
 0x195   :  { %v1552_v20 = vsel %vm14354_vm8, %v1544_v10, %v1551_v9  ;;  %v1561_v3 = vsel %vm14354_vm8, %v1553_v40, %v14594_v22  ;;  %1631 = vst [vmem:[#allocation4 + $0xac] sm:$0xf] %v1543_v38  ;;  %v1575_v61 = vrot.slane %v1573_v18, 7  ;;  %v1170_v7 = vpack.c.b16 %v1157_v23, %v1157_v23 }
 0x196   :  { %1632 = vst [vmem:[#allocation4 + $0xe0] sm:$0xf] %v1552_v20  ;;  %v14634_v62 = vrot.slane %v1582_v29, 7  ;;  %v1239_v37 = vshrl.u32 %v1169_v59, 16  ;;  %v1242_v2 = vshll.u32 %v1169_v59, 16  ;;  %v1111_v57 = vsel %vm496_vm9, %v14583_v60, %v1110_v30  ;;  %v14649_v30 = vld [vmem:[#allocation2 + $0x20] sm:$0xff]  }
 0x197   :  { %1633 = vst [vmem:[#allocation4 + $0x114] sm:$0xf] %v1561_v3  ;;  %v1578_v0 = vor.u32 %v1576_v4, %v1575_v61  ;;  %v1580_v25 = vrot.slane %v1575_v61, 4  ;;  %v1249_v10 = vshrl.u32 %v1170_v7, 16  ;;  %v1252_v9 = vshll.u32 %v1170_v7, 16  ;;  %1124 = vrot.lane.b32.xlu0 %v1111_v57, %s13859_s9 }
 0x198   :  { %v897_v22 = vpop.permute.xlu1 %896  ;;  %v973_v23 = vrot.slane %v971_v45, 4  ;;  %v1587_v18 = vor.u32 %v1585_v17, %v14634_v62  ;;  %v1241_v33 = vrot.slane %v1239_v37, 6  ;;  %v1244_v58 = vrot.slane %v1242_v2, 7  ;;  %v13007_v59 = vld [vmem:[#allocation4 + $0x108] sm:$0xf0] }
 0x199   :  { %v1579_v60 = vsel %vm14354_vm8, %v1571_v14, %v1578_v0  ;;  %v1251_v5 = vrot.slane %v1249_v10, 6  ;;  %v1254_v4 = vrot.slane %v1252_v9, 7  ;;  %v1378_v49 = vpack.c.b16 %v14616_v51, %v1364_v46  ;;  %v11091_v37 = vld [vmem:[#allocation4 + $0xd8] sm:$0xf] }
 0x19a   :  { %v1588_v52 = vsel %vm14354_vm8, %v1580_v25, %v1587_v18  ;;  %1635 = vst [vmem:[#allocation4 + $0x17c] sm:$0xf] %v1579_v60  ;;  %v1245_v45 = vor.u32 %v1244_v58, %v1241_v33  ;;  %v11036_v40 = vor.u32 %v12987_v12, %v11033_v31  ;;  %v914_v63 = vsel %vm556_vm6, %v14649_v30, %v897_v22  ;;  %v13746_v33 = vld [vmem:[#allocation2 + $0x24] sm:$0xff] }
 0x19b   :  { %1636 = vst [vmem:[#allocation4 + $0x1b0] sm:$0xf] %v1588_v52  ;;  %v14655_v14 = vor.u32 %v1254_v4, %v1251_v5  ;;  %v1425_v38 = vshrl.u32 %v1378_v49, 16  ;;  %v1428_v29 = vshll.u32 %v1378_v49, 16  ;;  %v932_v17 = vunpack.c.l.b16 %v914_v63  ;;  %v11047_v4 = vld [vmem:[#allocation4 + $0x78] sm:$0xf] }
 0x19c   :  { %v17266_v20 = vrot.slane %v14556_v41, 4  ;;  %v1247_v61 = vrot.slane %v1245_v45, 4  ;;  %4622 = vmatmul.bf16.gmra.mxu2 %v11036_v40  ;;  %v933_v7 = vunpack.c.h.b16 %v914_v63  ;;  %v1112_v31 = vshrl.u32 %v14619_v50, 16  ;;  %v1123_v2 = vpop.permute.xlu2 %1122  ;;  %v12995_v9 = vld [vmem:[#allocation4 + $0xa8] sm:$0xf0] }
 0x19d   :  { %v14664_v57 = vadd.f32 %v14482_v16, %v14579_v28  ;;  %v1427_v0 = vrot.slane %v1425_v38, 4  ;;  %v1430_v25 = vrot.slane %v1428_v29, 5  ;;  %v944_v10 = vpack.c.b16 %v932_v17, %v932_v17 }
 0x19e   :  { %v1246_v3 = vsel %vm14331_vm15, %v17266_v20, %v1245_v45  ;;  %v1256_v41 = vsel %vm14331_vm15, %v1247_v61, %v14655_v14  ;;  %v14669_v22 = vpack.c.b16 %v933_v7, %v933_v7  ;;  %v11092_v18 = vor.u32 %v13007_v59, %v11091_v37  ;;  %v13001_v37 = vld [vmem:[#allocation4 + $0xdc] sm:$0xf] }
 0x19f   :  { %1320 = vst [vmem:[#allocation4 + $0x110] sm:$0xf] %v1246_v3  ;;  %v1138_v58 = vsel %vm556_vm6, %v13746_v33, %v1123_v2  ;;  %v14672_v60 = vor.u32 %v1430_v25, %v1427_v0  ;;  %v974_v16 = vrot.slane %v944_v10, 6  ;;  %1126 = vrot.lane.b32.xlu0 %v1112_v31, %s13859_s9  ;;  %v11048_v52 = vor.u32 %v12995_v9, %v11047_v4  ;;  %v14697_v31 = vld [vmem:[#allocation2 + $0x28] sm:$0xff]  }
 0x1a0   :  { %1321 = vst [vmem:[#allocation4 + $0x144] sm:$0xf] %v1256_v41  ;;  %v1158_v28 = vunpack.c.l.b16 %v1138_v58  ;;  %v1159_v5 = vunpack.c.h.b16 %v1138_v58  ;;  %v728_v49 = vpop.permute.xlu1 %727  ;;  %v977_v12 = vrot.slane %v14669_v22, 6  ;;  %4666 = vmatmul.bf16.gmra.mxu3 %v11092_v18  ;;  %v17267_v45 = vor.u32 %v14567_v56, %v14576_v26 }
 0x1a1   :  { %v1877_v63 = vsel %vm496_vm9, %v14549_v13, %v14551_v42  ;;  %v1432_v38 = vsel %vm1379_vm4, %v14263_v34, %v14672_v60  ;;  %v975_v29 = vsel %vm14079_vm2, %v973_v23, %v974_v16  ;;  %v976_v17 = vrot.slane %v974_v16, 4 }
 0x1a2   :  { %v741_v40 = vsel %vm556_vm6, %v17267_v45, %v728_v49  ;;  %v1171_v59 = vpack.c.b16 %v1158_v28, %v1158_v28  ;;  %vm251_vm11 = vcmp.ge.f32.partialorder %v14664_v57, 0.0  ;;  %1443 = vrot.lane.b32.xlu1 %v1432_v38, %s13859_s9  ;;  %1005 = vst [vmem:[#allocation4 + $0x174] sm:$0xf] %v975_v29  ;;  %v1172_v56 = vpack.c.b16 %v1159_v5, %v1159_v5  ;;  %v13000_v45 = vld [vmem:[#allocation4 + $0xd4] sm:$0xf] }
 0x1a3   :  { %v758_v26 = vunpack.c.l.b16 %v741_v40  ;;  %v759_v20 = vunpack.c.h.b16 %v741_v40  ;;  %v263_v3 = vmul.f32 0.01, %v14664_v57  ;;  %v17268_v13 = vrot.slane %v14599_v47, 5  ;;  %4739 = vmatmul.bf16.gmra.mxu1 %v11048_v52  ;;  %v11085_v40 = vld [vmem:[#allocation4 + $0x104] sm:$0xf0] }
 0x1a4   :  { %v978_v34 = vsel %vm14079_vm2, %v976_v17, %v977_v12  ;;  %v1259_v23 = vshrl.u32 %v1171_v59, 16  ;;  %v1262_v7 = vshll.u32 %v1171_v59, 16  ;;  %v1269_v2 = vshrl.u32 %v1172_v56, 16  ;;  %v899_v9 = vpop.permute.xlu2 %898  ;;  %v14703_v17 = vpop.f32.mrf.mxu1 }
 0x1a5   :  { %v803_v61 = vrot.slane %v17268_v13, 4  ;;  %1006 = vst [vmem:[#allocation4 + $0x1a8] sm:$0xf] %v978_v34  ;;  %v1272_v0 = vshll.u32 %v1172_v56, 16  ;;  %v770_v25 = vpack.c.b16 %v758_v26, %v758_v26  ;;  %v771_v10 = vpack.c.b16 %v759_v20, %v759_v20  ;;  %v14709_v13 = vld [vmem:[#allocation2 + $0x24] sm:$0xff] }
 0x1a6   :  { %v11093_v41 = vld [vmem:[#allocation4 + $0x10c] sm:$0xf0]  ;;  %v1261_v47 = vrot.slane %v1259_v23, 6  ;;  %v1264_v18 = vrot.slane %v1262_v7, 7  ;;  %v917_v33 = vsel %vm556_vm6, %v14697_v31, %v899_v9  ;;  %v1271_v16 = vrot.slane %v1269_v2, 6 }
 0x1a7   :  { %v11096_v58 = vor.u32 %v13001_v37, %v11093_v41  ;;  %v1274_v28 = vrot.slane %v1272_v0, 7  ;;  %v804_v5 = vrot.slane %v770_v25, 5  ;;  %v807_v4 = vrot.slane %v771_v10, 5  ;;  %1907 = vrot.lane.b32.xlu0 %v1877_v63, %s13859_s9  ;;  %v11143_v41 = vld [vmem:[#allocation4 + $0x140] sm:$0xf] }
 0x1a8   :  { %v1257_v49 = vrot.slane %v14655_v14, 4  ;;  %v1265_v52 = vor.u32 %v1264_v18, %v1261_v47  ;;  %v934_v38 = vunpack.c.l.b16 %v917_v33  ;;  %v935_v29 = vunpack.c.h.b16 %v917_v33 }
 0x1a9   :  { %4705 = vmatmul.bf16.gmra.mxu0 %v11096_v58  ;;  %v14705_v59 = vor.u32 %v1274_v28, %v1271_v16  ;;  %v805_v56 = vsel %vm14304_vm12, %v803_v61, %v804_v5  ;;  %v806_v26 = vrot.slane %v804_v5, 4  ;;  %v809_v20 = vrot.slane %v807_v4, 4  ;;  %v13020_v7 = vld [vmem:[#allocation4 + $0x170] sm:$0xf0] }
 0x1aa   :  { %v1266_v14 = vsel %vm14331_vm15, %v1257_v49, %v1265_v52  ;;  %v1267_v63 = vrot.slane %v1265_v52, 4  ;;  %831 = vst [vmem:[#allocation4 + $0x1d8] sm:$0xf] %v805_v56  ;;  %v946_v34 = vpack.c.b16 %v934_v38, %v934_v38  ;;  %v947_v23 = vpack.c.b16 %v935_v29, %v935_v29  ;;  %1445 = vrot.lane.b32.xlu1 %v14672_v60, %s13859_s9  ;;  %v11099_v38 = vld [vmem:[#allocation4 + $0xe0] sm:$0xf]  ;;  %v13747_v56 = vld [vmem:[#allocation2 + $0x28] sm:$0xff]  }
 0x1ab   :  { %1322 = vst [vmem:[#allocation4 + $0x178] sm:$0xf] %v1266_v14  ;;  %v808_v37 = vsel %vm14304_vm12, %v806_v26, %v807_v4  ;;  %v17269_v61 = vshll.u32 %v14399_v19, 16  ;;  %v11088_v0 = vor.u32 %v13000_v45, %v11085_v40  ;;  %v17270_v25 = vunpack.c.l.b16 %v14517_v53  ;;  %v13008_v29 = vld [vmem:[#allocation4 + $0x110] sm:$0xf0] }
 0x1ac   :  { %v17271_v10 = vunpack.c.l.b16 %v14515_v48  ;;  %v979_v47 = vrot.slane %v977_v12, 4  ;;  %v1276_v60 = vsel %vm14331_vm15, %v1267_v63, %v14705_v59  ;;  %832 = vst [vmem:[#allocation4 + $0x20c] sm:$0xf] %v808_v37  ;;  %v980_v18 = vrot.slane %v946_v34, 6  ;;  %v346_v22 = vpop.permute.xlu2 %345  ;;  %v14753_v37 = vpop.f32.mrf.mxu1 }
 0x1ad   :  { %v1691_v2 = vrot.slane %v17269_v61, 1  ;;  %v983_v33 = vrot.slane %v947_v23, 6  ;;  %1323 = vst [vmem:[#allocation4 + $0x1ac] sm:$0xf] %v1276_v60  ;;  %v17272_v58 = vshll.u32 %v14536_v8, 16  ;;  %4627 = vmatmul.bf16.gmra.mxu2 %v11088_v0  ;;  %v11144_v53 = vor.u32 %v13020_v7, %v11143_v41 }
 0x1ae   :  { %v2067_v9 = vpack.c.b16 %v17271_v10, %v17270_v25  ;;  %v275_v28 = vsel %vm251_vm11, %v14664_v57, %v263_v3  ;;  %v1882_v12 = vshll.u32 %v14709_v13, 16  ;;  %833 = vst [vmem:[#allocation4 + $0x240] sm:$0x3] %v809_v20  ;;  %v981_v5 = vsel %vm14079_vm2, %v979_v47, %v980_v18  ;;  %v14751_v7 = vld [vmem:[#allocation2 + $0x34] sm:$0xf] }
 0x1af   :  { %v14730_v16 = vrot.slane %v17272_v58, 1  ;;  %v982_v4 = vrot.slane %v980_v18, 4  ;;  %v985_v49 = vrot.slane %v983_v33, 4  ;;  %v359_v52 = vmul.f32 %v346_v22, %v275_v28  ;;  %1007 = vst [vmem:[#allocation4 + $0x1dc] sm:$0xf] %v981_v5 }
 0x1b0   :  { %v17273_v45 = vshrl.u32 %v14399_v19, 16  ;;  %v13495_v26 = vunpack.c.h.b16 %v13747_v56  ;;  %2073 = vrot.lane.b32.xlu0 %v2067_v9, %s13859_s9  ;;  %4671 = vmatmul.bf16.gmra.mxu3 %v11144_v53  ;;  %v418_v14 = vrot.slane %v14540_v15, 4  ;;  %v11100_v34 = vor.u32 %v13008_v29, %v11099_v38  ;;  %v13014_v25 = vld [vmem:[#allocation4 + $0x144] sm:$0xf]  ;;  %v2192_v58 = vld [vmem:[#allocation2 + $0x10] sm:$0xc] }
 0x1b1   :  { %v984_v57 = vsel %vm14079_vm2, %v982_v4, %v983_v33  ;;  %1009 = vst [vmem:[#allocation4 + $0x244] sm:$0x3] %v985_v49  ;;  %v371_v3 = vpack.c.bf16 %v359_v52, %v359_v52  ;;  %v1878_v23 = vshrl.u32 %v14524_v27, 16  ;;  %v14756_v61 = vrot.slane %v1882_v12, 1  ;;  %v14767_v33 = vld [vmem:[#allocation2 + $0x2c] sm:$0xff]  ;;  %v13748_v29 = vld [vmem:[#allocation2 + $0x18] sm:$0xff]  }
 0x1b2   :  { %v1692_v40 = vor.u32 %v1691_v2, %v17273_v45  ;;  %1008 = vst [vmem:[#allocation4 + $0x210] sm:$0xf] %v984_v57  ;;  %v14747_v19 = vpack.c.b16 %v1364_v46, %v13495_v26  ;;  %v11145_v2 = vld [vmem:[#allocation4 + $0x174] sm:$0xf0]  ;;  %v3238_v10 = vrot.slane %v14751_v7, 6  ;;  %v17274_v53 = vrot.slane %v14462_v36, 6 }
 0x1b3   :  { %v419_v63 = vrot.slane %v371_v3, 7  ;;  %4744 = vmatmul.bf16.gmra.mxu1 %v11100_v34  ;;  %v1880_v15 = vor.u32 %v1878_v23, %v14551_v42  ;;  %v11148_v41 = vor.u32 %v13014_v25, %v11145_v2  ;;  %v11137_v28 = vld [vmem:[#allocation4 + $0x16c] sm:$0xf0]  ;;  %v13013_v5 = vld [vmem:[#allocation4 + $0x13c] sm:$0xf]  ;;  %v2219_v4 = vunpack.c.l.b16 %v2192_v58 }
 0x1b4   :  { %v1697_v20 = vsel %vm496_vm9, %v1692_v40, %v14730_v16  ;;  %v1906_v27 = vpop.permute.xlu2 %1905  ;;  %v3237_v42 = vrot.slane %v17274_v53, 4  ;;  %v14775_v49 = vld [vmem:[#allocation2 + $0x30] sm:$0xff]  ;;  %v11140_v36 = vor.u32 %v13013_v5, %v11137_v28  ;;  %v13498_v56 = vunpack.c.l.b16 %v13748_v29  ;;  %v11151_v28 = vld [vmem:[#allocation4 + $0x148] sm:$0xf] }
 0x1b5   :  { %1733 = vrot.lane.b32.xlu1 %v1697_v20, %s13859_s9  ;;  %v420_v46 = vsel %vm14039_vm7, %v418_v14, %v419_v63  ;;  %v421_v0 = vrot.slane %v419_v63, 4  ;;  %v1918_v9 = vsel %vm556_vm6, %v14344_v21, %v1906_v27  ;;  %v1885_v47 = vsel %vm496_vm9, %v1880_v15, %v14756_v61  ;;  %v13099_v14 = vld [vmem:[#allocation6 + $0x178] sm:$0xff]  ;;  %v13749_v5 = vld [vmem:[#allocation2 + $0x28] sm:$0xff] }
 0x1b6   :  { %447 = vst.msk [vmem:[#allocation2 + $0x38] sm:$0xf] %vm72_vm1, %v420_v46  ;;  %v1936_v60 = vunpack.c.l.b16 %v1918_v9  ;;  %v1937_v18 = vunpack.c.h.b16 %v1918_v9  ;;  %v1698_v21 = vshrl.u32 %v14536_v8, 16  ;;  %v3239_v52 = vsel %vm14079_vm2, %v3237_v42, %v3238_v10  ;;  %v13033_v26 = vld [vmem:[#allocation4 + $0x1d8] sm:$0xf0]  ;;  %v13107_v2 = vld [vmem:[#allocation6 + $0x1b8] sm:$0xff]  ;;  %4765 = vmatpush.bf16.msrb.mxu2 %v13099_v14 }
 0x1b7   :  { %449 = vst.msk [vmem:[#allocation2 + $0x3c] sm:$0x1] %vm448_vm13, %v421_v0  ;;  %v1890_v8 = vshll.u32 %v14767_v33, 16  ;;  %v17275_v57 = vunpack.c.l.b16 %v14326_v32  ;;  %v17224_v34 = vunpack.c.h.b16 %v14602_v35  ;;  %v11195_v46 = vld [vmem:[#allocation4 + $0x1a8] sm:$0xf]  ;;  %v2274_v15 = vshll.u32 %v14775_v49, 16  ;;  %4804 = vmatpush.bf16.msrb.mxu3 %v13107_v2 }
 0x1b8   :  { %1909 = vrot.lane.b32.xlu0 %v1885_v47, %s13859_s9  ;;  %v1948_v22 = vpack.c.b16 %v1936_v60, %v1936_v60  ;;  %v14772_v12 = vpack.c.b16 %v1937_v18, %v1937_v18  ;;  %3271 = vst.msk [vmem:[#allocation4 + $0x168] sm:$0xf] %vm72_vm1, %v3239_v52  ;;  %v1700_v32 = vor.u32 %v1698_v21, %v14730_v16  ;;  %v17276_v60 = vunpack.c.l.b16 %v14515_v48 }
 0x1b9   :  { %4710 = vmatmul.bf16.gmra.mxu0 %v11148_v41  ;;  %v2232_v3 = vpack.c.b16 %v17275_v57, %v2219_v4  ;;  %v11196_v27 = vor.u32 %v13033_v26, %v11195_v46  ;;  %v13021_v41 = vld [vmem:[#allocation4 + $0x178] sm:$0xf0]  ;;  %v1892_v16 = vrot.slane %v1890_v8, 1  ;;  %v2270_v4 = vshrl.u32 %v13749_v5, 16  ;;  %v13115_v26 = vld [vmem:[#allocation6 + $0x1f8] sm:$0xff] }
 0x1ba   :  { %v10908_v45 = vrot.slane %v1948_v22, 9  ;;  %v17227_v40 = vrot.slane %v14772_v12, 5  ;;  %v14784_v38 = vpop.f32.mrf.mxu1  ;;  %v2058_v18 = vpack.c.b16 %v13498_v56, %v17276_v60  ;;  %v1705_v58 = vsel %vm496_vm9, %v1700_v32, %v14435_v54  ;;  %4843 = vmatpush.bf16.msra.mxu0 %v13115_v26 }
 0x1bb   :  { %v11152_v21 = vor.u32 %v13021_v41, %v11151_v28  ;;  %v14812_v52 = vrot.slane %v2274_v15, 1  ;;  %v1894_v48 = vshrl.u32 %v14767_v33, 16  ;;  %v1886_v57 = vshrl.u32 %v14709_v13, 16 }
 0x1bc   :  { %v2297_v63 = vpop.permute.xlu2 %2296  ;;  %vm5235_vm11 = vsmask.f32 2304  ;;  %vm5236_vm13 = vsmask.f32 6416 }
 0x1bd   :  { %2298 = vrot.lane.b32.xlu1 %v14166_v24, %s13859_s9  ;;  %v14789_v20 = vld [vmem:[#allocation2 + $0x34] sm:$0xff]   ;;  %4632 = vmatmul.bf16.gmra.mxu2 %v11140_v36  ;;  %v1963_v24 = vsel %vm14304_vm12, %v10908_v45, %v17227_v40  ;;  %v2312_v0 = vsel %vm556_vm6, %v2232_v3, %v2297_v63  ;;  %v14815_v36 = vld [vmem:[#allocation2 + $0x2c] sm:$0xff]  ;;  %v2272_v3 = vor.u32 %v2270_v4, %v14433_v43 }
 0x1be   :  { %v1856_v23 = vunpack.c.h.b16 %v14789_v20  ;;  %2007 = vst [vmem:[#allocation4 + $0x18] sm:$0xf] %v1963_v24  ;;  %v2332_v25 = vunpack.c.l.b16 %v2312_v0  ;;  %v2333_v9 = vunpack.c.h.b16 %v2312_v0  ;;  %v1896_v14 = vor.u32 %v1894_v48, %v1892_v16  ;;  %v14828_v13 = vld [vmem:[#allocation2 + $0x38] sm:$0xff]  ;;  %v13026_v48 = vld [vmem:[#allocation4 + $0x1a4] sm:$0xf] }
 0x1c0   :  { %v14803_v47 = vpack.c.b16 %v1856_v23, %v17224_v34  ;;  %2077 = vrot.lane.b32.xlu0 %v14649_v30, %s13859_s9  ;;  %4676 = vmatmul.bf16.gmra.mxu3 %v11196_v27  ;;  %v2345_v53 = vpack.c.b16 %v2332_v25, %v2332_v25  ;;  %v2346_v42 = vpack.c.b16 %v2333_v9, %v2333_v9  ;;  %v2204_v30 = vld [vmem:[#allocation2 + $0x40] sm:$0x1]  ;;  %v1718_v27 = vshll.u32 %v14815_v36, 16  ;;  %v13112_v34 = vld [vmem:[#allocation6 + $0x1e0] sm:$0xff] }
 0x1c1   :  { %v2231_v25 = vunpack.c.l.b16 %v2204_v30  ;;  %v2277_v9 = vsel %vm496_vm9, %v2272_v3, %v14812_v52  ;;  %v13106_v3 = vld [vmem:[#allocation6 + $0x1b0] sm:$0xff] }
 0x1c2   :  { %v1898_v22 = vshll.u32 %v14803_v47, 16  ;;  %v2359_v45 = vshrl.u32 %v2345_v53, 16  ;;  %v2362_v54 = vshll.u32 %v2345_v53, 16  ;;  %v2368_v8 = vshrl.u32 %v2346_v42, 16  ;;  %v14818_v56 = vpop.f32.mrf.mxu1  ;;  %v13750_v53 = vld [vmem:[#allocation2 + $0x24] sm:$0xff]  ;;  %4805 = vmatpush.bf16.msrb.mxu3 %v13106_v3 }
 0x1c3   :  { %v2371_v29 = vshll.u32 %v2346_v42, 16  ;;  %4749 = vmatmul.bf16.gmra.mxu1 %v11152_v21  ;;  %v1714_v42 = vshrl.u32 %v13750_v53, 16  ;;  %v14842_v30 = vrot.slane %v1718_v27, 1  ;;  %v17223_v53 = vunpack.c.l.b16 %v14789_v20 }
 0x1c4   :  { %v14822_v24 = vrot.slane %v1898_v22, 1  ;;  %v2361_v63 = vrot.slane %v2359_v45, 6  ;;  %v2364_v23 = vrot.slane %v2362_v54, 7  ;;  %v2370_v2 = vrot.slane %v2368_v8, 6  ;;  %v2076_v46 = vpop.permute.xlu2 %2075 }
 0x1c5   :  { %1735 = vrot.lane.b32.xlu1 %v1705_v58, %s13859_s9  ;;  %v2373_v32 = vrot.slane %v2371_v29, 7  ;;  %v2090_v0 = vsel %vm556_vm6, %v2058_v18, %v2076_v46  ;;  %v1888_v58 = vor.u32 %v1886_v57, %v14756_v61  ;;  %v11189_v18 = vld [vmem:[#allocation4 + $0x1d4] sm:$0xf0]  ;;  %v2282_v45 = vshll.u32 %v14828_v13, 16  ;;  %v13098_v57 = vld [vmem:[#allocation6 + $0x170] sm:$0xff] }
 0x1c6   :  { %v1901_v15 = vsel %vm496_vm9, %v1896_v14, %v14822_v24  ;;  %v2365_v43 = vor.u32 %v2364_v23, %v2361_v63  ;;  %v2111_v41 = vunpack.c.l.b16 %v2090_v0  ;;  %v2112_v60 = vunpack.c.h.b16 %v2090_v0  ;;  %v11247_v63 = vld [vmem:[#allocation4 + $0x210] sm:$0xf]  ;;  %v13046_v23 = vld [vmem:[#allocation4 + $0x240] sm:$0x30]  ;;  %v1652_v0 = vld [vmem:[#allocation2 + $0x38] sm:$0x7]  ;;  %4766 = vmatpush.bf16.msrb.mxu2 %v13098_v57 }
 0x1c7   :  { %1913 = vrot.lane.b32.xlu2 %v1901_v15, %s13859_s9  ;;  %v14835_v22 = vor.u32 %v2373_v32, %v2370_v2  ;;  %v1893_v4 = vsel %vm496_vm9, %v1888_v58, %v1892_v16  ;;  %v14845_v61 = vpack.c.b16 %v2231_v25, %v2231_v25  ;;  %v11192_v8 = vor.u32 %v13026_v48, %v11189_v18  ;;  %v13123_v16 = vld [vmem:[#allocation6 + $0x238] sm:$0xff]  ;;  %v13751_v25 = vld [vmem:[#allocation2 + $0x20] sm:$0xff] }
 0x1c8   :  { %2302 = vrot.lane.b32.xlu0 %v2277_v9, %s13859_s9  ;;  %v2366_v28 = vrot.slane %v2365_v43, 4  ;;  %v14837_v21 = vpack.c.b16 %v2111_v41, %v2111_v41  ;;  %v14839_v5 = vpack.c.b16 %v2112_v60, %v2112_v60  ;;  %v1716_v14 = vor.u32 %v1714_v42, %v14450_v1  ;;  %4882 = vmatpush.bf16.msra.mxu1 %v13123_v16  ;;  %v13583_v1 = vld [vmem:[#allocation2 + $0x30] sm:$0xff]  }
 0x1c9   :  { %v14860_v27 = vrot.slane %v2282_v45, 1  ;;  %v2290_v9 = vshll.u32 %v14845_v61, 16  ;;  %v11248_v60 = vor.u32 %v13046_v23, %v11247_v63  ;;  %v1684_v42 = vunpack.c.l.b16 %v1652_v0  ;;  %v14872_v45 = vld [vmem:[#allocation2 + $0x14] sm:$0xf] }
 0x1ca   :  { %v2375_v54 = vsel %vm14331_vm15, %v2366_v28, %v14835_v22  ;;  %v17226_v29 = vrot.slane %v14837_v21, 6  ;;  %v14852_v26 = vpop.f32.mrf.mxu1  ;;  %v17225_v32 = vrot.slane %v14839_v5, 6  ;;  %v1721_v15 = vsel %vm496_vm9, %v1716_v14, %v14842_v30 }
 0x1cb   :  { %2494 = vst [vmem:[#allocation4 + $0x20] sm:$0xf] %v2375_v54  ;;  %v2286_v28 = vshrl.u32 %v14828_v13, 16  ;;  %v13585_v54 = vld [vmem:[#allocation2 + $0x18] sm:$0xff]   ;;  %v2292_v57 = vrot.slane %v2290_v9, 1  ;;  %v13097_v13 = vld [vmem:[#allocation6 + $0x168] sm:$0xff]  ;;  %v14882_v0 = vpack.c.b16 %v1684_v42, %v17223_v53 }
 0x1cc   :  { %v2140_v2 = vrot.slane %v17226_v29, 4  ;;  %v2301_v46 = vpop.permute.xlu2 %2300  ;;  %4767 = vmatpush.bf16.msrb.mxu2 %v13097_v13  ;;  %v13120_v29 = vld [vmem:[#allocation6 + $0x220] sm:$0xff] }
 0x1cd   :  { %1911 = vrot.lane.b32.xlu1 %v1893_v4, %s13859_s9  ;;  %4637 = vmatmul.bf16.gmra.mxu2 %v11192_v8  ;;  %v2316_v43 = vsel %vm556_vm6, %v13751_v25, %v2301_v46  ;;  %v2288_v8 = vor.u32 %v2286_v28, %v14860_v27  ;;  %v1902_v46 = vshrl.u32 %v14803_v47, 16  ;;  %v17222_v25 = vunpack.c.l.b16 %v14872_v45  ;;  %v13752_v28 = vld [vmem:[#allocation2 + $0x1c] sm:$0xff] }
 0x1ce   :  { %v2142_v41 = vsel %vm14079_vm2, %v2140_v2, %v17225_v32  ;;  %v2336_v58 = vunpack.c.l.b16 %v2316_v43  ;;  %v2337_v18 = vunpack.c.h.b16 %v2316_v43  ;;  %v13114_v2 = vld [vmem:[#allocation6 + $0x1f0] sm:$0xff]  ;;  %v13095_v32 = vld [vmem:[#allocation6 + $0x158] sm:$0xff] }
 0x1cf   :  { %2081 = vrot.lane.b32.xlu2 %v13583_v1, %s13859_s9  ;;  %2182 = vst [vmem:[#allocation4 + $0x84] sm:$0xf] %v2142_v41  ;;  %v13122_v43 = vld [vmem:[#allocation6 + $0x230] sm:$0xff]  ;;  %v13105_v1 = vld [vmem:[#allocation6 + $0x1a8] sm:$0xff]  ;;  %4844 = vmatpush.bf16.msra.mxu0 %v13114_v2  ;;  %v1904_v47 = vor.u32 %v1902_v46, %v14822_v24 }
 0x1d0   :  { %1739 = vrot.lane.b32.xlu0 %v1721_v15, %s13859_s9  ;;  %4681 = vmatmul.bf16.gmra.mxu3 %v11248_v60  ;;  %v2349_v4 = vpack.c.b16 %v2336_v58, %v2336_v58  ;;  %v2350_v48 = vpack.c.b16 %v2337_v18, %v2337_v18  ;;  %v13518_v15 = vunpack.c.l.b16 %v13585_v54  ;;  %v2278_v18 = vshrl.u32 %v14775_v49, 16  ;;  %v13039_v49 = vld [vmem:[#allocation4 + $0x20c] sm:$0xf] }
 0x1d1   :  { %4883 = vmatpush.bf16.msra.mxu1 %v13122_v43  ;;  %4806 = vmatpush.bf16.msrb.mxu3 %v13105_v1  ;;  %v1726_v43 = vshll.u32 %v14882_v0, 16 }
 0x1d2   :  { %v2398_v16 = vshrl.u32 %v2349_v4, 16  ;;  %v2401_v3 = vshll.u32 %v2349_v4, 16  ;;  %v2408_v14 = vshrl.u32 %v2350_v48, 16  ;;  %v2411_v63 = vshll.u32 %v2350_v48, 16  ;;  %v14877_v23 = vpop.f32.mrf.mxu1 }
 0x1d3   :  { %17277 = vst [vmem:[#allocation19_spill] sm:$0xff] %v14877_v23  ;;  %v2293_v4 = vsel %vm496_vm9, %v2288_v8, %v2292_v57  ;;  %v2552_v24 = vpack.c.b16 %v13518_v15, %v17222_v25  ;;  %v1730_v25 = vshrl.u32 %v14882_v0, 16  ;;  %v14937_v0 = vld [vmem:[#allocation2 + $0x28] sm:$0xff]  ;;  %v15175_v23 = vld [vmem:[#allocation2 + $0x38] sm:$0x7] }
 0x1d4   :  { %v2403_v9 = vrot.slane %v2401_v3, 7  ;;  %v2410_v41 = vrot.slane %v2408_v14, 6  ;;  %v2413_v60 = vrot.slane %v2411_v63, 7  ;;  %v1738_v58 = vpop.permute.xlu2 %1737  ;;  %v2280_v3 = vor.u32 %v2278_v18, %v14812_v52  ;;  %v11241_v14 = vld [vmem:[#allocation4 + $0x23c] sm:$0x30]  ;;  %v12964_v63 = vld [vmem:[#allocation2 + $0x18] sm:$0xff] }
 0x1d5   :  { %2079 = vrot.lane.b32.xlu1 %v14697_v31, %s13859_s9  ;;  %v2400_v31 = vrot.slane %v2398_v16, 6  ;;  %v1750_v42 = vsel %vm556_vm6, %v13752_v28, %v1738_v58  ;;  %v14902_v52 = vld [vmem:[#allocation2 + $0x20] sm:$0xff]  ;;  %v11244_v1 = vor.u32 %v13039_v49, %v11241_v14  ;;  %v2562_v58 = vshll.u32 %v2552_v24, 16  ;;  %v12969_v18 = vld [vmem:[#allocation2 + $0x18] sm:$0xf0] }
 0x1d6   :  { %v1768_v54 = vunpack.c.l.b16 %v1750_v42  ;;  %v1769_v16 = vunpack.c.h.b16 %v1750_v42  ;;  %v14897_v57 = vor.u32 %v2413_v60, %v2410_v41  ;;  %v2285_v46 = vsel %vm496_vm9, %v2280_v3, %v14860_v27  ;;  %v13672_v49 = vld [vmem:[#allocation2 + $0x1c] sm:$0xff]  }
 0x1d7   :  { %v14889_v48 = vor.u32 %v2403_v9, %v2400_v31  ;;  %2306 = vrot.lane.b32.xlu2 %v2293_v4, %s13859_s9  ;;  %v2294_v31 = vshrl.u32 %v14845_v61, 16  ;;  %v13113_v9 = vld [vmem:[#allocation6 + $0x1e8] sm:$0xff]  ;;  %v2864_v41 = vshll.u32 %v12964_v63, 16  ;;  %v2559_v60 = vshrl.u32 %v2552_v24, 16 }
 0x1d8   :  { %1915 = vrot.lane.b32.xlu0 %v1904_v47, %s13859_s9  ;;  %v1780_v2 = vpack.c.b16 %v1768_v54, %v1768_v54  ;;  %v1781_v13 = vpack.c.b16 %v1769_v16, %v1769_v16  ;;  %4845 = vmatpush.bf16.msra.mxu0 %v13113_v9  ;;  %v1722_v47 = vshrl.u32 %v14815_v36, 16  ;;  %v1728_v28 = vrot.slane %v1726_v43, 1  ;;  %v13674_v4 = vld [vmem:[#allocation2 + $0x24] sm:$0xff]   ;;  %v14913_v54 = vld [vmem:[#allocation2 + $0x38] sm:$0xff]  }
 0x1d9   :  { %v2406_v8 = vrot.slane %v14889_v48, 4  ;;  %v2869_v42 = vshll.u32 %v14902_v52, 16  ;;  %v10957_v16 = vld [vmem:[#allocation2 + $0x18] sm:$0xe]  ;;  %v2866_v14 = vrot.slane %v2864_v41, 1  ;;  %v2564_v36 = vrot.slane %v2562_v58, 5 }
 0x1da   :  { %1804 = vst [vmem:[#allocation4 + $0xe4] sm:$0xf] %v1780_v2  ;;  %v1724_v3 = vor.u32 %v1722_v47, %v14842_v30  ;;  %v14919_v24 = vor.u32 %v12969_v18, %v10957_v16  ;;  %v2862_v2 = vshrl.u32 %v12964_v63, 16  ;;  %v14924_v43 = vld [vmem:[#allocation2 + $0x20] sm:$0xff]  ;;  %v13096_v30 = vld [vmem:[#allocation6 + $0x160] sm:$0xff]  ;;  %v2567_v47 = vshrl.u32 %v13672_v49, 16 }
 0x1db   :  { %v2415_v15 = vsel %vm14331_vm15, %v2406_v8, %v14897_v57  ;;  %1805 = vst [vmem:[#allocation4 + $0x118] sm:$0xf] %v1781_v13  ;;  %v14909_v27 = vpop.f32.mrf.mxu1  ;;  %v2561_v8 = vrot.slane %v2559_v60, 4  ;;  %v13104_v9 = vld [vmem:[#allocation6 + $0x1a0] sm:$0xff]  ;;  %v2570_v41 = vshll.u32 %v13672_v49, 16  ;;  %4768 = vmatpush.bf16.msrb.mxu2 %v13096_v30  ;;  %v13676_v63 = vld [vmem:[#allocation2 + $0x2c] sm:$0xff]   ;;  %v1732_v30 = vor.u32 %v1730_v25, %v1728_v28 }
 0x1dc   :  { %2498 = vst [vmem:[#allocation4 + $0xf0] sm:$0xf] %v2415_v15  ;;  %v1729_v13 = vsel %vm496_vm9, %v1724_v3, %v1728_v28  ;;  %v2576_v15 = vshrl.u32 %v13674_v4, 16  ;;  %v2867_v18 = vor.u32 %v2866_v14, %v2862_v2  ;;  %v3036_v60 = vshll.u32 %v14919_v24, 16  ;;  %v3202_v58 = vld [vmem:[#allocation2 + $0x38] sm:$0xf]  ;;  %4807 = vmatpush.bf16.msrb.mxu3 %v13104_v9  ;;  %4846 = vmatpush.bf16.msra.mxu0 %v13112_v34 }
 0x1dd   :  { %2304 = vrot.lane.b32.xlu1 %v2285_v46, %s13859_s9  ;;  %4642 = vmatmul.bf16.gmra.mxu2 %v11244_v1  ;;  %v14922_v46 = vrot.slane %v2869_v42, 1  ;;  %v2579_v1 = vshll.u32 %v13674_v4, 16  ;;  %v2565_v42 = vor.u32 %v2564_v36, %v2561_v8  ;;  %v3041_v49 = vshll.u32 %v14924_v43, 16  ;;  %v14952_v34 = vld [vmem:[#allocation2 + $0x40] sm:$0xf] }
 0x1de   :  { %v2578_v3 = vrot.slane %v2576_v15, 4  ;;  %v2569_v14 = vrot.slane %v2567_v47, 4  ;;  %v2572_v2 = vrot.slane %v2570_v41, 5  ;;  %v3038_v8 = vrot.slane %v3036_v60, 1  ;;  %v13103_v41 = vld [vmem:[#allocation6 + $0x198] sm:$0xff]  ;;  %v14942_v60 = vld [vmem:[#allocation2 + $0x28] sm:$0xff] }
 0x1df   :  { %2308 = vrot.lane.b32.xlu2 %v2294_v31, %s13859_s9  ;;  %v13121_v31 = vld [vmem:[#allocation6 + $0x228] sm:$0xff]  ;;  %v2872_v16 = vsel %vm496_vm9, %v2867_v18, %v14922_v46  ;;  %v2581_v4 = vrot.slane %v2579_v1, 5  ;;  %v3241_v36 = vrot.slane %v3202_v58, 6  ;;  %v2588_v15 = vshll.u32 %v13676_v63, 16  ;;  %4769 = vmatpush.bf16.msrb.mxu2 %v13095_v32 }
 0x1e0   :  { %2083 = vrot.lane.b32.xlu0 %v14913_v54, %s13859_s9  ;;  %4884 = vmatpush.bf16.msra.mxu1 %v13121_v31  ;;  %v2585_v31 = vshrl.u32 %v13676_v63, 16  ;;  %v3034_v9 = vshrl.u32 %v14919_v24, 16  ;;  %v2573_v40 = vor.u32 %v2572_v2, %v2569_v14  ;;  %v3240_v25 = vrot.slane %v3238_v10, 4  ;;  %v2518_v10 = vld [vmem:[#allocation2 + $0x40] sm:$0x3] }
 0x1e1   :  { %v2582_v18 = vor.u32 %v2581_v4, %v2578_v3  ;;  %v3243_v28 = vrot.slane %v3241_v36, 4  ;;  %v2590_v58 = vrot.slane %v2588_v15, 5  ;;  %v13677_v3 = vld [vmem:[#allocation2 + $0x34] sm:$0xff]   ;;  %4808 = vmatpush.bf16.msrb.mxu3 %v13103_v41  ;;  %v2877_v7 = vshll.u32 %v14937_v0, 16 }
 0x1e2   :  { %v3039_v47 = vor.u32 %v3038_v8, %v3034_v9  ;;  %v2587_v63 = vrot.slane %v2585_v31, 4  ;;  %v3242_v2 = vsel %vm14079_vm2, %v3240_v25, %v3241_v36  ;;  %v2574_v32 = vsel %vm1379_vm4, %v2565_v42, %v2573_v40  ;;  %v12967_v25 = vld [vmem:[#allocation2 + $0x30] sm:$0xff] }
 0x1e3   :  { %v14931_v53 = vpop.f32.mrf.mxu1  ;;  %3272 = vst.msk [vmem:[#allocation4 + $0x19c] sm:$0xf] %vm72_vm1, %v3242_v2  ;;  %v3049_v8 = vshll.u32 %v14942_v60, 16  ;;  %v2594_v31 = vshrl.u32 %v13677_v3, 16  ;;  %v2597_v9 = vshll.u32 %v13677_v3, 16  ;;  %v13535_v36 = vunpack.c.h.b16 %v14913_v54 }
 0x1e4   :  { %17278 = vst [vmem:[#allocation20_spill] sm:$0xff] %v14931_v53  ;;  %4885 = vmatpush.bf16.msra.mxu1 %v13120_v29  ;;  %v17228_v29 = vrot.slane %v14952_v34, 6  ;;  %v2879_v41 = vrot.slane %v2877_v7, 1  ;;  %v2885_v7 = vshll.u32 %v12967_v25, 16 }
 0x1e5   :  { %1741 = vrot.lane.b32.xlu1 %v1729_v13, %s13859_s9  ;;  %v3203_v13 = vld [vmem:[#allocation2 + $0x3c] sm:$0xf]  ;;  %v3051_v54 = vrot.slane %v3049_v8, 1  ;;  %v2596_v3 = vrot.slane %v2594_v31, 4  ;;  %v2881_v31 = vshrl.u32 %v14937_v0, 16 }
 0x1e6   :  { %v3244_v1 = vrot.slane %v3203_v13, 6  ;;  %v2583_v13 = vsel %vm1379_vm4, %v2573_v40, %v2582_v18 }
 0x1e7   :  { %2908 = vrot.lane.b32.xlu2 %v2872_v16, %s13859_s9  ;;  %v3043_v16 = vrot.slane %v3041_v49, 1 }
 0x1e8   :  { %2611 = vrot.lane.b32.xlu0 %v2565_v42, %s13859_s9  ;;  %v3246_v4 = vrot.slane %v3244_v1, 4  ;;  %v3245_v15 = vsel %vm14079_vm2, %v3243_v28, %v3244_v1  ;;  %v2873_v42 = vshrl.u32 %v14902_v52, 16  ;;  %v3045_v1 = vshrl.u32 %v14924_v43, 16 }
 0x1e9   :  { %v3044_v49 = vsel %vm496_vm9, %v3039_v47, %v3043_v16  ;;  %v14962_v47 = vunpack.c.l.b16 %v2518_v10  ;;  %3273 = vst.msk [vmem:[#allocation4 + $0x1d0] sm:$0xf] %vm72_vm1, %v3245_v15  ;;  %v2887_v15 = vrot.slane %v2885_v7, 1 }
 0x1ea   :  { %v3248_v40 = vsel %vm14079_vm2, %v3246_v4, %v17228_v29  ;;  %v2875_v28 = vor.u32 %v2873_v42, %v14922_v46  ;;  %v2599_v4 = vrot.slane %v2597_v9, 5  ;;  %v3047_v10 = vor.u32 %v3045_v1, %v3043_v16  ;;  %v12968_v9 = vld [vmem:[#allocation2 + $0x38] sm:$0xff] }
 0x1eb   :  { %3274 = vst.msk [vmem:[#allocation4 + $0x204] sm:$0xf] %vm72_vm1, %v3248_v40  ;;  %v2827_v40 = vld [vmem:[#allocation2 + $0x44] sm:$0x7]  ;;  %v3053_v16 = vshrl.u32 %v14942_v60, 16  ;;  %v2883_v1 = vor.u32 %v2881_v31, %v2879_v41  ;;  %v2893_v0 = vshll.u32 %v12968_v9, 16 }
 0x1ec   :  { %v3052_v43 = vsel %vm496_vm9, %v3047_v10, %v3051_v54  ;;  %v2600_v2 = vor.u32 %v2599_v4, %v2596_v3  ;;  %v4618_v8 = vpop.f32.mrf.mxu2 }
 0x1ed   :  { %1743 = vrot.lane.b32.xlu1 %v1732_v30, %s13859_s9  ;;  %v2591_v30 = vor.u32 %v2590_v58, %v2587_v63  ;;  %v14974_v63 = vld [vmem:[#allocation2 + $0x30] sm:$0xff]  ;;  %v3055_v29 = vor.u32 %v3053_v16, %v3051_v54  ;;  %v13094_v54 = vld [vmem:[#allocation6 + $0x150] sm:$0xff] }
 0x1ee   :  { %v14946_v14 = vpop.f32.mrf.mxu1  ;;  %v3057_v46 = vshll.u32 %v14974_v63, 16  ;;  %v13119_v16 = vld [vmem:[#allocation6 + $0x218] sm:$0xff]  ;;  %4770 = vmatpush.bf16.msrb.mxu2 %v13094_v54 }
 0x1ef   :  { %2615 = vrot.lane.b32.xlu2 %v2583_v13, %s13859_s9  ;;  %v2592_v58 = vsel %vm1379_vm4, %v2582_v18, %v2591_v30  ;;  %v2557_v13 = vpack.c.b16 %v14962_v47, %v13535_v36  ;;  %v14987_v36 = vld [vmem:[#allocation2 + $0x40] sm:$0xf]  ;;  %v2601_v3 = vsel %vm1379_vm4, %v2591_v30, %v2600_v2  ;;  %4886 = vmatpush.bf16.msra.mxu1 %v13119_v16 }
 0x1f0   :  { %3080 = vrot.lane.b32.xlu0 %v3044_v49, %s13859_s9  ;;  %v2880_v49 = vsel %vm496_vm9, %v2875_v28, %v2879_v41  ;;  %v3059_v42 = vrot.slane %v3057_v46, 1  ;;  %v4619_v28 = vadd.f32 %v4618_v8, %v14703_v17  ;;  %v17229_v7 = vunpack.c.l.b16 %v14987_v36 }
 0x1f1   :  { %v2603_v18 = vshrl.u32 %v2557_v13, 16  ;;  %v2895_v8 = vrot.slane %v2893_v0, 1 }
 0x1f2   :  { %v3060_v17 = vsel %vm496_vm9, %v3055_v29, %v3059_v42  ;;  %v3061_v29 = vshrl.u32 %v14974_v63, 16  ;;  %v2897_v63 = vshrl.u32 %v12968_v9, 16  ;;  %v13118_v9 = vld [vmem:[#allocation6 + $0x210] sm:$0xff] }
 0x1f3   :  { %v2605_v4 = vrot.slane %v2603_v18, 4  ;;  %4887 = vmatpush.bf16.msra.mxu1 %v13118_v9 }
 0x1f5   :  { %2613 = vrot.lane.b32.xlu1 %v2574_v32, %s13859_s9  ;;  %v2606_v32 = vshll.u32 %v2557_v13, 16 }
 0x1f6   :  { %v14979_v52 = vpop.f32.mrf.mxu1 }
 0x1f7   :  { %17279 = vst [vmem:[#allocation21_spill] sm:$0xff] %v14979_v52  ;;  %2617 = vrot.lane.b32.xlu2 %v2592_v58, %s13859_s9  ;;  %v12973_v58 = vld [vmem:[#allocation2 + $0x38] sm:$0xff]  ;;  %v2608_v13 = vrot.slane %v2606_v32, 5  ;;  %v2889_v32 = vshrl.u32 %v12967_v25, 16  ;;  %4888 = vmatpush.bf16.msra.mxu1 %v13117_v39 }
 0x1f8   :  { %2910 = vrot.lane.b32.xlu0 %v2880_v49, %s13859_s9  ;;  %v2888_v49 = vsel %vm496_vm9, %v2883_v1, %v2887_v15  ;;  %v3065_v46 = vshll.u32 %v12973_v58, 16 }
 0x1f9   :  { %v4696_v30 = vpop.f32.mrf.mxu0  ;;  %v2609_v18 = vor.u32 %v2608_v13, %v2605_v4 }
 0x1fb   :  { %v2610_v4 = vsel %vm1379_vm4, %v2600_v2, %v2609_v18  ;;  %v3069_v2 = vshrl.u32 %v12973_v58, 16 }
 0x1fd   :  { %3082 = vrot.lane.b32.xlu1 %v3052_v43, %s13859_s9  ;;  %v2859_v43 = vunpack.c.l.b16 %v2827_v40  ;;  %v13111_v40 = vld [vmem:[#allocation6 + $0x1d8] sm:$0xff] }
 0x1fe   :  { %v4657_v10 = vpop.f32.mrf.mxu3  ;;  %4847 = vmatpush.bf16.msra.mxu0 %v13111_v40  ;;  %v13102_v40 = vld [vmem:[#allocation6 + $0x190] sm:$0xff] }
 0x1ff   :  { %2619 = vrot.lane.b32.xlu2 %v2601_v3, %s13859_s9  ;;  %v4658_v60 = vadd.f32 %v4657_v10, %v4619_v28  ;;  %v15002_v31 = vpack.c.b16 %v2859_v43, %v17229_v7  ;;  %v2891_v28 = vor.u32 %v2889_v32, %v2887_v15  ;;  %v3067_v3 = vrot.slane %v3065_v46, 1  ;;  %4809 = vmatpush.bf16.msrb.mxu3 %v13102_v40  ;;  %v13101_v7 = vld [vmem:[#allocation6 + $0x188] sm:$0xff] }
 0x200   :  { %2912 = vrot.lane.b32.xlu0 %v2888_v49, %s13859_s9  ;;  %v14996_v41 = vpop.f32.mrf.mxu1  ;;  %v15005_v49 = vld [vmem:[#allocation2 + $0x40] sm:$0xff]   ;;  %v3063_v10 = vor.u32 %v3061_v29, %v3059_v42  ;;  %v2899_v46 = vor.u32 %v2897_v63, %v2895_v8  ;;  %v13110_v29 = vld [vmem:[#allocation6 + $0x1d0] sm:$0xff] }
 0x201   :  { %v4697_v1 = vadd.f32 %v4696_v30, %v4658_v60  ;;  %v2896_v25 = vsel %vm496_vm9, %v2891_v28, %v2895_v8  ;;  %v2901_v13 = vshll.u32 %v15002_v31, 16  ;;  %v3073_v15 = vshll.u32 %v15005_v49, 16 }
 0x202   :  { %v3068_v43 = vsel %vm496_vm9, %v3063_v10, %v3067_v3  ;;  %v3071_v16 = vor.u32 %v3069_v2, %v3067_v3  ;;  %4848 = vmatpush.bf16.msra.mxu0 %v13110_v29  ;;  %v2905_v58 = vshrl.u32 %v15002_v31, 16  ;;  %v3077_v31 = vshrl.u32 %v15005_v49, 16 }
 0x203   :  { %v2903_v32 = vrot.slane %v2901_v13, 1  ;;  %v3075_v28 = vrot.slane %v3073_v15, 1  ;;  %4810 = vmatpush.bf16.msrb.mxu3 %v13101_v7 }
 0x205   :  { %3084 = vrot.lane.b32.xlu1 %v3060_v17, %s13859_s9  ;;  %v13753_v17 = vld [vmem:[#allocation2 + $0x2c] sm:$0xff]  ;;  %v3076_v3 = vsel %vm496_vm9, %v3071_v16, %v3075_v28  ;;  %v1277_v16 = vrot.slane %v14705_v59, 4 }
 0x206   :  { %v15030_v9 = vpop.f32.mrf.mxu3 }
 0x207   :  { %2621 = vrot.lane.b32.xlu2 %v2610_v4, %s13859_s9  ;;  %v13093_v4 = vld [vmem:[#allocation6 + $0x148] sm:$0xff] }
 0x208   :  { %2914 = vrot.lane.b32.xlu0 %v2896_v25, %s13859_s9  ;;  %v15013_v0 = vpop.f32.mrf.mxu1  ;;  %4771 = vmatpush.bf16.msrb.mxu2 %v13093_v4 }
 0x209   :  { %17280 = vst [vmem:[#allocation22_spill] sm:$0xff] %v15013_v0  ;;  %v1125_v60 = vpop.permute.xlu0 %1124  ;;  %v13130_v0 = vld [vmem:[#allocation6 + $0x270] sm:$0xff] }
 0x20a   :  { %v1140_v30 = vsel %vm556_vm6, %v13753_v17, %v1125_v60 }
 0x20b   :  { %v1160_v42 = vunpack.c.l.b16 %v1140_v30  ;;  %v1161_v54 = vunpack.c.h.b16 %v1140_v30 }
 0x20d   :  { %3086 = vrot.lane.b32.xlu1 %v3068_v43, %s13859_s9  ;;  %v1173_v25 = vpack.c.b16 %v1160_v42, %v1160_v42  ;;  %v1174_v10 = vpack.c.b16 %v1161_v54, %v1161_v54  ;;  %v2904_v43 = vsel %vm496_vm9, %v2899_v46, %v2903_v32  ;;  %v2907_v54 = vor.u32 %v2905_v58, %v2903_v32 }
 0x20e   :  { %v3079_v32 = vor.u32 %v3077_v31, %v3075_v28  ;;  %vm3276_vm9 = vcmask 517120  }
 0x20f   :  { %2623 = vrot.lane.b32.xlu2 %v2609_v18, %s13859_s9  ;;  %v1279_v8 = vshrl.u32 %v1173_v25, 16  ;;  %v1282_v13 = vshll.u32 %v1173_v25, 16  ;;  %v1289_v63 = vshrl.u32 %v1174_v10, 16  ;;  %v1292_v60 = vshll.u32 %v1174_v10, 16  ;;  %v5139_v25 = vld [vmem:[%s17207_s1] sm:$0xff] }
 0x210   :  { %2916 = vrot.lane.b32.xlu0 %v2904_v43, %s13859_s9  ;;  %v4735_v15 = vpop.f32.mrf.mxu1 }
 0x211   :  { %v1281_v2 = vrot.slane %v1279_v8, 6  ;;  %v1284_v17 = vrot.slane %v1282_v13, 7  ;;  %v1291_v30 = vrot.slane %v1289_v63, 6  ;;  %v1294_v46 = vrot.slane %v1292_v60, 7  ;;  %v1127_v18 = vpop.permute.xlu0 %1126  ;;  %v15040_v8 = vpop.f32.mrf.mxu2 }
 0x212   :  { %v1142_v40 = vsel %vm556_vm6, %v14619_v50, %v1127_v18  ;;  %v15027_v42 = vadd.f32 %v4735_v15, %v4697_v1  ;;  %v12958_v18 = vld [vmem:[#allocation2 + $0xc] sm:$0xf0] }
 0x213   :  { %v1285_v29 = vor.u32 %v1284_v17, %v1281_v2  ;;  %v1162_v4 = vunpack.c.l.b16 %v1142_v40  ;;  %v1295_v43 = vor.u32 %v1294_v46, %v1291_v30  ;;  %v1372_v46 = vpack.c.b16 %v14616_v51, %v14616_v51  ;;  %v5143_v51 = vld [vmem:[%s17207_s1 + $0x20] sm:$0xff] }
 0x214   :  { %v1444_v7 = vpop.permute.xlu1 %1443 }
 0x215   :  { %3088 = vrot.lane.b32.xlu1 %v3076_v3, %s13859_s9  ;;  %v1286_v49 = vsel %vm14331_vm15, %v1277_v16, %v1285_v29  ;;  %v1287_v10 = vrot.slane %v1285_v29, 4  ;;  %v1464_v50 = vsel %vm556_vm6, %v14747_v19, %v1444_v7  ;;  %v1175_v58 = vpack.c.b16 %v1162_v4, %v1162_v4  ;;  %v15046_v19 = vpop.f32.mrf.mxu0  ;;  %v13754_v16 = vld [vmem:[#allocation2 + $0x14] sm:$0xff]  ;;  %v10911_v4 = vld [vmem:[#allocation2 + $0xc] sm:$0xc] }
 0x216   :  { %1324 = vst [vmem:[#allocation4 + $0x1e0] sm:$0xf] %v1286_v49  ;;  %v1485_v1 = vunpack.c.l.b16 %v1464_v50  ;;  %v1486_v59 = vunpack.c.h.b16 %v1464_v50  ;;  %v1297_v17 = vrot.slane %v1295_v43, 4  ;;  %v5141_v50 = vld [vmem:[%s17207_s1 + $0x10] sm:$0xff] }
 0x217   :  { %2918 = vrot.lane.b32.xlu2 %v2907_v54, %s13859_s9  ;;  %v1296_v13 = vsel %vm14331_vm15, %v1287_v10, %v1295_v43  ;;  %v1299_v3 = vshll.u32 %v1175_v58, 16 }
 0x218   :  { %5153 = vperm.xlu0 %13710, %v5139_v25   ;;  %1325 = vst [vmem:[#allocation4 + $0x214] sm:$0xf] %v1296_v13  ;;  %v1498_v63 = vpack.c.b16 %v1485_v1, %v1485_v1  ;;  %v1499_v60 = vpack.c.b16 %v1486_v59, %v1486_v59  ;;  %v15044_v15 = vpop.f32.mrf.mxu1  ;;  %v13092_v1 = vld [vmem:[#allocation6 + $0x140] sm:$0xff]  ;;  %v1589_v59 = vrot.slane %v14634_v62, 4 }
 0x219   :  { %v1908_v2 = vpop.permute.xlu0 %1907  ;;  %v1301_v54 = vrot.slane %v1299_v3, 7  ;;  %v13100_v3 = vld [vmem:[#allocation6 + $0x180] sm:$0xff]  ;;  %4772 = vmatpush.bf16.msrb.mxu2 %v13092_v1 }
 0x21a   :  { %v1591_v28 = vshrl.u32 %v1498_v63, 16  ;;  %v1600_v30 = vshrl.u32 %v1499_v60, 16  ;;  %v1594_v31 = vshll.u32 %v1498_v63, 16  ;;  %v1603_v40 = vshll.u32 %v1499_v60, 16  ;;  %v13109_v60 = vld [vmem:[#allocation6 + $0x1c8] sm:$0xff]  ;;  %4811 = vmatpush.bf16.msrb.mxu3 %v13100_v3 }
 0x21b   :  { %v1920_v29 = vsel %vm556_vm6, %v13754_v16, %v1908_v2  ;;  %v10912_v63 = vor.u32 %v12958_v18, %v10911_v4  ;;  %v4662_v16 = vpop.f32.mrf.mxu3  ;;  %4849 = vmatpush.bf16.msra.mxu0 %v13109_v60 }
 0x21c   :  { %v1593_v7 = vrot.slane %v1591_v28, 7  ;;  %v15052_v25 = vrot.slane %v1600_v30, 7  ;;  %v1446_v49 = vpop.permute.xlu1 %1445  ;;  %v1938_v10 = vunpack.c.l.b16 %v1920_v29  ;;  %v1939_v43 = vunpack.c.h.b16 %v1920_v29  ;;  %v13027_v29 = vld [vmem:[#allocation4 + $0x1ac] sm:$0xf] }
 0x21d   :  { %3090 = vrot.lane.b32.xlu1 %v3079_v32, %s13859_s9  ;;  %v1302_v32 = vsel %vm14331_vm15, %v1297_v17, %v1301_v54  ;;  %v1467_v58 = vsel %vm556_vm6, %v1372_v46, %v1446_v49  ;;  %v11197_v13 = vld [vmem:[#allocation4 + $0x1dc] sm:$0xf0]  ;;  %v5140_v17 = vld [vmem:[%s17207_s1 + $0x8] sm:$0xff]  ;;  %v4701_v39 = vpop.f32.mrf.mxu0 }
 0x21e   :  { %v1596_v2 = vor.u32 %v1594_v31, %v1593_v7  ;;  %v1598_v28 = vrot.slane %v1593_v7, 4  ;;  %v1605_v30 = vor.u32 %v1603_v40, %v15052_v25  ;;  %1326 = vst [vmem:[#allocation4 + $0x248] sm:$0x3] %v1302_v32  ;;  %v1487_v62 = vunpack.c.l.b16 %v1467_v58 }
 0x21f   :  { %5173 = vperm.xlu2 %13712, %v5143_v51   ;;  %v1950_v46 = vpack.c.b16 %v1938_v10, %v1938_v10  ;;  %v15068_v54 = vpack.c.b16 %v1939_v43, %v1939_v43  ;;  %v4623_v18 = vpop.f32.mrf.mxu2  ;;  %v11200_v31 = vor.u32 %v13027_v29, %v11197_v13  ;;  %v17281_v40 = vrot.slane %v14772_v12, 5 }
 0x220   :  { %5163 = vperm.xlu0 %13710, %v5141_v50   ;;  %v1597_v7 = vsel %vm14354_vm8, %v1589_v59, %v1596_v2  ;;  %v1606_v49 = vsel %vm14354_vm8, %v1598_v28, %v1605_v30  ;;  %v4624_v51 = vadd.f32 %v4623_v18, %v14784_v38  ;;  %v1607_v10 = vrot.slane %v15052_v25, 4  ;;  %v4740_v13 = vpop.f32.mrf.mxu1 }
 0x221   :  { %v1964_v4 = vrot.slane %v17281_v40, 4  ;;  %v1914_v1 = vpop.permute.xlu2 %1913  ;;  %1637 = vst [vmem:[#allocation4 + $0x1e4] sm:$0xf] %v1597_v7  ;;  %v1500_v43 = vpack.c.b16 %v1487_v62, %v1487_v62  ;;  %v1965_v50 = vrot.slane %v1950_v46, 5  ;;  %4715 = vmatmul.bf16.gmra.mxu0 %v11200_v31  ;;  %v1968_v59 = vrot.slane %v15068_v54, 5  ;;  %v13755_v31 = vld [vmem:[#allocation2 + $0xc] sm:$0xff] }
 0x222   :  { %v2074_v32 = vpop.permute.xlu0 %2073  ;;  %v1926_v12 = vsel %vm556_vm6, %v14767_v33, %v1914_v1  ;;  %1638 = vst [vmem:[#allocation4 + $0x218] sm:$0xf] %v1606_v49  ;;  %v4663_v58 = vadd.f32 %v4662_v16, %v4624_v51  ;;  %v5146_v33 = vld [vmem:[%s17207_s1 + $0x38] sm:$0xff] }
 0x223   :  { %v2087_v38 = vsel %vm556_vm6, %v10912_v63, %v2074_v32  ;;  %v1944_v60 = vunpack.c.l.b16 %v1926_v12  ;;  %v1609_v3 = vshrl.u32 %v1500_v43, 16  ;;  %v1966_v25 = vsel %vm14304_vm12, %v1964_v4, %v1965_v50  ;;  %v5144_v63 = vld [vmem:[%s17207_s1 + $0x28] sm:$0xff]  ;;  %v11203_v32 = vld [vmem:[#allocation4 + $0x1b0] sm:$0xf] }
 0x224   :  { %v1967_v2 = vrot.slane %v1965_v50, 4  ;;  %v1945_v28 = vunpack.c.h.b16 %v1926_v12  ;;  %v1612_v30 = vshll.u32 %v1500_v43, 16  ;;  %2008 = vst [vmem:[#allocation4 + $0x4c] sm:$0xf] %v1966_v25  ;;  %v2109_v62 = vunpack.c.l.b16 %v2087_v38  ;;  %v5142_v50 = vld [vmem:[%s17207_s1 + $0x18] sm:$0xff]  ;;  %v15107_v25 = vpop.f32.mrf.mxu3 }
 0x225   :  { %5158 = vperm.xlu1 %13711, %v5140_v17   ;;  %v2110_v16 = vunpack.c.h.b16 %v2087_v38  ;;  %v4702_v17 = vadd.f32 %v4701_v39, %v4663_v58  ;;  %v1611_v46 = vrot.slane %v1609_v3, 7  ;;  %v15095_v4 = vpack.c.b16 %v1944_v60, %v1944_v60 }
 0x226   :  { %v1969_v18 = vsel %vm14304_vm12, %v1967_v2, %v1968_v59  ;;  %v2121_v51 = vpack.c.b16 %v2109_v62, %v2109_v62  ;;  %v15104_v38 = vpack.c.b16 %v1945_v28, %v1945_v28  ;;  %v13108_v62 = vld [vmem:[#allocation6 + $0x1c0] sm:$0xff] }
 0x227   :  { %v1734_v29 = vpop.permute.xlu1 %1733  ;;  %2009 = vst [vmem:[#allocation4 + $0x80] sm:$0xf] %v1969_v18  ;;  %v2122_v1 = vpack.c.b16 %v2110_v16, %v2110_v16  ;;  %5188 = vperm.xlu2 %13712, %v5146_v33   ;;  %v1614_v43 = vor.u32 %v1612_v30, %v1611_v46  ;;  %v15100_v12 = vadd.f32 %v4740_v13, %v4702_v17  ;;  %v15102_v58 = vpop.f32.mrf.mxu2  ;;  %v17233_v60 = vrot.slane %v15095_v4, 5  ;;  %v13116_v16 = vld [vmem:[#allocation6 + $0x200] sm:$0xff]  ;;  %v13699_v46 = vld [vmem:[#allocation2 + $0x2c] sm:$0xff]  }
 0x228   :  { %v1746_v40 = vsel %vm556_vm6, %v13755_v31, %v1734_v29  ;;  %5178 = vperm.xlu0 %13710, %v5144_v63   ;;  %v10913_v2 = vrot.slane %v2121_v51, 10  ;;  %v13034_v30 = vld [vmem:[#allocation4 + $0x1e0] sm:$0xf0]  ;;  %v13131_v18 = vld [vmem:[#allocation6 + $0x278] sm:$0xff]  ;;  %4850 = vmatpush.bf16.msra.mxu0 %v13108_v62 }
 0x229   :  { %v1764_v7 = vunpack.c.l.b16 %v1746_v40  ;;  %v1765_v49 = vunpack.c.h.b16 %v1746_v40  ;;  %v2135_v33 = vrot.slane %v2122_v1, 6  ;;  %v2082_v29 = vpop.permute.xlu2 %2081  ;;  %v1615_v13 = vsel %vm14354_vm8, %v1607_v10, %v1614_v43  ;;  %v11003_v1 = vld [vmem:[#allocation4 + $0x18] sm:$0xf]  ;;  %4921 = vmatpush.bf16.msra.mxu2 %v13131_v18  ;;  %4889 = vmatpush.bf16.msra.mxu1 %v13116_v16 }
 0x22a   :  { %v11204_v17 = vor.u32 %v13034_v30, %v11203_v32  ;;  %v1985_v28 = vrot.slane %v17233_v60, 4  ;;  %v1910_v63 = vpop.permute.xlu0 %1909  ;;  %1639 = vst [vmem:[#allocation4 + $0x24c] sm:$0x3] %v1615_v13  ;;  %v2099_v30 = vsel %vm556_vm6, %v13699_v46, %v2082_v29  ;;  %v11249_v46 = vld [vmem:[#allocation4 + $0x244] sm:$0x30]  ;;  %v1970_v16 = vrot.slane %v1968_v59, 4 }
 0x22b   :  { %v1776_v39 = vpack.c.b16 %v1764_v7, %v1764_v7  ;;  %v1777_v3 = vpack.c.b16 %v1765_v49, %v1765_v49  ;;  %v2136_v31 = vsel %vm14079_vm2, %v10913_v2, %v2135_v33  ;;  %v2137_v40 = vrot.slane %v2135_v33, 4  ;;  %v13756_v49 = vld [vmem:[#allocation2 + $0x1c] sm:$0xff]  ;;  %v12983_v32 = vld [vmem:[#allocation4 + $0x48] sm:$0xf0] }
 0x22c   :  { %v17232_v7 = vrot.slane %v15104_v38, 5  ;;  %v1922_v51 = vsel %vm556_vm6, %v13756_v49, %v1910_v63  ;;  %4754 = vmatmul.bf16.gmra.mxu1 %v11204_v17  ;;  %v13139_v2 = vld [vmem:[#allocation6 + $0x2b8] sm:$0xff]  ;;  %v17282_v33 = vrot.slane %v14837_v21, 6  ;;  %v15129_v17 = vpop.f32.mrf.mxu1  ;;  %v11004_v29 = vor.u32 %v12983_v32, %v11003_v1  ;;  %v5147_v63 = vld [vmem:[%s17207_s1 + $0x40] sm:$0xff]  ;;  %2180 = vst [vmem:[#allocation4 + $0x1c] sm:$0xf] %v2136_v31  ;;  %v15137_v49 = vpop.f32.mrf.mxu0 }
 0x22d   :  { %5168 = vperm.xlu1 %13711, %v5142_v50   ;;  %1800 = vst [vmem:[#allocation4 + $0x14] sm:$0xf] %v1776_v39  ;;  %v1940_v10 = vunpack.c.l.b16 %v1922_v51  ;;  %v1941_v43 = vunpack.c.h.b16 %v1922_v51  ;;  %v5149_v50 = vld [vmem:[%s17207_s1 + $0x50] sm:$0xff]  ;;  %v13757_v21 = vld [vmem:[#allocation2 + $0x18] sm:$0xff]  ;;  %v2117_v1 = vunpack.c.l.b16 %v2099_v30  ;;  %v2118_v32 = vunpack.c.h.b16 %v2099_v30  ;;  %4960 = vmatpush.bf16.msra.mxu3 %v13139_v2 }
 0x22e   :  { %1801 = vst [vmem:[#allocation4 + $0x48] sm:$0xf] %v1777_v3  ;;  %v2139_v13 = vsel %vm14079_vm2, %v2137_v40, %v17282_v33  ;;  %v1987_v39 = vsel %vm14304_vm12, %v1985_v28, %v17232_v7  ;;  %4812 = vmatmul.bf16.vlgmr.msrb.gmra.mxu3 %v11004_v29  ;;  %v13040_v33 = vld [vmem:[#allocation4 + $0x214] sm:$0xf]  ;;  %v5145_v31 = vld [vmem:[%s17207_s1 + $0x30] sm:$0xff]  ;;  %4922 = vmatpush.bf16.msra.mxu2 %v13130_v0 }
 0x22f   :  { %v2299_v62 = vpop.permute.xlu1 %2298  ;;  %17283 = vst [vmem:[#allocation23_spill] sm:$0xff] %v15129_v17  ;;  %v1952_v18 = vpack.c.b16 %v1940_v10, %v1940_v10  ;;  %v15135_v40 = vpack.c.b16 %v1941_v43, %v1941_v43  ;;  %5203 = vperm.xlu2 %13712, %v5149_v50   ;;  %v15145_v30 = vpack.c.b16 %v2117_v1, %v2117_v1  ;;  %v13758_v7 = vld [vmem:[#allocation2 + $0x14] sm:$0xff] }
 0x230   :  { %v2314_v3 = vsel %vm556_vm6, %v13757_v21, %v2299_v62  ;;  %17284 = vst [vmem:[#allocation24_spill] sm:$0xff] %v15137_v49  ;;  %v4628_v43 = vpop.f32.mrf.mxu2  ;;  %5193 = vperm.xlu0 %13710, %v5147_v63   ;;  %v11252_v62 = vor.u32 %v13040_v33, %v11249_v46 }
 0x231   :  { %2181 = vst [vmem:[#allocation4 + $0x50] sm:$0xf] %v2139_v13  ;;  %v2334_v28 = vunpack.c.l.b16 %v2314_v3  ;;  %v2335_v51 = vunpack.c.h.b16 %v2314_v3  ;;  %v1971_v10 = vrot.slane %v1952_v18, 5  ;;  %v4629_v29 = vadd.f32 %v4628_v43, %v14852_v26  ;;  %v13047_v26 = vld [vmem:[#allocation4 + $0x248] sm:$0x30] }
 0x232   :  { %2015 = vst [vmem:[#allocation4 + $0x1b8] sm:$0xf] %v1987_v39  ;;  %v17234_v50 = vrot.slane %v15135_v40, 5  ;;  %v15150_v39 = vpack.c.b16 %v2118_v32, %v2118_v32  ;;  %4720 = vmatmul.bf16.gmra.mxu0 %v11252_v62  ;;  %v2078_v3 = vpop.permute.xlu0 %2077 }
 0x233   :  { %v2347_v13 = vpack.c.b16 %v2334_v28, %v2334_v28  ;;  %v2348_v21 = vpack.c.b16 %v2335_v51, %v2335_v51  ;;  %v1972_v54 = vsel %vm14304_vm12, %v1970_v16, %v1971_v10  ;;  %v1973_v59 = vrot.slane %v1971_v10, 4  ;;  %v4667_v28 = vpop.f32.mrf.mxu3 }
 0x234   :  { %2010 = vst [vmem:[#allocation4 + $0xb4] sm:$0xf] %v1972_v54  ;;  %v2376_v51 = vrot.slane %v14835_v22, 4  ;;  %v12976_v33 = vld [vmem:[#allocation4 + $0x14] sm:$0xf]  ;;  %v4668_v16 = vadd.f32 %v4667_v28, %v4629_v29  ;;  %v17235_v10 = vrot.slane %v15145_v30, 6 }
 0x235   :  { %v2378_v18 = vshrl.u32 %v2347_v13, 16  ;;  %v2381_v63 = vshll.u32 %v2347_v13, 16  ;;  %v2388_v46 = vshrl.u32 %v2348_v21, 16  ;;  %v2391_v2 = vshll.u32 %v2348_v21, 16  ;;  %5183 = vperm.xlu1 %13711, %v5145_v31   ;;  %v10997_v32 = vld [vmem:[#allocation4 + $0x44] sm:$0xf0] }
 0x236   :  { %v1975_v1 = vsel %vm14304_vm12, %v1973_v59, %v17234_v50  ;;  %v11000_v54 = vor.u32 %v12976_v33, %v10997_v32  ;;  %v2158_v60 = vrot.slane %v17235_v10, 4  ;;  %v17236_v59 = vrot.slane %v15150_v39, 6  ;;  %v13695_v50 = vld [vmem:[#allocation2 + $0x1c] sm:$0xff]   ;;  %v5150_v29 = vld [vmem:[%s17207_s1 + $0x58] sm:$0xf]  ;;  %v4745_v32 = vpop.f32.mrf.mxu1  ;;  %v5148_v10 = vld [vmem:[%s17207_s1 + $0x48] sm:$0xff] }
 0x237   :  { %v2380_v43 = vrot.slane %v2378_v18, 6  ;;  %v2383_v62 = vrot.slane %v2381_v63, 7  ;;  %v2390_v13 = vrot.slane %v2388_v46, 6  ;;  %v2393_v21 = vrot.slane %v2391_v2, 7  ;;  %2011 = vst [vmem:[#allocation4 + $0xe8] sm:$0xf] %v1975_v1  ;;  %v1736_v31 = vpop.permute.xlu1 %1735  ;;  %v4706_v2 = vpop.f32.mrf.mxu0 }
 0x238   :  { %v1748_v22 = vsel %vm556_vm6, %v13758_v7, %v1736_v31  ;;  %v13147_v18 = vld [vmem:[#allocation6 + $0x2f8] sm:$0xff]  ;;  %v11255_v33 = vld [vmem:[#allocation4 + $0x218] sm:$0xf]  ;;  %4773 = vmatmul.bf16.vlgmr.msrb.gmra.mxu2 %v11000_v54  ;;  %v2160_v31 = vsel %vm14079_vm2, %v2158_v60, %v17236_v59  ;;  %5208 = vperm.xlu0 %13710, %v5150_v29   ;;  %v2307_v54 = vpop.permute.xlu2 %2306 }
 0x239   :  { %v2384_v63 = vor.u32 %v2383_v62, %v2380_v43  ;;  %v2394_v46 = vor.u32 %v2393_v21, %v2390_v13  ;;  %v1766_v28 = vunpack.c.l.b16 %v1748_v22  ;;  %v1767_v1 = vunpack.c.h.b16 %v1748_v22  ;;  %v13151_v7 = vld [vmem:[#allocation6 + $0x318] sm:$0xff]  ;;  %2188 = vst [vmem:[#allocation4 + $0x1bc] sm:$0xf] %v2160_v31  ;;  %4999 = vmatpush.bf16.msrb.mxu0 %v13147_v18 }
 0x23a   :  { %v2093_v43 = vsel %vm556_vm6, %v13695_v50, %v2078_v3  ;;  %v11256_v62 = vor.u32 %v13047_v26, %v11255_v33  ;;  %v4707_v13 = vadd.f32 %v4706_v2, %v4668_v16  ;;  %v2303_v50 = vpop.permute.xlu0 %2302  ;;  %5042 = vmatpush.bf16.msrb.mxu1 %v13151_v7  ;;  %v17285_v3 = vrot.slane %v14839_v5, 6  ;;  %v13760_v33 = vld [vmem:[#allocation2 + $0x28] sm:$0xff] }
 0x23b   :  { %v2385_v21 = vsel %vm14331_vm15, %v2376_v51, %v2384_v63  ;;  %v2386_v22 = vrot.slane %v2384_v63, 4  ;;  %v2396_v52 = vrot.slane %v2394_v46, 4  ;;  %v1778_v53 = vpack.c.b16 %v1766_v28, %v1766_v28  ;;  %v13759_v63 = vld [vmem:[#allocation2 + $0x38] sm:$0xff] }
 0x23c   :  { %2495 = vst [vmem:[#allocation4 + $0x54] sm:$0xf] %v2385_v21  ;;  %v1779_v60 = vpack.c.b16 %v1767_v1, %v1767_v1  ;;  %v2113_v59 = vunpack.c.l.b16 %v2093_v43  ;;  %v2114_v17 = vunpack.c.h.b16 %v2093_v43  ;;  %v15177_v49 = vadd.f32 %v4745_v32, %v4707_v13  ;;  %4759 = vmatmul.bf16.gmra.mxu1 %v11256_v62  ;;  %v15195_v32 = vpop.f32.mrf.mxu2 }
 0x23d   :  { %v2143_v26 = vrot.slane %v17285_v3, 4  ;;  %v2395_v51 = vsel %vm14331_vm15, %v2386_v22, %v2394_v46  ;;  %v2405_v16 = vsel %vm14331_vm15, %v2396_v52, %v14889_v48  ;;  %1802 = vst [vmem:[#allocation4 + $0x7c] sm:$0xf] %v1778_v53  ;;  %5198 = vperm.xlu1 %13711, %v5148_v10   ;;  %v2322_v0 = vsel %vm556_vm6, %v13759_v63, %v2307_v54  ;;  %v13761_v10 = vld [vmem:[#allocation2 + $0x24] sm:$0xff] }
 0x23e   :  { %2496 = vst [vmem:[#allocation4 + $0x88] sm:$0xf] %v2395_v51  ;;  %v2125_v29 = vpack.c.b16 %v2113_v59, %v2113_v59  ;;  %v15186_v18 = vpack.c.b16 %v2114_v17, %v2114_v17  ;;  %v2342_v28 = vunpack.c.l.b16 %v2322_v0  ;;  %v2343_v1 = vunpack.c.h.b16 %v2322_v0 }
 0x23f   :  { %2497 = vst [vmem:[#allocation4 + $0xbc] sm:$0xf] %v2405_v16  ;;  %v1912_v46 = vpop.permute.xlu1 %1911  ;;  %v2318_v53 = vsel %vm556_vm6, %v13760_v33, %v2303_v50  ;;  %v17286_v48 = vrot.slane %v15135_v40, 5  ;;  %v13138_v50 = vld [vmem:[#allocation6 + $0x2b0] sm:$0xff] }
 0x240   :  { %1803 = vst [vmem:[#allocation4 + $0xb0] sm:$0xf] %v1779_v60  ;;  %v2144_v17 = vrot.slane %v2125_v29, 6  ;;  %v1924_v59 = vsel %vm556_vm6, %v13761_v10, %v1912_v46  ;;  %v2338_v7 = vunpack.c.l.b16 %v2318_v53  ;;  %v2355_v62 = vpack.c.b16 %v2342_v28, %v2342_v28  ;;  %v15200_v29 = vpop.f32.mrf.mxu3  ;;  %4961 = vmatpush.bf16.msra.mxu3 %v13138_v50  ;;  %v15210_v10 = vpop.f32.mrf.mxu0 }
 0x241   :  { %v1976_v52 = vrot.slane %v17286_v48, 4  ;;  %v1942_v31 = vunpack.c.l.b16 %v1924_v59  ;;  %v1943_v43 = vunpack.c.h.b16 %v1924_v59  ;;  %v2356_v13 = vpack.c.b16 %v2343_v1, %v2343_v1  ;;  %17287 = vst [vmem:[#allocation25_spill] sm:$0xff] %v15210_v10  ;;  %v13697_v10 = vld [vmem:[#allocation2 + $0x24] sm:$0xff]  }
 0x242   :  { %v2145_v21 = vsel %vm14079_vm2, %v2143_v26, %v2144_v17  ;;  %v2146_v22 = vrot.slane %v2144_v17, 4  ;;  %v17237_v54 = vrot.slane %v15186_v18, 6  ;;  %v2339_v40 = vunpack.c.h.b16 %v2318_v53  ;;  %v15206_v28 = vpop.permute.xlu0 %1739  ;;  %v15208_v17 = vld [vmem:[#allocation2 + $0x10] sm:$0x8] }
 0x243   :  { %2183 = vst [vmem:[#allocation4 + $0xb8] sm:$0xf] %v2145_v21  ;;  %v1954_v60 = vpack.c.b16 %v1942_v31, %v1942_v31  ;;  %v1955_v3 = vpack.c.b16 %v1943_v43, %v1943_v43  ;;  %v2458_v51 = vshrl.u32 %v2355_v62, 16  ;;  %v2461_v16 = vshll.u32 %v2355_v62, 16  ;;  %v2309_v21 = vpop.permute.xlu2 %2308 }
 0x244   :  { %v2148_v63 = vsel %vm14079_vm2, %v2146_v22, %v17237_v54  ;;  %v2468_v0 = vshrl.u32 %v2356_v13, 16  ;;  %v2471_v46 = vshll.u32 %v2356_v13, 16  ;;  %v2351_v26 = vpack.c.b16 %v2338_v7, %v2338_v7  ;;  %v13146_v22 = vld [vmem:[#allocation6 + $0x2f0] sm:$0xff]  ;;  %v13129_v13 = vld [vmem:[#allocation6 + $0x268] sm:$0xff] }
 0x245   :  { %2184 = vst [vmem:[#allocation4 + $0xec] sm:$0xf] %v2148_v63  ;;  %v1977_v1 = vrot.slane %v1954_v60, 5  ;;  %v1980_v33 = vrot.slane %v1955_v3, 5  ;;  %v2460_v53 = vrot.slane %v2458_v51, 6  ;;  %v2463_v48 = vrot.slane %v2461_v16, 7  ;;  %v15216_v51 = vpop.f32.mrf.mxu1  ;;  %5000 = vmatpush.bf16.msrb.mxu0 %v13146_v22  ;;  %4923 = vmatpush.bf16.msra.mxu2 %v13129_v13 }
 0x246   :  { %v2470_v59 = vrot.slane %v2468_v0, 6  ;;  %v2473_v31 = vrot.slane %v2471_v46, 7  ;;  %v2352_v43 = vpack.c.b16 %v2339_v40, %v2339_v40  ;;  %v2418_v62 = vshrl.u32 %v2351_v26, 16  ;;  %v13137_v7 = vld [vmem:[#allocation6 + $0x2a8] sm:$0xff]  ;;  %17288 = vst [vmem:[#allocation26_spill] sm:$0xff] %v15216_v51 }
 0x247   :  { %v1978_v50 = vsel %vm14304_vm12, %v1976_v52, %v1977_v1  ;;  %v1979_v63 = vrot.slane %v1977_v1, 4  ;;  %v1982_v60 = vrot.slane %v1980_v33, 4  ;;  %v15214_v3 = vor.u32 %v2463_v48, %v2460_v53  ;;  %v12989_v16 = vld [vmem:[#allocation4 + $0x7c] sm:$0xf]  ;;  %v11049_v54 = vld [vmem:[#allocation4 + $0xac] sm:$0xf0]  ;;  %v2080_v2 = vpop.permute.xlu1 %2079  ;;  %4962 = vmatpush.bf16.msra.mxu3 %v13137_v7 }
 0x248   :  { %2012 = vst [vmem:[#allocation4 + $0x11c] sm:$0xf] %v1978_v50  ;;  %v15218_v0 = vor.u32 %v2473_v31, %v2470_v59  ;;  %v2420_v40 = vrot.slane %v2418_v62, 6  ;;  %v2421_v46 = vshll.u32 %v2351_v26, 16  ;;  %v2428_v5 = vshrl.u32 %v2352_v43, 16  ;;  %v4633_v62 = vpop.f32.mrf.mxu2 }
 0x249   :  { %v1981_v52 = vsel %vm14304_vm12, %v1979_v63, %v1980_v33  ;;  %v17289_v1 = vrot.slane %v15095_v4, 5  ;;  %v2466_v48 = vrot.slane %v15214_v3, 4  ;;  %v2431_v51 = vshll.u32 %v2352_v43, 16  ;;  %v15227_v59 = vld [vmem:[#allocation2 + $0x38] sm:$0x3] }
 0x24a   :  { %2013 = vst [vmem:[#allocation4 + $0x150] sm:$0xf] %v1981_v52  ;;  %v2423_v26 = vrot.slane %v2421_v46, 7  ;;  %v2430_v31 = vrot.slane %v2428_v5, 6  ;;  %v12996_v22 = vld [vmem:[#allocation4 + $0xb0] sm:$0xf0]  ;;  %v17290_v13 = vunpack.c.h.b16 %v14602_v35  ;;  %v17291_v33 = vunpack.c.l.b16 %v15175_v23  ;;  %v15240_v23 = vpop.permute.xlu0 %1915 }
 0x24b   :  { %v1984_v53 = vsel %vm14304_vm12, %v1982_v60, %v17289_v1  ;;  %v2532_v50 = vunpack.c.l.b16 %v15208_v17  ;;  %v2475_v43 = vsel %vm14331_vm15, %v2466_v48, %v15218_v0  ;;  %v2433_v7 = vrot.slane %v2431_v51, 7  ;;  %v11055_v35 = vld [vmem:[#allocation4 + $0x80] sm:$0xf]  ;;  %v11005_v1 = vld [vmem:[#allocation4 + $0x4c] sm:$0xf0] }
 0x24c   :  { %v15233_v4 = vpack.c.b16 %v17291_v33, %v17290_v13  ;;  %2014 = vst [vmem:[#allocation4 + $0x184] sm:$0xf] %v1984_v53  ;;  %v11052_v63 = vor.u32 %v12989_v16, %v11049_v54  ;;  %v2096_v60 = vsel %vm556_vm6, %v13697_v10, %v2080_v2  ;;  %v2424_v5 = vor.u32 %v2423_v26, %v2420_v40  ;;  %v13145_v2 = vld [vmem:[#allocation6 + $0x2e8] sm:$0xff]  ;;  %v4672_v10 = vpop.f32.mrf.mxu3 }
 0x24d   :  { %2504 = vst [vmem:[#allocation4 + $0x228] sm:$0xf] %v2475_v43  ;;  %v2115_v46 = vunpack.c.l.b16 %v2096_v60  ;;  %v2116_v52 = vunpack.c.h.b16 %v2096_v60  ;;  %v1676_v13 = vunpack.c.l.b16 %v15227_v59  ;;  %v15243_v33 = vor.u32 %v2433_v7, %v2430_v31  ;;  %v12977_v60 = vld [vmem:[#allocation4 + $0x1c] sm:$0xf]  ;;  %v12984_v31 = vld [vmem:[#allocation4 + $0x50] sm:$0xf0]  ;;  %5001 = vmatpush.bf16.msrb.mxu0 %v13145_v2  ;;  %v4750_v2 = vpop.f32.mrf.mxu1 }
 0x24e   :  { %4778 = vmatmul.bf16.gmra.mxu2 %v11052_v63  ;;  %v4634_v53 = vadd.f32 %v4633_v62, %v14909_v27  ;;  %v11056_v48 = vor.u32 %v12996_v22, %v11055_v35  ;;  %v2324_v54 = vsel %vm556_vm6, %v14845_v61, %v2309_v21  ;;  %v17292_v51 = vrot.slane %v14897_v57, 4  ;;  %v11011_v35 = vld [vmem:[#allocation4 + $0x20] sm:$0xf] }
 0x24f   :  { %v2426_v40 = vrot.slane %v2424_v5, 4  ;;  %v2127_v26 = vpack.c.b16 %v2115_v46, %v2115_v46  ;;  %v2128_v43 = vpack.c.b16 %v2116_v52, %v2116_v52  ;;  %v17293_v7 = vrot.slane %v15186_v18, 6  ;;  %v2305_v21 = vpop.permute.xlu1 %2304  ;;  %v13762_v46 = vld [vmem:[#allocation2 + $0x24] sm:$0xff]  ;;  %v2909_v18 = vpop.permute.xlu2 %2908 }
 0x250   :  { %v2425_v16 = vsel %vm14331_vm15, %v17292_v51, %v2424_v5  ;;  %v4673_v27 = vadd.f32 %v4672_v10, %v4634_v53  ;;  %4817 = vmatmul.bf16.gmra.mxu3 %v11056_v48  ;;  %v2344_v62 = vunpack.c.l.b16 %v2324_v54  ;;  %v11008_v61 = vor.u32 %v12977_v60, %v11005_v1  ;;  %v4711_v51 = vpop.f32.mrf.mxu0 }
 0x251   :  { %v2149_v63 = vrot.slane %v17293_v7, 4  ;;  %2499 = vst [vmem:[#allocation4 + $0x124] sm:$0xf] %v2425_v16  ;;  %v2435_v57 = vsel %vm14331_vm15, %v2426_v40, %v15243_v33  ;;  %v2150_v22 = vrot.slane %v2127_v26, 6  ;;  %v2153_v5 = vrot.slane %v2128_v43, 6  ;;  %v13763_v7 = vld [vmem:[#allocation2 + $0x30] sm:$0xff] }
 0x252   :  { %v1752_v52 = vsel %vm556_vm6, %v13762_v46, %v15206_v28  ;;  %2500 = vst [vmem:[#allocation4 + $0x158] sm:$0xf] %v2435_v57  ;;  %v2357_v53 = vpack.c.b16 %v2344_v62, %v2344_v62  ;;  %4851 = vmatmul.bf16.vlgmr.msra.gmra.mxu0 %v11008_v61  ;;  %v11012_v54 = vor.u32 %v12984_v31, %v11011_v35  ;;  %v2476_v43 = vrot.slane %v15218_v0, 4  ;;  %v11101_v0 = vld [vmem:[#allocation4 + $0x114] sm:$0xf0] }
 0x253   :  { %v1770_v48 = vunpack.c.l.b16 %v1752_v52  ;;  %v1771_v1 = vunpack.c.h.b16 %v1752_v52  ;;  %v2151_v10 = vsel %vm14079_vm2, %v2149_v63, %v2150_v22  ;;  %v2152_v16 = vrot.slane %v2150_v22, 4  ;;  %v13002_v22 = vld [vmem:[#allocation4 + $0xe4] sm:$0xf] }
 0x254   :  { %v2155_v40 = vrot.slane %v2153_v5, 4  ;;  %v4712_v26 = vadd.f32 %v4711_v51, %v4673_v27  ;;  %2185 = vst [vmem:[#allocation4 + $0x120] sm:$0xf] %v2151_v10  ;;  %v2478_v28 = vshll.u32 %v2357_v53, 16  ;;  %4890 = vmatmul.bf16.vlgmr.msra.gmra.mxu1 %v11012_v54  ;;  %v2320_v62 = vsel %vm556_vm6, %v13763_v7, %v2305_v21  ;;  %v13764_v51 = vld [vmem:[#allocation2 + $0x18] sm:$0xff]  ;;  %v15275_v54 = vpop.permute.xlu0 %2083  ;;  %v13150_v10 = vld [vmem:[#allocation6 + $0x310] sm:$0xff] }
 0x255   :  { %v1782_v60 = vpack.c.b16 %v1770_v48, %v1770_v48  ;;  %v2154_v61 = vsel %vm14079_vm2, %v2152_v16, %v2153_v5  ;;  %v17294_v31 = vrot.slane %v15145_v30, 6  ;;  %v2340_v27 = vunpack.c.l.b16 %v2320_v62  ;;  %5043 = vmatpush.bf16.msrb.mxu1 %v13150_v10 }
 0x256   :  { %v15269_v57 = vadd.f32 %v4750_v2, %v4712_v26  ;;  %2186 = vst [vmem:[#allocation4 + $0x154] sm:$0xf] %v2154_v61  ;;  %v2480_v46 = vrot.slane %v2478_v28, 7  ;;  %v1783_v52 = vpack.c.b16 %v1771_v1, %v1771_v1  ;;  %v2341_v35 = vunpack.c.h.b16 %v2320_v62  ;;  %v13128_v2 = vld [vmem:[#allocation6 + $0x260] sm:$0xff] }
 0x257   :  { %v2157_v63 = vsel %vm14079_vm2, %v2155_v40, %v17294_v31  ;;  %v2921_v21 = vsel %vm556_vm6, %v13764_v51, %v2909_v18  ;;  %v2353_v53 = vpack.c.b16 %v2340_v27, %v2340_v27  ;;  %v1929_v30 = vsel %vm556_vm6, %v15233_v4, %v15240_v23  ;;  %1806 = vst [vmem:[#allocation4 + $0x14c] sm:$0xf] %v1782_v60  ;;  %v1742_v18 = vpop.permute.xlu1 %1741  ;;  %v13136_v51 = vld [vmem:[#allocation6 + $0x2a0] sm:$0xff] }
 0x258   :  { %2187 = vst [vmem:[#allocation4 + $0x188] sm:$0xf] %v2157_v63  ;;  %v2939_v5 = vunpack.c.l.b16 %v2921_v21  ;;  %v2940_v48 = vunpack.c.h.b16 %v2921_v21  ;;  %v2481_v16 = vsel %vm14331_vm15, %v2476_v43, %v2480_v46  ;;  %v2354_v1 = vpack.c.b16 %v2341_v35, %v2341_v35  ;;  %4924 = vmatpush.bf16.msra.mxu2 %v13128_v2  ;;  %v2616_v35 = vpop.permute.xlu2 %2615  ;;  %4963 = vmatpush.bf16.msra.mxu3 %v13136_v51 }
 0x259   :  { %v1946_v40 = vunpack.c.l.b16 %v1929_v30  ;;  %v11104_v26 = vor.u32 %v13002_v22, %v11101_v0  ;;  %2505 = vst [vmem:[#allocation4 + $0x25c] sm:$0x3] %v2481_v16  ;;  %v2438_v28 = vshrl.u32 %v2353_v53, 16  ;;  %v2441_v7 = vshll.u32 %v2353_v53, 16  ;;  %v13765_v22 = vld [vmem:[#allocation2 + $0x2c] sm:$0xff] }
 0x25a   :  { %v2951_v62 = vpack.c.b16 %v2939_v5, %v2939_v5  ;;  %v2952_v61 = vpack.c.b16 %v2940_v48, %v2940_v48  ;;  %1807 = vst [vmem:[#allocation4 + $0x180] sm:$0xf] %v1783_v52  ;;  %v2448_v4 = vshrl.u32 %v2354_v1, 16  ;;  %v2451_v23 = vshll.u32 %v2354_v1, 16 }
 0x25b   :  { %v1947_v31 = vunpack.c.h.b16 %v1929_v30  ;;  %v1958_v63 = vpack.c.b16 %v1946_v40, %v1946_v40  ;;  %v17295_v27 = vrot.slane %v15104_v38, 5  ;;  %v2440_v60 = vrot.slane %v2438_v28, 6  ;;  %v13009_v28 = vld [vmem:[#allocation4 + $0x118] sm:$0xf0] }
 0x25c   :  { %v2443_v46 = vrot.slane %v2441_v7, 7  ;;  %2975 = vst [vmem:[#allocation4 + $0x28] sm:$0xf] %v2951_v62  ;;  %v1754_v0 = vsel %vm556_vm6, %v13765_v22, %v1742_v18  ;;  %v2450_v21 = vrot.slane %v2448_v4, 6  ;;  %v2453_v53 = vrot.slane %v2451_v23, 7  ;;  %v13586_v7 = vld [vmem:[#allocation2 + $0x20] sm:$0xff]  }
 0x25d   :  { %v1988_v43 = vrot.slane %v17295_v27, 4  ;;  %2976 = vst [vmem:[#allocation4 + $0x5c] sm:$0xf] %v2952_v61  ;;  %v1959_v5 = vpack.c.b16 %v1947_v31, %v1947_v31  ;;  %v1989_v52 = vrot.slane %v1958_v63, 5  ;;  %v2436_v48 = vrot.slane %v15243_v33, 4  ;;  %v13700_v31 = vld [vmem:[#allocation2 + $0x34] sm:$0xff]  }
 0x25e   :  { %v2444_v30 = vor.u32 %v2443_v46, %v2440_v60  ;;  %v1772_v2 = vunpack.c.l.b16 %v1754_v0  ;;  %v1773_v10 = vunpack.c.h.b16 %v1754_v0  ;;  %v2454_v38 = vor.u32 %v2453_v53, %v2450_v21  ;;  %4783 = vmatmul.bf16.gmra.mxu2 %v11104_v26  ;;  %v11107_v18 = vld [vmem:[#allocation4 + $0xe8] sm:$0xf]  ;;  %v12990_v62 = vld [vmem:[#allocation4 + $0x84] sm:$0xf]  ;;  %v11057_v61 = vld [vmem:[#allocation4 + $0xb4] sm:$0xf0] }
 0x25f   :  { %v1990_v16 = vsel %vm14304_vm12, %v1988_v43, %v1989_v52  ;;  %v1991_v1 = vrot.slane %v1989_v52, 4  ;;  %v1992_v40 = vrot.slane %v1959_v5, 5  ;;  %v11063_v63 = vld [vmem:[#allocation4 + $0x88] sm:$0xf]  ;;  %v17296_v27 = vunpack.c.l.b16 %v14789_v20  ;;  %v12997_v0 = vld [vmem:[#allocation4 + $0xb8] sm:$0xf0]  ;;  %v1744_v51 = vpop.permute.xlu1 %1743  ;;  %v2612_v52 = vpop.permute.xlu0 %2611 }
 0x260   :  { %v2445_v4 = vsel %vm14331_vm15, %v2436_v48, %v2444_v30  ;;  %v2446_v33 = vrot.slane %v2444_v30, 4  ;;  %2016 = vst [vmem:[#allocation4 + $0x1ec] sm:$0xf] %v1990_v16  ;;  %v1784_v23 = vpack.c.b16 %v1772_v2, %v1772_v2  ;;  %v2456_v60 = vrot.slane %v2454_v38, 4 }
 0x261   :  { %v1682_v43 = vpack.c.b16 %v1676_v13, %v17296_v27  ;;  %2501 = vst [vmem:[#allocation4 + $0x18c] sm:$0xf] %v2445_v4  ;;  %v1993_v26 = vsel %vm14304_vm12, %v1991_v1, %v1992_v40  ;;  %v1994_v46 = vrot.slane %v1992_v40, 4  ;;  %v1785_v22 = vpack.c.b16 %v1773_v10, %v1773_v10  ;;  %v13135_v4 = vld [vmem:[#allocation6 + $0x298] sm:$0xff] }
 0x262   :  { %v2455_v21 = vsel %vm14331_vm15, %v2446_v33, %v2454_v38  ;;  %2017 = vst [vmem:[#allocation4 + $0x220] sm:$0xf] %v1993_v26  ;;  %v11108_v53 = vor.u32 %v13009_v28, %v11107_v18  ;;  %v2633_v5 = vsel %vm556_vm6, %v13586_v7, %v2616_v35  ;;  %v11060_v20 = vor.u32 %v12990_v62, %v11057_v61  ;;  %v2618_v28 = vpop.permute.xlu2 %2617  ;;  %v13144_v62 = vld [vmem:[#allocation6 + $0x2e0] sm:$0xff]  ;;  %v13127_v61 = vld [vmem:[#allocation6 + $0x258] sm:$0xff] }
 0x263   :  { %v2465_v59 = vsel %vm14331_vm15, %v2456_v60, %v15214_v3  ;;  %2502 = vst [vmem:[#allocation4 + $0x1c0] sm:$0xf] %v2455_v21  ;;  %v2657_v13 = vunpack.c.l.b16 %v2633_v5  ;;  %v2658_v48 = vunpack.c.h.b16 %v2633_v5  ;;  %v2102_v30 = vsel %vm556_vm6, %v13700_v31, %v15275_v54  ;;  %5002 = vmatpush.bf16.msrb.mxu0 %v13144_v62  ;;  %4925 = vmatpush.bf16.msra.mxu2 %v13127_v61 }
 0x264   :  { %2503 = vst [vmem:[#allocation4 + $0x1f4] sm:$0xf] %v2465_v59  ;;  %4822 = vmatmul.bf16.gmra.mxu3 %v11108_v53  ;;  %4856 = vmatmul.bf16.gmra.mxu0 %v11060_v20  ;;  %v2119_v2 = vunpack.c.l.b16 %v2102_v30  ;;  %v2120_v10 = vunpack.c.h.b16 %v2102_v30  ;;  %v11064_v38 = vor.u32 %v12997_v0, %v11063_v63  ;;  %v1757_v35 = vsel %vm556_vm6, %v1682_v43, %v1744_v51  ;;  %v13587_v0 = vld [vmem:[#allocation2 + $0x28] sm:$0xff]   ;;  %v11153_v59 = vld [vmem:[#allocation4 + $0x17c] sm:$0xf0] }
 0x265   :  { %2018 = vst [vmem:[#allocation4 + $0x254] sm:$0x3] %v1994_v46  ;;  %v2670_v16 = vpack.c.b16 %v2657_v13, %v2657_v13  ;;  %v2671_v1 = vpack.c.b16 %v2658_v48, %v2658_v48  ;;  %v1774_v40 = vunpack.c.l.b16 %v1757_v35  ;;  %v17297_v54 = vunpack.c.l.b16 %v14872_v45  ;;  %4964 = vmatpush.bf16.msra.mxu3 %v13135_v4 }
 0x266   :  { %1808 = vst [vmem:[#allocation4 + $0x1b4] sm:$0xf] %v1784_v23  ;;  %v2131_v3 = vpack.c.b16 %v2119_v2, %v2119_v2  ;;  %v2132_v18 = vpack.c.b16 %v2120_v10, %v2120_v10  ;;  %4895 = vmatmul.bf16.gmra.mxu1 %v11064_v38  ;;  %v17298_v33 = vrot.slane %v15150_v39, 6  ;;  %v1775_v43 = vunpack.c.h.b16 %v1757_v35  ;;  %v13015_v39 = vld [vmem:[#allocation4 + $0x14c] sm:$0xf] }
 0x267   :  { %v2545_v7 = vpack.c.b16 %v17297_v54, %v2532_v50  ;;  %1809 = vst [vmem:[#allocation4 + $0x1e8] sm:$0xf] %v1785_v22  ;;  %v2712_v63 = vshrl.u32 %v2670_v16, 16  ;;  %v2721_v27 = vshrl.u32 %v2671_v1, 16  ;;  %v2724_v23 = vshll.u32 %v2671_v1, 16  ;;  %v2614_v21 = vpop.permute.xlu1 %2613  ;;  %v15317_v1 = vpop.permute.xlu0 %3080 }
 0x268   :  { %v2161_v31 = vrot.slane %v17298_v33, 4  ;;  %v2162_v60 = vrot.slane %v2131_v3, 6  ;;  %v2165_v26 = vrot.slane %v2132_v18, 6  ;;  %v1786_v46 = vpack.c.b16 %v1774_v40, %v1774_v40  ;;  %v13766_v18 = vld [vmem:[#allocation2 + $0x18] sm:$0xff]  }
 0x269   :  { %v2714_v17 = vrot.slane %v2712_v63, 7  ;;  %v15308_v45 = vrot.slane %v2721_v27, 7  ;;  %v2636_v50 = vsel %vm556_vm6, %v13587_v0, %v2618_v28  ;;  %v2627_v51 = vsel %vm556_vm6, %v2545_v7, %v2612_v52  ;;  %v13143_v27 = vld [vmem:[#allocation6 + $0x2d8] sm:$0xff] }
 0x26a   :  { %v2163_v22 = vsel %vm14079_vm2, %v2161_v31, %v2162_v60  ;;  %v2164_v53 = vrot.slane %v2162_v60, 4  ;;  %v2167_v5 = vrot.slane %v2165_v26, 4  ;;  %1810 = vst [vmem:[#allocation4 + $0x21c] sm:$0xf] %v1786_v46  ;;  %v2659_v20 = vunpack.c.l.b16 %v2636_v50  ;;  %5003 = vmatpush.bf16.msrb.mxu0 %v13143_v27  ;;  %v13149_v27 = vld [vmem:[#allocation6 + $0x308] sm:$0xff] }
 0x26b   :  { %v2715_v13 = vshll.u32 %v2670_v16, 16  ;;  %v2719_v48 = vrot.slane %v2714_v17, 4  ;;  %v2726_v30 = vor.u32 %v2724_v23, %v15308_v45  ;;  %2189 = vst [vmem:[#allocation4 + $0x1f0] sm:$0xf] %v2163_v22  ;;  %v1787_v2 = vpack.c.b16 %v1775_v43, %v1775_v43  ;;  %5044 = vmatpush.bf16.msrb.mxu1 %v13149_v27 }
 0x26c   :  { %v2166_v52 = vsel %vm14079_vm2, %v2164_v53, %v2165_v26  ;;  %2191 = vst [vmem:[#allocation4 + $0x258] sm:$0x3] %v2167_v5  ;;  %v2660_v10 = vunpack.c.h.b16 %v2636_v50  ;;  %v2672_v38 = vpack.c.b16 %v2659_v20, %v2659_v20  ;;  %v2653_v35 = vunpack.c.l.b16 %v2627_v51  ;;  %v13022_v20 = vld [vmem:[#allocation4 + $0x180] sm:$0xf0] }
 0x26d   :  { %v2727_v40 = vsel %vm14354_vm8, %v2719_v48, %v2726_v30  ;;  %2190 = vst [vmem:[#allocation4 + $0x224] sm:$0xf] %v2166_v52  ;;  %v2654_v3 = vunpack.c.h.b16 %v2627_v51  ;;  %v11156_v16 = vor.u32 %v13015_v39, %v11153_v59  ;;  %v2630_v28 = vsel %vm556_vm6, %v13766_v18, %v2614_v21  ;;  %v11159_v51 = vld [vmem:[#allocation4 + $0x150] sm:$0xf]  ;;  %v2620_v39 = vpop.permute.xlu2 %2619 }
 0x26e   :  { %v15322_v54 = vor.u32 %v2715_v13, %v2714_v17  ;;  %2807 = vst [vmem:[#allocation4 + $0xf4] sm:$0xf] %v2727_v40  ;;  %v2673_v7 = vpack.c.b16 %v2660_v10, %v2660_v10  ;;  %v2730_v62 = vshrl.u32 %v2672_v38, 16  ;;  %v2666_v61 = vpack.c.b16 %v2653_v35, %v2653_v35  ;;  %v13003_v40 = vld [vmem:[#allocation4 + $0xec] sm:$0xf] }
 0x26f   :  { %v2728_v4 = vrot.slane %v15308_v45, 4  ;;  %1811 = vst [vmem:[#allocation4 + $0x250] sm:$0x3] %v1787_v2  ;;  %v2667_v33 = vpack.c.b16 %v2654_v3, %v2654_v3  ;;  %4788 = vmatmul.bf16.gmra.mxu2 %v11156_v16  ;;  %v2655_v31 = vunpack.c.l.b16 %v2630_v28  ;;  %v2656_v63 = vunpack.c.h.b16 %v2630_v28  ;;  %v15325_v21 = vpop.permute.xlu1 %3082  ;;  %v11109_v2 = vld [vmem:[#allocation4 + $0x11c] sm:$0xf0] }
 0x270   :  { %v2732_v43 = vrot.slane %v2730_v62, 7  ;;  %v2733_v23 = vshll.u32 %v2672_v38, 16  ;;  %v2739_v60 = vshrl.u32 %v2673_v7, 16  ;;  %v2680_v26 = vshrl.u32 %v2666_v61, 16 }
 0x271   :  { %v2742_v46 = vshll.u32 %v2673_v7, 16  ;;  %v2685_v0 = vshrl.u32 %v2667_v33, 16  ;;  %v2668_v17 = vpack.c.b16 %v2655_v31, %v2655_v31  ;;  %v2669_v50 = vpack.c.b16 %v2656_v63, %v2656_v63  ;;  %v13588_v7 = vld [vmem:[#allocation2 + $0x30] sm:$0xff]   ;;  %v2911_v63 = vpop.permute.xlu0 %2910 }
 0x272   :  { %v2735_v45 = vor.u32 %v2733_v23, %v2732_v43  ;;  %v2737_v22 = vrot.slane %v2732_v43, 4  ;;  %v15327_v53 = vrot.slane %v2739_v60, 7  ;;  %v2688_v5 = vshll.u32 %v2667_v33, 16 }
 0x273   :  { %v10934_v59 = vrot.slane %v2680_v26, 11  ;;  %v2687_v13 = vrot.slane %v2685_v0, 7  ;;  %v2694_v48 = vshrl.u32 %v2668_v17, 16  ;;  %v2703_v30 = vshrl.u32 %v2669_v50, 16  ;;  %v15337_v0 = vpop.f32.mrf.mxu2 }
 0x274   :  { %v2736_v52 = vsel %vm14354_vm8, %v2728_v4, %v2735_v45  ;;  %v2744_v10 = vor.u32 %v2742_v46, %v15327_v53  ;;  %v2697_v38 = vshll.u32 %v2668_v17, 16  ;;  %v2706_v35 = vshll.u32 %v2669_v50, 16  ;;  %v13126_v4 = vld [vmem:[#allocation6 + $0x250] sm:$0xff] }
 0x275   :  { %2808 = vst [vmem:[#allocation4 + $0x128] sm:$0xf] %v2736_v52  ;;  %v2690_v3 = vor.u32 %v2688_v5, %v2687_v13  ;;  %v2692_v16 = vrot.slane %v2687_v13, 4  ;;  %v2696_v18 = vrot.slane %v2694_v48, 7  ;;  %v2705_v28 = vrot.slane %v2703_v30, 7  ;;  %v13134_v45 = vld [vmem:[#allocation6 + $0x290] sm:$0xff]  ;;  %4926 = vmatpush.bf16.msra.mxu2 %v13126_v4 }
 0x276   :  { %v2745_v62 = vsel %vm14354_vm8, %v2737_v22, %v2744_v10  ;;  %v11160_v61 = vor.u32 %v13022_v20, %v11159_v51  ;;  %v2639_v33 = vsel %vm556_vm6, %v13588_v7, %v2620_v39  ;;  %v11112_v31 = vor.u32 %v13003_v40, %v11109_v2  ;;  %v13010_v46 = vld [vmem:[#allocation4 + $0x120] sm:$0xf0]  ;;  %v11115_v13 = vld [vmem:[#allocation4 + $0xf0] sm:$0xf]  ;;  %v2622_v40 = vpop.permute.xlu2 %2621  ;;  %4965 = vmatpush.bf16.msra.mxu3 %v13134_v45  ;;  %v13133_v4 = vld [vmem:[#allocation6 + $0x288] sm:$0xff] }
 0x277   :  { %2809 = vst [vmem:[#allocation4 + $0x15c] sm:$0xf] %v2745_v62  ;;  %v2691_v43 = vsel %vm14354_vm8, %v10934_v59, %v2690_v3  ;;  %v2699_v23 = vor.u32 %v2697_v38, %v2696_v18  ;;  %v2701_v60 = vrot.slane %v2696_v18, 4  ;;  %v2708_v26 = vor.u32 %v2706_v35, %v2705_v28  ;;  %v15346_v48 = vpop.permute.xlu1 %3084  ;;  %v13767_v38 = vld [vmem:[#allocation2 + $0x20] sm:$0xff] }
 0x278   :  { %2803 = vst [vmem:[#allocation4 + $0x24] sm:$0xf] %v2691_v43  ;;  %v2710_v17 = vrot.slane %v2705_v28, 4  ;;  %4827 = vmatmul.bf16.gmra.mxu3 %v11160_v61  ;;  %v2661_v50 = vunpack.c.l.b16 %v2639_v33  ;;  %v2662_v51 = vunpack.c.h.b16 %v2639_v33  ;;  %4861 = vmatmul.bf16.gmra.mxu0 %v11112_v31  ;;  %v3093_v39 = vsel %vm556_vm6, %v14919_v24, %v15317_v1  ;;  %v13142_v33 = vld [vmem:[#allocation6 + $0x2d0] sm:$0xff]  ;;  %v13125_v31 = vld [vmem:[#allocation6 + $0x248] sm:$0xff] }
 0x279   :  { %v2700_v22 = vsel %vm14354_vm8, %v2692_v16, %v2699_v23  ;;  %v2709_v5 = vsel %vm14354_vm8, %v2701_v60, %v2708_v26  ;;  %v3111_v20 = vunpack.c.l.b16 %v3093_v39  ;;  %v3112_v59 = vunpack.c.h.b16 %v3093_v39  ;;  %v13768_v23 = vld [vmem:[#allocation2 + $0x38] sm:$0xff]   ;;  %v13769_v60 = vld [vmem:[#allocation2 + $0x20] sm:$0xff]  ;;  %5004 = vmatpush.bf16.msrb.mxu0 %v13142_v33  ;;  %4927 = vmatpush.bf16.msra.mxu2 %v13125_v31 }
 0x27a   :  { %v2718_v30 = vsel %vm14354_vm8, %v2710_v17, %v15322_v54  ;;  %2804 = vst [vmem:[#allocation4 + $0x58] sm:$0xf] %v2700_v22  ;;  %v2674_v24 = vpack.c.b16 %v2661_v50, %v2661_v50  ;;  %v2675_v1 = vpack.c.b16 %v2662_v51, %v2662_v51  ;;  %v11116_v2 = vor.u32 %v13010_v46, %v11115_v13  ;;  %v15357_v46 = vpop.f32.mrf.mxu3 }
 0x27b   :  { %2805 = vst [vmem:[#allocation4 + $0x8c] sm:$0xf] %v2709_v5  ;;  %v3123_v52 = vpack.c.b16 %v3111_v20, %v3111_v20  ;;  %v3124_v10 = vpack.c.b16 %v3112_v59, %v3112_v59  ;;  %v3095_v35 = vsel %vm556_vm6, %v13767_v38, %v15325_v21  ;;  %v2642_v21 = vsel %vm556_vm6, %v13768_v23, %v2622_v40  ;;  %v2913_v59 = vpop.permute.xlu0 %2912  ;;  %v13016_v40 = vld [vmem:[#allocation4 + $0x154] sm:$0xf]  ;;  %v13141_v23 = vld [vmem:[#allocation6 + $0x2c8] sm:$0xff] }
 0x27c   :  { %2806 = vst [vmem:[#allocation4 + $0xc0] sm:$0xf] %v2718_v30  ;;  %v2748_v3 = vshrl.u32 %v2674_v24, 16  ;;  %v2751_v16 = vshll.u32 %v2674_v24, 16  ;;  %v2757_v18 = vshrl.u32 %v2675_v1, 16  ;;  %v2760_v28 = vshll.u32 %v2675_v1, 16  ;;  %4900 = vmatmul.bf16.gmra.mxu1 %v11116_v2  ;;  %4966 = vmatpush.bf16.msra.mxu3 %v13133_v4 }
 0x27d   :  { %v10975_v54 = vrot.slane %v3123_v52, 9  ;;  %v3137_v7 = vrot.slane %v3124_v10, 5  ;;  %v3113_v62 = vunpack.c.l.b16 %v3095_v35  ;;  %v3114_v61 = vunpack.c.h.b16 %v3095_v35  ;;  %v13028_v1 = vld [vmem:[#allocation4 + $0x1b4] sm:$0xf]  ;;  %v11205_v2 = vld [vmem:[#allocation4 + $0x1e4] sm:$0xf0]  ;;  %v15366_v52 = vpop.f32.mrf.mxu2  ;;  %5005 = vmatpush.bf16.msrb.mxu0 %v13141_v23 }
 0x27e   :  { %v2750_v27 = vrot.slane %v2748_v3, 7  ;;  %v15353_v43 = vrot.slane %v2757_v18, 7  ;;  %v2923_v26 = vsel %vm556_vm6, %v13769_v60, %v2911_v63  ;;  %v2746_v45 = vrot.slane %v15327_v53, 4  ;;  %v11161_v3 = vld [vmem:[#allocation4 + $0x184] sm:$0xf0] }
 0x27f   :  { %v3138_v17 = vsel %vm14304_vm12, %v10975_v54, %v3137_v7  ;;  %v3139_v50 = vrot.slane %v3137_v7, 4  ;;  %v3125_v51 = vpack.c.b16 %v3113_v62, %v3113_v62  ;;  %v15361_v39 = vpack.c.b16 %v3114_v61, %v3114_v61  ;;  %v13035_v62 = vld [vmem:[#allocation4 + $0x1e8] sm:$0xf0] }
 0x280   :  { %v2753_v22 = vor.u32 %v2751_v16, %v2750_v27  ;;  %v2755_v5 = vrot.slane %v2750_v27, 4  ;;  %v2762_v20 = vor.u32 %v2760_v28, %v15353_v43  ;;  %3182 = vst [vmem:[#allocation4 + $0x2c] sm:$0xf] %v3138_v17  ;;  %v2764_v63 = vrot.slane %v15353_v43, 4  ;;  %v15372_v16 = vpop.permute.xlu1 %3086  ;;  %v13124_v27 = vld [vmem:[#allocation6 + $0x240] sm:$0xff] }
 0x281   :  { %v3140_v13 = vrot.slane %v3125_v51, 5  ;;  %v2663_v30 = vunpack.c.l.b16 %v2642_v21  ;;  %v2664_v24 = vunpack.c.h.b16 %v2642_v21  ;;  %v2941_v38 = vunpack.c.l.b16 %v2923_v26  ;;  %v13132_v21 = vld [vmem:[#allocation6 + $0x280] sm:$0xff]  ;;  %4928 = vmatpush.bf16.msra.mxu2 %v13124_v27 }
 0x282   :  { %v2754_v10 = vsel %vm14354_vm8, %v2746_v45, %v2753_v22  ;;  %v2763_v53 = vsel %vm14354_vm8, %v2755_v5, %v2762_v20  ;;  %v2942_v35 = vunpack.c.h.b16 %v2923_v26  ;;  %v3143_v54 = vrot.slane %v15361_v39, 5  ;;  %v11211_v39 = vld [vmem:[#allocation4 + $0x1b8] sm:$0xf]  ;;  %4967 = vmatpush.bf16.msra.mxu3 %v13132_v21 }
 0x283   :  { %2810 = vst [vmem:[#allocation4 + $0x190] sm:$0xf] %v2754_v10  ;;  %v3141_v18 = vsel %vm14304_vm12, %v3139_v50, %v3140_v13  ;;  %v3142_v28 = vrot.slane %v3140_v13, 4  ;;  %v2676_v7 = vpack.c.b16 %v2663_v30, %v2663_v30  ;;  %v2677_v61 = vpack.c.b16 %v2664_v24, %v2664_v24  ;;  %v13770_v50 = vld [vmem:[#allocation2 + $0x28] sm:$0xff]  ;;  %v2624_v13 = vpop.permute.xlu2 %2623  ;;  %v13148_v30 = vld [vmem:[#allocation6 + $0x300] sm:$0xff] }
 0x284   :  { %2811 = vst [vmem:[#allocation4 + $0x1c4] sm:$0xf] %v2763_v53  ;;  %v2953_v33 = vpack.c.b16 %v2941_v38, %v2941_v38  ;;  %v2954_v31 = vpack.c.b16 %v2942_v35, %v2942_v35  ;;  %v11208_v4 = vor.u32 %v13028_v1, %v11205_v2  ;;  %v3097_v51 = vsel %vm556_vm6, %v13770_v50, %v15346_v48  ;;  %v13771_v35 = vld [vmem:[#allocation2 + $0x28] sm:$0xff] }
 0x285   :  { %v3144_v60 = vsel %vm14304_vm12, %v3142_v28, %v3143_v54  ;;  %3183 = vst [vmem:[#allocation4 + $0x60] sm:$0xf] %v3141_v18  ;;  %v2766_v26 = vshrl.u32 %v2676_v7, 16  ;;  %v2769_v17 = vshll.u32 %v2676_v7, 16  ;;  %v2775_v45 = vshrl.u32 %v2677_v61, 16  ;;  %v15386_v28 = vpop.f32.mrf.mxu3  ;;  %5045 = vmatpush.bf16.msrb.mxu1 %v13148_v30 }
 0x286   :  { %3184 = vst [vmem:[#allocation4 + $0x94] sm:$0xf] %v3144_v60  ;;  %v2778_v22 = vshll.u32 %v2677_v61, 16  ;;  %4793 = vmatmul.bf16.gmra.mxu2 %v11208_v4  ;;  %v3115_v5 = vunpack.c.l.b16 %v3097_v51  ;;  %v3116_v20 = vunpack.c.h.b16 %v3097_v51  ;;  %v11212_v1 = vor.u32 %v13035_v62, %v11211_v39  ;;  %v2915_v4 = vpop.permute.xlu0 %2914  ;;  %v2826_v60 = vld [vmem:[#allocation2 + $0x44] sm:$0x3] }
 0x287   :  { %v2768_v24 = vrot.slane %v2766_v26, 7  ;;  %2977 = vst [vmem:[#allocation4 + $0x90] sm:$0xf] %v2953_v33  ;;  %v2551_v2 = vpack.c.b16 %v14962_v47, %v14962_v47  ;;  %v11164_v10 = vor.u32 %v13016_v40, %v11161_v3  ;;  %v15383_v53 = vrot.slane %v2775_v45, 7  ;;  %v15394_v26 = vpop.f32.mrf.mxu2  ;;  %v11167_v39 = vld [vmem:[#allocation4 + $0x158] sm:$0xf] }
 0x288   :  { %2978 = vst [vmem:[#allocation4 + $0xc4] sm:$0xf] %v2954_v31  ;;  %v3127_v48 = vpack.c.b16 %v3115_v5, %v3115_v5  ;;  %v3128_v38 = vpack.c.b16 %v3116_v20, %v3116_v20  ;;  %v2925_v18 = vsel %vm556_vm6, %v13771_v35, %v2913_v59  ;;  %4832 = vmatmul.bf16.gmra.mxu3 %v11212_v1  ;;  %v3145_v40 = vrot.slane %v3143_v54, 4  ;;  %v13023_v31 = vld [vmem:[#allocation4 + $0x188] sm:$0xf0]  ;;  %v3089_v43 = vpop.permute.xlu1 %3088 }
 0x289   :  { %v2771_v7 = vor.u32 %v2769_v17, %v2768_v24  ;;  %v2773_v61 = vrot.slane %v2768_v24, 4  ;;  %v2645_v62 = vsel %vm556_vm6, %v2551_v2, %v2624_v13  ;;  %4866 = vmatmul.bf16.gmra.mxu0 %v11164_v10  ;;  %v2943_v47 = vunpack.c.l.b16 %v2925_v18  ;;  %v13772_v5 = vld [vmem:[#allocation2 + $0x30] sm:$0xff]  ;;  %v13041_v2 = vld [vmem:[#allocation4 + $0x21c] sm:$0xf] }
 0x28a   :  { %v2780_v3 = vor.u32 %v2778_v22, %v15383_v53  ;;  %v3146_v33 = vrot.slane %v3127_v48, 5  ;;  %v3149_v27 = vrot.slane %v3128_v38, 5  ;;  %v2665_v23 = vunpack.c.l.b16 %v2645_v62  ;;  %v11257_v10 = vld [vmem:[#allocation4 + $0x24c] sm:$0x30] }
 0x28b   :  { %v2772_v59 = vsel %vm14354_vm8, %v2764_v63, %v2771_v7  ;;  %v2944_v21 = vunpack.c.h.b16 %v2925_v18  ;;  %v2955_v51 = vpack.c.b16 %v2943_v47, %v2943_v47  ;;  %v11168_v22 = vor.u32 %v13023_v31, %v11167_v39  ;;  %v13773_v18 = vld [vmem:[#allocation2 + $0x30] sm:$0xff]  ;;  %v13048_v31 = vld [vmem:[#allocation4 + $0x250] sm:$0x30] }
 0x28c   :  { %v2781_v54 = vsel %vm14354_vm8, %v2773_v61, %v2780_v3  ;;  %2812 = vst [vmem:[#allocation4 + $0x1f8] sm:$0xf] %v2772_v59  ;;  %v3147_v17 = vsel %vm14304_vm12, %v3145_v40, %v3146_v33  ;;  %v3148_v50 = vrot.slane %v3146_v33, 4  ;;  %v2678_v45 = vpack.c.b16 %v2665_v23, %v2665_v23  ;;  %v13140_v61 = vld [vmem:[#allocation6 + $0x2c0] sm:$0xff]  ;;  %v11263_v33 = vld [vmem:[#allocation4 + $0x220] sm:$0xf] }
 0x28d   :  { %2813 = vst [vmem:[#allocation4 + $0x22c] sm:$0xf] %v2781_v54  ;;  %v2956_v63 = vpack.c.b16 %v2944_v21, %v2944_v21  ;;  %v3099_v20 = vsel %vm556_vm6, %v13772_v5, %v15372_v16  ;;  %v2851_v1 = vunpack.c.l.b16 %v2826_v60  ;;  %v2782_v48 = vrot.slane %v15383_v53, 4  ;;  %4905 = vmatmul.bf16.gmra.mxu1 %v11168_v22  ;;  %v2919_v53 = vpop.permute.xlu2 %2918  ;;  %v13774_v21 = vld [vmem:[#allocation2 + $0x38] sm:$0xff]  ;;  %5006 = vmatpush.bf16.msrb.mxu0 %v13140_v61 }
 0x28e   :  { %v3150_v13 = vsel %vm14304_vm12, %v3148_v50, %v3149_v27  ;;  %3185 = vst [vmem:[#allocation4 + $0xc8] sm:$0xf] %v3147_v17  ;;  %v3117_v30 = vunpack.c.l.b16 %v3099_v20  ;;  %v3118_v24 = vunpack.c.h.b16 %v3099_v20  ;;  %v3151_v38 = vrot.slane %v3149_v27, 4  ;;  %v11213_v20 = vld [vmem:[#allocation4 + $0x1ec] sm:$0xf0] }
 0x28f   :  { %3186 = vst [vmem:[#allocation4 + $0xfc] sm:$0xf] %v3150_v13  ;;  %v2784_v35 = vshrl.u32 %v2678_v45, 16  ;;  %v2927_v7 = vsel %vm556_vm6, %v13773_v18, %v2915_v4  ;;  %v17299_v47 = vunpack.c.l.b16 %v14987_v36  ;;  %v2787_v23 = vshll.u32 %v2678_v45, 16  ;;  %v13680_v45 = vld [vmem:[#allocation2 + $0x40] sm:$0xf]  }
 0x290   :  { %2979 = vst [vmem:[#allocation4 + $0xf8] sm:$0xf] %v2955_v51  ;;  %v3129_v16 = vpack.c.b16 %v3117_v30, %v3117_v30  ;;  %v3130_v62 = vpack.c.b16 %v3118_v24, %v3118_v24  ;;  %v2945_v3 = vunpack.c.l.b16 %v2927_v7  ;;  %v11260_v27 = vor.u32 %v13041_v2, %v11257_v10  ;;  %v15410_v51 = vpop.f32.mrf.mxu3  ;;  %v2917_v24 = vpop.permute.xlu0 %2916 }
 0x291   :  { %v2857_v40 = vpack.c.b16 %v2851_v1, %v17299_v47  ;;  %v2786_v59 = vrot.slane %v2784_v35, 7  ;;  %2980 = vst [vmem:[#allocation4 + $0x12c] sm:$0xf] %v2956_v63  ;;  %v3101_v60 = vsel %vm556_vm6, %v13774_v21, %v3089_v43  ;;  %v2946_v17 = vunpack.c.h.b16 %v2927_v7  ;;  %v13701_v1 = vld [vmem:[#allocation2 + $0x40] sm:$0x70]  ;;  %v4643_v7 = vpop.f32.mrf.mxu2  ;;  %v3091_v47 = vpop.permute.xlu1 %3090 }
 0x292   :  { %v3152_v4 = vrot.slane %v3129_v16, 5  ;;  %v2957_v50 = vpack.c.b16 %v2945_v3, %v2945_v3  ;;  %v11264_v5 = vor.u32 %v13048_v31, %v11263_v33  ;;  %v3155_v30 = vrot.slane %v3130_v62, 5  ;;  %v13029_v62 = vld [vmem:[#allocation4 + $0x1bc] sm:$0xf]  ;;  %v13775_v33 = vld [vmem:[#allocation2 + $0x38] sm:$0xff] }
 0x293   :  { %v2932_v54 = vsel %vm556_vm6, %v2857_v40, %v2919_v53  ;;  %v2789_v36 = vor.u32 %v2787_v23, %v2786_v59  ;;  %v3119_v43 = vunpack.c.l.b16 %v3101_v60  ;;  %v3120_v18 = vunpack.c.h.b16 %v3101_v60 }
 0x294   :  { %v2949_v39 = vunpack.c.l.b16 %v2932_v54  ;;  %v2950_v22 = vunpack.c.h.b16 %v2932_v54  ;;  %v3153_v63 = vsel %vm14304_vm12, %v3151_v38, %v3152_v4  ;;  %v3154_v13 = vrot.slane %v3152_v4, 4  ;;  %2981 = vst [vmem:[#allocation4 + $0x160] sm:$0xf] %v2957_v50 }
 0x295   :  { %v2790_v2 = vsel %vm14354_vm8, %v2782_v48, %v2789_v36  ;;  %3187 = vst [vmem:[#allocation4 + $0x130] sm:$0xf] %v3153_v63  ;;  %v2958_v16 = vpack.c.b16 %v2946_v17, %v2946_v17  ;;  %v3131_v38 = vpack.c.b16 %v3119_v43, %v3119_v43  ;;  %v3132_v40 = vpack.c.b16 %v3120_v18, %v3120_v18 }
 0x296   :  { %v2961_v10 = vpack.c.b16 %v2949_v39, %v2949_v39  ;;  %v2962_v35 = vpack.c.b16 %v2950_v22, %v2950_v22  ;;  %2814 = vst [vmem:[#allocation4 + $0x260] sm:$0x3] %v2790_v2  ;;  %v3156_v61 = vsel %vm14304_vm12, %v3154_v13, %v3155_v30  ;;  %4798 = vmatmul.bf16.gmra.mxu2 %v11260_v27  ;;  %v3157_v59 = vrot.slane %v3155_v30, 4  ;;  %v11219_v27 = vld [vmem:[#allocation4 + $0x1c0] sm:$0xf] }
 0x297   :  { %3188 = vst [vmem:[#allocation4 + $0x164] sm:$0xf] %v3156_v61  ;;  %v11216_v3 = vor.u32 %v13029_v62, %v11213_v20  ;;  %v2929_v48 = vsel %vm556_vm6, %v13775_v33, %v2917_v24  ;;  %v13681_v31 = vor.u32 %v13701_v1, %v13680_v45  ;;  %v3158_v23 = vrot.slane %v3131_v38, 5  ;;  %v13036_v22 = vld [vmem:[#allocation4 + $0x1f0] sm:$0xf0]  ;;  %v15423_v20 = vpop.f32.mrf.mxu0 }
 0x298   :  { %2985 = vst [vmem:[#allocation4 + $0x230] sm:$0xf] %v2961_v10  ;;  %v2947_v53 = vunpack.c.l.b16 %v2929_v48  ;;  %v2948_v21 = vunpack.c.h.b16 %v2929_v48  ;;  %v4644_v60 = vadd.f32 %v4643_v7, %v14996_v41  ;;  %v3161_v4 = vrot.slane %v3132_v40, 5  ;;  %4837 = vmatmul.bf16.gmra.mxu3 %v11264_v5  ;;  %v4682_v63 = vpop.f32.mrf.mxu3  ;;  %v11019_v38 = vld [vmem:[#allocation4 + $0x28] sm:$0xf] }
 0x299   :  { %2986 = vst [vmem:[#allocation4 + $0x264] sm:$0x3] %v2962_v35  ;;  %4871 = vmatmul.bf16.gmra.mxu0 %v11216_v3  ;;  %v3104_v54 = vsel %vm556_vm6, %v13681_v31, %v3091_v47  ;;  %v3159_v17 = vsel %vm14304_vm12, %v3157_v59, %v3158_v23  ;;  %v3160_v50 = vrot.slane %v3158_v23, 4  ;;  %v11220_v13 = vor.u32 %v13036_v22, %v11219_v27  ;;  %v13042_v33 = vld [vmem:[#allocation4 + $0x224] sm:$0xf]  ;;  %v15434_v59 = vpop.f32.mrf.mxu1 }
 0x29a   :  { %2982 = vst [vmem:[#allocation4 + $0x194] sm:$0xf] %v2958_v16  ;;  %v2959_v36 = vpack.c.b16 %v2947_v53, %v2947_v53  ;;  %v2960_v39 = vpack.c.b16 %v2948_v21, %v2948_v21  ;;  %v3121_v45 = vunpack.c.l.b16 %v3104_v54  ;;  %v3122_v41 = vunpack.c.h.b16 %v3104_v54  ;;  %v11013_v16 = vld [vmem:[#allocation4 + $0x54] sm:$0xf0]  ;;  %v11071_v22 = vld [vmem:[#allocation4 + $0x90] sm:$0xf] }
 0x29b   :  { %3189 = vst [vmem:[#allocation4 + $0x198] sm:$0xf] %v3159_v17  ;;  %v3162_v5 = vsel %vm14304_vm12, %v3160_v50, %v3161_v4  ;;  %v4639_v24 = vadd.f32 %v15366_v52, %v14946_v14  ;;  %v4683_v1 = vadd.f32 %v4682_v63, %v4644_v60  ;;  %v3163_v2 = vrot.slane %v3161_v4, 4  ;;  %v12978_v14 = vld [vmem:[#allocation4 + $0x24] sm:$0xf] }
 0x29c   :  { %2983 = vst [vmem:[#allocation4 + $0x1c8] sm:$0xf] %v2959_v36  ;;  %v3133_v30 = vpack.c.b16 %v3121_v45, %v3121_v45  ;;  %v3134_v43 = vpack.c.b16 %v3122_v41, %v3122_v41  ;;  %v12985_v52 = vld [vmem:[#allocation4 + $0x58] sm:$0xf0]  ;;  %v11016_v3 = vor.u32 %v12978_v14, %v11013_v16  ;;  %v11265_v48 = vld [vmem:[#allocation4 + $0x254] sm:$0x30] }
 0x29d   :  { %3190 = vst [vmem:[#allocation4 + $0x1cc] sm:$0xf] %v3162_v5  ;;  %4910 = vmatmul.bf16.gmra.mxu1 %v11220_v13  ;;  %v4678_v62 = vadd.f32 %v15386_v28, %v4639_v24  ;;  %v11020_v23 = vor.u32 %v12985_v52, %v11019_v38  ;;  %v11268_v53 = vor.u32 %v13042_v33, %v11265_v48  ;;  %v13049_v28 = vld [vmem:[#allocation4 + $0x258] sm:$0x30]  ;;  %v11271_v60 = vld [vmem:[#allocation4 + $0x228] sm:$0xf] }
 0x29e   :  { %2984 = vst [vmem:[#allocation4 + $0x1fc] sm:$0xf] %v2960_v39  ;;  %v3164_v10 = vrot.slane %v3133_v30, 5  ;;  %v3167_v35 = vrot.slane %v3134_v43, 5  ;;  %v11272_v4 = vor.u32 %v13049_v28, %v11271_v60  ;;  %v12991_v17 = vld [vmem:[#allocation4 + $0x8c] sm:$0xf]  ;;  %v15444_v43 = vpop.f32.mrf.mxu2 }
 0x29f   :  { %v4716_v40 = vpop.f32.mrf.mxu0  ;;  %v11065_v50 = vld [vmem:[#allocation4 + $0xbc] sm:$0xf0]  ;;  %v12998_v45 = vld [vmem:[#allocation4 + $0xc0] sm:$0xf0]  ;;  %v12979_v13 = vld [vmem:[#allocation4 + $0x2c] sm:$0xf] }
 0x2a0   :  { %v3165_v18 = vsel %vm14304_vm12, %v3163_v2, %v3164_v10  ;;  %v3166_v7 = vrot.slane %v3164_v10, 4  ;;  %v3169_v61 = vrot.slane %v3167_v35, 4  ;;  %v4717_v31 = vadd.f32 %v4716_v40, %v4678_v62  ;;  %v11021_v41 = vld [vmem:[#allocation4 + $0x5c] sm:$0xf0]  ;;  %v15442_v30 = vpop.f32.mrf.mxu3  ;;  %v12986_v10 = vld [vmem:[#allocation4 + $0x60] sm:$0xf0] }
 0x2a1   :  { %3191 = vst [vmem:[#allocation4 + $0x200] sm:$0xf] %v3165_v18  ;;  %v11068_v39 = vor.u32 %v12991_v17, %v11065_v50  ;;  %v11072_v24 = vor.u32 %v12998_v45, %v11071_v22  ;;  %v11024_v2 = vor.u32 %v12979_v13, %v11021_v41  ;;  %v11117_v62 = vld [vmem:[#allocation4 + $0x124] sm:$0xf0]  ;;  %v13004_v14 = vld [vmem:[#allocation4 + $0xf4] sm:$0xf] }
 0x2a2   :  { %v3168_v47 = vsel %vm14304_vm12, %v3166_v7, %v3167_v35  ;;  %3193 = vst [vmem:[#allocation4 + $0x268] sm:$0x3] %v3169_v61  ;;  %v11027_v35 = vld [vmem:[#allocation4 + $0x30] sm:$0xf]  ;;  %v11120_v52 = vor.u32 %v13004_v14, %v11117_v62  ;;  %v11123_v40 = vld [vmem:[#allocation4 + $0xf8] sm:$0xf] }
 0x2a3   :  { %3192 = vst [vmem:[#allocation4 + $0x234] sm:$0xf] %v3168_v47  ;;  %v11028_v18 = vor.u32 %v12986_v10, %v11027_v35  ;;  %v11073_v33 = vld [vmem:[#allocation4 + $0xc4] sm:$0xf0]  ;;  %v12992_v48 = vld [vmem:[#allocation4 + $0x94] sm:$0xf] }
 0x2a4   :  { %v13017_v41 = vld [vmem:[#allocation4 + $0x15c] sm:$0xf]  ;;  %v13024_v10 = vld [vmem:[#allocation4 + $0x190] sm:$0xf0] }
 0x2a6   :  { %4929 = vmatmul.bf16.vlgmr.msra.gmra.mxu2 %v11016_v3  ;;  %v13011_v3 = vld [vmem:[#allocation4 + $0x128] sm:$0xf0] }
 0x2a7   :  { %v15436_v21 = vpop.f32.mrf.mxu0 }
 0x2a8   :  { %4968 = vmatmul.bf16.vlgmr.msra.gmra.mxu3 %v11020_v23  ;;  %v11124_v23 = vor.u32 %v13011_v3, %v11123_v40 }
 0x2a9   :  { %4876 = vmatmul.bf16.gmra.mxu0 %v11268_v53  ;;  %v4755_v27 = vpop.f32.mrf.mxu1  ;;  %v11076_v53 = vor.u32 %v12992_v48, %v11073_v33  ;;  %v11221_v33 = vld [vmem:[#allocation4 + $0x1f4] sm:$0xf0] }
 0x2aa   :  { %v15438_v54 = vadd.f32 %v4755_v27, %v4717_v31  ;;  %v11079_v27 = vld [vmem:[#allocation4 + $0x98] sm:$0xf] }
 0x2ad   :  { %4915 = vmatmul.bf16.gmra.mxu1 %v11272_v4 }
 0x2af   :  { %v4721_v36 = vpop.f32.mrf.mxu0 }
 0x2b0   :  { %v4722_v5 = vadd.f32 %v4721_v36, %v4683_v1  ;;  %v11169_v36 = vld [vmem:[#allocation4 + $0x18c] sm:$0xf0] }
 0x2b1   :  { %v15440_v63 = vpop.f32.mrf.mxu1  ;;  %v4813_v16 = vpop.f32.mrf.mxu3 }
 0x2b6   :  { %4934 = vmatmul.bf16.gmra.mxu2 %v11068_v39 }
 0x2b7   :  { %v15450_v31 = vpop.f32.mrf.mxu0 }
 0x2b8   :  { %4973 = vmatmul.bf16.gmra.mxu3 %v11072_v24  ;;  %v11172_v24 = vor.u32 %v13017_v41, %v11169_v36  ;;  %v11227_v36 = vld [vmem:[#allocation4 + $0x1c8] sm:$0xf]  ;;  %v13018_v41 = vld [vmem:[#allocation4 + $0x164] sm:$0xf] }
 0x2b9   :  { %5007 = vmatmul.bf16.vlgmr.msrb.gmra.mxu0 %v11024_v2  ;;  %v4760_v7 = vpop.f32.mrf.mxu1  ;;  %v15456_v4 = vpop.f32.mrf.mxu3  ;;  %v11175_v2 = vld [vmem:[#allocation4 + $0x160] sm:$0xf] }
 0x2ba   :  { %v15446_v61 = vadd.f32 %v4760_v7, %v4722_v5 }
 0x2bb   :  { %v4774_v1 = vpop.f32.mrf.mxu2 }
 0x2bc   :  { %v4775_v38 = vadd.f32 %v4774_v1, %v15027_v42  ;;  %v12999_v42 = vld [vmem:[#allocation4 + $0xc8] sm:$0xf0]  ;;  %v13005_v1 = vld [vmem:[#allocation4 + $0xfc] sm:$0xf] }
 0x2bd   :  { %11689 = vmatmul.msk.bf16.vlgmr.msrb.gmra.mxu1 %vm556_vm6, %v11028_v18  ;;  %v11080_v17 = vor.u32 %v12999_v42, %v11079_v27  ;;  %v11125_v18 = vld [vmem:[#allocation4 + $0x12c] sm:$0xf0]  ;;  %v13030_v42 = vld [vmem:[#allocation4 + $0x1c4] sm:$0xf] }
 0x2be   :  { %v4814_v47 = vadd.f32 %v4813_v16, %v4775_v38  ;;  %v11176_v16 = vor.u32 %v13024_v10, %v11175_v2  ;;  %v11128_v38 = vor.u32 %v13005_v1, %v11125_v18 }
 0x2c1   :  { %v15454_v60 = vpop.f32.mrf.mxu1 }
 0x2c3   :  { %v15452_v28 = vpop.f32.mrf.mxu2 }
 0x2c6   :  { %4939 = vmatmul.bf16.gmra.mxu2 %v11120_v52  ;;  %v11131_v52 = vld [vmem:[#allocation4 + $0x100] sm:$0xf] }
 0x2c8   :  { %4978 = vmatmul.bf16.gmra.mxu3 %v11124_v23 }
 0x2c9   :  { %5012 = vmatmul.bf16.gmra.mxu0 %v11076_v53 }
 0x2cd   :  { %11690 = vmatmul.msk.bf16.gmra.mxu1 %vm556_vm6, %v11080_v17 }
 0x2cf   :  { %v4852_v50 = vpop.f32.mrf.mxu0 }
 0x2d0   :  { %v4853_v39 = vadd.f32 %v4852_v50, %v4814_v47  ;;  %v13012_v47 = vld [vmem:[#allocation4 + $0x130] sm:$0xf0]  ;;  %v11224_v50 = vor.u32 %v13030_v42, %v11221_v33 }
 0x2d1   :  { %v4779_v22 = vpop.f32.mrf.mxu2  ;;  %v4891_v45 = vpop.f32.mrf.mxu1  ;;  %v11132_v40 = vor.u32 %v13012_v47, %v11131_v52  ;;  %v3205_v52 = vld [vmem:[#allocation2 + $0x44] sm:$0xf] }
 0x2d2   :  { %v4780_v5 = vadd.f32 %v4779_v22, %v15100_v12  ;;  %v15460_v13 = vadd.f32 %v4891_v45, %v4853_v39  ;;  %v13037_v39 = vld [vmem:[#allocation4 + $0x1f8] sm:$0xf0]  ;;  %v11177_v45 = vld [vmem:[#allocation4 + $0x194] sm:$0xf0]  ;;  %v3250_v33 = vrot.slane %v3205_v52, 6 }
 0x2d3   :  { %v4818_v35 = vpop.f32.mrf.mxu3  ;;  %v11180_v2 = vor.u32 %v13018_v41, %v11177_v45  ;;  %v11229_v41 = vld [vmem:[#allocation4 + $0x1fc] sm:$0xf0]  ;;  %v13038_v52 = vld [vmem:[#allocation4 + $0x200] sm:$0xf0] }
 0x2d4   :  { %v4819_v7 = vadd.f32 %v4818_v35, %v4780_v5  ;;  %v11228_v5 = vor.u32 %v13037_v39, %v11227_v36  ;;  %v13025_v35 = vld [vmem:[#allocation4 + $0x198] sm:$0xf0]  ;;  %v13043_v36 = vld [vmem:[#allocation4 + $0x22c] sm:$0xf] }
 0x2d6   :  { %4944 = vmatmul.bf16.gmra.mxu2 %v11172_v24 }
 0x2d7   :  { %v15462_v62 = vpop.f32.mrf.mxu0 }
 0x2d8   :  { %4983 = vmatmul.bf16.gmra.mxu3 %v11176_v16  ;;  %v13259_v16 = vld [vmem:[#allocation9 + $0x38] sm:$0xff] }
 0x2d9   :  { %5017 = vmatmul.bf16.gmra.mxu0 %v11128_v38  ;;  %v15464_v14 = vpop.f32.mrf.mxu2  ;;  %v15466_v12 = vpop.f32.mrf.mxu1  ;;  %v17300_v38 = vrot.slane %v14952_v34, 6  ;;  %9558 = vmatpush.bf16.msrb.mxu2 %v13259_v16  ;;  %v13050_v34 = vld [vmem:[#allocation4 + $0x260] sm:$0x30] }
 0x2db   :  { %v15468_v3 = vpop.f32.mrf.mxu3  ;;  %v3249_v47 = vrot.slane %v17300_v38, 4 }
 0x2dd   :  { %11691 = vmatmul.msk.bf16.gmra.mxu1 %vm556_vm6, %v11132_v40  ;;  %v3251_v42 = vsel %vm14079_vm2, %v3249_v47, %v3250_v33  ;;  %v11235_v47 = vld [vmem:[#allocation4 + $0x1d0] sm:$0xf] }
 0x2de   :  { %3275 = vst.msk [vmem:[#allocation4 + $0x238] sm:$0xf] %vm72_vm1, %v3251_v42  ;;  %v13266_v42 = vld [vmem:[#allocation9 + $0x70] sm:$0xff] }
 0x2e1   :  { %v4857_v48 = vpop.f32.mrf.mxu0  ;;  %v4784_v53 = vpop.f32.mrf.mxu2 }
 0x2e2   :  { %v4858_v23 = vadd.f32 %v4857_v48, %v4819_v7  ;;  %v4785_v27 = vadd.f32 %v4784_v53, %v15177_v49  ;;  %v11183_v49 = vld [vmem:[#allocation4 + $0x168] sm:$0xf]  ;;  %v13267_v48 = vld [vmem:[#allocation9 + $0x78] sm:$0xff]  ;;  %v11273_v53 = vld [vmem:[#allocation4 + $0x25c] sm:$0x30] }
 0x2e3   :  { %v4896_v17 = vpop.f32.mrf.mxu1  ;;  %v11184_v1 = vor.u32 %v13025_v35, %v11183_v49  ;;  %9591 = vmatpush.bf16.msrb.mxu3 %v13267_v48  ;;  %v11276_v45 = vor.u32 %v13043_v36, %v11273_v53  ;;  %v13031_v35 = vld [vmem:[#allocation4 + $0x1cc] sm:$0xf]  ;;  %v11236_v48 = vor.u32 %v13038_v52, %v11235_v47 }
 0x2e4   :  { %v15472_v22 = vadd.f32 %v4896_v17, %v4858_v23  ;;  %v11279_v17 = vld [vmem:[#allocation4 + $0x230] sm:$0xf]  ;;  %v11232_v49 = vor.u32 %v13031_v35, %v11229_v41  ;;  %v13265_v41 = vld [vmem:[#allocation9 + $0x68] sm:$0xff] }
 0x2e6   :  { %4949 = vmatmul.bf16.gmra.mxu2 %v11224_v50 }
 0x2e7   :  { %v4823_v24 = vpop.f32.mrf.mxu3  ;;  %9592 = vmatpush.bf16.msrb.mxu3 %v13266_v42  ;;  %v13256_v42 = vld [vmem:[#allocation9 + $0x20] sm:$0xff] }
 0x2e8   :  { %v4824_v10 = vadd.f32 %v4823_v24, %v4785_v27  ;;  %4988 = vmatmul.bf16.gmra.mxu3 %v11228_v5  ;;  %v3252_v27 = vrot.slane %v3250_v33, 4  ;;  %v11280_v24 = vor.u32 %v13050_v34, %v11279_v17  ;;  %v13044_v17 = vld [vmem:[#allocation4 + $0x234] sm:$0xf]  ;;  %v11281_v34 = vld [vmem:[#allocation4 + $0x264] sm:$0x30] }
 0x2e9   :  { %5022 = vmatmul.bf16.gmra.mxu0 %v11180_v2  ;;  %v15474_v18 = vpop.f32.mrf.mxu2  ;;  %v15476_v7 = vpop.f32.mrf.mxu0  ;;  %v11284_v36 = vor.u32 %v13044_v17, %v11281_v34 }
 0x2ea   :  { %3277 = vst.msk [vmem:[#allocation4 + $0x26c] sm:$0x3] %vm3276_vm9, %v3252_v27 }
 0x2eb   :  { %v15481_v40 = vpop.f32.mrf.mxu1  ;;  %9593 = vmatpush.bf16.msrb.mxu3 %v13265_v41 }
 0x2ed   :  { %11692 = vmatmul.msk.bf16.gmra.mxu1 %vm556_vm6, %v11184_v1  ;;  %v13258_v1 = vld [vmem:[#allocation9 + $0x30] sm:$0xff] }
 0x2ee   :  { %9559 = vmatpush.bf16.msrb.mxu2 %v13258_v1 }
 0x2ef   :  { %v15483_v23 = vpop.f32.mrf.mxu3 }
 0x2f2   :  { %v4789_v50 = vpop.f32.mrf.mxu2 }
 0x2f3   :  { %v4790_v39 = vadd.f32 %v4789_v50, %v15269_v57 }
 0x2f5   :  { %v4862_v5 = vpop.f32.mrf.mxu0 }
 0x2f6   :  { %4954 = vmatmul.bf16.gmra.mxu2 %v11276_v45  ;;  %v4863_v2 = vadd.f32 %v4862_v5, %v4824_v10  ;;  %v13257_v45 = vld [vmem:[#allocation9 + $0x28] sm:$0xff] }
 0x2f7   :  { %9560 = vmatpush.bf16.msrb.mxu2 %v13257_v45 }
 0x2f8   :  { %4993 = vmatmul.bf16.gmra.mxu3 %v11280_v24  ;;  %v11287_v24 = vld [vmem:[#allocation4 + $0x238] sm:$0xf] }
 0x2f9   :  { %v4901_v16 = vpop.f32.mrf.mxu1  ;;  %5027 = vmatmul.bf16.gmra.mxu0 %v11232_v49 }
 0x2fa   :  { %v15489_v38 = vadd.f32 %v4901_v16, %v4863_v2  ;;  %v15494_v10 = vpop.f32.mrf.mxu2  ;;  %v13051_v2 = vld [vmem:[#allocation4 + $0x268] sm:$0x30] }
 0x2fb   :  { %v4828_v33 = vpop.f32.mrf.mxu3  ;;  %v11288_v1 = vor.u32 %v13051_v2, %v11287_v24  ;;  %9561 = vmatpush.bf16.msrb.mxu2 %v13256_v42 }
 0x2fc   :  { %v4829_v57 = vadd.f32 %v4828_v33, %v4790_v39 }
 0x2fd   :  { %v15491_v53 = vpop.f32.mrf.mxu0  ;;  %11693 = vmatmul.msk.bf16.gmra.mxu1 %vm556_vm6, %v11236_v48 }
 0x2ff   :  { %9562 = vmatpush.bf16.msrb.mxu2 %v13255_v44  ;;  %v15546_v44 = vld [vmem:[%s17211_s5 + $0x2] ss:$0 sm:$0xff] }
 0x301   :  { %v15496_v27 = vpop.f32.mrf.mxu1 }
 0x303   :  { %v15498_v50 = vpop.f32.mrf.mxu3 }
 0x306   :  { %v4867_v5 = vpop.f32.mrf.mxu0 }
 0x307   :  { %v4868_v39 = vadd.f32 %v4867_v5, %v4829_v57 }
 0x309   :  { %v4794_v35 = vpop.f32.mrf.mxu2  ;;  %5032 = vmatmul.bf16.gmra.mxu0 %v11284_v36  ;;  %v13264_v36 = vld [vmem:[#allocation9 + $0x60] sm:$0xff] }
 0x30a   :  { %v4795_v49 = vadd.f32 %v4794_v35, %v15438_v54  ;;  %v4906_v47 = vpop.f32.mrf.mxu1  ;;  %9594 = vmatpush.bf16.msrb.mxu3 %v13264_v36 }
 0x30b   :  { %v4833_v16 = vpop.f32.mrf.mxu3  ;;  %v15501_v33 = vadd.f32 %v4906_v47, %v4868_v39 }
 0x30c   :  { %v4834_v52 = vadd.f32 %v4833_v16, %v4795_v49 }
 0x30d   :  { %11694 = vmatmul.msk.bf16.gmra.mxu1 %vm556_vm6, %v11288_v1  ;;  %vm5370_vm6 = vcmask 1043458  }
 0x30e   :  { %v15503_v48 = vpop.f32.mrf.mxu0  ;;  %vm15572_vm10 = vmand %vm5370_vm6, %vm5371_vm14 }
 0x311   :  { %v15506_v57 = vpop.f32.mrf.mxu2 }
 0x312   :  { %v15510_v34 = vpop.f32.mrf.mxu1 }
 0x313   :  { %v15508_v17 = vpop.f32.mrf.mxu3 }
 0x316   :  { %v4872_v54 = vpop.f32.mrf.mxu0 }
 0x317   :  { %v4873_v45 = vadd.f32 %v4872_v54, %v4834_v52  ;;  %v4621_v52 = vadd.f32 %v15040_v8, %v14753_v37  ;;  %v4626_v37 = vadd.f32 %v15102_v58, %v14818_v56 }
 0x319   :  { %v4799_v41 = vpop.f32.mrf.mxu2  ;;  %v4660_v36 = vadd.f32 %v15030_v9, %v4621_v52  ;;  %v13263_v9 = vld [vmem:[#allocation9 + $0x58] sm:$0xff] }
 0x31a   :  { %v4800_v5 = vadd.f32 %v4799_v41, %v15446_v61  ;;  %v4911_v24 = vpop.f32.mrf.mxu1  ;;  %9595 = vmatpush.bf16.msrb.mxu3 %v13263_v9 }
 0x31b   :  { %v4838_v39 = vpop.f32.mrf.mxu3  ;;  %v15513_v35 = vadd.f32 %v4911_v24, %v4873_v45  ;;  %v4699_v41 = vadd.f32 %v15046_v19, %v4660_v36 }
 0x31c   :  { %v4839_v2 = vadd.f32 %v4838_v39, %v4800_v5 }
 0x31d   :  { %v4738_v39 = vadd.f32 %v15044_v15, %v4699_v41  ;;  %v17301_v41 = vld [vmem:[#allocation24_spill] sm:$0xff] }
 0x31e   :  { %v15515_v49 = vpop.f32.mrf.mxu0 }
 0x31f   :  { %v4777_v11 = vadd.f32 %v15452_v28, %v4738_v39 }
 0x321   :  { %v15517_v1 = vpop.f32.mrf.mxu2 }
 0x322   :  { %v15521_v47 = vpop.f32.mrf.mxu1 }
 0x323   :  { %v15519_v16 = vpop.f32.mrf.mxu3 }
 0x326   :  { %v4877_v42 = vpop.f32.mrf.mxu0 }
 0x327   :  { %v4878_v61 = vadd.f32 %v4877_v42, %v4839_v2  ;;  %v4816_v2 = vadd.f32 %v15456_v4, %v4777_v11  ;;  %v4665_v42 = vadd.f32 %v15107_v25, %v4626_v37  ;;  %v13254_v11 = vld [vmem:[#allocation9 + $0x10] sm:$0xff] }
 0x328   :  { %9563 = vmatpush.bf16.msrb.mxu2 %v13254_v11 }
 0x329   :  { %v4930_v54 = vpop.f32.mrf.mxu2  ;;  %v4855_v36 = vadd.f32 %v15462_v62, %v4816_v2  ;;  %v4704_v56 = vadd.f32 %v17301_v41, %v4665_v42 }
 0x32a   :  { %v4916_v45 = vpop.f32.mrf.mxu1  ;;  %v4931_v19 = vadd.f32 %v4930_v54, %v15460_v13  ;;  %v17302_v54 = vld [vmem:[#allocation23_spill] sm:$0xff] }
 0x32b   :  { %v4969_v5 = vpop.f32.mrf.mxu3  ;;  %v15528_v24 = vadd.f32 %v4916_v45, %v4878_v61  ;;  %v4894_v58 = vadd.f32 %v15466_v12, %v4855_v36  ;;  %v4743_v62 = vadd.f32 %v17302_v54, %v4704_v56 }
 0x32c   :  { %v4970_v61 = vadd.f32 %v4969_v5, %v4931_v19  ;;  %v15552_v5 = vld [vmem:[%s17211_s5 + $0x3] ss:$0 sm:$0xff]  ;;  %v17303_v19 = vld [vmem:[#allocation19_spill] sm:$0xff] }
 0x32d   :  { %v4782_v9 = vadd.f32 %v15464_v14, %v4743_v62  ;;  %v4631_v42 = vadd.f32 %v15195_v32, %v17303_v19 }
 0x32e   :  { %v15530_v55 = vpop.f32.mrf.mxu0 }
 0x32f   :  { %v4821_v41 = vadd.f32 %v15468_v3, %v4782_v9 }
 0x331   :  { %v4932_v8 = vpop.f32.mrf.mxu2 }
 0x332   :  { %v15537_v52 = vpop.f32.mrf.mxu1  ;;  %v4933_v4 = vadd.f32 %v4932_v8, %v4894_v58 }
 0x333   :  { %v4971_v15 = vpop.f32.mrf.mxu3 }
 0x334   :  { %v4972_v8 = vadd.f32 %v4971_v15, %v4933_v4  ;;  %v5154_v15 = vpop.permute.xlu0 %5153  ;;  %v4860_v4 = vadd.f32 %v15476_v7, %v4821_v41  ;;  %v13253_v7 = vld [vmem:[#allocation9 + $0x8] sm:$0xff] }
 0x335   :  { %9564 = vmatpush.bf16.msrb.mxu2 %v13253_v7 }
 0x336   :  { %v5008_v28 = vpop.f32.mrf.mxu0 }
 0x337   :  { %v5009_v45 = vadd.f32 %v5008_v28, %v4970_v61 }
 0x339   :  { %v4935_v39 = vpop.f32.mrf.mxu2 }
 0x33a   :  { %v5047_v25 = vpop.f32.mrf.mxu1  ;;  %v4936_v56 = vadd.f32 %v4935_v39, %v15472_v22  ;;  %v13262_v22 = vld [vmem:[#allocation9 + $0x50] sm:$0xff]  ;;  %v13275_v39 = vld [vmem:[#allocation9 + $0xb8] sm:$0xff] }
 0x33b   :  { %v4974_v13 = vpop.f32.mrf.mxu3  ;;  %v5048_v37 = vadd.f32 %v5047_v25, %v5009_v45  ;;  %v4670_v45 = vadd.f32 %v15200_v29, %v4631_v42  ;;  %9596 = vmatpush.bf16.msrb.mxu3 %v13262_v22  ;;  %9624 = vmatpush.bf16.msra.mxu0 %v13275_v39 }
 0x33d   :  { %v5078_v2 = vmul.f32 %v15546_v44, %v5048_v37  ;;  %v4975_v37 = vadd.f32 %v4974_v13, %v4936_v56 }
 0x33e   :  { %v5010_v12 = vpop.f32.mrf.mxu0 }
 0x33f   :  { %v5091_v36 = vadd.f32 %v15552_v5, %v5078_v2  ;;  %v5011_v28 = vadd.f32 %v5010_v12, %v4972_v8  ;;  %v17304_v8 = vld [vmem:[#allocation25_spill] sm:$0xff]  ;;  %v4899_v2 = vadd.f32 %v15481_v40, %v4860_v4 }
 0x340   :  { %v4709_v3 = vadd.f32 %v17304_v8, %v4670_v45  ;;  %v13261_v45 = vld [vmem:[#allocation9 + $0x48] sm:$0xff]  ;;  %v5373_v8 = vld [vmem:[#allocation3 + $0x4] sm:$0xc] }
 0x341   :  { %v4937_v61 = vpop.f32.mrf.mxu2  ;;  %vm5103_vm1 = vcmp.ge.f32.partialorder %v5091_v36, 0.0  ;;  %v5115_v58 = vmul.f32 0.01, %v5091_v36  ;;  %9597 = vmatpush.bf16.msrb.mxu3 %v13261_v45 }
 0x342   :  { %v5049_v14 = vpop.f32.mrf.mxu1 }
 0x343   :  { %v4976_v11 = vpop.f32.mrf.mxu3  ;;  %v5127_v25 = vsel %vm5103_vm1, %v5091_v36, %v5115_v58  ;;  %v5050_v54 = vadd.f32 %v5049_v14, %v5011_v28  ;;  %v13299_v36 = vld [vmem:[#allocation9 + $0x178] sm:$0xff]  ;;  %v17305_v28 = vld [vmem:[#allocation20_spill] sm:$0xff]  ;;  %v4938_v14 = vadd.f32 %v4937_v61, %v4899_v2  ;;  %vm15596_vm1 = vmor %vm5235_vm11, %vm5236_vm13 }
 0x344   :  { %v5211_v32 = vmul.f32 %v5154_v15, %v5127_v25  ;;  %v4636_v41 = vadd.f32 %v15337_v0, %v17305_v28  ;;  %v13274_v58 = vld [vmem:[#allocation9 + $0xb0] sm:$0xff]  ;;  %9723 = vmatpush.bf16.msra.mxu1 %v13299_v36  ;;  %v5159_v0 = vpop.permute.xlu1 %5158  ;;  %v13273_v36 = vld [vmem:[#allocation9 + $0xa8] sm:$0xff] }
 0x345   :  { %v5079_v12 = vmul.f32 %v15546_v44, %v5050_v54  ;;  %v13298_v15 = vld [vmem:[#allocation9 + $0x170] sm:$0xff]  ;;  %9625 = vmatpush.bf16.msra.mxu0 %v13274_v58  ;;  %v4977_v28 = vadd.f32 %v4976_v11, %v4938_v14 }
 0x346   :  { %v5013_v62 = vpop.f32.mrf.mxu0  ;;  %v5223_v9 = vpack.c.bf16 %v5211_v32, %v5211_v32  ;;  %v4675_v22 = vadd.f32 %v15357_v46, %v4636_v41  ;;  %v17310_v46 = vld [vmem:[#allocation22_spill] sm:$0xff] }
 0x347   :  { %v5092_v29 = vadd.f32 %v15552_v5, %v5079_v12  ;;  %v5014_v19 = vadd.f32 %v5013_v62, %v4975_v37  ;;  %v17306_v62 = vld [vmem:[#allocation26_spill] sm:$0xff]  ;;  %v4646_v41 = vadd.f32 %v15444_v43, %v17310_v46  ;;  %v5391_v46 = vld [vmem:[#allocation3] sm:$0xf] }
 0x348   :  { %v5239_v13 = vshrl.u32 %v5223_v9, 16  ;;  %v5242_v56 = vshll.u32 %v5223_v9, 16  ;;  %v4748_v37 = vadd.f32 %v17306_v62, %v4709_v3  ;;  %9724 = vmatpush.bf16.msra.mxu1 %v13298_v15  ;;  %v4714_v11 = vadd.f32 %v15423_v20, %v4675_v22  ;;  %5400 = vst [vmem:[#allocation5] sm:$0xf] %v5391_v46 }
 0x349   :  { %v4940_v42 = vpop.f32.mrf.mxu2  ;;  %vm5104_vm3 = vcmp.ge.f32.partialorder %v5092_v29, 0.0  ;;  %v5116_v40 = vmul.f32 0.01, %v5092_v29  ;;  %9626 = vmatpush.bf16.msra.mxu0 %v13273_v36  ;;  %v4685_v20 = vadd.f32 %v15442_v30, %v4646_v41 }
 0x34a   :  { %v5241_v4 = vrot.slane %v5239_v13, 5  ;;  %v5244_v25 = vrot.slane %v5242_v56, 6  ;;  %v5052_v32 = vpop.f32.mrf.mxu1  ;;  %v4787_v3 = vadd.f32 %v15474_v18, %v4748_v37  ;;  %v17309_v56 = vld [vmem:[#allocation21_spill] sm:$0xff]  ;;  %v4753_v36 = vadd.f32 %v15434_v59, %v4714_v11 }
 0x34b   :  { %v4979_v54 = vpop.f32.mrf.mxu3  ;;  %v5128_v61 = vsel %vm5104_vm3, %v5092_v29, %v5116_v40  ;;  %v5053_v9 = vadd.f32 %v5052_v32, %v5014_v19  ;;  %v4641_v62 = vadd.f32 %v15394_v26, %v17309_v56  ;;  %v13272_v26 = vld [vmem:[#allocation9 + $0xa0] sm:$0xff]  ;;  %v13271_v56 = vld [vmem:[#allocation9 + $0x98] sm:$0xff]  ;;  %v13270_v11 = vld [vmem:[#allocation9 + $0x90] sm:$0xff]  ;;  %vm5418_vm3 = vsmask.f32 7440 }
 0x34c   :  { %v5245_v39 = vor.u32 %v5244_v25, %v5241_v4  ;;  %v5212_v2 = vmul.f32 %v5159_v0, %v5128_v61  ;;  %v4826_v15 = vadd.f32 %v15483_v23, %v4787_v3  ;;  %v4941_v4 = vadd.f32 %v4940_v42, %v15489_v38  ;;  %vm15665_vm11 = vmor %vm1379_vm4, %vm5418_vm3 }
 0x34d   :  { %v5080_v13 = vmul.f32 %v15546_v44, %v5053_v9  ;;  %v4680_v43 = vadd.f32 %v15410_v51, %v4641_v62  ;;  %9627 = vmatpush.bf16.msra.mxu0 %v13272_v26  ;;  %v4724_v3 = vadd.f32 %v15450_v31, %v4685_v20  ;;  %v13297_v62 = vld [vmem:[#allocation9 + $0x168] sm:$0xff] }
 0x34e   :  { %v5015_v7 = vpop.f32.mrf.mxu0  ;;  %v5374_v29 = vsel %vm15572_vm10, %v5245_v39, %v5373_v8  ;;  %v5224_v19 = vpack.c.bf16 %v5212_v2, %v5212_v2  ;;  %v5164_v8 = vpop.permute.xlu0 %5163  ;;  %v4865_v61 = vadd.f32 %v15491_v53, %v4826_v15  ;;  %v5246_v9 = vrot.slane %v5245_v39, 4  ;;  %9725 = vmatpush.bf16.msra.mxu1 %v13297_v62 }
 0x34f   :  { %5375 = vst [vmem:[#allocation3 + $0x4] sm:$0xc] %v5374_v29  ;;  %v5093_v58 = vadd.f32 %v15552_v5, %v5080_v13  ;;  %v5016_v45 = vadd.f32 %v5015_v7, %v4977_v28  ;;  %v4719_v51 = vadd.f32 %v15436_v21, %v4680_v43  ;;  %v4980_v30 = vadd.f32 %v4979_v54, %v4941_v4  ;;  %v13252_v29 = vld [vmem:[#allocation9] sm:$0xff] }
 0x350   :  { %v5248_v14 = vshrl.u32 %v5224_v19, 16  ;;  %v5251_v40 = vshll.u32 %v5224_v19, 16  ;;  %v4792_v21 = vadd.f32 %v15494_v10, %v4753_v36  ;;  %v4904_v39 = vadd.f32 %v15496_v27, %v4865_v61  ;;  %9565 = vmatpush.bf16.msrb.mxu2 %v13252_v29  ;;  %v13260_v27 = vld [vmem:[#allocation9 + $0x40] sm:$0xff] }
 0x351   :  { %v4942_v18 = vpop.f32.mrf.mxu2  ;;  %vm5105_vm9 = vcmp.ge.f32.partialorder %v5093_v58, 0.0  ;;  %v5117_v25 = vmul.f32 0.01, %v5093_v58  ;;  %v4758_v31 = vadd.f32 %v15440_v63, %v4719_v51  ;;  %9628 = vmatpush.bf16.msra.mxu0 %v13271_v56  ;;  %v4763_v26 = vadd.f32 %v15454_v60, %v4724_v3  ;;  %9598 = vmatpush.bf16.msrb.mxu3 %v13260_v27  ;;  %v13269_v60 = vld [vmem:[#allocation9 + $0x88] sm:$0xff] }
 0x352   :  { %v5250_v32 = vrot.slane %v5248_v14, 5  ;;  %v5253_v37 = vrot.slane %v5251_v40, 6  ;;  %v5054_v12 = vpop.f32.mrf.mxu1  ;;  %v13296_v14 = vld [vmem:[#allocation9 + $0x160] sm:$0xff]  ;;  %v4943_v40 = vadd.f32 %v4942_v18, %v4904_v39 }
 0x353   :  { %v15590_v0 = vpop.f32.mrf.mxu3  ;;  %v5129_v38 = vsel %vm5105_vm9, %v5093_v58, %v5117_v25  ;;  %v5055_v42 = vadd.f32 %v5054_v12, %v5016_v45  ;;  %v4797_v15 = vadd.f32 %v15506_v57, %v4758_v31  ;;  %v4802_v18 = vadd.f32 %v15517_v1, %v4763_v26  ;;  %9726 = vmatpush.bf16.msra.mxu1 %v13296_v14  ;;  %v13295_v57 = vld [vmem:[#allocation9 + $0x158] sm:$0xff] }
 0x354   :  { %v5254_v22 = vor.u32 %v5253_v37, %v5250_v32  ;;  %v5213_v2 = vmul.f32 %v5164_v8, %v5129_v38  ;;  %v5169_v32 = vpop.permute.xlu1 %5168  ;;  %v4831_v37 = vadd.f32 %v15498_v50, %v4792_v21  ;;  %v4982_v51 = vadd.f32 %v15590_v0, %v4943_v40 }
 0x355   :  { %v5081_v53 = vmul.f32 %v15546_v44, %v5055_v42  ;;  %9629 = vmatpush.bf16.msra.mxu0 %v13270_v11  ;;  %v4836_v50 = vadd.f32 %v15508_v17, %v4797_v15  ;;  %v4841_v0 = vadd.f32 %v15519_v16, %v4802_v18  ;;  %v13294_v17 = vld [vmem:[#allocation9 + $0x150] sm:$0xff] }
 0x356   :  { %v5018_v7 = vpop.f32.mrf.mxu0  ;;  %v5255_v28 = vsel %vm15596_vm1, %v5246_v9, %v5254_v22  ;;  %v5225_v13 = vpack.c.bf16 %v5213_v2, %v5213_v2  ;;  %v5392_v41 = vld [vmem:[#allocation3 + $0x4] sm:$0xf]  ;;  %v5256_v20 = vrot.slane %v5254_v22, 4  ;;  %v4870_v2 = vadd.f32 %v15503_v48, %v4831_v37  ;;  %v13268_v48 = vld [vmem:[#allocation9 + $0x80] sm:$0xff] }
 0x357   :  { %5376 = vst [vmem:[#allocation3 + $0x8] sm:$0xf] %v5255_v28  ;;  %v5094_v19 = vadd.f32 %v15552_v5, %v5081_v53  ;;  %v5019_v59 = vadd.f32 %v5018_v7, %v4980_v30  ;;  %v11709_v53 = vld [vmem:[#allocation5] sm:$0xf]  ;;  %v4875_v3 = vadd.f32 %v15515_v49, %v4836_v50  ;;  %9727 = vmatpush.bf16.msra.mxu1 %v13295_v57 }
 0x358   :  { %v5258_v58 = vshrl.u32 %v5225_v13, 16  ;;  %v5261_v45 = vshll.u32 %v5225_v13, 16  ;;  %5401 = vst [vmem:[#allocation5 + $0x64] sm:$0xf] %v5392_v41  ;;  %v4909_v39 = vadd.f32 %v15510_v34, %v4870_v2  ;;  %v5174_v41 = vpop.permute.xlu2 %5173  ;;  %v4880_v16 = vadd.f32 %v15530_v55, %v4841_v0 }
 0x359   :  { %v4945_v54 = vpop.f32.mrf.mxu2  ;;  %vm5106_vm6 = vcmp.ge.f32.partialorder %v5094_v19, 0.0  ;;  %v5118_v10 = vmul.f32 0.01, %v5094_v19  ;;  %9630 = vmatpush.bf16.msra.mxu0 %v13269_v60  ;;  %v15629_v34 = vadd.f32 %v15521_v47, %v4875_v3 }
 0x35a   :  { %v5260_v4 = vrot.slane %v5258_v58, 5  ;;  %v5263_v25 = vrot.slane %v5261_v45, 6  ;;  %v5057_v43 = vpop.f32.mrf.mxu1  ;;  %v4946_v62 = vadd.f32 %v4945_v54, %v15501_v33  ;;  %v5409_v45 = vld [vmem:[#allocation3] sm:$0xf] }
 0x35b   :  { %v4984_v63 = vpop.f32.mrf.mxu3  ;;  %v5130_v12 = vsel %vm5106_vm6, %v5094_v19, %v5118_v10  ;;  %v5058_v8 = vadd.f32 %v5057_v43, %v5019_v59  ;;  %9728 = vmatpush.bf16.msra.mxu1 %v13294_v17  ;;  %v5421_v15 = vshrl.u32 %v5409_v45, 16 }
 0x35c   :  { %v5264_v61 = vor.u32 %v5263_v25, %v5260_v4  ;;  %v5214_v38 = vmul.f32 %v5169_v32, %v5130_v12  ;;  %v4985_v10 = vadd.f32 %v4984_v63, %v4946_v62  ;;  %v5424_v4 = vshll.u32 %v5409_v45, 16  ;;  %v5527_v63 = vld [vmem:[#allocation3] sm:$0xe]  ;;  %v13283_v12 = vld [vmem:[#allocation9 + $0xf8] sm:$0xff] }
 0x35d   :  { %v5082_v9 = vmul.f32 %v15546_v44, %v5058_v8  ;;  %9631 = vmatpush.bf16.msra.mxu0 %v13268_v48  ;;  %v15636_v25 = vadd.f32 %v15537_v52, %v4880_v16  ;;  %v11695_v60 = vrot.slane %v5527_v63, 9  ;;  %9657 = vmatpush.bf16.msra.mxu2 %v13283_v12 }
 0x35e   :  { %v5020_v42 = vpop.f32.mrf.mxu0  ;;  %v5265_v7 = vsel %vm15596_vm1, %v5256_v20, %v5264_v61  ;;  %v5226_v1 = vpack.c.bf16 %v5214_v38, %v5214_v38  ;;  %v5266_v11 = vrot.slane %v5264_v61, 4  ;;  %v5528_v38 = vld [vmem:[#allocation3 + $0x4] sm:$0xf]  ;;  %v5768_v12 = vld [vmem:[#allocation3 + $0x8] sm:$0xf] }
 0x35f   :  { %5377 = vst [vmem:[#allocation3 + $0xc] sm:$0xf] %v5265_v7  ;;  %v5095_v22 = vadd.f32 %v15552_v5, %v5082_v9  ;;  %v5021_v36 = vadd.f32 %v5020_v42, %v4982_v51  ;;  %v13164_v56 = vld [vmem:[#allocation5 + $0x60] sm:$0xf0]  ;;  %v15641_v42 = vld [vmem:[#allocation3 + $0x8] sm:$0xf] }
 0x360   :  { %v5268_v28 = vshrl.u32 %v5226_v1, 16  ;;  %v5271_v13 = vshll.u32 %v5226_v1, 16  ;;  %v11710_v21 = vor.u32 %v13164_v56, %v11709_v53  ;;  %v5547_v57 = vrot.slane %v5528_v38, 5  ;;  %v13293_v51 = vld [vmem:[#allocation9 + $0x148] sm:$0xff]  ;;  %v5393_v56 = vld [vmem:[#allocation3 + $0x8] sm:$0xf] }
 0x361   :  { %v4947_v30 = vpop.f32.mrf.mxu2  ;;  %vm5107_vm14 = vcmp.ge.f32.partialorder %v5095_v22, 0.0  ;;  %v5119_v29 = vmul.f32 0.01, %v5095_v22  ;;  %v5550_v1 = vrot.slane %v15641_v42, 5  ;;  %9729 = vmatpush.bf16.msra.mxu1 %v13293_v51  ;;  %5402 = vst [vmem:[#allocation5 + $0xc8] sm:$0xf] %v5393_v56 }
 0x362   :  { %v5270_v19 = vrot.slane %v5268_v28, 5  ;;  %v5273_v59 = vrot.slane %v5271_v13, 6  ;;  %v5059_v49 = vpop.f32.mrf.mxu1  ;;  %9566 = vmatmul.bf16.vlgmr.msrb.gmra.mxu2 %v11710_v21  ;;  %v4948_v54 = vadd.f32 %v4947_v30, %v4909_v39  ;;  %v5179_v30 = vpop.permute.xlu0 %5178  ;;  %v5548_v0 = vsel %vm14304_vm12, %v11695_v60, %v5547_v57  ;;  %v15648_v28 = vld [vmem:[#allocation3 + $0x8] sm:$0xf]  ;;  %v13281_v51 = vld [vmem:[#allocation9 + $0xe8] sm:$0xff] }
 0x363   :  { %v4986_v46 = vpop.f32.mrf.mxu3  ;;  %v5131_v31 = vsel %vm5107_vm14, %v5095_v22, %v5119_v29  ;;  %v5060_v58 = vadd.f32 %v5059_v49, %v5021_v36  ;;  %v5410_v22 = vld [vmem:[#allocation3 + $0x4] sm:$0xf]  ;;  %v5423_v36 = vrot.slane %v5421_v15, 4  ;;  %v13291_v13 = vld [vmem:[#allocation9 + $0x138] sm:$0xff]  ;;  %v5549_v62 = vrot.slane %v5547_v57, 4 }
 0x364   :  { %v15626_v14 = vor.u32 %v5273_v59, %v5270_v19  ;;  %v5215_v33 = vmul.f32 %v5174_v41, %v5131_v31  ;;  %v4987_v20 = vadd.f32 %v4986_v46, %v4948_v54  ;;  %5580 = vst [vmem:[#allocation5 + $0x8] sm:$0xf] %v5548_v0  ;;  %v5426_v29 = vrot.slane %v5424_v4, 5  ;;  %9690 = vmatpush.bf16.msra.mxu3 %v13291_v13  ;;  %v13292_v41 = vld [vmem:[#allocation9 + $0x140] sm:$0xff] }
 0x365   :  { %v5083_v27 = vmul.f32 %v15546_v44, %v5060_v58  ;;  %v5430_v59 = vshll.u32 %v5410_v22, 16  ;;  %v5434_v46 = vshrl.u32 %v5410_v22, 16  ;;  %v5440_v49 = vshll.u32 %v15648_v28, 16  ;;  %9730 = vmatpush.bf16.msra.mxu1 %v13292_v41 }
 0x366   :  { %v5023_v40 = vpop.f32.mrf.mxu0  ;;  %v5275_v55 = vsel %vm15596_vm1, %v5266_v11, %v15626_v14  ;;  %v5227_v26 = vpack.c.bf16 %v5215_v33, %v5215_v33  ;;  %v5276_v43 = vrot.slane %v15626_v14, 4  ;;  %v5394_v39 = vld [vmem:[#allocation3 + $0xc] sm:$0xf]  ;;  %v5551_v45 = vsel %vm14304_vm12, %v5549_v62, %v5550_v1  ;;  %v13282_v11 = vld [vmem:[#allocation9 + $0xf0] sm:$0xff] }
 0x367   :  { %5378 = vst [vmem:[#allocation3 + $0x10] sm:$0xf] %v5275_v55  ;;  %v5096_v32 = vadd.f32 %v15552_v5, %v5083_v27  ;;  %v5024_v47 = vadd.f32 %v5023_v40, %v4985_v10  ;;  %v5427_v33 = vor.u32 %v5426_v29, %v5423_v36  ;;  %v5432_v54 = vrot.slane %v5430_v59, 5  ;;  %v5767_v27 = vld [vmem:[#allocation3 + $0x4] sm:$0xc]  ;;  %9658 = vmatpush.bf16.msra.mxu2 %v13282_v11 }
 0x368   :  { %v5278_v8 = vshrl.u32 %v5227_v26, 16  ;;  %v5281_v18 = vshll.u32 %v5227_v26, 16  ;;  %5403 = vst [vmem:[#allocation5 + $0x12c] sm:$0xf] %v5394_v39  ;;  %v5436_v40 = vrot.slane %v5434_v46, 4  ;;  %v15669_v4 = vrot.slane %v5440_v49, 5 }
 0x369   :  { %v4950_v37 = vpop.f32.mrf.mxu2  ;;  %vm5108_vm10 = vcmp.ge.f32.partialorder %v5096_v32, 0.0  ;;  %v5120_v52 = vmul.f32 0.01, %v5096_v32  ;;  %5581 = vst [vmem:[#allocation5 + $0x6c] sm:$0xf] %v5551_v45  ;;  %v11697_v57 = vrot.slane %v5767_v27, 10 }
 0x36a   :  { %v4951_v61 = vadd.f32 %v4950_v37, %v15513_v35  ;;  %v5280_v9 = vrot.slane %v5278_v8, 5  ;;  %v5283_v2 = vrot.slane %v5281_v18, 6  ;;  %v5062_v7 = vpop.f32.mrf.mxu1  ;;  %v5428_v37 = vrot.slane %v5427_v33, 4  ;;  %v15672_v60 = vld [vmem:[#allocation3 + $0xc] sm:$0xf] }
 0x36b   :  { %v4989_v50 = vpop.f32.mrf.mxu3  ;;  %v5132_v53 = vsel %vm5108_vm10, %v5096_v32, %v5120_v52  ;;  %v5063_v3 = vadd.f32 %v5062_v7, %v5024_v47  ;;  %v13290_v32 = vld [vmem:[#allocation9 + $0x130] sm:$0xff]  ;;  %v5437_v63 = vor.u32 %v5436_v40, %v5432_v54  ;;  %9659 = vmatpush.bf16.msra.mxu2 %v13281_v51  ;;  %v11809_v13 = vld [vmem:[#allocation5 + $0xc8] sm:$0xf]  ;;  %v5552_v11 = vrot.slane %v5550_v1, 4  ;;  %v5412_v40 = vld [vmem:[#allocation3 + $0xc] sm:$0xf] }
 0x36c   :  { %v15644_v35 = vadd.f32 %v4989_v50, %v4951_v61  ;;  %v15650_v48 = vor.u32 %v5283_v2, %v5280_v9  ;;  %v5216_v17 = vmul.f32 %v5179_v30, %v5132_v53  ;;  %9691 = vmatpush.bf16.msra.mxu3 %v13290_v32  ;;  %v5184_v9 = vpop.permute.xlu1 %5183  ;;  %v5433_v2 = vsel %vm15665_vm11, %v5428_v37, %v5432_v54  ;;  %v5189_v37 = vpop.permute.xlu2 %5188  ;;  %vm15839_vm10 = vmand %vm384_vm5, %vm1501_vm0 }
 0x36d   :  { %v5084_v19 = vmul.f32 %v15546_v44, %v5063_v3  ;;  %v5438_v50 = vrot.slane %v5437_v63, 4  ;;  %5518 = vst [vmem:[#allocation5 + $0x4] sm:$0xf] %v5433_v2  ;;  %v5530_v3 = vld [vmem:[#allocation3 + $0xc] sm:$0xf]  ;;  %v13289_v2 = vld [vmem:[#allocation9 + $0x128] sm:$0xff] }
 0x36e   :  { %v5025_v21 = vpop.f32.mrf.mxu0  ;;  %v5285_v16 = vsel %vm15596_vm1, %v5276_v43, %v15650_v48  ;;  %v5286_v31 = vrot.slane %v15650_v48, 4  ;;  %v5228_v58 = vpack.c.bf16 %v5216_v17, %v5216_v17  ;;  %v5790_v17 = vrot.slane %v15672_v60, 6  ;;  %v15690_v46 = vld [vmem:[#allocation3 + $0x10] sm:$0xf] }
 0x36f   :  { %5379 = vst [vmem:[#allocation3 + $0x14] sm:$0xf] %v5285_v16  ;;  %v5097_v14 = vadd.f32 %v15552_v5, %v5084_v19  ;;  %v5026_v43 = vadd.f32 %v5025_v21, %v4987_v20  ;;  %v5443_v0 = vsel %vm15665_vm11, %v5438_v50, %v15669_v4  ;;  %v13189_v56 = vld [vmem:[#allocation5 + $0x128] sm:$0xf0]  ;;  %v11717_v19 = vld [vmem:[#allocation5 + $0x8] sm:$0xf] }
 0x370   :  { %v5288_v26 = vshrl.u32 %v5228_v58, 16  ;;  %v5291_v15 = vshll.u32 %v5228_v58, 16  ;;  %v11810_v59 = vor.u32 %v13189_v56, %v11809_v13  ;;  %v13165_v49 = vld [vmem:[#allocation5 + $0x68] sm:$0xf0]  ;;  %5519 = vst [vmem:[#allocation5 + $0x68] sm:$0xf] %v5443_v0  ;;  %9692 = vmatpush.bf16.msra.mxu3 %v13289_v2 }
 0x371   :  { %v4952_v10 = vpop.f32.mrf.mxu2  ;;  %vm5109_vm13 = vcmp.ge.f32.partialorder %v5097_v14, 0.0  ;;  %v5121_v47 = vmul.f32 0.01, %v5097_v14  ;;  %v11718_v33 = vor.u32 %v13165_v49, %v11717_v19  ;;  %v5553_v42 = vrot.slane %v5530_v3, 5 }
 0x372   :  { %v5290_v8 = vrot.slane %v5288_v26, 5  ;;  %v5293_v18 = vrot.slane %v5291_v15, 6  ;;  %v4953_v61 = vadd.f32 %v4952_v10, %v15629_v34  ;;  %v5064_v52 = vpop.f32.mrf.mxu1  ;;  %v5787_v34 = vrot.slane %v5768_v12, 6  ;;  %9571 = vmatmul.bf16.gmra.mxu2 %v11810_v59  ;;  %v15698_v10 = vld [vmem:[#allocation3 + $0x10] sm:$0xf] }
 0x373   :  { %v4991_v38 = vpop.f32.mrf.mxu3  ;;  %v5133_v20 = vsel %vm5109_vm13, %v5097_v14, %v5121_v47  ;;  %v5065_v7 = vadd.f32 %v5064_v52, %v5026_v43  ;;  %9632 = vmatmul.bf16.vlgmr.msra.gmra.mxu0 %v11718_v33  ;;  %v5444_v47 = vshrl.u32 %v15648_v28, 16  ;;  %v5555_v51 = vrot.slane %v5553_v42, 4 }
 0x374   :  { %v15676_v22 = vor.u32 %v5293_v18, %v5290_v8  ;;  %v5217_v36 = vmul.f32 %v5184_v9, %v5133_v20  ;;  %v15678_v30 = vadd.f32 %v4991_v38, %v4953_v61  ;;  %v5788_v58 = vsel %vm14079_vm2, %v11697_v57, %v5787_v34  ;;  %v5395_v61 = vld [vmem:[#allocation3 + $0x10] sm:$0xf] }
 0x375   :  { %v5085_v48 = vmul.f32 %v15546_v44, %v5065_v7  ;;  %v5789_v45 = vrot.slane %v5787_v34, 4  ;;  %5820 = vst [vmem:[#allocation5 + $0x14] sm:$0xf] %v5788_v58  ;;  %v5554_v18 = vsel %vm14304_vm12, %v5552_v11, %v5553_v42  ;;  %v5446_v9 = vrot.slane %v5444_v47, 4  ;;  %v5194_v42 = vpop.permute.xlu0 %5193 }
 0x376   :  { %v5028_v53 = vpop.f32.mrf.mxu0  ;;  %v5295_v29 = vsel %vm15596_vm1, %v5286_v31, %v15676_v22  ;;  %v5296_v21 = vrot.slane %v15676_v22, 4  ;;  %v5229_v39 = vpack.c.bf16 %v5217_v36, %v5217_v36  ;;  %v5396_v38 = vld [vmem:[#allocation3 + $0x14] sm:$0xf]  ;;  %5582 = vst [vmem:[#allocation5 + $0xd0] sm:$0xf] %v5554_v18  ;;  %v5450_v50 = vshll.u32 %v5412_v40, 16 }
 0x377   :  { %v5029_v62 = vadd.f32 %v5028_v53, %v15644_v35  ;;  %5380 = vst [vmem:[#allocation3 + $0x18] sm:$0xf] %v5295_v29  ;;  %v5098_v41 = vadd.f32 %v15552_v5, %v5085_v48  ;;  %v5791_v26 = vsel %vm14079_vm2, %v5789_v45, %v5790_v17  ;;  %v5454_v7 = vshrl.u32 %v5412_v40, 16  ;;  %v13152_v53 = vld [vmem:[#allocation5 + $0x4] sm:$0xf] }
 0x378   :  { %v5298_v31 = vshrl.u32 %v5229_v39, 16  ;;  %v5301_v14 = vshll.u32 %v5229_v39, 16  ;;  %5821 = vst [vmem:[#allocation5 + $0x78] sm:$0xf] %v5791_v26  ;;  %v5460_v22 = vshll.u32 %v15698_v10, 16  ;;  %v5447_v48 = vor.u32 %v5446_v9, %v15669_v4  ;;  %v13280_v26 = vld [vmem:[#allocation9 + $0xe0] sm:$0xff] }
 0x379   :  { %v4955_v35 = vpop.f32.mrf.mxu2  ;;  %vm5110_vm4 = vcmp.ge.f32.partialorder %v5098_v41, 0.0  ;;  %v5122_v27 = vmul.f32 0.01, %v5098_v41  ;;  %5404 = vst [vmem:[#allocation5 + $0x190] sm:$0xf] %v5395_v61  ;;  %v5456_v29 = vrot.slane %v5454_v7, 4  ;;  %9660 = vmatpush.bf16.msra.mxu2 %v13280_v26 }
 0x37a   :  { %v4956_v54 = vadd.f32 %v4955_v35, %v15528_v24  ;;  %v5300_v1 = vrot.slane %v5298_v31, 5  ;;  %v5303_v15 = vrot.slane %v5301_v14, 6  ;;  %v5067_v43 = vpop.f32.mrf.mxu1  ;;  %v5556_v24 = vrot.slane %v15690_v46, 5  ;;  %5405 = vst [vmem:[#allocation5 + $0x1f4] sm:$0xf] %v5396_v38  ;;  %v13288_v38 = vld [vmem:[#allocation9 + $0x120] sm:$0xff] }
 0x37b   :  { %v4994_v32 = vpop.f32.mrf.mxu3  ;;  %v5134_v63 = vsel %vm5110_vm4, %v5098_v41, %v5122_v27  ;;  %v5068_v12 = vadd.f32 %v5067_v43, %v5029_v62  ;;  %v11711_v13 = vld [vmem:[#allocation5 + $0x64] sm:$0xf0]  ;;  %v5452_v62 = vrot.slane %v5450_v50, 5  ;;  %v5770_v41 = vld [vmem:[#allocation3 + $0x10] sm:$0xf]  ;;  %v5448_v35 = vrot.slane %v5447_v48, 4  ;;  %9693 = vmatpush.bf16.msra.mxu3 %v13288_v38 }
 0x37c   :  { %v15706_v8 = vadd.f32 %v4994_v32, %v4956_v54  ;;  %v15710_v52 = vor.u32 %v5303_v15, %v5300_v1  ;;  %v5218_v57 = vmul.f32 %v5189_v37, %v5134_v63  ;;  %v5557_v0 = vsel %vm14304_vm12, %v5555_v51, %v5556_v24  ;;  %v13154_v59 = vld [vmem:[#allocation5 + $0x14] sm:$0xf]  ;;  %v15727_v27 = vld [vmem:[#allocation3 + $0x14] sm:$0xf] }
 0x37d   :  { %v5086_v28 = vmul.f32 %v15546_v44, %v5068_v12  ;;  %5583 = vst [vmem:[#allocation5 + $0x134] sm:$0xf] %v5557_v0  ;;  %v5457_v11 = vor.u32 %v5456_v29, %v5452_v62  ;;  %v15725_v54 = vrot.slane %v5460_v22, 5  ;;  %v5464_v43 = vshrl.u32 %v15698_v10, 16  ;;  %v5532_v61 = vld [vmem:[#allocation3 + $0x14] sm:$0xf] }
 0x37e   :  { %v5030_v20 = vpop.f32.mrf.mxu0  ;;  %v5305_v36 = vsel %vm15596_vm1, %v5296_v21, %v15710_v52  ;;  %v5306_v34 = vrot.slane %v15710_v52, 4  ;;  %v5230_v3 = vpack.c.bf16 %v5218_v57, %v5218_v57  ;;  %v11714_v21 = vor.u32 %v13152_v53, %v11711_v13  ;;  %v11817_v52 = vld [vmem:[#allocation5 + $0xd0] sm:$0xf]  ;;  %v15745_v50 = vld [vmem:[#allocation3 + $0x18] sm:$0xf] }
 0x37f   :  { %5381 = vst [vmem:[#allocation3 + $0x1c] sm:$0xf] %v5305_v36  ;;  %v5099_v56 = vadd.f32 %v15552_v5, %v5086_v28  ;;  %v5031_v49 = vadd.f32 %v5030_v20, %v15678_v30  ;;  %v11727_v58 = vld [vmem:[#allocation5 + $0x74] sm:$0xf0]  ;;  %v5453_v30 = vsel %vm15665_vm11, %v5448_v35, %v5452_v62  ;;  %v5458_v15 = vrot.slane %v5457_v11, 4 }
 0x380   :  { %v5308_v39 = vshrl.u32 %v5230_v3, 16  ;;  %v5311_v19 = vshll.u32 %v5230_v3, 16  ;;  %9599 = vmatmul.bf16.vlgmr.msrb.gmra.mxu3 %v11714_v21  ;;  %v11730_v4 = vor.u32 %v13154_v59, %v11727_v58  ;;  %5520 = vst [vmem:[#allocation5 + $0xcc] sm:$0xf] %v5453_v30  ;;  %v5792_v12 = vrot.slane %v5790_v17, 4 }
 0x381   :  { %vm5111_vm9 = vcmp.ge.f32.partialorder %v5099_v56, 0.0  ;;  %v5123_v45 = vmul.f32 0.01, %v5099_v56  ;;  %v4957_v31 = vpop.f32.mrf.mxu2  ;;  %v5463_v57 = vsel %vm15665_vm11, %v5458_v15, %v15725_v54  ;;  %v11909_v10 = vld [vmem:[#allocation5 + $0x190] sm:$0xf]  ;;  %v5793_v20 = vrot.slane %v5770_v41, 6 }
 0x382   :  { %v5310_v14 = vrot.slane %v5308_v39, 5  ;;  %v5313_v33 = vrot.slane %v5311_v19, 6  ;;  %v5069_v40 = vpop.f32.mrf.mxu1  ;;  %9731 = vmatmul.bf16.vlgmr.msra.gmra.mxu1 %v11730_v4  ;;  %v4958_v37 = vadd.f32 %v4957_v31, %v15636_v25  ;;  %v13214_v51 = vld [vmem:[#allocation5 + $0x1f0] sm:$0xf0]  ;;  %v5796_v2 = vrot.slane %v15727_v27, 6 }
 0x383   :  { %v5135_v1 = vsel %vm5111_vm9, %v5099_v56, %v5123_v45  ;;  %v4996_v63 = vpop.f32.mrf.mxu3  ;;  %v5070_v9 = vadd.f32 %v5069_v40, %v5031_v49  ;;  %5521 = vst [vmem:[#allocation5 + $0x130] sm:$0xf] %v5463_v57  ;;  %v11910_v28 = vor.u32 %v13214_v51, %v11909_v10  ;;  %v5794_v53 = vsel %vm14079_vm2, %v5792_v12, %v5793_v20  ;;  %v5414_v48 = vld [vmem:[#allocation3 + $0x14] sm:$0xf]  ;;  %v15760_v19 = vld [vmem:[#allocation3 + $0x18] sm:$0xf] }
 0x384   :  { %v15732_v32 = vor.u32 %v5313_v33, %v5310_v14  ;;  %v5219_v47 = vmul.f32 %v5194_v42, %v5135_v1  ;;  %v13190_v7 = vld [vmem:[#allocation5 + $0x130] sm:$0xf0]  ;;  %v15748_v36 = vadd.f32 %v4996_v63, %v4958_v37  ;;  %v5795_v3 = vrot.slane %v5793_v20, 4  ;;  %5822 = vst [vmem:[#allocation5 + $0xdc] sm:$0xf] %v5794_v53  ;;  %v5199_v42 = vpop.permute.xlu1 %5198 }
 0x385   :  { %v5087_v22 = vmul.f32 %v15546_v44, %v5070_v9  ;;  %v11818_v13 = vor.u32 %v13190_v7, %v11817_v52  ;;  %9576 = vmatmul.bf16.gmra.mxu2 %v11910_v28  ;;  %v5558_v21 = vrot.slane %v5556_v24, 4  ;;  %v5559_v39 = vrot.slane %v5532_v61, 5  ;;  %v5397_v59 = vld [vmem:[#allocation3 + $0x18] sm:$0xf]  ;;  %v13279_v24 = vld [vmem:[#allocation9 + $0xd8] sm:$0xff] }
 0x386   :  { %v5033_v18 = vpop.f32.mrf.mxu0  ;;  %v5315_v25 = vsel %vm15596_vm1, %v5306_v34, %v15732_v32  ;;  %v5316_v60 = vrot.slane %v15732_v32, 4  ;;  %v5231_v17 = vpack.c.bf16 %v5219_v47, %v5219_v47  ;;  %v5797_v29 = vsel %vm14079_vm2, %v5795_v3, %v5796_v2  ;;  %v5398_v26 = vld [vmem:[#allocation3 + $0x1c] sm:$0xf]  ;;  %5406 = vst [vmem:[#allocation5 + $0x258] sm:$0xf] %v5397_v59  ;;  %9661 = vmatpush.bf16.msra.mxu2 %v13279_v24 }
 0x387   :  { %5382 = vst [vmem:[#allocation3 + $0x20] sm:$0xf] %v5315_v25  ;;  %v5034_v56 = vadd.f32 %v5033_v18, %v15706_v8  ;;  %v5100_v62 = vadd.f32 %v15552_v5, %v5087_v22  ;;  %9637 = vmatmul.bf16.gmra.mxu0 %v11818_v13  ;;  %v5562_v58 = vrot.slane %v15745_v50, 5  ;;  %v5466_v45 = vrot.slane %v5464_v43, 4  ;;  %v13177_v35 = vld [vmem:[#allocation5 + $0xcc] sm:$0xf]  ;;  %v5204_v13 = vpop.permute.xlu2 %5203 }
 0x388   :  { %v5318_v0 = vshrl.u32 %v5231_v17, 16  ;;  %v5321_v34 = vshll.u32 %v5231_v17, 16  ;;  %5823 = vst [vmem:[#allocation5 + $0x140] sm:$0xf] %v5797_v29  ;;  %v5560_v46 = vsel %vm14304_vm12, %v5558_v21, %v5559_v39  ;;  %v5561_v33 = vrot.slane %v5559_v39, 4  ;;  %v13287_v18 = vld [vmem:[#allocation9 + $0x118] sm:$0xff] }
 0x389   :  { %vm5112_vm6 = vcmp.ge.f32.partialorder %v5100_v62, 0.0  ;;  %v5124_v11 = vmul.f32 0.01, %v5100_v62  ;;  %5584 = vst [vmem:[#allocation5 + $0x198] sm:$0xf] %v5560_v46  ;;  %v5467_v4 = vor.u32 %v5466_v45, %v15725_v54  ;;  %v5470_v40 = vshll.u32 %v5414_v48, 16  ;;  %9694 = vmatpush.bf16.msra.mxu3 %v13287_v18 }
 0x38a   :  { %v5320_v49 = vrot.slane %v5318_v0, 5  ;;  %v5323_v41 = vrot.slane %v5321_v34, 6  ;;  %v5072_v8 = vpop.f32.mrf.mxu1  ;;  %v11811_v1 = vld [vmem:[#allocation5 + $0x12c] sm:$0xf0]  ;;  %v5474_v43 = vshrl.u32 %v5414_v48, 16  ;;  %v5480_v32 = vshll.u32 %v15760_v19, 16 }
 0x38b   :  { %v5073_v31 = vadd.f32 %v5072_v8, %v5034_v56  ;;  %v5136_v30 = vsel %vm5112_vm6, %v5100_v62, %v5124_v11  ;;  %v11814_v63 = vor.u32 %v13177_v35, %v11811_v1  ;;  %5407 = vst [vmem:[#allocation5 + $0x2bc] sm:$0xf] %v5398_v26  ;;  %v13179_v61 = vld [vmem:[#allocation5 + $0xdc] sm:$0xf]  ;;  %v5563_v38 = vsel %vm14304_vm12, %v5561_v33, %v5562_v58  ;;  %v5772_v34 = vld [vmem:[#allocation3 + $0x18] sm:$0xf] }
 0x38c   :  { %v15765_v14 = vor.u32 %v5323_v41, %v5320_v49  ;;  %v5220_v54 = vmul.f32 %v5199_v42, %v5136_v30  ;;  %v5468_v52 = vrot.slane %v5467_v4, 4  ;;  %v5472_v57 = vrot.slane %v5470_v40, 5  ;;  %5585 = vst [vmem:[#allocation5 + $0x1fc] sm:$0xf] %v5563_v38  ;;  %v13307_v25 = vld [vmem:[#allocation9 + $0x1b8] sm:$0xff]  ;;  %v13278_v8 = vld [vmem:[#allocation9 + $0xd0] sm:$0xff] }
 0x38d   :  { %v5088_v15 = vmul.f32 %v15546_v44, %v5073_v31  ;;  %v5476_v51 = vrot.slane %v5474_v43, 4  ;;  %v15779_v9 = vrot.slane %v5480_v32, 5  ;;  %v5484_v20 = vshrl.u32 %v15760_v19, 16  ;;  %9756 = vmatpush.bf16.msrb.mxu0 %v13307_v25  ;;  %v15785_v62 = vld [vmem:[#allocation3 + $0x1c] sm:$0xf]  ;;  %9662 = vmatpush.bf16.msra.mxu2 %v13278_v8 }
 0x38e   :  { %v5325_v47 = vsel %vm15596_vm1, %v5316_v60, %v15765_v14  ;;  %v5326_v37 = vrot.slane %v15765_v14, 4  ;;  %v5035_v12 = vpop.f32.mrf.mxu0  ;;  %v5232_v10 = vpack.c.bf16 %v5220_v54, %v5220_v54  ;;  %v5798_v29 = vrot.slane %v5796_v2, 4  ;;  %v12009_v41 = vld [vmem:[#allocation5 + $0x258] sm:$0xf]  ;;  %v13776_v35 = vld [vmem:[%s17211_s5 + $0x2] ss:$0 sm:$0xff] }
 0x38f   :  { %5383 = vst [vmem:[#allocation3 + $0x24] sm:$0xf] %v5325_v47  ;;  %v5101_v44 = vadd.f32 %v15552_v5, %v5088_v15  ;;  %v11827_v60 = vld [vmem:[#allocation5 + $0x13c] sm:$0xf0]  ;;  %v5473_v5 = vsel %vm15665_vm11, %v5468_v52, %v5472_v57  ;;  %v5036_v28 = vadd.f32 %v5035_v12, %v15748_v36  ;;  %v5477_v3 = vor.u32 %v5476_v51, %v5472_v57  ;;  %v5534_v2 = vld [vmem:[#allocation3 + $0x1c] sm:$0xf] }
 0x390   :  { %9604 = vmatmul.bf16.gmra.mxu3 %v11814_v63  ;;  %v5328_v7 = vshrl.u32 %v5232_v10, 16  ;;  %v5331_v22 = vshll.u32 %v5232_v10, 16  ;;  %v11830_v53 = vor.u32 %v13179_v61, %v11827_v60  ;;  %5522 = vst [vmem:[#allocation5 + $0x194] sm:$0xf] %v5473_v5  ;;  %v5799_v21 = vrot.slane %v5772_v34, 6  ;;  %v13305_v34 = vld [vmem:[#allocation9 + $0x1a8] sm:$0xff] }
 0x391   :  { %vm5113_vm14 = vcmp.ge.f32.partialorder %v5101_v44, 0.0  ;;  %v5125_v17 = vmul.f32 0.01, %v5101_v44  ;;  %v5478_v49 = vrot.slane %v5477_v3, 4  ;;  %v5802_v27 = vrot.slane %v15785_v62, 6 }
 0x392   :  { %v5074_v0 = vpop.f32.mrf.mxu1  ;;  %v5330_v39 = vrot.slane %v5328_v7, 5  ;;  %v5333_v36 = vrot.slane %v5331_v22, 6  ;;  %9736 = vmatmul.bf16.gmra.mxu1 %v11830_v53  ;;  %v13239_v45 = vld [vmem:[#allocation5 + $0x2b8] sm:$0xf0]  ;;  %v5800_v31 = vsel %vm14079_vm2, %v5798_v29, %v5799_v21  ;;  %v5801_v46 = vrot.slane %v5799_v21, 4 }
 0x393   :  { %v5137_v56 = vsel %vm5113_vm14, %v5101_v44, %v5125_v17  ;;  %v5075_v48 = vadd.f32 %v5074_v0, %v5036_v28  ;;  %v11917_v4 = vld [vmem:[#allocation5 + $0x198] sm:$0xf]  ;;  %v5483_v40 = vsel %vm15665_vm11, %v5478_v49, %v15779_v9  ;;  %v12010_v26 = vor.u32 %v13239_v45, %v12009_v41  ;;  %5824 = vst [vmem:[#allocation5 + $0x1a4] sm:$0xf] %v5800_v31  ;;  %v15798_v42 = vld [vmem:[#allocation3 + $0x20] sm:$0x3]  ;;  %v5209_v17 = vpop.permute.xlu0 %5208 }
 0x394   :  { %v5221_v59 = vmul.f32 %v5204_v13, %v5137_v56  ;;  %v5334_v24 = vor.u32 %v5333_v36, %v5330_v39  ;;  %v5416_v1 = vld [vmem:[#allocation3 + $0x1c] sm:$0xf]  ;;  %v13215_v30 = vld [vmem:[#allocation5 + $0x1f8] sm:$0xf0]  ;;  %5523 = vst [vmem:[#allocation5 + $0x1f8] sm:$0xf] %v5483_v40  ;;  %v5803_v32 = vsel %vm14079_vm2, %v5801_v46, %v5802_v27 }
 0x395   :  { %v5089_v11 = vmul.f32 %v13776_v35, %v5075_v48  ;;  %v13777_v15 = vld [vmem:[%s17211_s5 + $0x3] ss:$0 sm:$0xff]  ;;  %v5564_v47 = vrot.slane %v5562_v58, 4  ;;  %v5565_v63 = vrot.slane %v5534_v2, 5  ;;  %9581 = vmatmul.bf16.gmra.mxu2 %v12010_v26  ;;  %5825 = vst [vmem:[#allocation5 + $0x208] sm:$0xf] %v5803_v32  ;;  %v11918_v38 = vor.u32 %v13215_v30, %v11917_v4 }
 0x396   :  { %v5233_v33 = vpack.c.bf16 %v5221_v59, %v5221_v59  ;;  %v5335_v54 = vsel %vm15596_vm1, %v5326_v37, %v5334_v24  ;;  %v5336_v12 = vrot.slane %v5334_v24, 4  ;;  %v13286_v44 = vld [vmem:[#allocation9 + $0x110] sm:$0xff]  ;;  %v5568_v14 = vrot.slane %v15798_v42, 5  ;;  %v13331_v46 = vld [vmem:[#allocation9 + $0x278] sm:$0xff]  ;;  %v13277_v2 = vld [vmem:[#allocation9 + $0xc8] sm:$0xff] }
 0x397   :  { %v5102_v43 = vadd.f32 %v13777_v15, %v5089_v11  ;;  %5384 = vst [vmem:[#allocation3 + $0x28] sm:$0xf] %v5335_v54  ;;  %v5566_v50 = vsel %vm14304_vm12, %v5564_v47, %v5565_v63  ;;  %v5567_v58 = vrot.slane %v5565_v63, 4  ;;  %9695 = vmatpush.bf16.msra.mxu3 %v13286_v44  ;;  %v13306_v37 = vld [vmem:[#allocation9 + $0x1b0] sm:$0xff]  ;;  %9642 = vmatmul.bf16.gmra.mxu0 %v11918_v38  ;;  %v5486_v25 = vrot.slane %v5484_v20, 4  ;;  %v13304_v26 = vld [vmem:[#allocation9 + $0x1a0] sm:$0xff] }
 0x398   :  { %v5338_v18 = vshrl.u32 %v5233_v33, 16  ;;  %v5341_v61 = vshll.u32 %v5233_v33, 16  ;;  %5586 = vst [vmem:[#allocation5 + $0x260] sm:$0xf] %v5566_v50  ;;  %v5417_v51 = vld [vmem:[#allocation3 + $0x20] sm:$0x3]  ;;  %9757 = vmatpush.bf16.msrb.mxu0 %v13306_v37  ;;  %9855 = vmatpush.bf16.msrb.mxu1 %v13331_v46 }
 0x399   :  { %vm5114_vm3 = vcmp.ge.f32.partialorder %v5102_v43, 0.0  ;;  %v5126_v10 = vmul.f32 0.01, %v5102_v43  ;;  %v5490_v60 = vshll.u32 %v5416_v1, 16  ;;  %v13202_v28 = vld [vmem:[#allocation5 + $0x194] sm:$0xf]  ;;  %v5569_v22 = vsel %vm14304_vm12, %v5567_v58, %v5568_v14  ;;  %9663 = vmatpush.bf16.msra.mxu2 %v13277_v2 }
 0x39a   :  { %v5340_v52 = vrot.slane %v5338_v18, 5  ;;  %v5343_v57 = vrot.slane %v5341_v61, 6  ;;  %v5494_v53 = vshrl.u32 %v5416_v1, 16  ;;  %v5399_v3 = vld [vmem:[#allocation3 + $0x20] sm:$0x1]  ;;  %v5487_v20 = vor.u32 %v5486_v25, %v15779_v9  ;;  %v13285_v1 = vld [vmem:[#allocation9 + $0x108] sm:$0xff] }
 0x39b   :  { %v5138_v7 = vsel %vm5114_vm3, %v5102_v43, %v5126_v10  ;;  %v5774_v0 = vld [vmem:[#allocation3 + $0x20] sm:$0xf]  ;;  %v13204_v19 = vld [vmem:[#allocation5 + $0x1a4] sm:$0xf]  ;;  %5587 = vst [vmem:[#allocation5 + $0x2c4] sm:$0xf] %v5569_v22  ;;  %9696 = vmatpush.bf16.msra.mxu3 %v13285_v1 }
 0x39c   :  { %v15818_v5 = vor.u32 %v5343_v57, %v5340_v52  ;;  %v5222_v13 = vmul.f32 %v5209_v17, %v5138_v7  ;;  %v5492_v56 = vrot.slane %v5490_v60, 5  ;;  %v5500_v48 = vshll.u32 %v5417_v51, 16  ;;  %v11911_v21 = vld [vmem:[#allocation5 + $0x1f4] sm:$0xf0]  ;;  %5408 = vst [vmem:[#allocation5 + $0x320] sm:$0x1] %v5399_v3  ;;  %9758 = vmatpush.bf16.msrb.mxu0 %v13305_v34 }
 0x39d   :  { %v5496_v39 = vrot.slane %v5494_v53, 4  ;;  %v11914_v36 = vor.u32 %v13202_v28, %v11911_v21  ;;  %v11927_v49 = vld [vmem:[#allocation5 + $0x204] sm:$0xf0]  ;;  %v5488_v41 = vrot.slane %v5487_v20, 4  ;;  %v5504_v11 = vshrl.u32 %v5417_v51, 16  ;;  %v13330_v32 = vld [vmem:[#allocation9 + $0x270] sm:$0xff] }
 0x39e   :  { %v5345_v29 = vsel %vm15596_vm1, %v5336_v12, %v15818_v5  ;;  %v5234_v59 = vpack.c.bf16 %v5222_v13, %v5222_v13  ;;  %v5502_v8 = vrot.slane %v5500_v48, 5  ;;  %v11930_v45 = vor.u32 %v13204_v19, %v11927_v49  ;;  %v15829_v31 = vld [vmem:[#allocation3 + $0x24] sm:$0x7]  ;;  %v5388_v30 = vld [vmem:[#allocation3 + $0x34] sm:$0x1]  ;;  %v13303_v61 = vld [vmem:[#allocation9 + $0x198] sm:$0xff]  ;;  %9856 = vmatpush.bf16.msrb.mxu1 %v13330_v32 }
 0x39f   :  { %5385 = vst [vmem:[#allocation3 + $0x2c] sm:$0xf] %v5345_v29  ;;  %v5497_v35 = vor.u32 %v5496_v39, %v5492_v56  ;;  %v5804_v9 = vrot.slane %v5802_v27, 4  ;;  %v5493_v4 = vsel %vm15665_vm11, %v5488_v41, %v5492_v56  ;;  %v5805_v40 = vrot.slane %v5774_v0, 6  ;;  %v5589_v62 = vld [vmem:[#allocation3] sm:$0xe] }
 0x3a0   :  { %v5348_v24 = vshrl.u32 %v5234_v59, 16  ;;  %v5351_v33 = vshll.u32 %v5234_v59, 16  ;;  %9609 = vmatmul.bf16.gmra.mxu3 %v11914_v36  ;;  %5524 = vst [vmem:[#allocation5 + $0x25c] sm:$0xf] %v5493_v4  ;;  %v5506_v43 = vrot.slane %v5504_v11, 4  ;;  %v5808_v52 = vrot.slane %v15829_v31, 6  ;;  %9759 = vmatpush.bf16.msrb.mxu0 %v13304_v26 }
 0x3a1   :  { %v5498_v15 = vrot.slane %v5497_v35, 4  ;;  %v12017_v63 = vld [vmem:[#allocation5 + $0x260] sm:$0xf]  ;;  %v5806_v54 = vsel %vm14079_vm2, %v5804_v9, %v5805_v40  ;;  %v5807_v12 = vrot.slane %v5805_v40, 4  ;;  %v5597_v18 = vld [vmem:[#allocation3 + $0x20] sm:$0x7] }
 0x3a2   :  { %v5350_v27 = vrot.slane %v5348_v24, 5  ;;  %v5353_v47 = vrot.slane %v5351_v33, 6  ;;  %9741 = vmatmul.bf16.gmra.mxu1 %v11930_v45  ;;  %v13240_v38 = vld [vmem:[#allocation5 + $0x2c0] sm:$0xf0]  ;;  %v5507_v58 = vor.u32 %v5506_v43, %v5502_v8  ;;  %5826 = vst [vmem:[#allocation5 + $0x26c] sm:$0xf] %v5806_v54 }
 0x3a3   :  { %v5503_v50 = vsel %vm15665_vm11, %v5498_v15, %v5502_v8  ;;  %v5570_v57 = vrot.slane %v5568_v14, 4  ;;  %v5346_v10 = vrot.slane %v15818_v5, 4  ;;  %v5678_v25 = vshrl.u32 %v5597_v18, 16  ;;  %v13276_v60 = vld [vmem:[#allocation9 + $0xc0] sm:$0xff]  ;;  %v13329_v53 = vld [vmem:[#allocation9 + $0x268] sm:$0xff]  ;;  %v13302_v3 = vld [vmem:[#allocation9 + $0x190] sm:$0xff] }
 0x3a4   :  { %v5354_v37 = vor.u32 %v5353_v47, %v5350_v27  ;;  %v5356_v51 = vrot.slane %v5350_v27, 4  ;;  %5525 = vst [vmem:[#allocation5 + $0x2c0] sm:$0xf] %v5503_v50  ;;  %v12018_v17 = vor.u32 %v13240_v38, %v12017_v63  ;;  %v5508_v28 = vrot.slane %v5507_v58, 4  ;;  %9664 = vmatpush.bf16.msra.mxu2 %v13276_v60  ;;  %v5590_v0 = vld [vmem:[#allocation3 + $0x4] sm:$0xf]  ;;  %9760 = vmatpush.bf16.msrb.mxu0 %v13303_v61 }
 0x3a5   :  { %v5809_v7 = vsel %vm14079_vm2, %v5807_v12, %v5808_v52  ;;  %5588 = vst [vmem:[#allocation5 + $0x328] sm:$0x1] %v5570_v57  ;;  %v5681_v22 = vshll.u32 %v5597_v18, 16  ;;  %v5680_v5 = vrot.slane %v5678_v25, 5  ;;  %v5599_v34 = vshrl.u32 %v5589_v62, 16  ;;  %v13328_v48 = vld [vmem:[#allocation9 + $0x260] sm:$0xff]  ;;  %9857 = vmatpush.bf16.msrb.mxu1 %v13329_v53 }
 0x3a6   :  { %v5355_v42 = vsel %vm15596_vm1, %v5346_v10, %v5354_v37  ;;  %v5389_v14 = vsel %vm15839_vm10, %v5356_v51, %v5388_v30  ;;  %5827 = vst [vmem:[#allocation5 + $0x2d0] sm:$0xf] %v5809_v7  ;;  %v5591_v19 = vld [vmem:[#allocation3 + $0x8] sm:$0xf]  ;;  %v5602_v20 = vshll.u32 %v5589_v62, 16  ;;  %v5608_v21 = vshrl.u32 %v5590_v0, 16 }
 0x3a7   :  { %5386 = vst [vmem:[#allocation3 + $0x30] sm:$0xf] %v5355_v42  ;;  %v5683_v13 = vrot.slane %v5681_v22, 6  ;;  %v15855_v56 = vld [vmem:[#allocation3 + $0xc] sm:$0xf]  ;;  %v5601_v29 = vrot.slane %v5599_v34, 5  ;;  %9647 = vmatmul.bf16.gmra.mxu0 %v12018_v17 }
 0x3a8   :  { %5390 = vst [vmem:[#allocation3 + $0x34] sm:$0x1] %v5389_v14  ;;  %v5604_v36 = vrot.slane %v5602_v20, 6  ;;  %v5611_v59 = vshll.u32 %v5590_v0, 16  ;;  %v5618_v49 = vshrl.u32 %v5591_v19, 16  ;;  %v13284_v41 = vld [vmem:[#allocation9 + $0x100] sm:$0xff]  ;;  %9761 = vmatpush.bf16.msrb.mxu0 %v13302_v3 }
 0x3a9   :  { %5526 = vst [vmem:[#allocation5 + $0x324] sm:$0x1] %v5508_v28  ;;  %v15857_v39 = vor.u32 %v5683_v13, %v5680_v5  ;;  %v13227_v8 = vld [vmem:[#allocation5 + $0x25c] sm:$0xf]  ;;  %v5610_v45 = vrot.slane %v5608_v21, 5  ;;  %v5621_v35 = vshll.u32 %v5591_v19, 16  ;;  %9697 = vmatpush.bf16.msra.mxu3 %v13284_v41  ;;  %9858 = vmatpush.bf16.msrb.mxu1 %v13328_v48 }
 0x3aa   :  { %v15859_v11 = vld [vmem:[#allocation3 + $0x20] sm:$0x7]  ;;  %v5605_v46 = vor.u32 %v5604_v36, %v5601_v29  ;;  %v5613_v2 = vrot.slane %v5611_v59, 6  ;;  %v5620_v24 = vrot.slane %v5618_v49, 5  ;;  %v13301_v33 = vld [vmem:[#allocation9 + $0x188] sm:$0xff]  ;;  %v5810_v1 = vrot.slane %v5808_v52, 4 }
 0x3ab   :  { %v12011_v31 = vld [vmem:[#allocation5 + $0x2bc] sm:$0xf0]  ;;  %v5686_v9 = vrot.slane %v15857_v39, 4  ;;  %v13229_v4 = vld [vmem:[#allocation5 + $0x26c] sm:$0xf]  ;;  %v5623_v40 = vrot.slane %v5621_v35, 6 }
 0x3ac   :  { %v5746_v26 = vrot.slane %v15859_v11, 6  ;;  %v13327_v30 = vld [vmem:[#allocation9 + $0x258] sm:$0xff]  ;;  %v12014_v15 = vor.u32 %v13227_v8, %v12011_v31  ;;  %v5606_v32 = vrot.slane %v5605_v46, 4  ;;  %v5614_v62 = vor.u32 %v5613_v2, %v5610_v45  ;;  %v13300_v27 = vld [vmem:[#allocation9 + $0x180] sm:$0xff]  ;;  %5828 = vst [vmem:[#allocation5 + $0x334] sm:$0x1] %v5810_v1  ;;  %9762 = vmatpush.bf16.msrb.mxu0 %v13301_v33 }
 0x3ad   :  { %v12027_v43 = vld [vmem:[#allocation5 + $0x2cc] sm:$0xf0]  ;;  %5704 = vst [vmem:[#allocation5 + $0x32c] sm:$0x1] %v5686_v9  ;;  %v5858_v47 = vshrl.u32 %v15855_v56, 16  ;;  %v15864_v54 = vor.u32 %v5623_v40, %v5620_v24  ;;  %v5861_v61 = vshll.u32 %v15855_v56, 16  ;;  %9859 = vmatpush.bf16.msrb.mxu1 %v13327_v30 }
 0x3ae   :  { %v12030_v63 = vor.u32 %v13229_v4, %v12027_v43  ;;  %v5748_v12 = vrot.slane %v5746_v26, 4  ;;  %v5829_v18 = vld [vmem:[#allocation3 + $0x4] sm:$0xc]  ;;  %v5615_v44 = vsel %vm15596_vm1, %v5606_v32, %v5614_v62  ;;  %v5616_v38 = vrot.slane %v5614_v62, 4  ;;  %v5830_v50 = vld [vmem:[#allocation3 + $0x8] sm:$0xf] }
 0x3af   :  { %v5839_v58 = vshrl.u32 %v5829_v18, 16  ;;  %v5842_v52 = vshll.u32 %v5829_v18, 16  ;;  %v13315_v57 = vld [vmem:[#allocation9 + $0x1f8] sm:$0xff]  ;;  %5696 = vst [vmem:[#allocation5 + $0xc] sm:$0xf] %v5615_v44  ;;  %v5848_v37 = vshrl.u32 %v5830_v50, 16 }
 0x3b0   :  { %v15871_v10 = vld [vmem:[#allocation5 + $0x320] sm:$0x11]  ;;  %v5851_v51 = vshll.u32 %v5830_v50, 16  ;;  %9614 = vmatmul.bf16.gmra.mxu3 %v12014_v15  ;;  %v5625_v60 = vsel %vm15596_vm1, %v5616_v38, %v15864_v54  ;;  %5766 = vst [vmem:[#allocation5 + $0x330] sm:$0x1] %v5748_v12  ;;  %v13326_v17 = vld [vmem:[#allocation9 + $0x250] sm:$0xff]  ;;  %9789 = vmatpush.bf16.msrb.mxu2 %v13315_v57 }
 0x3b1   :  { %v8083_v25 = vunpack.c.l.b16 %v15871_v10  ;;  %v5841_v28 = vrot.slane %v5839_v58, 6  ;;  %v5705_v7 = vld [vmem:[#allocation3] sm:$0xc]  ;;  %5697 = vst [vmem:[#allocation5 + $0x70] sm:$0xf] %v5625_v60  ;;  %v5844_v22 = vrot.slane %v5842_v52, 7  ;;  %9763 = vmatpush.bf16.msrb.mxu0 %v13300_v27  ;;  %9860 = vmatpush.bf16.msrb.mxu1 %v13326_v17  ;;  %v8084_v38 = vunpack.c.h.b16 %v15871_v10 }
 0x3b2   :  { %v5850_v53 = vrot.slane %v5848_v37, 6  ;;  %v5853_v3 = vrot.slane %v5851_v51, 7  ;;  %v5860_v42 = vrot.slane %v5858_v47, 6  ;;  %9746 = vmatmul.bf16.gmra.mxu1 %v12030_v63  ;;  %v5863_v5 = vrot.slane %v5861_v61, 7  ;;  %v5706_v0 = vld [vmem:[#allocation3 + $0x4] sm:$0xf] }
 0x3b3   :  { %v8208_v14 = vpack.c.b16 %v8083_v25, %v8083_v25  ;;  %v15877_v34 = vld [vmem:[#allocation3 + $0x8] sm:$0xf]  ;;  %v11696_v13 = vrot.slane %v5705_v7, 10  ;;  %v5845_v20 = vor.u32 %v5844_v22, %v5841_v28  ;;  %v13325_v48 = vld [vmem:[#allocation9 + $0x248] sm:$0xff]  ;;  %v5725_v29 = vrot.slane %v5706_v0, 6  ;;  %v13314_v45 = vld [vmem:[#allocation9 + $0x1f0] sm:$0xff] }
 0x3b4   :  { %v15879_v19 = vld [vmem:[#allocation5 + $0x328] sm:$0x11]  ;;  %v5854_v56 = vor.u32 %v5853_v3, %v5850_v53  ;;  %v5728_v21 = vrot.slane %v15877_v34, 6  ;;  %v13323_v36 = vld [vmem:[#allocation9 + $0x238] sm:$0xff]  ;;  %v15883_v49 = vor.u32 %v5863_v5, %v5860_v42  ;;  %v5593_v8 = vld [vmem:[#allocation3 + $0x10] sm:$0xf]  ;;  %9790 = vmatpush.bf16.msrb.mxu2 %v13314_v45  ;;  %v8209_v42 = vpack.c.b16 %v8084_v38, %v8084_v38 }
 0x3b5   :  { %9586 = vmatmul.bf16.gmra.mxu2 %v8208_v14  ;;  %v8085_v59 = vunpack.c.l.b16 %v15879_v19  ;;  %v5592_v41 = vld [vmem:[#allocation3 + $0xc] sm:$0xf]  ;;  %v5846_v35 = vrot.slane %v5845_v20, 4  ;;  %v5726_v9 = vsel %vm14079_vm2, %v11696_v13, %v5725_v29  ;;  %v5727_v46 = vrot.slane %v5725_v29, 4  ;;  %9822 = vmatpush.bf16.msrb.mxu3 %v13323_v36  ;;  %v13322_v2 = vld [vmem:[#allocation9 + $0x230] sm:$0xff]  ;;  %v13324_v32 = vld [vmem:[#allocation9 + $0x240] sm:$0xff] }
 0x3b6   :  { %v5856_v31 = vrot.slane %v5854_v56, 4  ;;  %5758 = vst [vmem:[#allocation5 + $0x10] sm:$0xf] %v5726_v9  ;;  %v5628_v33 = vshrl.u32 %v5592_v41, 16  ;;  %v5631_v4 = vshll.u32 %v5592_v41, 16  ;;  %v5638_v62 = vshrl.u32 %v5593_v8, 16  ;;  %9861 = vmatpush.bf16.msrb.mxu1 %v13325_v48 }
 0x3b7   :  { %v8210_v24 = vpack.c.b16 %v8085_v59, %v8085_v59  ;;  %v15887_v40 = vld [vmem:[#allocation5 + $0x330] sm:$0x11]  ;;  %v5855_v30 = vsel %vm14331_vm15, %v5846_v35, %v5854_v56  ;;  %v5729_v43 = vsel %vm14079_vm2, %v5727_v46, %v5728_v21  ;;  %v6116_v27 = vld [vmem:[#allocation3 + $0x8] sm:$0xf]  ;;  %v6117_v12 = vld [vmem:[#allocation3 + $0xc] sm:$0xf] }
 0x3b8   :  { %v5865_v15 = vsel %vm14331_vm15, %v5856_v31, %v15883_v49  ;;  %5936 = vst [vmem:[#allocation5 + $0x18] sm:$0xf] %v5855_v30  ;;  %v5630_v47 = vrot.slane %v5628_v33, 5  ;;  %v5633_v63 = vrot.slane %v5631_v4, 6  ;;  %v5640_v18 = vrot.slane %v5638_v62, 5 }
 0x3b9   :  { %9652 = vmatmul.bf16.gmra.mxu0 %v8210_v24  ;;  %5937 = vst [vmem:[#allocation5 + $0x7c] sm:$0xf] %v5865_v15  ;;  %v5641_v61 = vshll.u32 %v5593_v8, 16  ;;  %9823 = vmatpush.bf16.msrb.mxu3 %v13322_v2  ;;  %v5832_v44 = vld [vmem:[#allocation3 + $0x10] sm:$0xf]  ;;  %v5626_v50 = vrot.slane %v15864_v54, 4  ;;  %v8088_v17 = vunpack.c.h.b16 %v15887_v40 }
 0x3ba   :  { %5759 = vst [vmem:[#allocation5 + $0x74] sm:$0xf] %v5729_v43  ;;  %v5634_v58 = vor.u32 %v5633_v63, %v5630_v47  ;;  %v5833_v52 = vld [vmem:[#allocation3 + $0x14] sm:$0xf]  ;;  %v5868_v57 = vshrl.u32 %v5832_v44, 16  ;;  %v5871_v51 = vshll.u32 %v5832_v44, 16  ;;  %9862 = vmatpush.bf16.msrb.mxu1 %v13324_v32 }
 0x3bb   :  { %v5643_v37 = vrot.slane %v5641_v61, 6  ;;  %6125 = vst [vmem:[#allocation5 + $0x24] sm:$0xf] %v6116_v27  ;;  %v5878_v25 = vshrl.u32 %v5833_v52, 16  ;;  %v5881_v60 = vshll.u32 %v5833_v52, 16  ;;  %v5730_v0 = vrot.slane %v5728_v21, 4 }
 0x3bc   :  { %v5635_v28 = vsel %vm15596_vm1, %v5626_v50, %v5634_v58  ;;  %6126 = vst [vmem:[#allocation5 + $0x88] sm:$0xf] %v6117_v12  ;;  %v5870_v7 = vrot.slane %v5868_v57, 6  ;;  %v5708_v10 = vld [vmem:[#allocation3 + $0xc] sm:$0xf]  ;;  %v5636_v22 = vrot.slane %v5634_v58, 4  ;;  %v8213_v36 = vpack.c.b16 %v8088_v17, %v8088_v17 }
 0x3bd   :  { %v15901_v53 = vor.u32 %v5643_v37, %v5640_v18  ;;  %5698 = vst [vmem:[#allocation5 + $0xd4] sm:$0xf] %v5635_v28  ;;  %v5873_v54 = vrot.slane %v5871_v51, 7  ;;  %v5880_v3 = vrot.slane %v5878_v25, 6  ;;  %v5883_v14 = vrot.slane %v5881_v60, 7  ;;  %v13313_v8 = vld [vmem:[#allocation9 + $0x1e8] sm:$0xff] }
 0x3be   :  { %v15903_v5 = vld [vmem:[#allocation3 + $0x10] sm:$0xf]  ;;  %v5731_v34 = vrot.slane %v5708_v10, 6  ;;  %v11719_v13 = vld [vmem:[#allocation5 + $0x6c] sm:$0xf0]  ;;  %v5866_v56 = vrot.slane %v15883_v49, 4  ;;  %9791 = vmatpush.bf16.msrb.mxu2 %v13313_v8 }
 0x3bf   :  { %v5645_v20 = vsel %vm15596_vm1, %v5636_v22, %v15901_v53  ;;  %v5874_v48 = vor.u32 %v5873_v54, %v5870_v7  ;;  %v5734_v29 = vrot.slane %v15903_v5, 6  ;;  %v15910_v59 = vor.u32 %v5883_v14, %v5880_v3  ;;  %v5594_v45 = vld [vmem:[#allocation3 + $0x14] sm:$0xf]  ;;  %v13153_v35 = vld [vmem:[#allocation5 + $0xc] sm:$0xf] }
 0x3c0   :  { %9619 = vmatmul.bf16.gmra.mxu3 %v8209_v42  ;;  %5699 = vst [vmem:[#allocation5 + $0x138] sm:$0xf] %v5645_v20  ;;  %v5732_v41 = vsel %vm14079_vm2, %v5730_v0, %v5731_v34  ;;  %v5733_v21 = vrot.slane %v5731_v34, 4  ;;  %v13321_v49 = vld [vmem:[#allocation9 + $0x228] sm:$0xff]  ;;  %v11722_v46 = vor.u32 %v13153_v35, %v11719_v13  ;;  %v5648_v4 = vshrl.u32 %v5594_v45, 16  ;;  %v13312_v44 = vld [vmem:[#allocation9 + $0x1e0] sm:$0xff] }
 0x3c1   :  { %v5875_v31 = vsel %vm14331_vm15, %v5866_v56, %v5874_v48  ;;  %v5876_v9 = vrot.slane %v5874_v48, 4  ;;  %5760 = vst [vmem:[#allocation5 + $0xd8] sm:$0xf] %v5732_v41  ;;  %v5595_v24 = vld [vmem:[#allocation3 + $0x18] sm:$0xf]  ;;  %9824 = vmatpush.bf16.msrb.mxu3 %v13321_v49  ;;  %v5651_v30 = vshll.u32 %v5594_v45, 16 }
 0x3c2   :  { %9751 = vmatmul.bf16.gmra.mxu1 %v8213_v36  ;;  %5938 = vst [vmem:[#allocation5 + $0xe0] sm:$0xf] %v5875_v31  ;;  %v5735_v2 = vsel %vm14079_vm2, %v5733_v21, %v5734_v29  ;;  %v11733_v15 = vld [vmem:[#allocation5 + $0x18] sm:$0xf]  ;;  %v13167_v43 = vld [vmem:[#allocation5 + $0x78] sm:$0xf0]  ;;  %9792 = vmatpush.bf16.msrb.mxu2 %v13312_v44 }
 0x3c3   :  { %v5885_v33 = vsel %vm14331_vm15, %v5876_v9, %v15910_v59  ;;  %5761 = vst [vmem:[#allocation5 + $0x13c] sm:$0xf] %v5735_v2  ;;  %v5658_v32 = vshrl.u32 %v5595_v24, 16  ;;  %v5661_v62 = vshll.u32 %v5595_v24, 16  ;;  %v5650_v27 = vrot.slane %v5648_v4, 5  ;;  %v13320_v10 = vld [vmem:[#allocation9 + $0x220] sm:$0xff] }
 0x3c4   :  { %5939 = vst [vmem:[#allocation5 + $0x144] sm:$0xf] %v5885_v33  ;;  %v5653_v47 = vrot.slane %v5651_v30, 6  ;;  %v6118_v63 = vld [vmem:[#allocation3 + $0x10] sm:$0xf]  ;;  %v11734_v38 = vor.u32 %v13167_v43, %v11733_v15  ;;  %v5646_v50 = vrot.slane %v15901_v53, 4 }
 0x3c5   :  { %9665 = vmatmul.bf16.vlgmr.msra.gmra.mxu2 %v11722_v46  ;;  %v6119_v12 = vld [vmem:[#allocation3 + $0x14] sm:$0xf]  ;;  %v5660_v18 = vrot.slane %v5658_v32, 5  ;;  %v5663_v61 = vrot.slane %v5661_v62, 6  ;;  %6127 = vst [vmem:[#allocation5 + $0xec] sm:$0xf] %v6118_v63  ;;  %9825 = vmatpush.bf16.msrb.mxu3 %v13320_v10 }
 0x3c6   :  { %v5654_v58 = vor.u32 %v5653_v47, %v5650_v27  ;;  %6128 = vst [vmem:[#allocation5 + $0x150] sm:$0xf] %v6119_v12  ;;  %v5834_v52 = vld [vmem:[#allocation3 + $0x18] sm:$0xf]  ;;  %v5835_v37 = vld [vmem:[#allocation3 + $0x1c] sm:$0xf] }
 0x3c7   :  { %v15924_v57 = vor.u32 %v5663_v61, %v5660_v18  ;;  %v5888_v51 = vshrl.u32 %v5834_v52, 16  ;;  %v5891_v25 = vshll.u32 %v5834_v52, 16  ;;  %v5898_v28 = vshrl.u32 %v5835_v37, 16  ;;  %v11725_v22 = vld [vmem:[#allocation5 + $0x10] sm:$0xf]  ;;  %v13319_v52 = vld [vmem:[#allocation9 + $0x218] sm:$0xff] }
 0x3c8   :  { %v5655_v60 = vsel %vm15596_vm1, %v5646_v50, %v5654_v58  ;;  %v5656_v17 = vrot.slane %v5654_v58, 4  ;;  %v5901_v7 = vshll.u32 %v5835_v37, 16  ;;  %v13166_v54 = vld [vmem:[#allocation5 + $0x70] sm:$0xf0]  ;;  %v5886_v14 = vrot.slane %v15910_v59, 4  ;;  %v13311_v58 = vld [vmem:[#allocation9 + $0x1d8] sm:$0xff] }
 0x3c9   :  { %9764 = vmatmul.bf16.vlgmr.msrb.gmra.mxu0 %v11734_v38  ;;  %5700 = vst [vmem:[#allocation5 + $0x19c] sm:$0xf] %v5655_v60  ;;  %v5890_v53 = vrot.slane %v5888_v51, 6  ;;  %v5893_v3 = vrot.slane %v5891_v25, 7  ;;  %v5900_v0 = vrot.slane %v5898_v28, 6  ;;  %v5736_v48 = vrot.slane %v5734_v29, 4  ;;  %9793 = vmatpush.bf16.msrb.mxu2 %v13311_v58 }
 0x3ca   :  { %v5665_v42 = vsel %vm15596_vm1, %v5656_v17, %v15924_v57  ;;  %v5903_v34 = vrot.slane %v5901_v7, 7  ;;  %v5710_v13 = vld [vmem:[#allocation3 + $0x14] sm:$0xf]  ;;  %v5711_v56 = vld [vmem:[#allocation3 + $0x18] sm:$0xf]  ;;  %v11726_v41 = vor.u32 %v13166_v54, %v11725_v22  ;;  %v5666_v12 = vrot.slane %v15924_v57, 4  ;;  %9826 = vmatpush.bf16.msrb.mxu3 %v13319_v52 }
 0x3cb   :  { %5701 = vst [vmem:[#allocation5 + $0x200] sm:$0xf] %v5665_v42  ;;  %v5894_v20 = vor.u32 %v5893_v3, %v5890_v53  ;;  %v5737_v36 = vrot.slane %v5710_v13, 6  ;;  %v11743_v21 = vld [vmem:[#allocation5 + $0x84] sm:$0xf0]  ;;  %v5740_v45 = vrot.slane %v5711_v56, 6 }
 0x3cc   :  { %v5904_v8 = vor.u32 %v5903_v34, %v5900_v0  ;;  %v5596_v35 = vld [vmem:[#allocation3 + $0x1c] sm:$0xf]  ;;  %v13156_v31 = vld [vmem:[#allocation5 + $0x24] sm:$0xf]  ;;  %v13178_v2 = vld [vmem:[#allocation5 + $0xd4] sm:$0xf] }
 0x3cd   :  { %v5895_v59 = vsel %vm14331_vm15, %v5886_v14, %v5894_v20  ;;  %v5896_v9 = vrot.slane %v5894_v20, 4  ;;  %v5738_v49 = vsel %vm14079_vm2, %v5736_v48, %v5737_v36  ;;  %v5739_v46 = vrot.slane %v5737_v36, 4  ;;  %v11819_v24 = vld [vmem:[#allocation5 + $0x134] sm:$0xf0]  ;;  %v6120_v15 = vld [vmem:[#allocation3 + $0x18] sm:$0xf] }
 0x3ce   :  { %5940 = vst [vmem:[#allocation5 + $0x1a8] sm:$0xf] %v5895_v59  ;;  %v5668_v5 = vshrl.u32 %v5596_v35, 16  ;;  %v5671_v29 = vshll.u32 %v5596_v35, 16  ;;  %v11746_v33 = vor.u32 %v13156_v31, %v11743_v21  ;;  %v5836_v43 = vld [vmem:[#allocation3 + $0x20] sm:$0xf]  ;;  %v11822_v47 = vor.u32 %v13178_v2, %v11819_v24 }
 0x3cf   :  { %v5905_v4 = vsel %vm14331_vm15, %v5896_v9, %v5904_v8  ;;  %v5741_v30 = vsel %vm14079_vm2, %v5739_v46, %v5740_v45  ;;  %5762 = vst [vmem:[#allocation5 + $0x1a0] sm:$0xf] %v5738_v49  ;;  %v6121_v27 = vld [vmem:[#allocation3 + $0x1c] sm:$0xf]  ;;  %v13192_v63 = vld [vmem:[#allocation5 + $0x140] sm:$0xf0] }
 0x3d0   :  { %9698 = vmatmul.bf16.vlgmr.msra.gmra.mxu3 %v11726_v41  ;;  %5941 = vst [vmem:[#allocation5 + $0x20c] sm:$0xf] %v5905_v4  ;;  %v5670_v32 = vrot.slane %v5668_v5, 5  ;;  %v5673_v62 = vrot.slane %v5671_v29, 6  ;;  %v5908_v18 = vshrl.u32 %v5836_v43, 16  ;;  %v5911_v61 = vshll.u32 %v5836_v43, 16 }
 0x3d1   :  { %5763 = vst [vmem:[#allocation5 + $0x204] sm:$0xf] %v5741_v30  ;;  %v5837_v38 = vld [vmem:[#allocation3 + $0x24] sm:$0xf]  ;;  %v5712_v50 = vld [vmem:[#allocation3 + $0x1c] sm:$0xf] }
 0x3d2   :  { %9863 = vmatmul.bf16.vlgmr.msrb.gmra.mxu1 %v11746_v33  ;;  %v5674_v44 = vor.u32 %v5673_v62, %v5670_v32  ;;  %6129 = vst [vmem:[#allocation5 + $0x1b4] sm:$0xf] %v6120_v15  ;;  %v5910_v37 = vrot.slane %v5908_v18, 6  ;;  %v5913_v51 = vrot.slane %v5911_v61, 7  ;;  %v11833_v25 = vld [vmem:[#allocation5 + $0xe0] sm:$0xf] }
 0x3d3   :  { %6130 = vst [vmem:[#allocation5 + $0x218] sm:$0xf] %v6121_v27  ;;  %v5918_v28 = vshrl.u32 %v5837_v38, 16  ;;  %v5921_v7 = vshll.u32 %v5837_v38, 16  ;;  %v5906_v57 = vrot.slane %v5904_v8, 4  ;;  %v5742_v22 = vrot.slane %v5740_v45, 4 }
 0x3d4   :  { %v5675_v60 = vsel %vm15596_vm1, %v5666_v12, %v5674_v44  ;;  %v5676_v17 = vrot.slane %v5674_v44, 4  ;;  %v5914_v10 = vor.u32 %v5913_v51, %v5910_v37  ;;  %v5743_v54 = vrot.slane %v5712_v50, 6  ;;  %v13191_v20 = vld [vmem:[#allocation5 + $0x138] sm:$0xf0]  ;;  %v6122_v41 = vld [vmem:[#allocation3 + $0x20] sm:$0xf] }
 0x3d5   :  { %9670 = vmatmul.bf16.gmra.mxu2 %v11822_v47  ;;  %5702 = vst [vmem:[#allocation5 + $0x264] sm:$0xf] %v5675_v60  ;;  %v11834_v53 = vor.u32 %v13192_v63, %v11833_v25  ;;  %v5920_v42 = vrot.slane %v5918_v28, 6  ;;  %v5923_v14 = vrot.slane %v5921_v7, 7  ;;  %v13339_v36 = vld [vmem:[#allocation9 + $0x2b8] sm:$0xff]  ;;  %v13310_v43 = vld [vmem:[#allocation9 + $0x1d0] sm:$0xff] }
 0x3d6   :  { %v5685_v3 = vsel %vm15596_vm1, %v5676_v17, %v15857_v39  ;;  %v5915_v0 = vsel %vm14331_vm15, %v5906_v57, %v5914_v10  ;;  %v5744_v34 = vsel %vm14079_vm2, %v5742_v22, %v5743_v54  ;;  %v5745_v13 = vrot.slane %v5743_v54, 4  ;;  %v15956_v21 = vld [vmem:[#allocation3 + $0x24] sm:$0xf]  ;;  %v6330_v8 = vld [vmem:[#allocation3 + $0xc] sm:$0xe]  ;;  %9888 = vmatpush.bf16.msra.mxu0 %v13339_v36  ;;  %9794 = vmatpush.bf16.msrb.mxu2 %v13310_v43  ;;  %v13337_v60 = vld [vmem:[#allocation9 + $0x2a8] sm:$0xff] }
 0x3d7   :  { %5703 = vst [vmem:[#allocation5 + $0x2c8] sm:$0xf] %v5685_v3  ;;  %v5916_v56 = vrot.slane %v5914_v10, 4  ;;  %v5924_v48 = vor.u32 %v5923_v14, %v5920_v42  ;;  %v11825_v45 = vld [vmem:[#allocation5 + $0xd8] sm:$0xf]  ;;  %v5986_v9 = vrot.slane %v15956_v21, 7 }
 0x3d8   :  { %5942 = vst [vmem:[#allocation5 + $0x270] sm:$0xf] %v5915_v0  ;;  %v5747_v39 = vsel %vm14079_vm2, %v5745_v13, %v5746_v26  ;;  %v6123_v31 = vld [vmem:[#allocation3 + $0x24] sm:$0xf]  ;;  %v5946_v49 = vld [vmem:[#allocation3 + $0x8] sm:$0xf]  ;;  %v11826_v24 = vor.u32 %v13191_v20, %v11825_v45 }
 0x3d9   :  { %9769 = vmatmul.bf16.gmra.mxu0 %v11834_v53  ;;  %5764 = vst [vmem:[#allocation5 + $0x268] sm:$0xf] %v5744_v34  ;;  %v5925_v35 = vsel %vm14331_vm15, %v5916_v56, %v5924_v48  ;;  %v5926_v59 = vrot.slane %v5924_v48, 4  ;;  %v5945_v11 = vld [vmem:[#allocation3 + $0x4] sm:$0x8]  ;;  %v5988_v2 = vrot.slane %v5986_v9, 4 }
 0x3da   :  { %5765 = vst [vmem:[#allocation5 + $0x2cc] sm:$0xf] %v5747_v39  ;;  %v13181_v46 = vld [vmem:[#allocation5 + $0xec] sm:$0xf]  ;;  %v11843_v26 = vld [vmem:[#allocation5 + $0x14c] sm:$0xf0] }
 0x3db   :  { %5943 = vst [vmem:[#allocation5 + $0x2d4] sm:$0xf] %v5925_v35  ;;  %v5947_v5 = vld [vmem:[#allocation3 + $0xc] sm:$0xf]  ;;  %v11698_v29 = vrot.slane %v5945_v11, 11  ;;  %v5965_v33 = vrot.slane %v5946_v49, 7  ;;  %v11846_v15 = vor.u32 %v13181_v46, %v11843_v26 }
 0x3dc   :  { %6131 = vst [vmem:[#allocation5 + $0x27c] sm:$0xf] %v6122_v41  ;;  %v11919_v4 = vld [vmem:[#allocation5 + $0x1fc] sm:$0xf0]  ;;  %v5968_v30 = vrot.slane %v5947_v5, 7  ;;  %v13318_v32 = vld [vmem:[#allocation9 + $0x210] sm:$0xff] }
 0x3dd   :  { %6132 = vst [vmem:[#allocation5 + $0x2e0] sm:$0xf] %v6123_v31  ;;  %v5966_v27 = vsel %vm14039_vm7, %v11698_v29, %v5965_v33  ;;  %v6340_v47 = vshrl.u32 %v6330_v8, 16  ;;  %v13203_v63 = vld [vmem:[#allocation5 + $0x19c] sm:$0xf]  ;;  %v5967_v12 = vrot.slane %v5965_v33, 4  ;;  %9827 = vmatpush.bf16.msrb.mxu3 %v13318_v32 }
 0x3de   :  { %5944 = vst [vmem:[#allocation5 + $0x338] sm:$0x1] %v5926_v59  ;;  %v11922_v18 = vor.u32 %v13203_v63, %v11919_v4  ;;  %v6134_v61 = vld [vmem:[#allocation3 + $0xc] sm:$0xf]  ;;  %v6135_v44 = vld [vmem:[#allocation3 + $0x10] sm:$0xf] }
 0x3df   :  { %6006 = vst [vmem:[#allocation5 + $0x33c] sm:$0x1] %v5988_v2  ;;  %v6343_v38 = vshll.u32 %v6330_v8, 16  ;;  %v5969_v50 = vsel %vm14039_vm7, %v5967_v12, %v5968_v30  ;;  %v6007_v58 = vld [vmem:[#allocation3 + $0x4] sm:$0x8]  ;;  %v6342_v25 = vrot.slane %v6340_v47, 5 }
 0x3e0   :  { %9703 = vmatmul.bf16.gmra.mxu3 %v11826_v24  ;;  %5998 = vst [vmem:[#allocation5 + $0x1c] sm:$0xf] %v5966_v27  ;;  %v11933_v52 = vld [vmem:[#allocation5 + $0x1a8] sm:$0xf]  ;;  %v13217_v37 = vld [vmem:[#allocation5 + $0x208] sm:$0xf0] }
 0x3e1   :  { %6143 = vst [vmem:[#allocation5 + $0x28] sm:$0xf] %v6134_v61  ;;  %v13338_v51 = vld [vmem:[#allocation9 + $0x2b0] sm:$0xff]  ;;  %v13363_v17 = vld [vmem:[#allocation9 + $0x378] sm:$0xff]  ;;  %v13309_v28 = vld [vmem:[#allocation9 + $0x1c8] sm:$0xff]  ;;  %v6018_v10 = vshrl.u32 %v6007_v58, 16  ;;  %v11934_v53 = vor.u32 %v13217_v37, %v11933_v52 }
 0x3e2   :  { %9868 = vmatmul.bf16.gmra.mxu1 %v11846_v15  ;;  %5999 = vst [vmem:[#allocation5 + $0x80] sm:$0xf] %v5969_v50  ;;  %9889 = vmatpush.bf16.msra.mxu0 %v13338_v51  ;;  %v6008_v7 = vld [vmem:[#allocation3 + $0x8] sm:$0xf]  ;;  %v6009_v57 = vld [vmem:[#allocation3 + $0xc] sm:$0xf] }
 0x3e3   :  { %6144 = vst [vmem:[#allocation5 + $0x8c] sm:$0xf] %v6135_v44  ;;  %v6345_v22 = vrot.slane %v6343_v38, 6  ;;  %v6332_v54 = vld [vmem:[#allocation3 + $0x14] sm:$0xf]  ;;  %9987 = vmatpush.bf16.msra.mxu1 %v13363_v17  ;;  %9795 = vmatpush.bf16.msrb.mxu2 %v13309_v28  ;;  %v6023_v3 = vshrl.u32 %v6008_v7, 16 }
 0x3e4   :  { %v6032_v42 = vshrl.u32 %v6009_v57, 16  ;;  %v6026_v14 = vshll.u32 %v6008_v7, 16  ;;  %v6035_v0 = vshll.u32 %v6009_v57, 16  ;;  %v5948_v34 = vld [vmem:[#allocation3 + $0x10] sm:$0xf]  ;;  %v5970_v13 = vrot.slane %v5968_v30, 4 }
 0x3e5   :  { %9675 = vmatmul.bf16.gmra.mxu2 %v11922_v18  ;;  %v6346_v20 = vor.u32 %v6345_v22, %v6342_v25  ;;  %v15967_v56 = vpop.f32.mrf.mxu2  ;;  %v11699_v48 = vrot.slane %v6018_v10, 11  ;;  %v6025_v36 = vrot.slane %v6023_v3, 7  ;;  %v5949_v41 = vld [vmem:[#allocation3 + $0x14] sm:$0xf]  ;;  %v5971_v8 = vrot.slane %v5948_v34, 7  ;;  %v13362_v4 = vld [vmem:[#allocation9 + $0x370] sm:$0xff] }
 0x3e6   :  { %v15969_v39 = vrot.slane %v6032_v42, 7  ;;  %9890 = vmatpush.bf16.msra.mxu0 %v13337_v60  ;;  %v5974_v45 = vrot.slane %v5949_v41, 7  ;;  %v6331_v35 = vld [vmem:[#allocation3 + $0x10] sm:$0xf]  ;;  %v6359_v59 = vshrl.u32 %v6332_v54, 16  ;;  %v6362_v11 = vshll.u32 %v6332_v54, 16 }
 0x3e7   :  { %v15971_v31 = vrot.slane %v6346_v20, 4  ;;  %v11925_v49 = vld [vmem:[#allocation5 + $0x1a0] sm:$0xf]  ;;  %v13216_v46 = vld [vmem:[#allocation5 + $0x200] sm:$0xf0]  ;;  %v6028_v2 = vor.u32 %v6026_v14, %v6025_v36  ;;  %v6030_v24 = vrot.slane %v6025_v36, 4  ;;  %v5972_v29 = vsel %vm14039_vm7, %v5970_v13, %v5971_v8  ;;  %9988 = vmatpush.bf16.msra.mxu1 %v13362_v4 }
 0x3e8   :  { %v11943_v26 = vld [vmem:[#allocation5 + $0x214] sm:$0xf0]  ;;  %v6037_v5 = vor.u32 %v6035_v0, %v15969_v39  ;;  %v13336_v33 = vld [vmem:[#allocation9 + $0x2a0] sm:$0xff]  ;;  %v13317_v30 = vld [vmem:[#allocation9 + $0x208] sm:$0xff]  ;;  %v5973_v15 = vrot.slane %v5971_v8, 4  ;;  %v6349_v61 = vshrl.u32 %v6331_v35, 16  ;;  %v11926_v50 = vor.u32 %v13216_v46, %v11925_v49 }
 0x3e9   :  { %9774 = vmatmul.bf16.gmra.mxu0 %v11934_v53  ;;  %6000 = vst [vmem:[#allocation5 + $0xe4] sm:$0xf] %v5972_v29  ;;  %v12019_v43 = vld [vmem:[#allocation5 + $0x2c4] sm:$0xf0]  ;;  %v13206_v32 = vld [vmem:[#allocation5 + $0x1b4] sm:$0xf]  ;;  %v6029_v12 = vsel %vm14354_vm8, %v11699_v48, %v6028_v2  ;;  %9828 = vmatpush.bf16.msrb.mxu3 %v13317_v30 }
 0x3ea   :  { %v13335_v27 = vld [vmem:[#allocation9 + $0x298] sm:$0xff]  ;;  %v13361_v47 = vld [vmem:[#allocation9 + $0x368] sm:$0xff]  ;;  %v6038_v18 = vsel %vm14354_vm8, %v6030_v24, %v6037_v5  ;;  %v6352_v44 = vshll.u32 %v6331_v35, 16  ;;  %v6136_v38 = vld [vmem:[#allocation3 + $0x14] sm:$0xf]  ;;  %9891 = vmatpush.bf16.msra.mxu0 %v13336_v33  ;;  %v5975_v58 = vsel %vm14039_vm7, %v5973_v15, %v5974_v45  ;;  %v6361_v52 = vrot.slane %v6359_v59, 5 }
 0x3eb   :  { %6107 = vst [vmem:[#allocation5 + $0x20] sm:$0xf] %v6029_v12  ;;  %v6364_v37 = vrot.slane %v6362_v11, 6  ;;  %v6137_v51 = vld [vmem:[#allocation3 + $0x18] sm:$0xf]  ;;  %v6351_v60 = vrot.slane %v6349_v61, 5  ;;  %v11946_v7 = vor.u32 %v13206_v32, %v11943_v26  ;;  %9989 = vmatpush.bf16.msra.mxu1 %v13361_v47 }
 0x3ec   :  { %v13228_v25 = vld [vmem:[#allocation5 + $0x264] sm:$0xf]  ;;  %6108 = vst [vmem:[#allocation5 + $0x84] sm:$0xf] %v6038_v18  ;;  %v6354_v17 = vrot.slane %v6352_v44, 6  ;;  %v6039_v54 = vrot.slane %v15969_v39, 4 }
 0x3ed   :  { %v6010_v28 = vld [vmem:[#allocation3 + $0x10] sm:$0xf]  ;;  %6001 = vst [vmem:[#allocation5 + $0x148] sm:$0xf] %v5975_v58  ;;  %v15982_v10 = vor.u32 %v6364_v37, %v6361_v52  ;;  %v6011_v22 = vld [vmem:[#allocation3 + $0x14] sm:$0xf]  ;;  %v12022_v0 = vor.u32 %v13228_v25, %v12019_v43  ;;  %v15985_v48 = vpop.f32.mrf.mxu2 }
 0x3ee   :  { %v13308_v57 = vld [vmem:[#allocation9 + $0x1c0] sm:$0xff]  ;;  %v6355_v53 = vor.u32 %v6354_v17, %v6351_v60  ;;  %6145 = vst [vmem:[#allocation5 + $0xf0] sm:$0xf] %v6136_v38  ;;  %v6041_v3 = vshrl.u32 %v6010_v28, 16  ;;  %v6044_v42 = vshll.u32 %v6010_v28, 16  ;;  %v6050_v14 = vshrl.u32 %v6011_v22, 16  ;;  %9892 = vmatpush.bf16.msra.mxu0 %v13335_v27 }
 0x3ef   :  { %6146 = vst [vmem:[#allocation5 + $0x154] sm:$0xf] %v6137_v51  ;;  %v6053_v34 = vshll.u32 %v6011_v22, 16  ;;  %v5950_v13 = vld [vmem:[#allocation3 + $0x18] sm:$0xf]  ;;  %v5976_v20 = vrot.slane %v5974_v45, 4  ;;  %9796 = vmatpush.bf16.msrb.mxu2 %v13308_v57 }
 0x3f0   :  { %9708 = vmatmul.bf16.gmra.mxu3 %v11926_v50  ;;  %v13242_v36 = vld [vmem:[#allocation5 + $0x2d0] sm:$0xf0]  ;;  %v6356_v39 = vsel %vm15596_vm1, %v15971_v31, %v6355_v53  ;;  %v6357_v41 = vrot.slane %v6355_v53, 4  ;;  %v6043_v8 = vrot.slane %v6041_v3, 7  ;;  %v15990_v35 = vrot.slane %v6050_v14, 7  ;;  %v13360_v11 = vld [vmem:[#allocation9 + $0x360] sm:$0xff]  ;;  %v15992_v45 = vpop.f32.mrf.mxu0 }
 0x3f1   :  { %v13334_v59 = vld [vmem:[#allocation9 + $0x290] sm:$0xff]  ;;  %v13316_v49 = vld [vmem:[#allocation9 + $0x200] sm:$0xff]  ;;  %6437 = vst [vmem:[#allocation5 + $0x34] sm:$0xf] %v6356_v39  ;;  %v5977_v46 = vrot.slane %v5950_v13, 7  ;;  %v13333_v4 = vld [vmem:[#allocation9 + $0x288] sm:$0xff]  ;;  %9990 = vmatpush.bf16.msra.mxu1 %v13360_v11 }
 0x3f2   :  { %9873 = vmatmul.bf16.gmra.mxu1 %v11946_v7  ;;  %v15994_v26 = vld [vmem:[#allocation3 + $0x24] sm:$0xf]  ;;  %v6016_v2 = vld [vmem:[#allocation3 + $0x28] sm:$0x1]  ;;  %v6366_v31 = vsel %vm15596_vm1, %v6357_v41, %v15982_v10  ;;  %v6046_v5 = vor.u32 %v6044_v42, %v6043_v8  ;;  %v12033_v29 = vld [vmem:[#allocation5 + $0x270] sm:$0xf]  ;;  %9893 = vmatpush.bf16.msra.mxu0 %v13334_v59  ;;  %v6055_v30 = vor.u32 %v6053_v34, %v15990_v35  ;;  %v8086_v42 = vunpack.c.h.b16 %v15879_v19 }
 0x3f3   :  { %v6124_v24 = vld [vmem:[#allocation3 + $0x28] sm:$0x1]  ;;  %9829 = vmatpush.bf16.msrb.mxu3 %v13316_v49  ;;  %v6086_v33 = vshrl.u32 %v15994_v26, 16  ;;  %v12034_v15 = vor.u32 %v13242_v36, %v12033_v29  ;;  %v5978_v27 = vsel %vm14039_vm7, %v5976_v20, %v5977_v46  ;;  %v6095_v12 = vshll.u32 %v6016_v2, 16  ;;  %6438 = vst [vmem:[#allocation5 + $0x98] sm:$0xf] %v6366_v31 }
 0x3f4   :  { %6133 = vst [vmem:[#allocation5 + $0x344] sm:$0x1] %v6124_v24  ;;  %v13359_v43 = vld [vmem:[#allocation9 + $0x358] sm:$0xff]  ;;  %v6047_v32 = vsel %vm14354_vm8, %v6039_v54, %v6046_v5  ;;  %v6048_v18 = vrot.slane %v6043_v8, 4  ;;  %v13241_v61 = vld [vmem:[#allocation5 + $0x2c8] sm:$0xf0]  ;;  %v8211_v29 = vpack.c.b16 %v8086_v42, %v8086_v42 }
 0x3f5   :  { %9680 = vmatmul.bf16.gmra.mxu2 %v12022_v0  ;;  %v16005_v47 = vrot.slane %v6086_v33, 7  ;;  %6109 = vst [vmem:[#allocation5 + $0xe8] sm:$0xf] %v6047_v32  ;;  %v16007_v44 = vld [vmem:[#allocation3 + $0x1c] sm:$0xf]  ;;  %9991 = vmatpush.bf16.msra.mxu1 %v13359_v43  ;;  %v5979_v51 = vrot.slane %v5977_v46, 4  ;;  %v16018_v14 = vpop.f32.mrf.mxu2 }
 0x3f6   :  { %v12025_v38 = vld [vmem:[#allocation5 + $0x268] sm:$0xf]  ;;  %9894 = vmatpush.bf16.msra.mxu0 %v13333_v4  ;;  %v6056_v58 = vsel %vm14354_vm8, %v6048_v18, %v6055_v30  ;;  %6002 = vst [vmem:[#allocation5 + $0x1ac] sm:$0xf] %v5978_v27  ;;  %v6333_v52 = vld [vmem:[#allocation3 + $0x18] sm:$0xf] }
 0x3f7   :  { %v6093_v50 = vrot.slane %v16005_v47, 4  ;;  %v12043_v37 = vld [vmem:[#allocation5 + $0x2dc] sm:$0xf0]  ;;  %6110 = vst [vmem:[#allocation5 + $0x14c] sm:$0xf] %v6056_v58  ;;  %v5980_v25 = vrot.slane %v16007_v44, 7  ;;  %v12026_v53 = vor.u32 %v13241_v61, %v12025_v38 }
 0x3f8   :  { %v13231_v60 = vld [vmem:[#allocation5 + $0x27c] sm:$0xf]  ;;  %v13332_v28 = vld [vmem:[#allocation9 + $0x280] sm:$0xff]  ;;  %v13358_v7 = vld [vmem:[#allocation9 + $0x350] sm:$0xff]  ;;  %v6369_v22 = vshrl.u32 %v6333_v52, 16  ;;  %v6372_v54 = vshll.u32 %v6333_v52, 16  ;;  %v16015_v3 = vpop.f32.mrf.mxu0 }
 0x3f9   :  { %9779 = vmatmul.bf16.gmra.mxu0 %v12034_v15  ;;  %v6097_v17 = vsel %vm14354_vm8, %v6093_v50, %v6095_v12  ;;  %v13347_v57 = vld [vmem:[#allocation9 + $0x2f8] sm:$0xff]  ;;  %v5981_v34 = vsel %vm14039_vm7, %v5979_v51, %v5980_v25  ;;  %v6334_v13 = vld [vmem:[#allocation3 + $0x1c] sm:$0xf]  ;;  %v12046_v19 = vor.u32 %v13231_v60, %v12043_v37  ;;  %9992 = vmatpush.bf16.msra.mxu1 %v13358_v7  ;;  %v6139_v49 = vld [vmem:[#allocation3 + $0x20] sm:$0xf]  ;;  %v6367_v2 = vrot.slane %v15982_v10, 4 }
 0x3fa   :  { %v16020_v0 = vld [vmem:[#allocation5 + $0x338] sm:$0x11]  ;;  %6115 = vst [vmem:[#allocation5 + $0x340] sm:$0x1] %v6097_v17  ;;  %9895 = vmatpush.bf16.msra.mxu0 %v13332_v28  ;;  %9921 = vmatpush.bf16.msra.mxu2 %v13347_v57  ;;  %v6371_v20 = vrot.slane %v6369_v22, 5  ;;  %v6374_v36 = vrot.slane %v6372_v54, 6 }
 0x3fb   :  { %6003 = vst [vmem:[#allocation5 + $0x210] sm:$0xf] %v5981_v34  ;;  %v6379_v39 = vshrl.u32 %v6334_v13, 16  ;;  %v6382_v41 = vshll.u32 %v6334_v13, 16  ;;  %v13357_v59 = vld [vmem:[#allocation9 + $0x348] sm:$0xff]  ;;  %v13355_v46 = vld [vmem:[#allocation9 + $0x338] sm:$0xff]  ;;  %v8089_v33 = vunpack.c.l.b16 %v16020_v0 }
 0x3fc   :  { %v6138_v11 = vld [vmem:[#allocation3 + $0x1c] sm:$0xf]  ;;  %v6375_v24 = vor.u32 %v6374_v36, %v6371_v20  ;;  %v6012_v4 = vld [vmem:[#allocation3 + $0x18] sm:$0xf]  ;;  %9954 = vmatpush.bf16.msra.mxu3 %v13355_v46  ;;  %6148 = vst [vmem:[#allocation5 + $0x21c] sm:$0xf] %v6139_v49 }
 0x3fd   :  { %v6381_v31 = vrot.slane %v6379_v39, 5  ;;  %v6384_v5 = vrot.slane %v6382_v41, 6  ;;  %6147 = vst [vmem:[#allocation5 + $0x1b8] sm:$0xf] %v6138_v11  ;;  %v6059_v32 = vshrl.u32 %v6012_v4, 16  ;;  %9993 = vmatpush.bf16.msra.mxu1 %v13357_v59  ;;  %v6062_v12 = vshll.u32 %v6012_v4, 16  ;;  %v16049_v42 = vpop.f32.mrf.mxu2 }
 0x3fe   :  { %v6376_v30 = vsel %vm15596_vm1, %v6367_v2, %v6375_v24  ;;  %v6377_v15 = vrot.slane %v6375_v24, 4  ;;  %v6013_v10 = vld [vmem:[#allocation3 + $0x1c] sm:$0xf]  ;;  %v13356_v61 = vld [vmem:[#allocation9 + $0x340] sm:$0xff]  ;;  %v13346_v38 = vld [vmem:[#allocation9 + $0x2f0] sm:$0xff]  ;;  %v6057_v17 = vrot.slane %v15990_v35, 4  ;;  %v8214_v28 = vpack.c.b16 %v8089_v33, %v8089_v33 }
 0x3ff   :  { %v16026_v8 = vpop.f32.mrf.mxu1  ;;  %v16032_v43 = vor.u32 %v6384_v5, %v6381_v31  ;;  %6439 = vst [vmem:[#allocation5 + $0xfc] sm:$0xf] %v6376_v30  ;;  %v6061_v58 = vrot.slane %v6059_v32, 7  ;;  %v6068_v52 = vshrl.u32 %v6013_v10, 16  ;;  %v16040_v37 = vld [vmem:[#allocation3 + $0xc] sm:$0xf]  ;;  %9922 = vmatpush.bf16.msra.mxu2 %v13346_v38  ;;  %v8087_v2 = vunpack.c.l.b16 %v15887_v40 }
 0x400   :  { %9713 = vmatmul.bf16.gmra.mxu3 %v12026_v53  ;;  %v13354_v60 = vld [vmem:[#allocation9 + $0x330] sm:$0xff]  ;;  %v6071_v57 = vshll.u32 %v6013_v10, 16  ;;  %v5982_v13 = vrot.slane %v5980_v25, 4  ;;  %v6162_v25 = vshrl.u32 %v16040_v37, 16  ;;  %v11735_v10 = vld [vmem:[#allocation5 + $0x7c] sm:$0xf0] }
 0x401   :  { %v6386_v50 = vsel %vm15596_vm1, %v6377_v15, %v16032_v43  ;;  %v16045_v7 = vrot.slane %v6068_v52, 7  ;;  %v5952_v22 = vld [vmem:[#allocation3 + $0x20] sm:$0xf]  ;;  %9994 = vmatpush.bf16.msra.mxu1 %v13356_v61  ;;  %9955 = vmatpush.bf16.msra.mxu3 %v13354_v60  ;;  %v6066_v34 = vrot.slane %v6061_v58, 4  ;;  %v6336_v35 = vld [vmem:[#allocation3 + $0x24] sm:$0xf]  ;;  %v8212_v52 = vpack.c.b16 %v8087_v2, %v8087_v2 }
 0x402   :  { %9878 = vmatmul.bf16.gmra.mxu1 %v12046_v19  ;;  %6440 = vst [vmem:[#allocation5 + $0x160] sm:$0xf] %v6386_v50  ;;  %v6335_v54 = vld [vmem:[#allocation3 + $0x20] sm:$0xf]  ;;  %v5983_v20 = vrot.slane %v5952_v22, 7  ;;  %v6399_v11 = vshrl.u32 %v6336_v35, 16 }
 0x403   :  { %v9600_v27 = vpop.f32.mrf.mxu3  ;;  %v6389_v36 = vshrl.u32 %v6335_v54, 16  ;;  %v16053_v39 = vld [vmem:[#allocation5 + $0x340] sm:$0x11]  ;;  %v6073_v19 = vor.u32 %v6071_v57, %v16045_v7  ;;  %v6392_v59 = vshll.u32 %v6335_v54, 16  ;;  %v6387_v31 = vrot.slane %v16032_v43, 4  ;;  %v13398_v63 = vld [vmem:[#allocation9 + $0x490] sm:$0xff] }
 0x404   :  { %v16035_v18 = vadd.f32 %v9600_v27, %v15967_v56  ;;  %v16042_v51 = vpop.f32.mrf.mxu0  ;;  %v6064_v56 = vor.u32 %v6062_v12, %v6061_v58  ;;  %v5984_v49 = vsel %vm14039_vm7, %v5982_v13, %v5983_v20  ;;  %v5985_v46 = vrot.slane %v5983_v20, 4  ;;  %v6014_v40 = vld [vmem:[#allocation3 + $0x20] sm:$0xf]  ;;  %v6141_v58 = vld [vmem:[#allocation3 + $0x28] sm:$0xf] }
 0x405   :  { %9685 = vmatmul.bf16.gmra.mxu2 %v8211_v29  ;;  %v6391_v44 = vrot.slane %v6389_v36, 5  ;;  %v6074_v24 = vsel %vm14354_vm8, %v6066_v34, %v6073_v19  ;;  %6004 = vst [vmem:[#allocation5 + $0x274] sm:$0xf] %v5984_v49  ;;  %v6394_v5 = vrot.slane %v6392_v59, 6  ;;  %v6140_v29 = vld [vmem:[#allocation3 + $0x24] sm:$0xf]  ;;  %v8092_v4 = vunpack.c.h.b16 %v16053_v39 }
 0x406   :  { %v6065_v41 = vsel %vm14354_vm8, %v6057_v17, %v6064_v56  ;;  %6112 = vst [vmem:[#allocation5 + $0x214] sm:$0xf] %v6074_v24  ;;  %v5987_v30 = vsel %vm14039_vm7, %v5985_v46, %v5986_v9  ;;  %v6401_v15 = vrot.slane %v6399_v11, 5  ;;  %v6402_v32 = vshll.u32 %v6336_v35, 16  ;;  %v6337_v17 = vld [vmem:[#allocation3 + $0x28] sm:$0xf] }
 0x407   :  { %v16047_v53 = vpop.f32.mrf.mxu1  ;;  %6111 = vst [vmem:[#allocation5 + $0x1b0] sm:$0xf] %v6065_v41  ;;  %v6395_v43 = vor.u32 %v6394_v5, %v6391_v44  ;;  %v6077_v12 = vshrl.u32 %v6014_v40, 16  ;;  %v6080_v61 = vshll.u32 %v6014_v40, 16  ;;  %v6089_v21 = vshll.u32 %v15994_v26, 16  ;;  %v13345_v26 = vld [vmem:[#allocation9 + $0x2e8] sm:$0xff] }
 0x408   :  { %6005 = vst [vmem:[#allocation5 + $0x2d8] sm:$0xf] %v5987_v30  ;;  %v6404_v50 = vrot.slane %v6402_v32, 6  ;;  %v13155_v56 = vld [vmem:[#allocation5 + $0x1c] sm:$0xf]  ;;  %v6409_v54 = vshrl.u32 %v6337_v17, 16  ;;  %v8217_v13 = vpack.c.b16 %v8092_v4, %v8092_v4  ;;  %v16082_v59 = vpop.f32.mrf.mxu2  ;;  %9923 = vmatpush.bf16.msra.mxu2 %v13345_v26 }
 0x409   :  { %9784 = vmatmul.bf16.gmra.mxu0 %v8214_v28  ;;  %6149 = vst [vmem:[#allocation5 + $0x280] sm:$0xf] %v6140_v29  ;;  %v6396_v9 = vsel %vm15596_vm1, %v6387_v31, %v6395_v43  ;;  %v6397_v60 = vrot.slane %v6395_v43, 4  ;;  %v6091_v22 = vor.u32 %v6089_v21, %v16005_v47  ;;  %v6412_v34 = vshll.u32 %v6337_v17, 16  ;;  %v6153_v41 = vld [vmem:[#allocation3 + $0x10] sm:$0xf] }
 0x40a   :  { %6150 = vst [vmem:[#allocation5 + $0x2e4] sm:$0xf] %v6141_v58  ;;  %v6405_v57 = vor.u32 %v6404_v50, %v6401_v15  ;;  %v6075_v20 = vrot.slane %v16045_v7, 4  ;;  %v11738_v19 = vor.u32 %v13155_v56, %v11735_v10  ;;  %v6411_v49 = vrot.slane %v6409_v54, 5  ;;  %v13169_v47 = vld [vmem:[#allocation5 + $0x88] sm:$0xf0] }
 0x40b   :  { %v9602_v33 = vpop.f32.mrf.mxu3  ;;  %6441 = vst [vmem:[#allocation5 + $0x1c4] sm:$0xf] %v6396_v9  ;;  %v6414_v46 = vrot.slane %v6412_v34, 6  ;;  %v6165_v24 = vshll.u32 %v16040_v37, 16  ;;  %v6164_v29 = vrot.slane %v6162_v25, 4  ;;  %v6175_v4 = vshrl.u32 %v6153_v41, 16 }
 0x40c   :  { %v16071_v27 = vadd.f32 %v9602_v33, %v15985_v48  ;;  %v16073_v38 = vpop.f32.mrf.mxu0  ;;  %v6079_v48 = vrot.slane %v6077_v12, 7  ;;  %v6406_v11 = vsel %vm15596_vm1, %v6397_v60, %v6405_v57  ;;  %v6407_v2 = vrot.slane %v6405_v57, 4  ;;  %v13353_v15 = vld [vmem:[#allocation9 + $0x328] sm:$0xff]  ;;  %v16094_v32 = vld [vmem:[#allocation3 + $0x14] sm:$0xf] }
 0x40d   :  { %6442 = vst [vmem:[#allocation5 + $0x228] sm:$0xf] %v6406_v11  ;;  %v6415_v5 = vor.u32 %v6414_v46, %v6411_v49  ;;  %v6171_v33 = vshll.u32 %v6153_v41, 16  ;;  %v6167_v40 = vrot.slane %v6165_v24, 5  ;;  %v6338_v10 = vld [vmem:[#allocation3 + $0x2c] sm:$0x7]  ;;  %9956 = vmatpush.bf16.msra.mxu3 %v13353_v15 }
 0x40e   :  { %v6082_v35 = vor.u32 %v6080_v61, %v6079_v48  ;;  %v6084_v36 = vrot.slane %v6079_v48, 4  ;;  %v11749_v61 = vld [vmem:[#allocation5 + $0x28] sm:$0xf]  ;;  %v6419_v25 = vshrl.u32 %v6338_v10, 16  ;;  %v6422_v50 = vshll.u32 %v6338_v10, 16 }
 0x40f   :  { %v16078_v28 = vpop.f32.mrf.mxu1  ;;  %v6416_v43 = vsel %vm15596_vm1, %v6407_v2, %v6415_v5  ;;  %v6173_v37 = vrot.slane %v6171_v33, 5  ;;  %v11750_v58 = vor.u32 %v13169_v47, %v11749_v61  ;;  %v6142_v21 = vld [vmem:[#allocation3 + $0x2c] sm:$0x1]  ;;  %v6168_v9 = vor.u32 %v6167_v40, %v6164_v29  ;;  %v6447_v41 = vld [vmem:[#allocation3 + $0x10] sm:$0xf] }
 0x410   :  { %9718 = vmatmul.bf16.gmra.mxu3 %v8212_v52  ;;  %v6083_v44 = vsel %vm14354_vm8, %v6075_v20, %v6082_v35  ;;  %v6092_v7 = vsel %vm14354_vm8, %v6084_v36, %v6091_v22  ;;  %6443 = vst [vmem:[#allocation5 + $0x28c] sm:$0xf] %v6416_v43  ;;  %v6160_v52 = vld [vmem:[#allocation3 + $0x2c] sm:$0x3]  ;;  %v6177_v60 = vrot.slane %v6175_v4, 4  ;;  %v6181_v48 = vshll.u32 %v16094_v32, 16  ;;  %v16109_v11 = vpop.f32.mrf.mxu2 }
 0x411   :  { %6113 = vst [vmem:[#allocation5 + $0x278] sm:$0xf] %v6083_v44  ;;  %v6421_v17 = vrot.slane %v6419_v25, 5  ;;  %v6424_v56 = vrot.slane %v6422_v50, 6  ;;  %v6241_v57 = vshll.u32 %v6160_v52, 16  ;;  %v6245_v22 = vshrl.u32 %v6160_v52, 16 }
 0x412   :  { %9883 = vmatmul.bf16.gmra.mxu1 %v8217_v13  ;;  %6114 = vst [vmem:[#allocation5 + $0x2dc] sm:$0xf] %v6092_v7  ;;  %v6169_v54 = vrot.slane %v6168_v9, 4  ;;  %v6178_v34 = vor.u32 %v6177_v60, %v6173_v37  ;;  %v6446_v13 = vld [vmem:[#allocation3 + $0xc] sm:$0xc]  ;;  %v6417_v26 = vrot.slane %v6415_v5, 4 }
 0x413   :  { %v9605_v31 = vpop.f32.mrf.mxu3  ;;  %6151 = vst [vmem:[#allocation5 + $0x348] sm:$0x1] %v6142_v21  ;;  %v16103_v20 = vor.u32 %v6424_v56, %v6421_v17  ;;  %v16105_v35 = vrot.slane %v6241_v57, 5  ;;  %v16107_v36 = vrot.slane %v6181_v48, 5  ;;  %v11741_v49 = vld [vmem:[#allocation5 + $0x20] sm:$0xf] }
 0x414   :  { %v16092_v30 = vadd.f32 %v9605_v31, %v16018_v14  ;;  %v16098_v12 = vpop.f32.mrf.mxu0  ;;  %v13168_v46 = vld [vmem:[#allocation5 + $0x80] sm:$0xf0]  ;;  %v6247_v47 = vrot.slane %v6245_v22, 4  ;;  %v6174_v44 = vsel %vm15665_vm11, %v6169_v54, %v6173_v37  ;;  %v6179_v7 = vrot.slane %v6178_v34, 4  ;;  %v16113_v2 = vld [vmem:[#allocation3 + $0x14] sm:$0xf] }
 0x415   :  { %9797 = vmatmul.bf16.vlgmr.msrb.gmra.mxu2 %v11738_v19  ;;  %v11835_v31 = vld [vmem:[#allocation5 + $0x144] sm:$0xf0]  ;;  %v6426_v33 = vsel %vm15596_vm1, %v6417_v26, %v16103_v20  ;;  %6259 = vst [vmem:[#allocation5 + $0x2c] sm:$0xf] %v6174_v44  ;;  %v11701_v4 = vrot.slane %v6446_v13, 10  ;;  %v6469_v37 = vrot.slane %v16113_v2, 6  ;;  %v11742_v61 = vor.u32 %v13168_v46, %v11741_v49 }
 0x416   :  { %v13344_v5 = vld [vmem:[#allocation9 + $0x2e0] sm:$0xff]  ;;  %v13158_v15 = vld [vmem:[#allocation5 + $0x34] sm:$0xf]  ;;  %v11759_v40 = vld [vmem:[#allocation5 + $0x94] sm:$0xf0]  ;;  %v6248_v10 = vor.u32 %v6247_v47, %v16105_v35  ;;  %v6184_v43 = vsel %vm15665_vm11, %v6179_v7, %v16107_v36 }
 0x417   :  { %v16100_v14 = vpop.f32.mrf.mxu1  ;;  %v13352_v29 = vld [vmem:[#allocation9 + $0x320] sm:$0xff]  ;;  %6444 = vst [vmem:[#allocation5 + $0x2f0] sm:$0xf] %v6426_v33  ;;  %9924 = vmatpush.bf16.msra.mxu2 %v13344_v5  ;;  %v11762_v57 = vor.u32 %v13158_v15, %v11759_v40  ;;  %v6155_v34 = vld [vmem:[#allocation3 + $0x18] sm:$0xf]  ;;  %v13343_v15 = vld [vmem:[#allocation9 + $0x2d8] sm:$0xff] }
 0x418   :  { %v13180_v50 = vld [vmem:[#allocation5 + $0xe4] sm:$0xf]  ;;  %9957 = vmatpush.bf16.msra.mxu3 %v13352_v29  ;;  %6260 = vst [vmem:[#allocation5 + $0x90] sm:$0xf] %v6184_v43  ;;  %v6249_v9 = vrot.slane %v6248_v10, 4  ;;  %v6191_v49 = vshll.u32 %v6155_v34, 16 }
 0x419   :  { %9896 = vmatmul.bf16.vlgmr.msra.gmra.mxu0 %v11750_v58  ;;  %v6268_v58 = vld [vmem:[#allocation3 + $0xc] sm:$0xe]  ;;  %v6269_v21 = vld [vmem:[#allocation3 + $0x10] sm:$0xf]  ;;  %v16132_v17 = vld [vmem:[#allocation3 + $0x14] sm:$0xf]  ;;  %v11838_v13 = vor.u32 %v13180_v50, %v11835_v31 }
 0x41a   :  { %v11700_v56 = vrot.slane %v6268_v58, 9  ;;  %v6288_v22 = vrot.slane %v6269_v21, 5  ;;  %v6291_v54 = vrot.slane %v16132_v17, 5  ;;  %6267 = vst [vmem:[#allocation5 + $0x34c] sm:$0x1] %v6249_v9  ;;  %v6195_v44 = vshrl.u32 %v6155_v34, 16 }
 0x41b   :  { %v9607_v19 = vpop.f32.mrf.mxu3  ;;  %v13194_v31 = vld [vmem:[#allocation5 + $0x150] sm:$0xf0]  ;;  %v6193_v33 = vrot.slane %v6191_v49, 5  ;;  %v6686_v43 = vld [vmem:[#allocation3 + $0x10] sm:$0x8]  ;;  %9925 = vmatpush.bf16.msra.mxu2 %v13343_v15  ;;  %v13351_v34 = vld [vmem:[#allocation9 + $0x318] sm:$0xff] }
 0x41c   :  { %v16116_v24 = vadd.f32 %v9607_v19, %v16049_v42  ;;  %v6466_v42 = vrot.slane %v6447_v41, 6  ;;  %v16126_v25 = vpop.f32.mrf.mxu0  ;;  %v6156_v41 = vld [vmem:[#allocation3 + $0x1c] sm:$0xf]  ;;  %v6185_v19 = vshrl.u32 %v16094_v32, 16  ;;  %v6289_v46 = vsel %vm14304_vm12, %v11700_v56, %v6288_v22  ;;  %9958 = vmatpush.bf16.msra.mxu3 %v13351_v34  ;;  %v13371_v15 = vld [vmem:[#allocation9 + $0x3b8] sm:$0xff] }
 0x41d   :  { %v6290_v47 = vrot.slane %v6288_v22, 4  ;;  %v6201_v7 = vshll.u32 %v6156_v41, 16  ;;  %6321 = vst [vmem:[#allocation5 + $0x30] sm:$0xf] %v6289_v46  ;;  %v16147_v32 = vadd.f32 %v15992_v45, %v16035_v18  ;;  %v6197_v10 = vrot.slane %v6195_v44, 4  ;;  %10020 = vmatpush.bf16.msrb.mxu0 %v13371_v15 }
 0x41e   :  { %v6467_v60 = vsel %vm14079_vm2, %v11701_v4, %v6466_v42  ;;  %v6468_v48 = vrot.slane %v6466_v42, 4  ;;  %v6187_v29 = vrot.slane %v6185_v19, 4  ;;  %v16151_v42 = vpop.f32.mrf.mxu2  ;;  %v6205_v45 = vshrl.u32 %v6156_v41, 16  ;;  %v6687_v18 = vld [vmem:[#allocation3 + $0x14] sm:$0xf] }
 0x41f   :  { %v16128_v52 = vpop.f32.mrf.mxu1  ;;  %6499 = vst [vmem:[#allocation5 + $0x38] sm:$0xf] %v6467_v60  ;;  %v6292_v40 = vsel %vm14304_vm12, %v6290_v47, %v6291_v54  ;;  %v6198_v21 = vor.u32 %v6197_v10, %v6193_v33  ;;  %v16156_v9 = vrot.slane %v6201_v7, 5  ;;  %v16158_v60 = vld [vmem:[#allocation3 + $0x18] sm:$0xf]  ;;  %v11703_v56 = vrot.slane %v6686_v43, 11 }
 0x420   :  { %9830 = vmatmul.bf16.vlgmr.msrb.gmra.mxu3 %v11742_v61  ;;  %v6470_v26 = vsel %vm14079_vm2, %v6468_v48, %v6469_v37  ;;  %v11849_v61 = vld [vmem:[#allocation5 + $0xf0] sm:$0xf]  ;;  %6322 = vst [vmem:[#allocation5 + $0x94] sm:$0xf] %v6292_v40  ;;  %v6188_v50 = vor.u32 %v6187_v29, %v16107_v36  ;;  %v6709_v22 = vrot.slane %v16158_v60, 7  ;;  %v6471_v47 = vrot.slane %v6469_v37, 4 }
 0x421   :  { %6500 = vst [vmem:[#allocation5 + $0x9c] sm:$0xf] %v6470_v26  ;;  %v6199_v36 = vrot.slane %v6198_v21, 4  ;;  %v13193_v26 = vld [vmem:[#allocation5 + $0x148] sm:$0xf0]  ;;  %v6293_v29 = vrot.slane %v6291_v54, 4  ;;  %v16177_v40 = vadd.f32 %v16015_v3, %v16071_v27 }
 0x422   :  { %9995 = vmatmul.bf16.vlgmr.msra.gmra.mxu1 %v11762_v57  ;;  %v6189_v17 = vrot.slane %v6188_v50, 4  ;;  %v6706_v57 = vrot.slane %v6687_v18, 7  ;;  %v16167_v46 = vld [vmem:[#allocation3 + $0x1c] sm:$0xf]  ;;  %v11841_v44 = vld [vmem:[#allocation5 + $0xe8] sm:$0xf] }
 0x423   :  { %v9610_v5 = vpop.f32.mrf.mxu3  ;;  %v6204_v7 = vsel %vm15665_vm11, %v6199_v36, %v16156_v9  ;;  %v6271_v37 = vld [vmem:[#allocation3 + $0x18] sm:$0xf]  ;;  %v6207_v10 = vrot.slane %v6205_v45, 4  ;;  %v11842_v3 = vor.u32 %v13193_v26, %v11841_v44  ;;  %v11935_v27 = vld [vmem:[#allocation5 + $0x20c] sm:$0xf0] }
 0x424   :  { %v16143_v4 = vadd.f32 %v9610_v5, %v16082_v59  ;;  %v16154_v58 = vpop.f32.mrf.mxu0  ;;  %v11850_v59 = vor.u32 %v13194_v31, %v11849_v61  ;;  %v6194_v19 = vsel %vm15665_vm11, %v6189_v17, %v6193_v33  ;;  %v6707_v41 = vsel %vm14039_vm7, %v11703_v56, %v6706_v57  ;;  %6262 = vst [vmem:[#allocation5 + $0x158] sm:$0xf] %v6204_v7  ;;  %v11859_v61 = vld [vmem:[#allocation5 + $0x15c] sm:$0xf0]  ;;  %v13183_v21 = vld [vmem:[#allocation5 + $0xfc] sm:$0xf] }
 0x425   :  { %9802 = vmatmul.bf16.gmra.mxu2 %v11838_v13  ;;  %v6449_v13 = vld [vmem:[#allocation3 + $0x18] sm:$0xf]  ;;  %v6708_v49 = vrot.slane %v6706_v57, 4  ;;  %6261 = vst [vmem:[#allocation5 + $0xf4] sm:$0xf] %v6194_v19  ;;  %v6475_v31 = vrot.slane %v16167_v46, 6  ;;  %v6208_v45 = vor.u32 %v6207_v10, %v16156_v9  ;;  %v11862_v44 = vor.u32 %v13183_v21, %v11859_v61 }
 0x426   :  { %v6472_v5 = vrot.slane %v6449_v13, 6  ;;  %6739 = vst [vmem:[#allocation5 + $0x44] sm:$0xf] %v6707_v41  ;;  %v16188_v18 = vld [vmem:[#allocation3 + $0x1c] sm:$0xf]  ;;  %v16200_v26 = vpop.f32.mrf.mxu2  ;;  %v13342_v7 = vld [vmem:[#allocation9 + $0x2d0] sm:$0xff] }
 0x427   :  { %v16160_v48 = vpop.f32.mrf.mxu1  ;;  %v6710_v2 = vsel %vm14039_vm7, %v6708_v49, %v6709_v22  ;;  %v6157_v17 = vld [vmem:[#allocation3 + $0x20] sm:$0xf]  ;;  %v6297_v36 = vrot.slane %v16188_v18, 5  ;;  %v6158_v13 = vld [vmem:[#allocation3 + $0x24] sm:$0xf]  ;;  %9926 = vmatpush.bf16.msra.mxu2 %v13342_v7  ;;  %v13395_v7 = vld [vmem:[#allocation9 + $0x478] sm:$0xff] }
 0x428   :  { %v6473_v54 = vsel %vm14079_vm2, %v6471_v47, %v6472_v5  ;;  %v6474_v50 = vrot.slane %v6472_v5, 4  ;;  %6740 = vst [vmem:[#allocation5 + $0xa8] sm:$0xf] %v6710_v2  ;;  %v6211_v9 = vshll.u32 %v6157_v17, 16  ;;  %v6215_v41 = vshrl.u32 %v6157_v17, 16  ;;  %v13350_v5 = vld [vmem:[#allocation9 + $0x310] sm:$0xff]  ;;  %10119 = vmatpush.bf16.msrb.mxu1 %v13395_v7 }
 0x429   :  { %9901 = vmatmul.bf16.gmra.mxu0 %v11850_v59  ;;  %v6294_v59 = vrot.slane %v6271_v37, 5  ;;  %6501 = vst [vmem:[#allocation5 + $0x100] sm:$0xf] %v6473_v54  ;;  %v6221_v49 = vshll.u32 %v6158_v13, 16  ;;  %v13205_v47 = vld [vmem:[#allocation5 + $0x1ac] sm:$0xf]  ;;  %9959 = vmatpush.bf16.msra.mxu3 %v13350_v5 }
 0x42a   :  { %v6213_v15 = vrot.slane %v6211_v9, 5  ;;  %v6217_v2 = vrot.slane %v6215_v41, 4  ;;  %v11938_v37 = vor.u32 %v13205_v47, %v11935_v27  ;;  %v16208_v10 = vld [vmem:[#allocation3 + $0x2c] sm:$0x3]  ;;  %v6689_v17 = vld [vmem:[#allocation3 + $0x1c] sm:$0xf] }
 0x42b   :  { %v9612_v33 = vpop.f32.mrf.mxu3  ;;  %v6295_v57 = vsel %vm14304_vm12, %v6293_v29, %v6294_v59  ;;  %v6296_v34 = vrot.slane %v6294_v59, 4  ;;  %v6309_v61 = vrot.slane %v16208_v10, 5  ;;  %v16213_v21 = vrot.slane %v6221_v49, 5  ;;  %v11949_v49 = vld [vmem:[#allocation5 + $0x1b8] sm:$0xf] }
 0x42c   :  { %v16184_v43 = vadd.f32 %v9612_v33, %v16109_v11  ;;  %v16191_v56 = vpop.f32.mrf.mxu0  ;;  %v6476_v11 = vsel %vm14079_vm2, %v6474_v50, %v6475_v31  ;;  %6323 = vst [vmem:[#allocation5 + $0xf8] sm:$0xf] %v6295_v57  ;;  %v6209_v33 = vrot.slane %v6208_v45, 4  ;;  %v13219_v50 = vld [vmem:[#allocation5 + $0x218] sm:$0xf0]  ;;  %v6225_v27 = vshrl.u32 %v6158_v13, 16 }
 0x42d   :  { %6502 = vst [vmem:[#allocation5 + $0x164] sm:$0xf] %v6476_v11  ;;  %v6298_v29 = vsel %vm14304_vm12, %v6296_v34, %v6297_v36  ;;  %v16218_v11 = vld [vmem:[#allocation3 + $0x20] sm:$0xf]  ;;  %v6311_v57 = vrot.slane %v6309_v61, 4  ;;  %v6711_v9 = vrot.slane %v6709_v22, 4 }
 0x42e   :  { %6324 = vst [vmem:[#allocation5 + $0x15c] sm:$0xf] %v6298_v29  ;;  %v6214_v59 = vsel %vm15665_vm11, %v6209_v33, %v6213_v15  ;;  %v6712_v41 = vrot.slane %v6689_v17, 7  ;;  %v6715_v13 = vrot.slane %v16218_v11, 7  ;;  %v11950_v33 = vor.u32 %v13219_v50, %v11949_v49  ;;  %v6451_v50 = vld [vmem:[#allocation3 + $0x20] sm:$0xf] }
 0x42f   :  { %v16202_v19 = vpop.f32.mrf.mxu1  ;;  %6263 = vst [vmem:[#allocation5 + $0x1bc] sm:$0xf] %v6214_v59  ;;  %v6477_v17 = vrot.slane %v6475_v31, 4  ;;  %v6299_v49 = vrot.slane %v6297_v36, 4  ;;  %v6454_v11 = vld [vmem:[#allocation3 + $0x2c] sm:$0x7] }
 0x430   :  { %9835 = vmatmul.bf16.gmra.mxu3 %v11842_v3  ;;  %v6218_v3 = vor.u32 %v6217_v2, %v6213_v15  ;;  %6329 = vst [vmem:[#allocation5 + $0x350] sm:$0x1] %v6311_v57  ;;  %v6713_v22 = vsel %vm14039_vm7, %v6711_v9, %v6712_v41  ;;  %v13369_v15 = vld [vmem:[#allocation9 + $0x3a8] sm:$0xff]  ;;  %v6227_v2 = vrot.slane %v6225_v27, 4  ;;  %v6478_v57 = vrot.slane %v6451_v50, 6  ;;  %v13394_v50 = vld [vmem:[#allocation9 + $0x470] sm:$0xff] }
 0x431   :  { %6741 = vst [vmem:[#allocation5 + $0x10c] sm:$0xf] %v6713_v22  ;;  %v11941_v9 = vld [vmem:[#allocation5 + $0x1b0] sm:$0xf]  ;;  %10120 = vmatpush.bf16.msrb.mxu1 %v13394_v50  ;;  %v16340_v62 = vld [vmem:[#allocation3 + $0x18] sm:$0xf] }
 0x432   :  { %10000 = vmatmul.bf16.gmra.mxu1 %v11862_v44  ;;  %v6219_v34 = vrot.slane %v6218_v3, 4  ;;  %v13370_v44 = vld [vmem:[#allocation9 + $0x3b0] sm:$0xff]  ;;  %v6479_v46 = vsel %vm14079_vm2, %v6477_v17, %v6478_v57  ;;  %v6480_v31 = vrot.slane %v6478_v57, 4  ;;  %v6228_v22 = vor.u32 %v6227_v2, %v16213_v21 }
 0x433   :  { %v9615_v54 = vpop.f32.mrf.mxu3  ;;  %10021 = vmatpush.bf16.msrb.mxu0 %v13370_v44  ;;  %v16245_v3 = vld [vmem:[#allocation3 + $0x24] sm:$0xf]  ;;  %6503 = vst [vmem:[#allocation5 + $0x1c8] sm:$0xf] %v6479_v46 }
 0x434   :  { %v16216_v45 = vadd.f32 %v9615_v54, %v16151_v42  ;;  %v16228_v42 = vadd.f32 %v16042_v51, %v16092_v30  ;;  %v6224_v60 = vsel %vm15665_vm11, %v6219_v34, %v16213_v21  ;;  %v13341_v51 = vld [vmem:[#allocation9 + $0x2c8] sm:$0xff]  ;;  %v6714_v30 = vrot.slane %v6712_v41, 4  ;;  %v6273_v34 = vld [vmem:[#allocation3 + $0x20] sm:$0xf]  ;;  %v11959_v41 = vld [vmem:[#allocation5 + $0x224] sm:$0xf0] }
 0x435   :  { %9807 = vmatmul.bf16.gmra.mxu2 %v11938_v37  ;;  %6264 = vst [vmem:[#allocation5 + $0x220] sm:$0xf] %v6224_v60  ;;  %v13218_v37 = vld [vmem:[#allocation5 + $0x210] sm:$0xf0]  ;;  %v6427_v54 = vrot.slane %v16103_v20, 4  ;;  %v6481_v20 = vrot.slane %v16245_v3, 6  ;;  %v16265_v3 = vadd.f32 %v16073_v38, %v16116_v24 }
 0x436   :  { %v16224_v47 = vpop.f32.mrf.mxu0  ;;  %9927 = vmatpush.bf16.msra.mxu2 %v13341_v51  ;;  %v6716_v59 = vsel %vm14039_vm7, %v6714_v30, %v6715_v13  ;;  %v6300_v44 = vrot.slane %v6273_v34, 5  ;;  %v16257_v60 = vld [vmem:[#allocation3 + $0x24] sm:$0xf]  ;;  %v11942_v30 = vor.u32 %v13218_v37, %v11941_v9  ;;  %v13230_v34 = vld [vmem:[#allocation5 + $0x274] sm:$0xf]  ;;  %v13367_v38 = vld [vmem:[#allocation9 + $0x398] sm:$0xff] }
 0x437   :  { %v16233_v29 = vpop.f32.mrf.mxu1  ;;  %6445 = vst [vmem:[#allocation5 + $0x354] sm:$0x1] %v6427_v54  ;;  %10022 = vmatpush.bf16.msrb.mxu0 %v13369_v15  ;;  %v6303_v51 = vrot.slane %v16257_v60, 5  ;;  %v13368_v15 = vld [vmem:[#allocation9 + $0x3a0] sm:$0xff]  ;;  %v6482_v21 = vsel %vm14079_vm2, %v6480_v31, %v6481_v20  ;;  %v13393_v31 = vld [vmem:[#allocation9 + $0x468] sm:$0xff] }
 0x438   :  { %v16231_v5 = vpop.f32.mrf.mxu2  ;;  %6742 = vst [vmem:[#allocation5 + $0x170] sm:$0xf] %v6716_v59  ;;  %v6301_v18 = vsel %vm14304_vm12, %v6299_v49, %v6300_v44  ;;  %v6302_v36 = vrot.slane %v6300_v44, 4  ;;  %v13349_v59 = vld [vmem:[#allocation9 + $0x308] sm:$0xff]  ;;  %v13340_v24 = vld [vmem:[#allocation9 + $0x2c0] sm:$0xff]  ;;  %v6229_v49 = vrot.slane %v6228_v22, 4  ;;  %10121 = vmatpush.bf16.msrb.mxu1 %v13393_v31 }
 0x439   :  { %9906 = vmatmul.bf16.gmra.mxu0 %v11950_v33  ;;  %v12035_v33 = vld [vmem:[#allocation5 + $0x2d4] sm:$0xf0]  ;;  %6325 = vst [vmem:[#allocation5 + $0x1c0] sm:$0xf] %v6301_v18  ;;  %9960 = vmatpush.bf16.msra.mxu3 %v13349_v59  ;;  %v13244_v59 = vld [vmem:[#allocation5 + $0x2e0] sm:$0xf0] }
 0x43a   :  { %6504 = vst [vmem:[#allocation5 + $0x22c] sm:$0xf] %v6482_v21  ;;  %v6304_v37 = vsel %vm14304_vm12, %v6302_v36, %v6303_v51  ;;  %v12038_v46 = vor.u32 %v13230_v34, %v12035_v33  ;;  %v6692_v21 = vld [vmem:[#allocation3 + $0x28] sm:$0xf]  ;;  %9928 = vmatpush.bf16.msra.mxu2 %v13340_v24  ;;  %v6483_v33 = vrot.slane %v6481_v20, 4 }
 0x43b   :  { %v9617_v27 = vpop.f32.mrf.mxu3  ;;  %10023 = vmatpush.bf16.msrb.mxu0 %v13368_v15  ;;  %6326 = vst [vmem:[#allocation5 + $0x224] sm:$0xf] %v6304_v37  ;;  %v6721_v15 = vrot.slane %v6692_v21, 7  ;;  %v12041_v60 = vld [vmem:[#allocation5 + $0x278] sm:$0xf] }
 0x43c   :  { %v16253_v7 = vadd.f32 %v9617_v27, %v16200_v26  ;;  %v6159_v26 = vld [vmem:[#allocation3 + $0x28] sm:$0xf]  ;;  %v13208_v27 = vld [vmem:[#allocation5 + $0x1c4] sm:$0xf] }
 0x43d   :  { %v6231_v2 = vshll.u32 %v6159_v26, 16  ;;  %v11962_v9 = vor.u32 %v13208_v27, %v11959_v41  ;;  %v6235_v18 = vshrl.u32 %v6159_v26, 16  ;;  %v6717_v41 = vrot.slane %v6715_v13, 4  ;;  %v12049_v13 = vld [vmem:[#allocation5 + $0x280] sm:$0xf] }
 0x43e   :  { %v9655_v54 = vpop.f32.mrf.mxu0  ;;  %v12050_v21 = vor.u32 %v13244_v59, %v12049_v13  ;;  %v16304_v59 = vld [vmem:[#allocation3 + $0x30] sm:$0xf] }
 0x43f   :  { %v16269_v57 = vpop.f32.mrf.mxu1  ;;  %v6233_v44 = vrot.slane %v6231_v2, 5  ;;  %v6691_v54 = vld [vmem:[#allocation3 + $0x24] sm:$0xf]  ;;  %v6237_v2 = vrot.slane %v6235_v18, 4  ;;  %10024 = vmatpush.bf16.msrb.mxu0 %v13367_v38  ;;  %v16290_v38 = vadd.f32 %v16098_v12, %v16143_v4  ;;  %v6275_v4 = vld [vmem:[#allocation3 + $0x28] sm:$0xf] }
 0x440   :  { %v9589_v17 = vpop.f32.mrf.mxu2  ;;  %9840 = vmatmul.bf16.gmra.mxu3 %v11942_v30  ;;  %v6718_v30 = vrot.slane %v6691_v54, 7  ;;  %v6487_v54 = vrot.slane %v6454_v11, 6 }
 0x441   :  { %v6234_v36 = vsel %vm15665_vm11, %v6229_v49, %v6233_v44  ;;  %v6453_v17 = vld [vmem:[#allocation3 + $0x28] sm:$0xf]  ;;  %v6238_v37 = vor.u32 %v6237_v2, %v6233_v44  ;;  %v13392_v49 = vld [vmem:[#allocation9 + $0x460] sm:$0xff] }
 0x442   :  { %10005 = vmatmul.bf16.gmra.mxu1 %v11962_v9  ;;  %6265 = vst [vmem:[#allocation5 + $0x284] sm:$0xf] %v6234_v36  ;;  %v6484_v50 = vrot.slane %v6453_v17, 6  ;;  %v6719_v34 = vsel %vm14039_vm7, %v6717_v41, %v6718_v30  ;;  %v6720_v27 = vrot.slane %v6718_v30, 4  ;;  %v13365_v30 = vld [vmem:[#allocation9 + $0x388] sm:$0xff]  ;;  %v13391_v17 = vld [vmem:[#allocation9 + $0x458] sm:$0xff] }
 0x443   :  { %v9620_v22 = vpop.f32.mrf.mxu3  ;;  %6743 = vst [vmem:[#allocation5 + $0x1d4] sm:$0xf] %v6719_v34  ;;  %v6239_v36 = vrot.slane %v6238_v37, 4  ;;  %10122 = vmatpush.bf16.msrb.mxu1 %v13392_v49  ;;  %v6723_v34 = vrot.slane %v6721_v15, 4 }
 0x444   :  { %v16280_v26 = vadd.f32 %v9620_v22, %v16231_v5  ;;  %v6485_v9 = vsel %vm14079_vm2, %v6483_v33, %v6484_v50  ;;  %v6486_v20 = vrot.slane %v6484_v50, 4  ;;  %v13366_v5 = vld [vmem:[#allocation9 + $0x390] sm:$0xff]  ;;  %v6722_v18 = vsel %vm14039_vm7, %v6720_v27, %v6721_v15  ;;  %v13243_v22 = vld [vmem:[#allocation5 + $0x2d8] sm:$0xf0]  ;;  %v6693_v50 = vld [vmem:[#allocation3 + $0x2c] sm:$0xf] }
 0x445   :  { %9812 = vmatmul.bf16.gmra.mxu2 %v12038_v46  ;;  %v13348_v46 = vld [vmem:[#allocation9 + $0x300] sm:$0xff]  ;;  %6505 = vst [vmem:[#allocation5 + $0x290] sm:$0xf] %v6485_v9  ;;  %10025 = vmatpush.bf16.msrb.mxu0 %v13366_v5  ;;  %v6244_v2 = vsel %vm15665_vm11, %v6239_v36, %v16105_v35  ;;  %v6306_v33 = vrot.slane %v6275_v4, 5  ;;  %v6724_v37 = vrot.slane %v6693_v50, 7  ;;  %v17245_v9 = vrot.slane %v16304_v59, 7 }
 0x446   :  { %v16286_v24 = vpop.f32.mrf.mxu0  ;;  %9961 = vmatpush.bf16.msra.mxu3 %v13348_v46  ;;  %6744 = vst [vmem:[#allocation5 + $0x238] sm:$0xf] %v6722_v18  ;;  %v6488_v12 = vsel %vm14079_vm2, %v6486_v20, %v6487_v54  ;;  %v16309_v20 = vld [vmem:[#allocation3 + $0x30] sm:$0x7]  ;;  %v6489_v46 = vrot.slane %v6487_v54, 4  ;;  %v12042_v18 = vor.u32 %v13243_v22, %v12041_v60  ;;  %v13390_v36 = vld [vmem:[#allocation9 + $0x450] sm:$0xff] }
 0x447   :  { %v9754_v31 = vpop.f32.mrf.mxu1  ;;  %6506 = vst [vmem:[#allocation5 + $0x2f4] sm:$0xf] %v6488_v12  ;;  %v6308_v13 = vrot.slane %v6306_v33, 4  ;;  %v17244_v35 = vrot.slane %v16309_v20, 6  ;;  %10123 = vmatpush.bf16.msrb.mxu1 %v13391_v17  ;;  %v6725_v5 = vsel %vm14039_vm7, %v6723_v34, %v6724_v37  ;;  %v6726_v49 = vrot.slane %v6724_v37, 4 }
 0x448   :  { %v9666_v44 = vpop.f32.mrf.mxu2  ;;  %6266 = vst [vmem:[#allocation5 + $0x2e8] sm:$0xf] %v6244_v2  ;;  %v8090_v31 = vunpack.c.h.b16 %v16020_v0  ;;  %v16323_v17 = vadd.f32 %v16126_v25, %v16184_v43  ;;  %v13233_v4 = vld [vmem:[#allocation5 + $0x28c] sm:$0xf]  ;;  %v6508_v22 = vld [vmem:[#allocation3 + $0x10] sm:$0xc]  ;;  %v8091_v37 = vunpack.c.l.b16 %v16053_v39 }
 0x449   :  { %v16295_v41 = vadd.f32 %v9666_v44, %v16147_v32  ;;  %9911 = vmatmul.bf16.gmra.mxu0 %v12050_v21  ;;  %v6305_v32 = vrot.slane %v6303_v51, 4  ;;  %v12059_v51 = vld [vmem:[#allocation5 + $0x2ec] sm:$0xf0]  ;;  %v6310_v15 = vsel %vm14304_vm12, %v6308_v13, %v6309_v61  ;;  %v13364_v21 = vld [vmem:[#allocation9 + $0x380] sm:$0xff]  ;;  %v6551_v10 = vrot.slane %v17244_v35, 4 }
 0x44a   :  { %10026 = vmatpush.bf16.msrb.mxu0 %v13365_v30  ;;  %v13379_v30 = vld [vmem:[#allocation9 + $0x3f8] sm:$0xff]  ;;  %6328 = vst [vmem:[#allocation5 + $0x2ec] sm:$0xf] %v6310_v15  ;;  %v16327_v61 = vld [vmem:[#allocation3 + $0x14] sm:$0xf]  ;;  %v6728_v0 = vsel %vm14039_vm7, %v6726_v49, %v17245_v9  ;;  %v12062_v43 = vor.u32 %v13233_v4, %v12059_v51  ;;  %v8215_v34 = vpack.c.b16 %v8090_v31, %v8090_v31  ;;  %v17246_v60 = vrot.slane %v16340_v62, 6 }
 0x44b   :  { %v9622_v27 = vpop.f32.mrf.mxu3  ;;  %v6307_v11 = vsel %vm14304_vm12, %v6305_v32, %v6306_v33  ;;  %6745 = vst [vmem:[#allocation5 + $0x29c] sm:$0xf] %v6725_v5  ;;  %v16338_v2 = vld [vmem:[#allocation5 + $0x348] sm:$0x11]  ;;  %v13387_v32 = vld [vmem:[#allocation9 + $0x438] sm:$0xff]  ;;  %10124 = vmatpush.bf16.msrb.mxu1 %v13390_v36  ;;  %10053 = vmatpush.bf16.msrb.mxu2 %v13379_v30 }
 0x44c   :  { %6327 = vst [vmem:[#allocation5 + $0x288] sm:$0xf] %v6307_v11  ;;  %v13389_v33 = vld [vmem:[#allocation9 + $0x448] sm:$0xff]  ;;  %v6509_v50 = vld [vmem:[#allocation3 + $0x14] sm:$0xf]  ;;  %10086 = vmatpush.bf16.msrb.mxu3 %v13387_v32  ;;  %v8093_v13 = vunpack.c.l.b16 %v16338_v2 }
 0x44d   :  { %6746 = vst [vmem:[#allocation5 + $0x300] sm:$0xf] %v6728_v0  ;;  %v6528_v27 = vrot.slane %v6509_v50, 6  ;;  %v6748_v51 = vld [vmem:[#allocation3 + $0x10] sm:$0x8]  ;;  %v6857_v15 = vld [vmem:[#allocation3 + $0x14] sm:$0xff]  }
 0x44e   :  { %v16318_v44 = vpop.f32.mrf.mxu0  ;;  %10027 = vmatpush.bf16.msrb.mxu0 %v13364_v21  ;;  %6507 = vst [vmem:[#allocation5 + $0x358] sm:$0x1] %v6489_v46  ;;  %v16348_v49 = vld [vmem:[#allocation5 + $0x350] sm:$0x11]  ;;  %v6749_v31 = vld [vmem:[#allocation3 + $0x14] sm:$0xf]  ;;  %v8218_v50 = vpack.c.b16 %v8093_v13, %v8093_v13 }
 0x44f   :  { %v16329_v54 = vpop.f32.mrf.mxu1  ;;  %6569 = vst [vmem:[#allocation5 + $0x35c] sm:$0x1] %v6551_v10  ;;  %v6589_v21 = vshrl.u32 %v16327_v61, 16  ;;  %10125 = vmatpush.bf16.msrb.mxu1 %v13389_v33  ;;  %v6750_v39 = vld [vmem:[#allocation3 + $0x18] sm:$0xf]  ;;  %v6759_v36 = vshrl.u32 %v6748_v51, 16 }
 0x450   :  { %v9668_v12 = vpop.f32.mrf.mxu2  ;;  %17321 = vst [vmem:[#allocation24_spill] sm:$0xff] %v16329_v54  ;;  %9845 = vmatmul.bf16.gmra.mxu3 %v12042_v18  ;;  %v6530_v18 = vrot.slane %v6528_v27, 4  ;;  %v6764_v30 = vshrl.u32 %v6749_v31, 16  ;;  %v6570_v0 = vld [vmem:[#allocation3 + $0x10] sm:$0xc]  ;;  %v13386_v51 = vld [vmem:[#allocation9 + $0x430] sm:$0xff] }
 0x451   :  { %v16336_v25 = vadd.f32 %v9668_v12, %v16177_v40  ;;  %v11702_v40 = vrot.slane %v6508_v22, 10  ;;  %v13388_v12 = vld [vmem:[#allocation9 + $0x440] sm:$0xff]  ;;  %v6592_v22 = vshll.u32 %v16327_v61, 16  ;;  %6866 = vst [vmem:[#allocation5 + $0x4c] sm:$0xff] %v6857_v15   ;;  %v6591_v61 = vrot.slane %v6589_v21, 6  ;;  %10087 = vmatpush.bf16.msrb.mxu3 %v13386_v51 }
 0x452   :  { %10010 = vmatmul.bf16.gmra.mxu1 %v12062_v43  ;;  %v6532_v4 = vsel %vm14079_vm2, %v6530_v18, %v17246_v60  ;;  %v6858_v43 = vld [vmem:[#allocation3 + $0x18] sm:$0xff]   ;;  %v11704_v15 = vrot.slane %v6759_v36, 11  ;;  %v6580_v9 = vshrl.u32 %v6570_v0, 16  ;;  %v6583_v13 = vshll.u32 %v6570_v0, 16 }
 0x453   :  { %v9699_v11 = vpop.f32.mrf.mxu3  ;;  %v6529_v46 = vsel %vm14079_vm2, %v11702_v40, %v6528_v27  ;;  %6562 = vst [vmem:[#allocation5 + $0xa0] sm:$0xf] %v6532_v4  ;;  %v6766_v40 = vrot.slane %v6764_v30, 7  ;;  %v6767_v27 = vshll.u32 %v6749_v31, 16  ;;  %v6572_v18 = vld [vmem:[#allocation3 + $0x18] sm:$0xf]  ;;  %10126 = vmatpush.bf16.msrb.mxu1 %v13388_v12 }
 0x454   :  { %v16346_v5 = vadd.f32 %v9699_v11, %v16295_v41  ;;  %6561 = vst [vmem:[#allocation5 + $0x3c] sm:$0xf] %v6529_v46  ;;  %v16357_v41 = vadd.f32 %v16154_v58, %v16216_v45  ;;  %v8096_v45 = vunpack.c.h.b16 %v16348_v49  ;;  %v13378_v11 = vld [vmem:[#allocation9 + $0x3f0] sm:$0xff]  ;;  %v6773_v46 = vshrl.u32 %v6750_v39, 16  ;;  %v6511_v51 = vld [vmem:[#allocation3 + $0x1c] sm:$0xf] }
 0x455   :  { %9817 = vmatmul.bf16.gmra.mxu2 %v8215_v34  ;;  %v8216_v34 = vpack.c.b16 %v8091_v37, %v8091_v37  ;;  %v6769_v35 = vor.u32 %v6767_v27, %v6766_v40  ;;  %6867 = vst [vmem:[#allocation5 + $0xb0] sm:$0xff] %v6858_v43   ;;  %v16370_v37 = vld [vmem:[#allocation5 + $0x8c] sm:$0xf0]  ;;  %v6776_v31 = vshll.u32 %v6750_v39, 16  ;;  %v6594_v49 = vrot.slane %v6592_v22, 7 }
 0x456   :  { %v16353_v10 = vpop.f32.mrf.mxu0  ;;  %10054 = vmatpush.bf16.msrb.mxu2 %v13378_v11  ;;  %v6599_v30 = vshrl.u32 %v6572_v18, 16  ;;  %v6582_v12 = vrot.slane %v6580_v9, 6  ;;  %v6585_v36 = vrot.slane %v6583_v13, 7  ;;  %v6771_v43 = vrot.slane %v6766_v40, 4  ;;  %v6894_v13 = vld [vmem:[#allocation3 + $0x1c] sm:$0xf] }
 0x457   :  { %v16364_v33 = vpop.f32.mrf.mxu1  ;;  %v6770_v21 = vsel %vm14354_vm8, %v11704_v15, %v6769_v35  ;;  %v6595_v11 = vor.u32 %v6594_v49, %v6591_v61  ;;  %v6893_v35 = vld [vmem:[#allocation3 + $0x18] sm:$0xf]  ;;  %v17323_v61 = vrot.slane %v16340_v62, 6 }
 0x458   :  { %v9671_v32 = vpop.f32.mrf.mxu2  ;;  %17322 = vst [vmem:[#allocation23_spill] sm:$0xff] %v16364_v33  ;;  %v6586_v22 = vor.u32 %v6585_v36, %v6582_v12  ;;  %v16381_v33 = vld [vmem:[#allocation3 + $0x20] sm:$0xf]  ;;  %v6903_v36 = vshrl.u32 %v6893_v35, 16 }
 0x459   :  { %v16367_v58 = vadd.f32 %v9671_v32, %v16228_v42  ;;  %9916 = vmatmul.bf16.gmra.mxu0 %v8218_v50  ;;  %v16372_v42 = vrot.slane %v6773_v46, 7  ;;  %v13157_v32 = vld [vmem:[#allocation5 + $0x2c] sm:$0xf]  ;;  %v6602_v50 = vshll.u32 %v6572_v18, 16  ;;  %6848 = vst [vmem:[#allocation5 + $0x48] sm:$0xf] %v6770_v21  ;;  %v8221_v18 = vpack.c.b16 %v8096_v45, %v8096_v45 }
 0x45a   :  { %v11754_v39 = vor.u32 %v13157_v32, %v16370_v37  ;;  %v6601_v46 = vrot.slane %v6599_v30, 6  ;;  %v6533_v15 = vrot.slane %v17323_v61, 4  ;;  %v6587_v49 = vrot.slane %v6586_v22, 4  ;;  %v13377_v21 = vld [vmem:[#allocation9 + $0x3e8] sm:$0xff]  ;;  %v16403_v12 = vld [vmem:[#allocation3 + $0x20] sm:$0xf] }
 0x45b   :  { %v9701_v4 = vpop.f32.mrf.mxu3  ;;  %v6778_v27 = vor.u32 %v6776_v31, %v16372_v42  ;;  %v6604_v60 = vrot.slane %v6602_v50, 7  ;;  %v6597_v30 = vrot.slane %v6595_v11, 4  ;;  %v6534_v45 = vrot.slane %v6511_v51, 6  ;;  %v6752_v51 = vld [vmem:[#allocation3 + $0x20] sm:$0xf]  ;;  %10055 = vmatpush.bf16.msrb.mxu2 %v13377_v21 }
 0x45c   :  { %v16377_v0 = vadd.f32 %v9701_v4, %v16336_v25  ;;  %v16387_v25 = vadd.f32 %v16191_v56, %v16253_v7  ;;  %v13171_v56 = vld [vmem:[#allocation5 + $0x98] sm:$0xf0]  ;;  %v16400_v7 = vld [vmem:[#allocation5 + $0x90] sm:$0xf0]  ;;  %v17247_v62 = vrot.slane %v16381_v33, 6  ;;  %v6906_v50 = vshll.u32 %v6893_v35, 16 }
 0x45d   :  { %v6779_v40 = vsel %vm14354_vm8, %v6771_v43, %v6778_v27  ;;  %v16395_v4 = vor.u32 %v6604_v60, %v6601_v46  ;;  %v6596_v43 = vsel %vm14331_vm15, %v6587_v49, %v6595_v11  ;;  %v6751_v27 = vld [vmem:[#allocation3 + $0x1c] sm:$0xf]  ;;  %v6905_v22 = vrot.slane %v6903_v36, 4  ;;  %v6574_v36 = vld [vmem:[#allocation3 + $0x20] sm:$0xf] }
 0x45e   :  { %v16383_v9 = vpop.f32.mrf.mxu0  ;;  %6849 = vst [vmem:[#allocation5 + $0xac] sm:$0xf] %v6779_v40  ;;  %v6908_v46 = vrot.slane %v6906_v50, 5  ;;  %v6912_v40 = vshll.u32 %v6894_v13, 16  ;;  %v6916_v35 = vshrl.u32 %v6894_v13, 16  ;;  %v6782_v50 = vshrl.u32 %v6751_v27, 16 }
 0x45f   :  { %v16393_v31 = vpop.f32.mrf.mxu1  ;;  %v6606_v60 = vsel %vm14331_vm15, %v6597_v30, %v16395_v4  ;;  %6677 = vst [vmem:[#allocation5 + $0x40] sm:$0xf] %v6596_v43  ;;  %v6791_v43 = vshrl.u32 %v6752_v51, 16  ;;  %v6622_v54 = vshll.u32 %v6574_v36, 16 }
 0x460   :  { %v9673_v37 = vpop.f32.mrf.mxu2  ;;  %17324 = vst [vmem:[#allocation19_spill] sm:$0xff] %v16393_v31  ;;  %9850 = vmatmul.bf16.gmra.mxu3 %v8216_v34  ;;  %v6536_v34 = vrot.slane %v6534_v45, 4  ;;  %v6909_v30 = vor.u32 %v6908_v46, %v6905_v22  ;;  %v6918_v13 = vrot.slane %v6916_v35, 4  ;;  %v6573_v22 = vld [vmem:[#allocation3 + $0x1c] sm:$0xf]  ;;  %v6785_v35 = vshll.u32 %v6751_v27, 16 }
 0x461   :  { %v16398_v32 = vadd.f32 %v9673_v37, %v16265_v3  ;;  %v6535_v3 = vsel %vm14079_vm2, %v6533_v15, %v6534_v45  ;;  %v11765_v37 = vld [vmem:[#allocation5 + $0x38] sm:$0xf]  ;;  %6678 = vst [vmem:[#allocation5 + $0xa4] sm:$0xf] %v6606_v60  ;;  %v6922_v15 = vshll.u32 %v16403_v12, 16  ;;  %v6914_v45 = vrot.slane %v6912_v40, 5 }
 0x462   :  { %10015 = vmatmul.bf16.gmra.mxu1 %v8221_v18  ;;  %v6538_v11 = vsel %vm14079_vm2, %v6536_v34, %v17247_v62  ;;  %v16420_v18 = vld [vmem:[#allocation5 + $0x30] sm:$0xf]  ;;  %6563 = vst [vmem:[#allocation5 + $0x104] sm:$0xf] %v6535_v3  ;;  %v11766_v21 = vor.u32 %v13171_v56, %v11765_v37  ;;  %v6784_v40 = vrot.slane %v6782_v50, 7  ;;  %v16434_v37 = vrot.slane %v6791_v43, 7 }
 0x463   :  { %v9704_v61 = vpop.f32.mrf.mxu3  ;;  %6564 = vst [vmem:[#allocation5 + $0x168] sm:$0xf] %v6538_v11  ;;  %v13385_v34 = vld [vmem:[#allocation9 + $0x428] sm:$0xff]  ;;  %v16430_v3 = vrot.slane %v6922_v15, 5  ;;  %v6794_v11 = vshll.u32 %v6752_v51, 16  ;;  %v6609_v43 = vshrl.u32 %v6573_v22, 16 }
 0x464   :  { %v16418_v49 = vadd.f32 %v9704_v61, %v16367_v58  ;;  %v16428_v58 = vadd.f32 %v16224_v47, %v16280_v26  ;;  %v6919_v61 = vor.u32 %v6918_v13, %v6914_v45  ;;  %v16439_v31 = vld [vmem:[#allocation5 + $0xf4] sm:$0xf]  ;;  %v16441_v47 = vld [vmem:[#allocation5 + $0x154] sm:$0xf0]  ;;  %10088 = vmatpush.bf16.msrb.mxu3 %v13385_v34  ;;  %v13160_v27 = vld [vmem:[#allocation5 + $0x44] sm:$0xf]  ;;  %v6787_v51 = vor.u32 %v6785_v35, %v6784_v40 }
 0x465   :  { %9929 = vmatmul.bf16.vlgmr.msra.gmra.mxu2 %v11754_v39  ;;  %v6910_v39 = vrot.slane %v6909_v30, 4  ;;  %v6780_v30 = vrot.slane %v16372_v42, 4  ;;  %v11775_v13 = vld [vmem:[#allocation5 + $0xa4] sm:$0xf0]  ;;  %v6789_v50 = vrot.slane %v6784_v40, 4  ;;  %v6612_v34 = vshll.u32 %v6573_v22, 16 }
 0x466   :  { %v16424_v60 = vpop.f32.mrf.mxu0  ;;  %v6920_v15 = vrot.slane %v6919_v61, 4  ;;  %v11854_v42 = vor.u32 %v16439_v31, %v16441_v47  ;;  %v6611_v40 = vrot.slane %v6609_v43, 6  ;;  %v16456_v35 = vld [vmem:[#allocation3 + $0x28] sm:$0xf]  ;;  %v11778_v22 = vor.u32 %v13160_v27, %v11775_v13  ;;  %v13376_v43 = vld [vmem:[#allocation9 + $0x3e0] sm:$0xff] }
 0x467   :  { %v16432_v56 = vpop.f32.mrf.mxu1  ;;  %v6915_v26 = vsel %vm15665_vm11, %v6910_v39, %v6914_v45  ;;  %v6513_v45 = vld [vmem:[#allocation3 + $0x24] sm:$0xf]  ;;  %v6607_v31 = vrot.slane %v16395_v4, 4  ;;  %v6624_v47 = vrot.slane %v6622_v54, 7  ;;  %v17248_v13 = vrot.slane %v16456_v35, 6  ;;  %10056 = vmatpush.bf16.msrb.mxu2 %v13376_v43 }
 0x468   :  { %v9676_v46 = vpop.f32.mrf.mxu2  ;;  %17325 = vst [vmem:[#allocation25_spill] sm:$0xff] %v16432_v56  ;;  %v6619_v56 = vshrl.u32 %v6574_v36, 16  ;;  %v6614_v36 = vrot.slane %v6612_v34, 7 }
 0x469   :  { %v16437_v62 = vadd.f32 %v9676_v46, %v16290_v38  ;;  %10028 = vmatmul.bf16.vlgmr.msrb.gmra.mxu0 %v11766_v21  ;;  %7000 = vst [vmem:[#allocation5 + $0x54] sm:$0xf] %v6915_v26  ;;  %v6796_v38 = vor.u32 %v6794_v11, %v16434_v37  ;;  %v6925_v46 = vsel %vm15665_vm11, %v6920_v15, %v16430_v3  ;;  %v17326_v15 = vrot.slane %v16381_v33, 6 }
 0x46a   :  { %7001 = vst [vmem:[#allocation5 + $0xb8] sm:$0xf] %v6925_v46  ;;  %v6788_v21 = vsel %vm14354_vm8, %v6780_v30, %v6787_v51  ;;  %v6621_v26 = vrot.slane %v6619_v56, 6  ;;  %v6540_v51 = vrot.slane %v6513_v45, 6  ;;  %v6578_v46 = vld [vmem:[#allocation3 + $0x30] sm:$0xf]  ;;  %v6615_v27 = vor.u32 %v6614_v36, %v6611_v40 }
 0x46b   :  { %v9706_v39 = vpop.f32.mrf.mxu3  ;;  %v6797_v61 = vsel %vm14354_vm8, %v6789_v50, %v6796_v38  ;;  %6850 = vst [vmem:[#allocation5 + $0x110] sm:$0xf] %v6788_v21  ;;  %v6539_v30 = vrot.slane %v17326_v15, 4  ;;  %v9733_v50 = vadd.f32 %v16026_v8, %v16346_v5  ;;  %v6926_v56 = vshrl.u32 %v16403_v12, 16  ;;  %v6896_v5 = vld [vmem:[#allocation3 + $0x24] sm:$0xf] }
 0x46c   :  { %v16459_v11 = vadd.f32 %v9706_v39, %v16398_v32  ;;  %6851 = vst [vmem:[#allocation5 + $0x174] sm:$0xf] %v6797_v61  ;;  %v13384_v32 = vld [vmem:[#allocation9 + $0x420] sm:$0xff]  ;;  %v6659_v54 = vshrl.u32 %v6578_v46, 16  ;;  %v6662_v33 = vshll.u32 %v6578_v46, 16  ;;  %v16472_v39 = vor.u32 %v6624_v47, %v6621_v26 }
 0x46d   :  { %v6541_v8 = vsel %vm14079_vm2, %v6539_v30, %v6540_v51  ;;  %v17327_v21 = vor.u32 %v16400_v7, %v16420_v18  ;;  %v6616_v12 = vsel %vm14331_vm15, %v6607_v31, %v6615_v27  ;;  %v6617_v61 = vrot.slane %v6615_v27, 4  ;;  %v16484_v36 = vld [vmem:[#allocation3 + $0x28] sm:$0xf]  ;;  %10089 = vmatpush.bf16.msrb.mxu3 %v13384_v32  ;;  %v13196_v32 = vld [vmem:[#allocation5 + $0x160] sm:$0xf0] }
 0x46e   :  { %v16466_v38 = vpop.f32.mrf.mxu0  ;;  %v6542_v40 = vrot.slane %v6540_v51, 4  ;;  %6565 = vst [vmem:[#allocation5 + $0x1cc] sm:$0xf] %v6541_v8  ;;  %v6661_v26 = vrot.slane %v6659_v54, 6  ;;  %v6664_v47 = vrot.slane %v6662_v33, 7  ;;  %v17328_v15 = vrot.slane %v16304_v59, 7 }
 0x46f   :  { %v16470_v4 = vpop.f32.mrf.mxu1  ;;  %6679 = vst [vmem:[#allocation5 + $0x108] sm:$0xf] %v6616_v12  ;;  %v6928_v30 = vrot.slane %v6926_v56, 4  ;;  %v6626_v7 = vsel %vm14331_vm15, %v6617_v61, %v16472_v39  ;;  %v6932_v31 = vshll.u32 %v6896_v5, 16  ;;  %v6936_v51 = vshrl.u32 %v6896_v5, 16  ;;  %v13375_v61 = vld [vmem:[#allocation9 + $0x3d8] sm:$0xff] }
 0x470   :  { %v9678_v34 = vpop.f32.mrf.mxu2  ;;  %9962 = vmatmul.bf16.vlgmr.msra.gmra.mxu3 %v17327_v21  ;;  %v6544_v18 = vsel %vm14079_vm2, %v6542_v40, %v17248_v13  ;;  %v16495_v46 = vor.u32 %v6664_v47, %v6661_v26  ;;  %v11865_v56 = vld [vmem:[#allocation5 + $0x100] sm:$0xf]  ;;  %6680 = vst [vmem:[#allocation5 + $0x16c] sm:$0xf] %v6626_v7  ;;  %v6753_v33 = vld [vmem:[#allocation3 + $0x24] sm:$0xf]  ;;  %v9735_v47 = vadd.f32 %v16047_v53, %v16377_v0 }
 0x471   :  { %v16477_v45 = vadd.f32 %v9678_v34, %v16323_v17  ;;  %v6729_v17 = vrot.slane %v17328_v15, 4  ;;  %v6929_v59 = vor.u32 %v6928_v30, %v16430_v3  ;;  %v6934_v34 = vrot.slane %v6932_v31, 5  ;;  %v16502_v8 = vld [vmem:[#allocation5 + $0x158] sm:$0xf0]  ;;  %6566 = vst [vmem:[#allocation5 + $0x230] sm:$0xf] %v6544_v18  ;;  %10057 = vmatpush.bf16.msrb.mxu2 %v13375_v61 }
 0x472   :  { %10127 = vmatmul.bf16.vlgmr.msrb.gmra.mxu1 %v11778_v22  ;;  %v6942_v22 = vshll.u32 %v16484_v36, 16  ;;  %v6938_v54 = vrot.slane %v6936_v51, 4  ;;  %v6667_v5 = vrot.slane %v16495_v46, 4  ;;  %v16507_v3 = vld [vmem:[#allocation5 + $0x21c] sm:$0xf0]  ;;  %v11866_v30 = vor.u32 %v13196_v32, %v11865_v56 }
 0x473   :  { %v9709_v43 = vpop.f32.mrf.mxu3  ;;  %6747 = vst [vmem:[#allocation5 + $0x364] sm:$0x1] %v6729_v17  ;;  %v6930_v21 = vrot.slane %v6929_v59, 4  ;;  %v6754_v26 = vld [vmem:[#allocation3 + $0x28] sm:$0xf]  ;;  %v6800_v18 = vshrl.u32 %v6753_v33, 16 }
 0x474   :  { %v16500_v27 = vadd.f32 %v9709_v43, %v16437_v62  ;;  %v16510_v62 = vadd.f32 %v16286_v24, %v9733_v50  ;;  %v16512_v40 = vrot.slane %v6942_v22, 5  ;;  %6685 = vst [vmem:[#allocation5 + $0x360] sm:$0x1] %v6667_v5  ;;  %v6575_v31 = vld [vmem:[#allocation3 + $0x24] sm:$0xf]  ;;  %v13383_v51 = vld [vmem:[#allocation9 + $0x418] sm:$0xff] }
 0x475   :  { %9934 = vmatmul.bf16.gmra.mxu2 %v11854_v42  ;;  %v6939_v42 = vor.u32 %v6938_v54, %v6934_v34  ;;  %v6935_v7 = vsel %vm15665_vm11, %v6930_v21, %v6934_v34  ;;  %v11857_v50 = vld [vmem:[#allocation5 + $0xf8] sm:$0xf]  ;;  %v16524_v0 = vld [vmem:[#allocation5 + $0x1bc] sm:$0xf]  ;;  %v6802_v32 = vrot.slane %v6800_v18, 7  ;;  %v6803_v59 = vshll.u32 %v6753_v33, 16  ;;  %10090 = vmatpush.bf16.msrb.mxu3 %v13383_v51 }
 0x476   :  { %v16505_v12 = vpop.f32.mrf.mxu0  ;;  %7002 = vst [vmem:[#allocation5 + $0x11c] sm:$0xf] %v6935_v7  ;;  %v11858_v53 = vor.u32 %v16502_v8, %v11857_v50  ;;  %v6809_v22 = vshrl.u32 %v6754_v26, 16  ;;  %v13185_v34 = vld [vmem:[#allocation5 + $0x10c] sm:$0xf]  ;;  %v6629_v21 = vshrl.u32 %v6575_v31, 16 }
 0x477   :  { %v16516_v17 = vpop.f32.mrf.mxu1  ;;  %v6940_v43 = vrot.slane %v6939_v42, 4  ;;  %v11875_v54 = vld [vmem:[#allocation5 + $0x16c] sm:$0xf0]  ;;  %v6576_v5 = vld [vmem:[#allocation3 + $0x28] sm:$0xf]  ;;  %v6632_v61 = vshll.u32 %v6575_v31, 16  ;;  %v6805_v7 = vor.u32 %v6803_v59, %v6802_v32 }
 0x478   :  { %v9681_v15 = vpop.f32.mrf.mxu2  ;;  %v13403_v8 = vld [vmem:[#allocation9 + $0x4b8] sm:$0xff]  ;;  %v6946_v33 = vshrl.u32 %v16484_v36, 16  ;;  %v16539_v50 = vrot.slane %v6809_v22, 7  ;;  %v6812_v51 = vshll.u32 %v6754_v26, 16  ;;  %v11878_v31 = vor.u32 %v13185_v34, %v11875_v54 }
 0x479   :  { %v16521_v24 = vadd.f32 %v9681_v15, %v16357_v41  ;;  %10033 = vmatmul.bf16.gmra.mxu0 %v11866_v30  ;;  %v6945_v41 = vsel %vm15665_vm11, %v6940_v43, %v16512_v40  ;;  %v16532_v15 = vadd.f32 %v16318_v44, %v9735_v47  ;;  %v6798_v30 = vrot.slane %v16434_v37, 4  ;;  %v6515_v56 = vld [vmem:[#allocation3 + $0x2c] sm:$0xf] }
 0x47a   :  { %7003 = vst [vmem:[#allocation5 + $0x180] sm:$0xf] %v6945_v41  ;;  %v6631_v43 = vrot.slane %v6629_v21, 6  ;;  %10152 = vmatpush.bf16.msra.mxu0 %v13403_v8  ;;  %v6634_v47 = vrot.slane %v6632_v61, 7  ;;  %v6639_v13 = vshrl.u32 %v6576_v5, 16  ;;  %v6807_v41 = vrot.slane %v6802_v32, 4 }
 0x47b   :  { %v9711_v42 = vpop.f32.mrf.mxu3  ;;  %v6806_v44 = vsel %vm14354_vm8, %v6798_v30, %v6805_v7  ;;  %v6814_v37 = vor.u32 %v6812_v51, %v16539_v50  ;;  %v6642_v59 = vshll.u32 %v6576_v5, 16  ;;  %v17329_v54 = vrot.slane %v16456_v35, 6  ;;  %v6898_v61 = vld [vmem:[#allocation3 + $0x2c] sm:$0xf]  ;;  %v13374_v32 = vld [vmem:[#allocation9 + $0x3d0] sm:$0xff] }
 0x47c   :  { %v16537_v18 = vadd.f32 %v9711_v42, %v16477_v45  ;;  %6852 = vst [vmem:[#allocation5 + $0x1d8] sm:$0xf] %v6806_v44  ;;  %v6627_v45 = vrot.slane %v16472_v39, 4  ;;  %v6635_v21 = vor.u32 %v6634_v47, %v6631_v43  ;;  %v6641_v34 = vrot.slane %v6639_v13, 6  ;;  %v13382_v7 = vld [vmem:[#allocation9 + $0x410] sm:$0xff]  ;;  %10058 = vmatpush.bf16.msrb.mxu2 %v13374_v32 }
 0x47d   :  { %v6545_v42 = vrot.slane %v17329_v54, 4  ;;  %v6546_v8 = vrot.slane %v6515_v56, 6  ;;  %v6815_v39 = vsel %vm14354_vm8, %v6807_v41, %v6814_v37  ;;  %v6644_v5 = vrot.slane %v6642_v59, 7  ;;  %v16556_v51 = vld [vmem:[#allocation3 + $0x30] sm:$0xf]  ;;  %10091 = vmatpush.bf16.msrb.mxu3 %v13382_v7  ;;  %v13427_v7 = vld [vmem:[#allocation9 + $0x578] sm:$0xff] }
 0x47e   :  { %v16543_v36 = vpop.f32.mrf.mxu0  ;;  %v6948_v44 = vrot.slane %v6946_v33, 4  ;;  %v9738_v13 = vadd.f32 %v16078_v28, %v16418_v49  ;;  %6853 = vst [vmem:[#allocation5 + $0x23c] sm:$0xf] %v6815_v39  ;;  %v6636_v35 = vsel %vm14331_vm15, %v6627_v45, %v6635_v21  ;;  %v6637_v56 = vrot.slane %v6635_v21, 4  ;;  %v11965_v28 = vld [vmem:[#allocation5 + $0x1c8] sm:$0xf]  ;;  %10251 = vmatpush.bf16.msra.mxu1 %v13427_v7 }
 0x47f   :  { %v16547_v26 = vpop.f32.mrf.mxu1  ;;  %v16564_v43 = vor.u32 %v6644_v5, %v6641_v34  ;;  %6681 = vst [vmem:[#allocation5 + $0x1d0] sm:$0xf] %v6636_v35  ;;  %v6548_v47 = vrot.slane %v6546_v8, 4  ;;  %v6952_v41 = vshll.u32 %v6898_v61, 16  ;;  %v13221_v49 = vld [vmem:[#allocation5 + $0x228] sm:$0xf0] }
 0x480   :  { %v9683_v22 = vpop.f32.mrf.mxu2  ;;  %9967 = vmatmul.bf16.gmra.mxu3 %v11858_v53  ;;  %v6865_v53 = vld [vmem:[#allocation3 + $0x34] sm:$0x1]  ;;  %v6949_v33 = vor.u32 %v6948_v44, %v16512_v40  ;;  %v6956_v45 = vshrl.u32 %v6898_v61, 16  ;;  %v6962_v59 = vshll.u32 %v16556_v51, 16  ;;  %v17331_v21 = vrot.slane %v16309_v20, 6  ;;  %v6859_v20 = vld [vmem:[#allocation3 + $0x1c] sm:$0xff]  }
 0x481   :  { %v16552_v30 = vadd.f32 %v9683_v22, %v16387_v25  ;;  %v6547_v25 = vsel %vm14079_vm2, %v6545_v42, %v6546_v8  ;;  %v6646_v40 = vsel %vm14331_vm15, %v6637_v56, %v16564_v43  ;;  %v6755_v54 = vld [vmem:[#allocation3 + $0x2c] sm:$0xf]  ;;  %v6756_v42 = vld [vmem:[#allocation3 + $0x30] sm:$0xf]  ;;  %6874 = vst [vmem:[#allocation5 + $0x36c] sm:$0x1] %v6865_v53  ;;  %v16584_v39 = vadd.f32 %v16353_v10, %v9738_v13 }
 0x482   :  { %10132 = vmatmul.bf16.gmra.mxu1 %v11878_v31  ;;  %6567 = vst [vmem:[#allocation5 + $0x294] sm:$0xf] %v6547_v25  ;;  %v17330_v31 = vor.u32 %v16524_v0, %v16507_v3  ;;  %v6550_v34 = vsel %vm14079_vm2, %v6548_v47, %v17331_v21  ;;  %v6950_v8 = vrot.slane %v6949_v33, 4  ;;  %v6958_v61 = vrot.slane %v6956_v45, 4  ;;  %v13402_v0 = vld [vmem:[#allocation9 + $0x4b0] sm:$0xff]  ;;  %v13401_v10 = vld [vmem:[#allocation9 + $0x4a8] sm:$0xff] }
 0x483   :  { %v9714_v37 = vpop.f32.mrf.mxu3  ;;  %6682 = vst [vmem:[#allocation5 + $0x234] sm:$0xf] %v6646_v40  ;;  %v11966_v3 = vor.u32 %v13221_v49, %v11965_v28  ;;  %v16588_v35 = vld [vmem:[#allocation5 + $0x220] sm:$0xf0]  ;;  %v16592_v53 = vrot.slane %v6962_v59, 5  ;;  %v6818_v47 = vshrl.u32 %v6755_v54, 16  ;;  %10153 = vmatpush.bf16.msra.mxu0 %v13402_v0  ;;  %v9740_v59 = vadd.f32 %v16100_v14, %v16459_v11 }
 0x484   :  { %v16569_v22 = vadd.f32 %v9714_v37, %v16521_v24  ;;  %v6954_v24 = vrot.slane %v6952_v41, 5  ;;  %6568 = vst [vmem:[#allocation5 + $0x2f8] sm:$0xf] %v6550_v34  ;;  %v6577_v33 = vld [vmem:[#allocation3 + $0x2c] sm:$0xf]  ;;  %v13373_v13 = vld [vmem:[#allocation9 + $0x3c8] sm:$0xff] }
 0x485   :  { %9939 = vmatmul.bf16.gmra.mxu2 %v17330_v31  ;;  %v6966_v37 = vshrl.u32 %v16556_v51, 16  ;;  %v6820_v49 = vrot.slane %v6818_v47, 7  ;;  %v6821_v45 = vshll.u32 %v6755_v54, 16  ;;  %v6827_v31 = vshrl.u32 %v6756_v42, 16  ;;  %6868 = vst [vmem:[#allocation5 + $0x114] sm:$0xff] %v6859_v20  }
 0x486   :  { %v16581_v32 = vpop.f32.mrf.mxu0  ;;  %v6955_v56 = vsel %vm15665_vm11, %v6950_v8, %v6954_v24  ;;  %v6959_v25 = vor.u32 %v6958_v61, %v6954_v24  ;;  %v11957_v40 = vld [vmem:[#allocation5 + $0x1c0] sm:$0xf]  ;;  %10059 = vmatpush.bf16.msrb.mxu2 %v13373_v13  ;;  %v6649_v21 = vshrl.u32 %v6577_v33, 16  ;;  %v6652_v34 = vshll.u32 %v6577_v33, 16  ;;  %v13210_v24 = vld [vmem:[#allocation5 + $0x1d4] sm:$0xf] }
 0x487   :  { %v16586_v44 = vpop.f32.mrf.mxu1  ;;  %7004 = vst [vmem:[#allocation5 + $0x1e4] sm:$0xf] %v6955_v56  ;;  %v11975_v61 = vld [vmem:[#allocation5 + $0x234] sm:$0xf0]  ;;  %v16604_v54 = vrot.slane %v6827_v31, 7  ;;  %v6830_v0 = vshll.u32 %v6756_v42, 16  ;;  %v11958_v14 = vor.u32 %v16588_v35, %v11957_v40  ;;  %10154 = vmatpush.bf16.msra.mxu0 %v13401_v10  ;;  %v16614_v10 = vadd.f32 %v16383_v9, %v9740_v59 }
 0x488   :  { %v9686_v5 = vpop.f32.mrf.mxu2  ;;  %v6960_v28 = vrot.slane %v6959_v25, 4  ;;  %v6651_v11 = vrot.slane %v6649_v21, 6  ;;  %v6900_v20 = vld [vmem:[#allocation3 + $0x34] sm:$0xf]  ;;  %v6825_v25 = vrot.slane %v6820_v49, 4  ;;  %v6968_v13 = vrot.slane %v6966_v37, 4 }
 0x489   :  { %v16595_v41 = vadd.f32 %v9686_v5, %v16428_v58  ;;  %10038 = vmatmul.bf16.gmra.mxu0 %v11966_v3  ;;  %v6816_v58 = vrot.slane %v16539_v50, 4  ;;  %v6823_v3 = vor.u32 %v6821_v45, %v6820_v49  ;;  %v6654_v50 = vrot.slane %v6652_v34, 7  ;;  %v12051_v5 = vld [vmem:[#allocation5 + $0x2e4] sm:$0xf0]  ;;  %v6901_v33 = vld [vmem:[#allocation3 + $0x38] sm:$0x3] }
 0x48a   :  { %v6965_v51 = vsel %vm15665_vm11, %v6960_v28, %v16592_v53  ;;  %v6832_v47 = vor.u32 %v6830_v0, %v16604_v54  ;;  %v6757_v42 = vld [vmem:[#allocation3 + $0x34] sm:$0x1]  ;;  %v13426_v31 = vld [vmem:[#allocation9 + $0x570] sm:$0xff]  ;;  %v13381_v35 = vld [vmem:[#allocation9 + $0x408] sm:$0xff]  ;;  %v6647_v40 = vrot.slane %v16564_v43, 4  ;;  %v6976_v0 = vshrl.u32 %v6900_v20, 16 }
 0x48b   :  { %v9716_v8 = vpop.f32.mrf.mxu3  ;;  %7005 = vst [vmem:[#allocation5 + $0x248] sm:$0xf] %v6965_v51  ;;  %v6824_v56 = vsel %vm14354_vm8, %v6816_v58, %v6823_v3  ;;  %v13400_v45 = vld [vmem:[#allocation9 + $0x4a0] sm:$0xff]  ;;  %v6655_v21 = vor.u32 %v6654_v50, %v6651_v11  ;;  %v7009_v34 = vld [vmem:[#allocation3 + $0x18] sm:$0xe]  ;;  %v13399_v51 = vld [vmem:[#allocation9 + $0x498] sm:$0xff]  ;;  %10252 = vmatpush.bf16.msra.mxu1 %v13426_v31  ;;  %10092 = vmatpush.bf16.msrb.mxu3 %v13381_v35 }
 0x48c   :  { %v16607_v7 = vadd.f32 %v9716_v8, %v16552_v30  ;;  %v11978_v30 = vor.u32 %v13210_v24, %v11975_v61  ;;  %6854 = vst [vmem:[#allocation5 + $0x2a0] sm:$0xf] %v6824_v56  ;;  %v13232_v8 = vld [vmem:[#allocation5 + $0x284] sm:$0xf]  ;;  %v13425_v37 = vld [vmem:[#allocation9 + $0x568] sm:$0xff]  ;;  %v6833_v24 = vsel %vm14354_vm8, %v6825_v25, %v6832_v47  ;;  %v6969_v61 = vor.u32 %v6968_v13, %v16592_v53 }
 0x48d   :  { %v6972_v3 = vshll.u32 %v6900_v20, 16  ;;  %v7010_v9 = vld [vmem:[#allocation3 + $0x1c] sm:$0xf]  ;;  %v16622_v59 = vld [vmem:[#allocation3 + $0x20] sm:$0xf]  ;;  %10155 = vmatpush.bf16.msra.mxu0 %v13400_v45  ;;  %v13372_v43 = vld [vmem:[#allocation9 + $0x3c0] sm:$0xff]  ;;  %v6656_v11 = vsel %vm14331_vm15, %v6647_v40, %v6655_v21  ;;  %v12054_v13 = vor.u32 %v13232_v8, %v12051_v5 }
 0x48e   :  { %v9787_v28 = vpop.f32.mrf.mxu0  ;;  %6855 = vst [vmem:[#allocation5 + $0x304] sm:$0xf] %v6833_v24  ;;  %v6657_v50 = vrot.slane %v6655_v21, 4  ;;  %v6982_v56 = vshll.u32 %v6901_v33, 16  ;;  %v6970_v53 = vrot.slane %v6969_v61, 4  ;;  %v6978_v20 = vrot.slane %v6976_v0, 4  ;;  %10060 = vmatpush.bf16.msrb.mxu2 %v13372_v43 }
 0x48f   :  { %v16617_v49 = vpop.f32.mrf.mxu1  ;;  %v6834_v28 = vrot.slane %v16604_v54, 4  ;;  %6683 = vst [vmem:[#allocation5 + $0x298] sm:$0xf] %v6656_v11  ;;  %v6974_v25 = vrot.slane %v6972_v3, 5  ;;  %v6836_v47 = vshll.u32 %v6757_v42, 16  ;;  %v7029_v1 = vrot.slane %v7010_v9, 5  ;;  %10253 = vmatpush.bf16.msra.mxu1 %v13425_v37 }
 0x490   :  { %v9688_v58 = vpop.f32.mrf.mxu2  ;;  %9972 = vmatmul.bf16.gmra.mxu3 %v11958_v14  ;;  %v9743_v14 = vadd.f32 %v16128_v52, %v16500_v27  ;;  %v6666_v45 = vsel %vm14331_vm15, %v6657_v50, %v16495_v46  ;;  %v16632_v33 = vrot.slane %v6982_v56, 5  ;;  %v13246_v31 = vld [vmem:[#allocation5 + $0x2f0] sm:$0xf0]  ;;  %v11705_v52 = vrot.slane %v7009_v34, 9  ;;  %v12065_v21 = vld [vmem:[#allocation5 + $0x290] sm:$0xf] }
 0x491   :  { %6684 = vst [vmem:[#allocation5 + $0x2fc] sm:$0xf] %v6666_v45  ;;  %v6975_v35 = vsel %vm15665_vm11, %v6970_v53, %v6974_v25  ;;  %v6979_v40 = vor.u32 %v6978_v20, %v6974_v25  ;;  %v6838_v42 = vsel %vm14354_vm8, %v6834_v28, %v6836_v47  ;;  %v6860_v27 = vld [vmem:[#allocation3 + $0x20] sm:$0xff]   ;;  %10156 = vmatpush.bf16.msra.mxu0 %v13399_v51  ;;  %v7032_v46 = vrot.slane %v16622_v59, 5  ;;  %v13424_v34 = vld [vmem:[#allocation9 + $0x560] sm:$0xff]  ;;  %v13423_v28 = vld [vmem:[#allocation9 + $0x558] sm:$0xff] }
 0x492   :  { %10137 = vmatmul.bf16.gmra.mxu1 %v11978_v30  ;;  %7006 = vst [vmem:[#allocation5 + $0x2ac] sm:$0xf] %v6975_v35  ;;  %v7012_v30 = vld [vmem:[#allocation3 + $0x24] sm:$0xf]  ;;  %v13380_v61 = vld [vmem:[#allocation9 + $0x400] sm:$0xff]  ;;  %v7030_v51 = vsel %vm14304_vm12, %v11705_v52, %v7029_v1  ;;  %v7031_v3 = vrot.slane %v7029_v1, 4  ;;  %v12066_v59 = vor.u32 %v13246_v31, %v12065_v21  ;;  %v9745_v20 = vadd.f32 %v16160_v48, %v16537_v18 }
 0x493   :  { %v9719_v54 = vpop.f32.mrf.mxu3  ;;  %v6980_v58 = vrot.slane %v6979_v40, 4  ;;  %6856 = vst [vmem:[#allocation5 + $0x368] sm:$0x1] %v6838_v42  ;;  %v7035_v8 = vrot.slane %v7012_v30, 5  ;;  %v6861_v43 = vld [vmem:[#allocation3 + $0x24] sm:$0xff]   ;;  %10093 = vmatpush.bf16.msrb.mxu3 %v13380_v61  ;;  %10254 = vmatpush.bf16.msra.mxu1 %v13424_v34  ;;  %v7034_v53 = vrot.slane %v7032_v46, 4 }
 0x494   :  { %v16639_v5 = vadd.f32 %v9719_v54, %v16595_v41  ;;  %v16645_v41 = vadd.f32 %v16424_v60, %v9743_v14  ;;  %6869 = vst [vmem:[#allocation5 + $0x178] sm:$0xff] %v6860_v27   ;;  %v13397_v60 = vld [vmem:[#allocation9 + $0x488] sm:$0xff]  ;;  %v7033_v50 = vsel %vm14304_vm12, %v7031_v3, %v7032_v46  ;;  %v7013_v56 = vld [vmem:[#allocation3 + $0x28] sm:$0xf]  ;;  %v7014_v54 = vld [vmem:[#allocation3 + $0x2c] sm:$0xf]  ;;  %v8094_v27 = vunpack.c.h.b16 %v16338_v2 }
 0x495   :  { %9944 = vmatmul.bf16.gmra.mxu2 %v12054_v13  ;;  %v6985_v37 = vsel %vm15665_vm11, %v6980_v58, %v16632_v33  ;;  %7062 = vst [vmem:[#allocation5 + $0x58] sm:$0xf] %v7030_v51  ;;  %10157 = vmatpush.bf16.msra.mxu0 %v13398_v63  ;;  %v7037_v55 = vrot.slane %v7035_v8, 4  ;;  %v7038_v25 = vrot.slane %v7013_v56, 5  ;;  %v13245_v14 = vld [vmem:[#allocation5 + $0x2e8] sm:$0xf0]  ;;  %v7036_v13 = vsel %vm14304_vm12, %v7034_v53, %v7035_v8 }
 0x496   :  { %v16642_v24 = vpop.f32.mrf.mxu0  ;;  %7007 = vst [vmem:[#allocation5 + $0x310] sm:$0xf] %v6985_v37  ;;  %v16663_v31 = vld [vmem:[#allocation3 + $0x1c] sm:$0xf]  ;;  %v7041_v40 = vrot.slane %v7014_v54, 5  ;;  %v13396_v1 = vld [vmem:[#allocation9 + $0x480] sm:$0xff]  ;;  %v16669_v21 = vadd.f32 %v16466_v38, %v9745_v20  ;;  %v8219_v37 = vpack.c.b16 %v8094_v27, %v8094_v27 }
 0x497   :  { %v9886_v9 = vpop.f32.mrf.mxu1  ;;  %7063 = vst [vmem:[#allocation5 + $0xbc] sm:$0xf] %v7033_v50  ;;  %v7039_v45 = vsel %vm14304_vm12, %v7037_v55, %v7038_v25  ;;  %v7040_v35 = vrot.slane %v7038_v25, 4  ;;  %v12057_v42 = vld [vmem:[#allocation5 + $0x288] sm:$0xf]  ;;  %10255 = vmatpush.bf16.msra.mxu1 %v13423_v28  ;;  %v13422_v46 = vld [vmem:[#allocation9 + $0x550] sm:$0xff] }
 0x498   :  { %v9798_v0 = vpop.f32.mrf.mxu2  ;;  %6870 = vst [vmem:[#allocation5 + $0x1dc] sm:$0xff] %v6861_v43   ;;  %v12075_v48 = vld [vmem:[#allocation5 + $0x2fc] sm:$0xf0]  ;;  %v12058_v18 = vor.u32 %v13245_v14, %v12057_v42  ;;  %v13235_v34 = vld [vmem:[#allocation5 + $0x29c] sm:$0xf]  ;;  %v13421_v38 = vld [vmem:[#allocation9 + $0x548] sm:$0xff] }
 0x499   :  { %v16653_v11 = vadd.f32 %v9798_v0, %v16510_v62  ;;  %10043 = vmatmul.bf16.gmra.mxu0 %v12066_v59  ;;  %v6862_v62 = vld [vmem:[#allocation3 + $0x28] sm:$0xff]   ;;  %7064 = vst [vmem:[#allocation5 + $0x120] sm:$0xf] %v7036_v13  ;;  %v7042_v58 = vsel %vm14304_vm12, %v7040_v35, %v7041_v40  ;;  %v12078_v2 = vor.u32 %v13235_v34, %v12075_v48  ;;  %v7071_v0 = vld [vmem:[#allocation3 + $0x18] sm:$0xe]  ;;  %v7090_v9 = vshrl.u32 %v16663_v31, 16 }
 0x49a   :  { %6871 = vst [vmem:[#allocation5 + $0x240] sm:$0xff] %v6862_v62   ;;  %10158 = vmatpush.bf16.msra.mxu0 %v13397_v60  ;;  %v13411_v30 = vld [vmem:[#allocation9 + $0x4f8] sm:$0xff]  ;;  %v9748_v59 = vadd.f32 %v16202_v19, %v16569_v22  ;;  %v7043_v50 = vrot.slane %v7041_v40, 4  ;;  %v6864_v53 = vld [vmem:[#allocation3 + $0x30] sm:$0xff]   ;;  %v7081_v55 = vshrl.u32 %v7071_v0, 16  ;;  %v7084_v62 = vshll.u32 %v7071_v0, 16 }
 0x49b   :  { %v9721_v47 = vpop.f32.mrf.mxu3  ;;  %7065 = vst [vmem:[#allocation5 + $0x184] sm:$0xf] %v7039_v45  ;;  %v16675_v61 = vld [vmem:[#allocation5 + $0x358] sm:$0x11]  ;;  %10256 = vmatpush.bf16.msra.mxu1 %v13422_v46  ;;  %10185 = vmatpush.bf16.msra.mxu2 %v13411_v30  ;;  %v6863_v28 = vld [vmem:[#allocation3 + $0x2c] sm:$0xff]   ;;  %v7093_v19 = vshll.u32 %v16663_v31, 16 }
 0x49c   :  { %v13419_v3 = vld [vmem:[#allocation9 + $0x538] sm:$0xff]  ;;  %7066 = vst [vmem:[#allocation5 + $0x1e8] sm:$0xf] %v7042_v58  ;;  %v8097_v43 = vunpack.c.l.b16 %v16675_v61  ;;  %v7016_v20 = vld [vmem:[#allocation3 + $0x34] sm:$0xf]  ;;  %v7092_v45 = vrot.slane %v7090_v9, 5  ;;  %v16695_v40 = vadd.f32 %v16505_v12, %v9748_v59 }
 0x49d   :  { %10218 = vmatpush.bf16.msra.mxu3 %v13419_v3  ;;  %6872 = vst [vmem:[#allocation5 + $0x2a4] sm:$0xff] %v6863_v28   ;;  %v16690_v47 = vld [vmem:[#allocation3 + $0x38] sm:$0x3]  ;;  %v7047_v13 = vrot.slane %v7016_v20, 5  ;;  %v13420_v35 = vld [vmem:[#allocation9 + $0x540] sm:$0xff]  ;;  %v7083_v30 = vrot.slane %v7081_v55, 5 }
 0x49e   :  { %v16665_v52 = vpop.f32.mrf.mxu0  ;;  %10159 = vmatpush.bf16.msra.mxu0 %v13396_v1  ;;  %6873 = vst [vmem:[#allocation5 + $0x308] sm:$0xff] %v6864_v53   ;;  %v7050_v31 = vrot.slane %v16690_v47, 5  ;;  %v7073_v42 = vld [vmem:[#allocation3 + $0x20] sm:$0xf]  ;;  %v16700_v27 = vld [vmem:[#allocation5 + $0x360] sm:$0x11] }
 0x49f   :  { %v16673_v63 = vpop.f32.mrf.mxu1  ;;  %10257 = vmatpush.bf16.msra.mxu1 %v13421_v38  ;;  %v7049_v46 = vrot.slane %v7047_v13, 4  ;;  %v7086_v58 = vrot.slane %v7084_v62, 6  ;;  %v13410_v12 = vld [vmem:[#allocation9 + $0x4f0] sm:$0xff]  ;;  %v7100_v3 = vshrl.u32 %v7073_v42, 16  ;;  %v7103_v9 = vshll.u32 %v7073_v42, 16 }
 0x4a0   :  { %v9800_v8 = vpop.f32.mrf.mxu2  ;;  %9977 = vmatmul.bf16.gmra.mxu3 %v12058_v18  ;;  %v13418_v34 = vld [vmem:[#allocation9 + $0x530] sm:$0xff]  ;;  %v7187_v59 = vld [vmem:[#allocation3 + $0x18] sm:$0xc]  ;;  %10186 = vmatpush.bf16.msra.mxu2 %v13410_v12  ;;  %v8100_v55 = vunpack.c.h.b16 %v16700_v27  ;;  %v7075_v42 = vld [vmem:[#allocation3 + $0x28] sm:$0xf] }
 0x4a1   :  { %v16678_v51 = vadd.f32 %v9800_v8, %v16532_v15  ;;  %v7015_v15 = vld [vmem:[#allocation3 + $0x30] sm:$0xf]  ;;  %v7051_v38 = vsel %vm14304_vm12, %v7049_v46, %v7050_v31  ;;  %v7087_v0 = vor.u32 %v7086_v58, %v7083_v30  ;;  %10219 = vmatpush.bf16.msra.mxu3 %v13418_v34  ;;  %v7105_v53 = vrot.slane %v7103_v9, 6  ;;  %v7189_v20 = vld [vmem:[#allocation3 + $0x20] sm:$0xf] }
 0x4a2   :  { %10142 = vmatmul.bf16.gmra.mxu1 %v12078_v2  ;;  %v7044_v56 = vrot.slane %v7015_v15, 5  ;;  %v7095_v2 = vrot.slane %v7093_v19, 6  ;;  %7069 = vst [vmem:[#allocation5 + $0x314] sm:$0xf] %v7051_v38  ;;  %v11706_v62 = vrot.slane %v7187_v59, 10  ;;  %v7210_v12 = vrot.slane %v7189_v20, 6 }
 0x4a3   :  { %v9831_v60 = vpop.f32.mrf.mxu3  ;;  %10258 = vmatpush.bf16.msra.mxu1 %v13420_v35  ;;  %v7088_v28 = vrot.slane %v7087_v0, 4  ;;  %v16730_v34 = vld [vmem:[#allocation3 + $0x28] sm:$0xf] }
 0x4a4   :  { %v16685_v25 = vadd.f32 %v9831_v60, %v16653_v11  ;;  %v7045_v22 = vsel %vm14304_vm12, %v7043_v50, %v7044_v56  ;;  %v7046_v14 = vrot.slane %v7044_v56, 4  ;;  %v8222_v11 = vpack.c.b16 %v8097_v43, %v8097_v43  ;;  %v13778_v43 = vld [vmem:[#allocation5 + $0x350] sm:$0x11]  ;;  %v13159_v9 = vld [vmem:[#allocation5 + $0x3c] sm:$0xf] }
 0x4a5   :  { %9949 = vmatmul.bf16.gmra.mxu2 %v8219_v37  ;;  %7067 = vst [vmem:[#allocation5 + $0x24c] sm:$0xf] %v7045_v22  ;;  %v7188_v37 = vld [vmem:[#allocation3 + $0x1c] sm:$0xf]  ;;  %v8095_v15 = vunpack.c.l.b16 %v13778_v43  ;;  %v7096_v60 = vor.u32 %v7095_v2, %v7092_v45  ;;  %v7102_v50 = vrot.slane %v7100_v3, 5  ;;  %v8225_v2 = vpack.c.b16 %v8100_v55, %v8100_v55 }
 0x4a6   :  { %v16692_v54 = vpop.f32.mrf.mxu0  ;;  %v7048_v1 = vsel %vm14304_vm12, %v7046_v14, %v7047_v13  ;;  %v7207_v19 = vrot.slane %v7188_v37, 6  ;;  %v11767_v22 = vld [vmem:[#allocation5 + $0x9c] sm:$0xf0]  ;;  %v7074_v13 = vld [vmem:[#allocation3 + $0x24] sm:$0xf]  ;;  %v13409_v3 = vld [vmem:[#allocation9 + $0x4e8] sm:$0xff] }
 0x4a7   :  { %v16698_v18 = vpop.f32.mrf.mxu1  ;;  %7068 = vst [vmem:[#allocation5 + $0x2b0] sm:$0xf] %v7048_v1  ;;  %v7106_v14 = vor.u32 %v7105_v53, %v7102_v50  ;;  %v8220_v45 = vpack.c.b16 %v8095_v15, %v8095_v15  ;;  %v7110_v38 = vshrl.u32 %v7074_v13, 16  ;;  %v7113_v0 = vshll.u32 %v7074_v13, 16  ;;  %10187 = vmatpush.bf16.msra.mxu2 %v13409_v3  ;;  %v13172_v3 = vld [vmem:[#allocation5 + $0xa0] sm:$0xf0] }
 0x4a8   :  { %v9803_v48 = vpop.f32.mrf.mxu2  ;;  %v7209_v58 = vrot.slane %v7207_v19, 4  ;;  %v7120_v37 = vshrl.u32 %v7075_v42, 16  ;;  %v7212_v43 = vrot.slane %v7210_v12, 4  ;;  %v9753_v15 = vadd.f32 %v16269_v57, %v16639_v5  ;;  %v11781_v5 = vld [vmem:[#allocation5 + $0x48] sm:$0xf] }
 0x4a9   :  { %v16705_v8 = vadd.f32 %v9803_v48, %v16584_v39  ;;  %10048 = vmatmul.bf16.gmra.mxu0 %v8222_v11  ;;  %v9750_v39 = vadd.f32 %v16233_v29, %v16607_v7  ;;  %v7097_v29 = vsel %vm15596_vm1, %v7088_v28, %v7096_v60  ;;  %v7098_v7 = vrot.slane %v7096_v60, 4  ;;  %v7190_v48 = vld [vmem:[#allocation3 + $0x24] sm:$0xf] }
 0x4aa   :  { %7178 = vst [vmem:[#allocation5 + $0x5c] sm:$0xf] %v7097_v29  ;;  %v7211_v59 = vsel %vm14079_vm2, %v7209_v58, %v7210_v12  ;;  %v11770_v60 = vor.u32 %v13159_v9, %v11767_v22  ;;  %v7115_v50 = vrot.slane %v7113_v0, 6  ;;  %v7122_v53 = vrot.slane %v7120_v37, 5  ;;  %v13173_v29 = vld [vmem:[#allocation5 + $0xa8] sm:$0xf0] }
 0x4ab   :  { %v9833_v56 = vpop.f32.mrf.mxu3  ;;  %v16722_v35 = vadd.f32 %v16543_v36, %v9750_v39  ;;  %v7107_v30 = vsel %vm15596_vm1, %v7098_v7, %v7106_v14  ;;  %v7123_v39 = vshll.u32 %v7075_v42, 16  ;;  %7241 = vst [vmem:[#allocation5 + $0xc4] sm:$0xf] %v7211_v59  ;;  %v7213_v20 = vrot.slane %v7190_v48, 6 }
 0x4ac   :  { %v16714_v6 = vadd.f32 %v9833_v56, %v16678_v51  ;;  %v7208_v51 = vsel %vm14079_vm2, %v11706_v62, %v7207_v19  ;;  %7179 = vst [vmem:[#allocation5 + $0xc0] sm:$0xf] %v7107_v30  ;;  %v7076_v56 = vld [vmem:[#allocation3 + $0x2c] sm:$0xf]  ;;  %v7216_v62 = vrot.slane %v16730_v34, 6  ;;  %v7108_v7 = vrot.slane %v7106_v14, 4 }
 0x4ad   :  { %7240 = vst [vmem:[#allocation5 + $0x60] sm:$0xf] %v7208_v51  ;;  %v7125_v55 = vrot.slane %v7123_v39, 6  ;;  %v7214_v13 = vsel %vm14079_vm2, %v7212_v43, %v7213_v20  ;;  %v7130_v51 = vshrl.u32 %v7076_v56, 16  ;;  %v16748_v48 = vadd.f32 %v16581_v32, %v9753_v15  ;;  %v7079_v30 = vld [vmem:[#allocation3 + $0x38] sm:$0x7] }
 0x4ae   :  { %v16719_v11 = vpop.f32.mrf.mxu0  ;;  %v7133_v14 = vshll.u32 %v7076_v56, 16  ;;  %v11773_v32 = vld [vmem:[#allocation5 + $0x40] sm:$0xf]  ;;  %7242 = vst [vmem:[#allocation5 + $0x128] sm:$0xf] %v7214_v13  ;;  %v7160_v59 = vshrl.u32 %v7079_v30, 16 }
 0x4af   :  { %v16726_v46 = vpop.f32.mrf.mxu1  ;;  %v7126_v22 = vor.u32 %v7125_v55, %v7122_v53  ;;  %v7163_v37 = vshll.u32 %v7079_v30, 16  ;;  %v7192_v39 = vld [vmem:[#allocation3 + $0x2c] sm:$0xf]  ;;  %v11774_v43 = vor.u32 %v13172_v3, %v11773_v32  ;;  %v7077_v15 = vld [vmem:[#allocation3 + $0x30] sm:$0xf]  ;;  %v7218_v55 = vrot.slane %v7216_v62, 4 }
 0x4b0   :  { %v9805_v1 = vpop.f32.mrf.mxu2  ;;  %9982 = vmatmul.bf16.gmra.mxu3 %v8220_v45  ;;  %v7215_v45 = vrot.slane %v7213_v20, 4  ;;  %v7193_v53 = vld [vmem:[#allocation3 + $0x30] sm:$0xf]  ;;  %v7078_v13 = vld [vmem:[#allocation3 + $0x34] sm:$0xf] }
 0x4b1   :  { %v16733_v36 = vadd.f32 %v9805_v1, %v16614_v10  ;;  %v7112_v10 = vrot.slane %v7110_v38, 5  ;;  %v13417_v1 = vld [vmem:[#allocation9 + $0x528] sm:$0xff]  ;;  %v7128_v56 = vrot.slane %v7126_v22, 4  ;;  %v7165_v3 = vrot.slane %v7163_v37, 6  ;;  %v7194_v32 = vld [vmem:[#allocation3 + $0x34] sm:$0xf] }
 0x4b2   :  { %10147 = vmatmul.bf16.gmra.mxu1 %v8225_v2  ;;  %v11782_v2 = vor.u32 %v13173_v29, %v11781_v5  ;;  %v7217_v38 = vsel %vm14079_vm2, %v7215_v45, %v7216_v62  ;;  %10220 = vmatpush.bf16.msra.mxu3 %v13417_v1  ;;  %v11867_v29 = vld [vmem:[#allocation5 + $0x164] sm:$0xf0]  ;;  %v7222_v5 = vrot.slane %v7193_v53, 6  ;;  %v13162_v45 = vld [vmem:[#allocation5 + $0x54] sm:$0xf]  ;;  %v7162_v62 = vrot.slane %v7160_v59, 5 }
 0x4b3   :  { %v9836_v28 = vpop.f32.mrf.mxu3  ;;  %v7116_v57 = vor.u32 %v7115_v50, %v7112_v10  ;;  %7243 = vst [vmem:[#allocation5 + $0x18c] sm:$0xf] %v7217_v38  ;;  %v7135_v10 = vrot.slane %v7133_v14, 6  ;;  %v11791_v1 = vld [vmem:[#allocation5 + $0xb4] sm:$0xf0] }
 0x4b4   :  { %v16741_v19 = vadd.f32 %v9836_v28, %v16705_v8  ;;  %v7143_v28 = vshll.u32 %v7077_v15, 16  ;;  %v11794_v59 = vor.u32 %v13162_v45, %v11791_v1  ;;  %v7225_v1 = vrot.slane %v7194_v32, 6 }
 0x4b5   :  { %10061 = vmatmul.bf16.vlgmr.msrb.gmra.mxu2 %v11770_v60  ;;  %v7117_v8 = vsel %vm15596_vm1, %v7108_v7, %v7116_v57  ;;  %v7118_v58 = vrot.slane %v7116_v57, 4  ;;  %v7132_v60 = vrot.slane %v7130_v51, 5  ;;  %v7219_v57 = vrot.slane %v7192_v39, 6 }
 0x4b6   :  { %v16745_v42 = vpop.f32.mrf.mxu0  ;;  %7180 = vst [vmem:[#allocation5 + $0x124] sm:$0xf] %v7117_v8  ;;  %v7145_v8 = vrot.slane %v7143_v28, 6  ;;  %v7150_v51 = vshrl.u32 %v7078_v13, 16  ;;  %v7224_v28 = vrot.slane %v7222_v5, 4 }
 0x4b7   :  { %v16752_v34 = vpop.f32.mrf.mxu1  ;;  %v7127_v9 = vsel %vm15596_vm1, %v7118_v58, %v7126_v22  ;;  %v7136_v7 = vor.u32 %v7135_v10, %v7132_v60  ;;  %v7153_v58 = vshll.u32 %v7078_v13, 16  ;;  %v13184_v22 = vld [vmem:[#allocation5 + $0x104] sm:$0xf]  ;;  %v7220_v38 = vsel %vm14079_vm2, %v7218_v55, %v7219_v57  ;;  %v17332_v13 = vld [vmem:[#allocation24_spill] sm:$0xff] }
 0x4b8   :  { %v9808_v12 = vpop.f32.mrf.mxu2  ;;  %7181 = vst [vmem:[#allocation5 + $0x188] sm:$0xf] %v7127_v9  ;;  %v7221_v10 = vrot.slane %v7219_v57, 4  ;;  %v11870_v53 = vor.u32 %v13184_v22, %v11867_v29  ;;  %v7227_v22 = vrot.slane %v7225_v1, 4 }
 0x4b9   :  { %v16757_v0 = vadd.f32 %v9808_v12, %v16645_v41  ;;  %10160 = vmatmul.bf16.vlgmr.msra.gmra.mxu0 %v11782_v2  ;;  %v7140_v41 = vshrl.u32 %v7077_v15, 16  ;;  %v13408_v12 = vld [vmem:[#allocation9 + $0x4e0] sm:$0xff]  ;;  %v7138_v15 = vrot.slane %v7136_v7, 4  ;;  %7244 = vst [vmem:[#allocation5 + $0x1f0] sm:$0xf] %v7220_v38  ;;  %v7155_v37 = vrot.slane %v7153_v58, 6 }
 0x4ba   :  { %v13416_v2 = vld [vmem:[#allocation9 + $0x520] sm:$0xff]  ;;  %10188 = vmatpush.bf16.msra.mxu2 %v13408_v12 }
 0x4bb   :  { %v9838_v50 = vpop.f32.mrf.mxu3  ;;  %v7142_v30 = vrot.slane %v7140_v41, 5  ;;  %10221 = vmatpush.bf16.msra.mxu3 %v13416_v2  ;;  %v11881_v2 = vld [vmem:[#allocation5 + $0x110] sm:$0xf] }
 0x4bc   :  { %v16762_v20 = vadd.f32 %v9838_v50, %v16733_v36  ;;  %v7137_v36 = vsel %vm15596_vm1, %v7128_v56, %v7136_v7  ;;  %v7152_v50 = vrot.slane %v7150_v51, 5  ;;  %v16773_v56 = vld [vmem:[#allocation3 + $0x38] sm:$0x7]  ;;  %v7223_v7 = vsel %vm14079_vm2, %v7221_v10, %v7222_v5  ;;  %v13198_v51 = vld [vmem:[#allocation5 + $0x170] sm:$0xf0]  ;;  %v13415_v10 = vld [vmem:[#allocation9 + $0x518] sm:$0xff] }
 0x4bd   :  { %v7146_v60 = vor.u32 %v7145_v8, %v7142_v30  ;;  %7182 = vst [vmem:[#allocation5 + $0x1ec] sm:$0xf] %v7137_v36  ;;  %v7228_v29 = vrot.slane %v16773_v56, 6  ;;  %v17333_v36 = vld [vmem:[#allocation23_spill] sm:$0xff] }
 0x4be   :  { %v16764_v14 = vpop.f32.mrf.mxu0  ;;  %v7156_v45 = vor.u32 %v7155_v37, %v7152_v50  ;;  %7245 = vst [vmem:[#allocation5 + $0x254] sm:$0xf] %v7223_v7  ;;  %v9867_v38 = vadd.f32 %v17333_v36, %v16714_v6  ;;  %v13197_v50 = vld [vmem:[#allocation5 + $0x168] sm:$0xf0]  ;;  %v13435_v6 = vld [vmem:[#allocation9 + $0x5b8] sm:$0xff] }
 0x4bf   :  { %v16770_v39 = vpop.f32.mrf.mxu1  ;;  %v7147_v55 = vsel %vm15596_vm1, %v7138_v15, %v7146_v60  ;;  %v7148_v57 = vrot.slane %v7146_v60, 4  ;;  %v11882_v15 = vor.u32 %v13198_v51, %v11881_v2  ;;  %v7229_v60 = vsel %vm14079_vm2, %v7227_v22, %v7228_v29  ;;  %10222 = vmatpush.bf16.msra.mxu3 %v13415_v10  ;;  %10284 = vmatpush.bf16.msrb.mxu0 %v13435_v6  ;;  %v13223_v22 = vld [vmem:[#allocation5 + $0x238] sm:$0xf0] }
 0x4c0   :  { %v9810_v9 = vpop.f32.mrf.mxu2  ;;  %10094 = vmatmul.bf16.vlgmr.msrb.gmra.mxu3 %v11774_v43  ;;  %v16781_v43 = vor.u32 %v7165_v3, %v7162_v62  ;;  %7183 = vst [vmem:[#allocation5 + $0x250] sm:$0xf] %v7147_v55  ;;  %v7158_v58 = vrot.slane %v7156_v45, 4  ;;  %v13407_v62 = vld [vmem:[#allocation9 + $0x4d8] sm:$0xff] }
 0x4c1   :  { %v9811_v41 = vadd.f32 %v9810_v9, %v16669_v21  ;;  %v9865_v21 = vadd.f32 %v17332_v13, %v16685_v25  ;;  %v7157_v5 = vsel %vm15596_vm1, %v7148_v57, %v7156_v45  ;;  %v7226_v25 = vsel %vm14079_vm2, %v7224_v28, %v7225_v1  ;;  %10189 = vmatpush.bf16.msra.mxu2 %v13407_v62  ;;  %v11873_v28 = vld [vmem:[#allocation5 + $0x108] sm:$0xf]  ;;  %v11967_v57 = vld [vmem:[#allocation5 + $0x22c] sm:$0xf0]  ;;  %v13187_v13 = vld [vmem:[#allocation5 + $0x11c] sm:$0xf] }
 0x4c2   :  { %10259 = vmatmul.bf16.vlgmr.msra.gmra.mxu1 %v11794_v59  ;;  %7184 = vst [vmem:[#allocation5 + $0x2b4] sm:$0xf] %v7157_v5  ;;  %v16809_v59 = vadd.f32 %v16665_v52, %v9867_v38  ;;  %v11874_v16 = vor.u32 %v13197_v50, %v11873_v28  ;;  %v13406_v1 = vld [vmem:[#allocation9 + $0x4d0] sm:$0xff]  ;;  %v11991_v28 = vld [vmem:[#allocation5 + $0x244] sm:$0xf0] }
 0x4c3   :  { %v9841_v30 = vpop.f32.mrf.mxu3  ;;  %v16794_v3 = vadd.f32 %v16642_v24, %v9865_v21  ;;  %7246 = vst [vmem:[#allocation5 + $0x2b8] sm:$0xf] %v7226_v25  ;;  %v13414_v52 = vld [vmem:[#allocation9 + $0x510] sm:$0xff] }
 0x4c4   :  { %v16785_v8 = vadd.f32 %v9841_v30, %v16757_v0  ;;  %v7167_v0 = vsel %vm15596_vm1, %v7158_v58, %v16781_v43  ;;  %7247 = vst [vmem:[#allocation5 + $0x31c] sm:$0xf] %v7229_v60  ;;  %v13209_v30 = vld [vmem:[#allocation5 + $0x1cc] sm:$0xf]  ;;  %10223 = vmatpush.bf16.msra.mxu3 %v13414_v52  ;;  %v13434_v62 = vld [vmem:[#allocation9 + $0x5b0] sm:$0xff] }
 0x4c5   :  { %10066 = vmatmul.bf16.gmra.mxu2 %v11870_v53  ;;  %7185 = vst [vmem:[#allocation5 + $0x318] sm:$0xf] %v7167_v0  ;;  %v11891_v53 = vld [vmem:[#allocation5 + $0x17c] sm:$0xf0]  ;;  %v11970_v5 = vor.u32 %v13209_v30, %v11967_v57  ;;  %10285 = vmatpush.bf16.msrb.mxu0 %v13434_v62  ;;  %v13405_v60 = vld [vmem:[#allocation9 + $0x4c8] sm:$0xff]  ;;  %v13404_v30 = vld [vmem:[#allocation9 + $0x4c0] sm:$0xff] }
 0x4c6   :  { %v16791_v12 = vpop.f32.mrf.mxu0  ;;  %v11894_v45 = vor.u32 %v13187_v13, %v11891_v53  ;;  %10190 = vmatpush.bf16.msra.mxu2 %v13406_v1  ;;  %v13222_v50 = vld [vmem:[#allocation5 + $0x230] sm:$0xf0]  ;;  %v13413_v57 = vld [vmem:[#allocation9 + $0x508] sm:$0xff]  ;;  %v12067_v1 = vld [vmem:[#allocation5 + $0x2f4] sm:$0xf0] }
 0x4c7   :  { %v16801_v9 = vpop.f32.mrf.mxu1  ;;  %v12081_v62 = vld [vmem:[#allocation5 + $0x2a0] sm:$0xf] }
 0x4c8   :  { %v9813_v32 = vpop.f32.mrf.mxu2  ;;  %10224 = vmatpush.bf16.msra.mxu3 %v13413_v57  ;;  %v13428_v57 = vld [vmem:[#allocation9 + $0x580] sm:$0xff] }
 0x4c9   :  { %v9814_v24 = vadd.f32 %v9813_v32, %v16695_v40  ;;  %10165 = vmatmul.bf16.gmra.mxu0 %v11882_v15  ;;  %v13433_v15 = vld [vmem:[#allocation9 + $0x5a8] sm:$0xff] }
 0x4ca   :  { %10191 = vmatpush.bf16.msra.mxu2 %v13405_v60  ;;  %10286 = vmatpush.bf16.msrb.mxu0 %v13433_v15 }
 0x4cb   :  { %v9843_v23 = vpop.f32.mrf.mxu3  ;;  %v13251_v56 = vld [vmem:[#allocation5 + $0x318] sm:$0xf0] }
 0x4cc   :  { %v16811_v37 = vadd.f32 %v9843_v23, %v9811_v41  ;;  %v17334_v41 = vld [vmem:[#allocation19_spill] sm:$0xff] }
 0x4cd   :  { %v9870_v51 = vadd.f32 %v17334_v41, %v16741_v19  ;;  %v13234_v41 = vld [vmem:[#allocation5 + $0x294] sm:$0xf] }
 0x4ce   :  { %v16813_v55 = vpop.f32.mrf.mxu0  ;;  %10192 = vmatpush.bf16.msra.mxu2 %v13404_v30 }
 0x4cf   :  { %v16815_v7 = vpop.f32.mrf.mxu1  ;;  %v16825_v0 = vadd.f32 %v16692_v54, %v9870_v51  ;;  %v11973_v54 = vld [vmem:[#allocation5 + $0x1d0] sm:$0xf]  ;;  %v9875_v51 = vadd.f32 %v16470_v4, %v16785_v8 }
 0x4d0   :  { %v9815_v40 = vpop.f32.mrf.mxu2  ;;  %10099 = vmatmul.bf16.gmra.mxu3 %v11874_v16  ;;  %v11974_v53 = vor.u32 %v13222_v50, %v11973_v54  ;;  %v13247_v50 = vld [vmem:[#allocation5 + $0x2f8] sm:$0xf0]  ;;  %v12073_v54 = vld [vmem:[#allocation5 + $0x298] sm:$0xf] }
 0x4d1   :  { %v9816_v21 = vadd.f32 %v9815_v40, %v16722_v35  ;;  %v11981_v35 = vld [vmem:[#allocation5 + $0x1d8] sm:$0xf]  ;;  %v13432_v40 = vld [vmem:[#allocation9 + $0x5a0] sm:$0xff]  ;;  %v16846_v15 = vadd.f32 %v16745_v42, %v9875_v51  ;;  %v12074_v42 = vor.u32 %v13247_v50, %v12073_v54 }
 0x4d2   :  { %10264 = vmatmul.bf16.gmra.mxu1 %v11894_v45  ;;  %v11982_v19 = vor.u32 %v13223_v22, %v11981_v35  ;;  %10287 = vmatpush.bf16.msrb.mxu0 %v13432_v40  ;;  %v13248_v22 = vld [vmem:[#allocation5 + $0x300] sm:$0xf0]  ;;  %v8098_v40 = vunpack.c.h.b16 %v16675_v61 }
 0x4d3   :  { %v9846_v58 = vpop.f32.mrf.mxu3  ;;  %v12082_v4 = vor.u32 %v13248_v22, %v12081_v62 }
 0x4d4   :  { %v16820_v25 = vadd.f32 %v9846_v58, %v9814_v24  ;;  %v17335_v24 = vld [vmem:[#allocation25_spill] sm:$0xff]  ;;  %v8223_v30 = vpack.c.b16 %v8098_v40, %v8098_v40 }
 0x4d5   :  { %10071 = vmatmul.bf16.gmra.mxu2 %v11970_v5  ;;  %v9872_v10 = vadd.f32 %v17335_v24, %v16762_v20  ;;  %v13212_v20 = vld [vmem:[#allocation5 + $0x1e4] sm:$0xf]  ;;  %v12070_v5 = vor.u32 %v13234_v41, %v12067_v1  ;;  %v11797_v40 = vld [vmem:[#allocation5 + $0x58] sm:$0xf] }
 0x4d6   :  { %v16822_v2 = vpop.f32.mrf.mxu0  ;;  %v11994_v52 = vor.u32 %v13212_v20, %v11991_v28  ;;  %v13237_v28 = vld [vmem:[#allocation5 + $0x2ac] sm:$0xf]  ;;  %v9880_v61 = vadd.f32 %v16547_v26, %v16820_v25  ;;  %v13442_v26 = vld [vmem:[#allocation9 + $0x5f0] sm:$0xff] }
 0x4d7   :  { %v16827_v38 = vpop.f32.mrf.mxu1  ;;  %v13450_v25 = vld [vmem:[#allocation9 + $0x630] sm:$0xff] }
 0x4d8   :  { %v9818_v36 = vpop.f32.mrf.mxu2 }
 0x4d9   :  { %v9819_v32 = vadd.f32 %v9818_v36, %v16748_v48  ;;  %10170 = vmatmul.bf16.gmra.mxu0 %v11982_v19  ;;  %v16835_v48 = vadd.f32 %v16719_v11, %v9872_v10  ;;  %v13430_v36 = vld [vmem:[#allocation9 + $0x590] sm:$0xff]  ;;  %v13412_v19 = vld [vmem:[#allocation9 + $0x500] sm:$0xff]  ;;  %v9877_v10 = vadd.f32 %v16516_v17, %v16811_v37 }
 0x4da   :  { %10225 = vmatpush.bf16.msra.mxu3 %v13412_v19 }
 0x4db   :  { %v9848_v23 = vpop.f32.mrf.mxu3 }
 0x4dc   :  { %v16832_v6 = vadd.f32 %v9848_v23, %v9816_v21  ;;  %v13431_v21 = vld [vmem:[#allocation9 + $0x598] sm:$0xff] }
 0x4dd   :  { %10288 = vmatpush.bf16.msrb.mxu0 %v13431_v21  ;;  %v13451_v21 = vld [vmem:[#allocation9 + $0x638] sm:$0xff] }
 0x4de   :  { %v9919_v16 = vpop.f32.mrf.mxu0  ;;  %10350 = vmatpush.bf16.msrb.mxu3 %v13451_v21  ;;  %v9882_v19 = vadd.f32 %v16586_v44, %v16832_v6  ;;  %v13441_v44 = vld [vmem:[#allocation9 + $0x5e8] sm:$0xff] }
 0x4df   :  { %v16837_v45 = vpop.f32.mrf.mxu1  ;;  %v13161_v6 = vld [vmem:[#allocation5 + $0x4c] sm:$0xf] }
 0x4e0   :  { %v9820_v13 = vpop.f32.mrf.mxu2  ;;  %10104 = vmatmul.bf16.gmra.mxu3 %v11974_v53  ;;  %v12091_v53 = vld [vmem:[#allocation5 + $0x30c] sm:$0xf0] }
 0x4e1   :  { %10289 = vmatpush.bf16.msrb.mxu0 %v13430_v36  ;;  %v16855_v13 = vadd.f32 %v16764_v14, %v9877_v10  ;;  %v12094_v37 = vor.u32 %v13237_v28, %v12091_v53 }
 0x4e2   :  { %10269 = vmatmul.bf16.gmra.mxu1 %v11994_v52  ;;  %v16860_v52 = vld [vmem:[#allocation5 + $0x368] sm:$0x11]  ;;  %10351 = vmatpush.bf16.msrb.mxu3 %v13450_v25 }
 0x4e3   :  { %v9851_v11 = vpop.f32.mrf.mxu3  ;;  %v8101_v41 = vunpack.c.l.b16 %v16860_v52 }
 0x4e4   :  { %v16841_v58 = vadd.f32 %v9851_v11, %v9819_v32  ;;  %v13429_v32 = vld [vmem:[#allocation9 + $0x588] sm:$0xff] }
 0x4e5   :  { %10076 = vmatmul.bf16.gmra.mxu2 %v12070_v5  ;;  %10290 = vmatpush.bf16.msrb.mxu0 %v13429_v32  ;;  %v8226_v62 = vpack.c.b16 %v8101_v41, %v8101_v41  ;;  %v16879_v32 = vadd.f32 %v16813_v55, %v9882_v19  ;;  %v13175_v55 = vld [vmem:[#allocation5 + $0xb8] sm:$0xf0]  ;;  %v13440_v41 = vld [vmem:[#allocation9 + $0x5e0] sm:$0xff] }
 0x4e6   :  { %v16843_v35 = vpop.f32.mrf.mxu0 }
 0x4e7   :  { %v10018_v24 = vpop.f32.mrf.mxu1 }
 0x4e8   :  { %v9930_v60 = vpop.f32.mrf.mxu2 }
 0x4e9   :  { %v9931_v8 = vadd.f32 %v9930_v60, %v16794_v3  ;;  %10175 = vmatmul.bf16.gmra.mxu0 %v12082_v4  ;;  %v13443_v3 = vld [vmem:[#allocation9 + $0x5f8] sm:$0xff]  ;;  %v8099_v60 = vunpack.c.l.b16 %v16700_v27  ;;  %v9885_v27 = vadd.f32 %v16617_v49, %v16841_v58 }
 0x4ea   :  { %10291 = vmatpush.bf16.msrb.mxu0 %v13428_v57  ;;  %10317 = vmatpush.bf16.msrb.mxu2 %v13443_v3  ;;  %v13449_v57 = vld [vmem:[#allocation9 + $0x628] sm:$0xff] }
 0x4eb   :  { %v9853_v23 = vpop.f32.mrf.mxu3  ;;  %v16891_v3 = vadd.f32 %v16822_v2, %v9885_v27  ;;  %10352 = vmatpush.bf16.msrb.mxu3 %v13449_v57 }
 0x4ec   :  { %v11783_v23 = vld [vmem:[#allocation5 + $0xac] sm:$0xf0] }
 0x4ed   :  { %v11786_v54 = vor.u32 %v13161_v6, %v11783_v23  ;;  %v11897_v23 = vld [vmem:[#allocation5 + $0x120] sm:$0xf] }
 0x4ee   :  { %v16851_v16 = vpop.f32.mrf.mxu0  ;;  %10318 = vmatpush.bf16.msrb.mxu2 %v13442_v26 }
 0x4ef   :  { %v16857_v20 = vpop.f32.mrf.mxu1 }
 0x4f0   :  { %v9932_v1 = vpop.f32.mrf.mxu2  ;;  %10109 = vmatmul.bf16.gmra.mxu3 %v12074_v42 }
 0x4f1   :  { %v9933_v17 = vadd.f32 %v9932_v1, %v16809_v59  ;;  %v16868_v59 = vadd.f32 %v16791_v12, %v9880_v61  ;;  %v8224_v12 = vpack.c.b16 %v8099_v60, %v8099_v60  ;;  %v11789_v61 = vld [vmem:[#allocation5 + $0x50] sm:$0xf] }
 0x4f2   :  { %10274 = vmatmul.bf16.gmra.mxu1 %v12094_v37  ;;  %10319 = vmatpush.bf16.msrb.mxu2 %v13441_v44  ;;  %v13174_v37 = vld [vmem:[#allocation5 + $0xb0] sm:$0xf0] }
 0x4f3   :  { %v9963_v14 = vpop.f32.mrf.mxu3 }
 0x4f4   :  { %v9964_v51 = vadd.f32 %v9963_v14, %v9931_v8 }
 0x4f5   :  { %10081 = vmatmul.bf16.gmra.mxu2 %v8223_v30  ;;  %v11790_v30 = vor.u32 %v13174_v37, %v11789_v61  ;;  %v13446_v37 = vld [vmem:[#allocation9 + $0x610] sm:$0xff]  ;;  %v13211_v61 = vld [vmem:[#allocation5 + $0x1dc] sm:$0xf] }
 0x4f6   :  { %v16865_v5 = vpop.f32.mrf.mxu0  ;;  %10320 = vmatpush.bf16.msrb.mxu2 %v13440_v41  ;;  %v9997_v25 = vadd.f32 %v16673_v63, %v9964_v51  ;;  %v13447_v51 = vld [vmem:[#allocation9 + $0x618] sm:$0xff] }
 0x4f7   :  { %v16870_v22 = vpop.f32.mrf.mxu1 }
 0x4f8   :  { %v9935_v11 = vpop.f32.mrf.mxu2  ;;  %v16909_v44 = vadd.f32 %v16843_v35, %v9997_v25  ;;  %v11889_v35 = vld [vmem:[#allocation5 + $0x118] sm:$0xf] }
 0x4f9   :  { %v9936_v36 = vadd.f32 %v9935_v11, %v16825_v0  ;;  %10180 = vmatmul.bf16.gmra.mxu0 %v8226_v62  ;;  %v13448_v11 = vld [vmem:[#allocation9 + $0x620] sm:$0xff] }
 0x4fa   :  { %10353 = vmatpush.bf16.msrb.mxu3 %v13448_v11 }
 0x4fb   :  { %v9965_v24 = vpop.f32.mrf.mxu3 }
 0x4fc   :  { %v9966_v4 = vadd.f32 %v9965_v24, %v9933_v17  ;;  %v11798_v17 = vor.u32 %v13175_v55, %v11797_v40  ;;  %v13199_v55 = vld [vmem:[#allocation5 + $0x178] sm:$0xf0] }
 0x4fe   :  { %v16876_v8 = vpop.f32.mrf.mxu0  ;;  %10354 = vmatpush.bf16.msrb.mxu3 %v13447_v51 }
 0x4ff   :  { %v16881_v0 = vpop.f32.mrf.mxu1 }
 0x500   :  { %v9937_v10 = vpop.f32.mrf.mxu2  ;;  %10114 = vmatmul.bf16.gmra.mxu3 %v8224_v12  ;;  %v13200_v12 = vld [vmem:[#allocation5 + $0x180] sm:$0xf0] }
 0x501   :  { %v9938_v50 = vadd.f32 %v9937_v10, %v16835_v48 }
 0x502   :  { %10355 = vmatpush.bf16.msrb.mxu3 %v13446_v37  ;;  %v12097_v37 = vld [vmem:[#allocation5 + $0x2b0] sm:$0xf] }
 0x503   :  { %v9968_v28 = vpop.f32.mrf.mxu3 }
 0x504   :  { %v16886_v53 = vadd.f32 %v9968_v28, %v9936_v36  ;;  %v11883_v36 = vld [vmem:[#allocation5 + $0x174] sm:$0xf0] }
 0x505   :  { %10193 = vmatmul.bf16.vlgmr.msra.gmra.mxu2 %v11786_v54  ;;  %v11898_v54 = vor.u32 %v13200_v12, %v11897_v23  ;;  %v13224_v23 = vld [vmem:[#allocation5 + $0x240] sm:$0xf0] }
 0x506   :  { %v16888_v42 = vpop.f32.mrf.mxu0 }
 0x507   :  { %v16893_v1 = vpop.f32.mrf.mxu1 }
 0x508   :  { %v9940_v48 = vpop.f32.mrf.mxu2 }
 0x509   :  { %v9941_v49 = vadd.f32 %v9940_v48, %v16846_v15  ;;  %10292 = vmatmul.bf16.vlgmr.msrb.gmra.mxu0 %v11798_v17  ;;  %v13186_v15 = vld [vmem:[#allocation5 + $0x114] sm:$0xf]  ;;  %v11890_v48 = vor.u32 %v13199_v55, %v11889_v35  ;;  %v12083_v55 = vld [vmem:[#allocation5 + $0x304] sm:$0xf0]  ;;  %v6883_v35 = vld [vmem:[#allocation3 + $0x38] sm:$0x1] }
 0x50a   :  { %v11886_v19 = vor.u32 %v13186_v15, %v11883_v36  ;;  %6892 = vst [vmem:[#allocation5 + $0x370] sm:$0x1] %v6883_v35 }
 0x50b   :  { %v9970_v58 = vpop.f32.mrf.mxu3 }
 0x50c   :  { %v16896_v21 = vadd.f32 %v9970_v58, %v9938_v50  ;;  %v13439_v50 = vld [vmem:[#allocation9 + $0x5d8] sm:$0xff]  ;;  %v13438_v58 = vld [vmem:[#allocation9 + $0x5d0] sm:$0xff] }
 0x50d   :  { %10321 = vmatpush.bf16.msrb.mxu2 %v13439_v50 }
 0x50e   :  { %v16898_v14 = vpop.f32.mrf.mxu0 }
 0x50f   :  { %v16900_v62 = vpop.f32.mrf.mxu1 }
 0x510   :  { %v9942_v2 = vpop.f32.mrf.mxu2  ;;  %10226 = vmatmul.bf16.vlgmr.msra.gmra.mxu3 %v11790_v30 }
 0x511   :  { %v9943_v26 = vadd.f32 %v9942_v2, %v16855_v13  ;;  %v9999_v13 = vadd.f32 %v16698_v18, %v9966_v4  ;;  %10322 = vmatpush.bf16.msrb.mxu2 %v13438_v58  ;;  %v13225_v2 = vld [vmem:[#allocation5 + $0x248] sm:$0xf0] }
 0x513   :  { %v9973_v60 = vpop.f32.mrf.mxu3  ;;  %v16916_v40 = vadd.f32 %v16851_v16, %v9999_v13  ;;  %v10002_v16 = vadd.f32 %v16726_v46, %v16886_v53  ;;  %v13437_v53 = vld [vmem:[#allocation9 + $0x5c8] sm:$0xff]  ;;  %v11989_v13 = vld [vmem:[#allocation5 + $0x1e0] sm:$0xf] }
 0x514   :  { %v16904_v24 = vadd.f32 %v9973_v60, %v9941_v49  ;;  %v11983_v49 = vld [vmem:[#allocation5 + $0x23c] sm:$0xf0]  ;;  %v10004_v60 = vadd.f32 %v16752_v34, %v16896_v21  ;;  %v13779_v34 = vld [vmem:[#allocation3 + $0x38] sm:$0x3] }
 0x515   :  { %10198 = vmatmul.bf16.gmra.mxu2 %v11886_v19  ;;  %v11986_v30 = vor.u32 %v13211_v61, %v11983_v49  ;;  %v6986_v21 = vshrl.u32 %v13779_v34, 16  ;;  %v13250_v61 = vld [vmem:[#allocation5 + $0x310] sm:$0xf0] }
 0x516   :  { %v16906_v10 = vpop.f32.mrf.mxu0  ;;  %10323 = vmatpush.bf16.msrb.mxu2 %v13437_v53  ;;  %v12098_v53 = vor.u32 %v13250_v61, %v12097_v37  ;;  %v11799_v61 = vld [vmem:[#allocation5 + $0xbc] sm:$0xf0] }
 0x517   :  { %v16912_v27 = vpop.f32.mrf.mxu1 }
 0x518   :  { %v9945_v6 = vpop.f32.mrf.mxu2 }
 0x519   :  { %v9946_v63 = vadd.f32 %v9945_v6, %v16868_v59  ;;  %10297 = vmatmul.bf16.gmra.mxu0 %v11898_v54  ;;  %v11990_v6 = vor.u32 %v13224_v23, %v11989_v13  ;;  %v13445_v54 = vld [vmem:[#allocation9 + $0x608] sm:$0xff] }
 0x51a   :  { %10356 = vmatpush.bf16.msrb.mxu3 %v13445_v54 }
 0x51b   :  { %v9975_v28 = vpop.f32.mrf.mxu3 }
 0x51c   :  { %v16918_v57 = vadd.f32 %v9975_v28, %v9943_v26  ;;  %v11997_v26 = vld [vmem:[#allocation5 + $0x1e8] sm:$0xf] }
 0x51d   :  { %v11998_v19 = vor.u32 %v13225_v2, %v11997_v26  ;;  %v13444_v2 = vld [vmem:[#allocation9 + $0x600] sm:$0xff] }
 0x51e   :  { %v16920_v18 = vpop.f32.mrf.mxu0  ;;  %10357 = vmatpush.bf16.msrb.mxu3 %v13444_v2 }
 0x51f   :  { %v16922_v17 = vpop.f32.mrf.mxu1 }
 0x520   :  { %v9947_v4 = vpop.f32.mrf.mxu2  ;;  %10231 = vmatmul.bf16.gmra.mxu3 %v11890_v48  ;;  %v13436_v48 = vld [vmem:[#allocation9 + $0x5c0] sm:$0xff] }
 0x521   :  { %v9948_v59 = vadd.f32 %v9947_v4, %v16879_v32  ;;  %v16932_v32 = vadd.f32 %v16865_v5, %v10002_v16  ;;  %v10007_v4 = vadd.f32 %v16770_v39, %v16904_v24  ;;  %10324 = vmatpush.bf16.msrb.mxu2 %v13436_v48  ;;  %v7052_v24 = vrot.slane %v7050_v31, 4 }
 0x523   :  { %v9978_v41 = vpop.f32.mrf.mxu3  ;;  %v10040_v26 = vadd.f32 %v16888_v42, %v10007_v4  ;;  %7070 = vst [vmem:[#allocation5 + $0x378] sm:$0x1] %v7052_v24  ;;  %v13249_v42 = vld [vmem:[#allocation5 + $0x308] sm:$0xf0] }
 0x524   :  { %v16927_v11 = vadd.f32 %v9978_v41, %v9946_v63  ;;  %v16942_v63 = vadd.f32 %v16876_v8, %v10004_v60 }
 0x525   :  { %10203 = vmatmul.bf16.gmra.mxu2 %v11986_v30 }
 0x526   :  { %v16929_v36 = vpop.f32.mrf.mxu0 }
 0x527   :  { %v16934_v25 = vpop.f32.mrf.mxu1 }
 0x528   :  { %v9950_v15 = vpop.f32.mrf.mxu2 }
 0x529   :  { %v9951_v46 = vadd.f32 %v9950_v15, %v16891_v3  ;;  %10302 = vmatmul.bf16.gmra.mxu0 %v11998_v19  ;;  %v13236_v3 = vld [vmem:[#allocation5 + $0x2a4] sm:$0xf] }
 0x52a   :  { %v12086_v49 = vor.u32 %v13236_v3, %v12083_v55 }
 0x52b   :  { %v9980_v12 = vpop.f32.mrf.mxu3 }
 0x52c   :  { %v16939_v50 = vadd.f32 %v9980_v12, %v9948_v59  ;;  %v6988_v59 = vrot.slane %v6986_v21, 4  ;;  %v12089_v12 = vld [vmem:[#allocation5 + $0x2a8] sm:$0xf] }
 0x52d   :  { %v12090_v23 = vor.u32 %v13249_v42, %v12089_v12  ;;  %v11899_v42 = vld [vmem:[#allocation5 + $0x184] sm:$0xf0] }
 0x52e   :  { %v10051_v5 = vpop.f32.mrf.mxu0  ;;  %v6989_v16 = vor.u32 %v6988_v59, %v16632_v33  ;;  %v10009_v33 = vadd.f32 %v16801_v9, %v16918_v57 }
 0x52f   :  { %v16944_v28 = vpop.f32.mrf.mxu1 }
 0x530   :  { %v9952_v51 = vpop.f32.mrf.mxu2  ;;  %10236 = vmatmul.bf16.gmra.mxu3 %v11990_v6  ;;  %v6990_v41 = vrot.slane %v6989_v16, 4  ;;  %v10042_v6 = vadd.f32 %v16898_v14, %v10009_v33  ;;  %v11805_v33 = vld [vmem:[#allocation5 + $0x60] sm:$0xf] }
 0x532   :  { %7008 = vst [vmem:[#allocation5 + $0x374] sm:$0x1] %v6990_v41  ;;  %v13163_v41 = vld [vmem:[#allocation5 + $0x5c] sm:$0xf] }
 0x533   :  { %v9983_v8 = vpop.f32.mrf.mxu3  ;;  %v11802_v2 = vor.u32 %v13163_v41, %v11799_v61 }
 0x534   :  { %v9984_v58 = vadd.f32 %v9983_v8, %v9951_v46  ;;  %v7168_v46 = vrot.slane %v16781_v43, 4 }
 0x535   :  { %10208 = vmatmul.bf16.gmra.mxu2 %v12086_v49 }
 0x536   :  { %v16949_v30 = vpop.f32.mrf.mxu0  ;;  %7186 = vst [vmem:[#allocation5 + $0x37c] sm:$0x1] %v7168_v46 }
 0x537   :  { %v10150_v19 = vpop.f32.mrf.mxu1 }
 0x538   :  { %v10062_v15 = vpop.f32.mrf.mxu2 }
 0x539   :  { %v10063_v39 = vadd.f32 %v10062_v15, %v16909_v44  ;;  %10307 = vmatmul.bf16.gmra.mxu0 %v12098_v53  ;;  %v8102_v44 = vunpack.c.h.b16 %v16860_v52  ;;  %v7363_v31 = vld [vmem:[#allocation5 + $0x370] sm:$0x11] }
 0x53a   :  { %v8104_v5 = vunpack.c.h.b16 %v7363_v31  ;;  %v8103_v21 = vunpack.c.l.b16 %v7363_v31 }
 0x53b   :  { %v9985_v60 = vpop.f32.mrf.mxu3  ;;  %v8227_v54 = vpack.c.b16 %v8102_v44, %v8102_v44 }
 0x53c   :  { %v8229_v9 = vpack.c.b16 %v8104_v5, %v8104_v5  ;;  %v8228_v49 = vpack.c.b16 %v8103_v21, %v8103_v21  ;;  %v13213_v21 = vld [vmem:[#allocation5 + $0x1ec] sm:$0xf] }
 0x53d   :  { %v16963_v57 = vld [vmem:[#allocation5 + $0x378] sm:$0x11] }
 0x53e   :  { %v16958_v13 = vpop.f32.mrf.mxu0  ;;  %v8105_v3 = vunpack.c.l.b16 %v16963_v57  ;;  %10279 = vmatmul.bf16.gmra.mxu1 %v8229_v9 }
 0x540   :  { %v10064_v47 = vpop.f32.mrf.mxu2  ;;  %10241 = vmatmul.bf16.gmra.mxu3 %v12090_v23  ;;  %v8230_v35 = vpack.c.b16 %v8105_v3, %v8105_v3  ;;  %v10012_v23 = vadd.f32 %v16815_v7, %v16927_v11  ;;  %v13201_v3 = vld [vmem:[#allocation5 + $0x188] sm:$0xf0] }
 0x541   :  { %v10065_v43 = vadd.f32 %v10064_v47, %v16916_v40  ;;  %v10014_v40 = vadd.f32 %v16827_v38, %v16939_v50 }
 0x542   :  { %v10045_v31 = vadd.f32 %v16906_v10, %v10012_v23 }
 0x543   :  { %v10095_v51 = vpop.f32.mrf.mxu3  ;;  %v10047_v8 = vadd.f32 %v16920_v18, %v10014_v40  ;;  %v13176_v18 = vld [vmem:[#allocation5 + $0xc0] sm:$0xf0] }
 0x544   :  { %v10096_v55 = vadd.f32 %v10095_v51, %v10063_v39  ;;  %v11806_v60 = vor.u32 %v13176_v18, %v11805_v33  ;;  %v12099_v18 = vld [vmem:[#allocation5 + $0x314] sm:$0xf0] }
 0x545   :  { %10213 = vmatmul.bf16.gmra.mxu2 %v8227_v54 }
 0x546   :  { %v16966_v52 = vpop.f32.mrf.mxu0  ;;  %v10129_v44 = vadd.f32 %v16857_v20, %v10096_v55  ;;  %v11905_v20 = vld [vmem:[#allocation5 + $0x128] sm:$0xf] }
 0x547   :  { %v11906_v55 = vor.u32 %v13201_v3, %v11905_v20 }
 0x548   :  { %v10067_v14 = vpop.f32.mrf.mxu2  ;;  %v10162_v5 = vadd.f32 %v16949_v30, %v10129_v44 }
 0x549   :  { %v10068_v34 = vadd.f32 %v10067_v14, %v16932_v32  ;;  %10312 = vmatmul.bf16.gmra.mxu0 %v8230_v35  ;;  %v10017_v32 = vadd.f32 %v16837_v45, %v9984_v58  ;;  %v13188_v58 = vld [vmem:[#allocation5 + $0x124] sm:$0xf] }
 0x54b   :  { %v10097_v48 = vpop.f32.mrf.mxu3  ;;  %v10050_v50 = vadd.f32 %v16929_v36, %v10017_v32  ;;  %v11902_v36 = vor.u32 %v13188_v58, %v11899_v42 }
 0x54c   :  { %v10098_v4 = vadd.f32 %v10097_v48, %v10065_v43 }
 0x54e   :  { %v16971_v59 = vpop.f32.mrf.mxu0  ;;  %v10131_v54 = vadd.f32 %v16870_v22, %v10098_v4  ;;  %v16993_v22 = vpop.f32.mrf.mxu1 }
 0x550   :  { %v10069_v37 = vpop.f32.mrf.mxu2  ;;  %10246 = vmatmul.bf16.gmra.mxu3 %v8228_v49  ;;  %v10164_v7 = vadd.f32 %v16958_v13, %v10131_v54 }
 0x551   :  { %v10070_v16 = vadd.f32 %v10069_v37, %v16942_v63 }
 0x553   :  { %v10100_v15 = vpop.f32.mrf.mxu3 }
 0x554   :  { %v10101_v19 = vadd.f32 %v10100_v15, %v10068_v34  ;;  %v11999_v34 = vld [vmem:[#allocation5 + $0x24c] sm:$0xf0] }
 0x555   :  { %10325 = vmatmul.bf16.vlgmr.msrb.gmra.mxu2 %v11802_v2  ;;  %v12002_v40 = vor.u32 %v13213_v21, %v11999_v34 }
 0x556   :  { %v16976_v38 = vpop.f32.mrf.mxu0  ;;  %v10134_v30 = vadd.f32 %v16881_v0, %v10101_v19  ;;  %v16999_v2 = vpop.f32.mrf.mxu1  ;;  %v12005_v0 = vld [vmem:[#allocation5 + $0x1f0] sm:$0xf] }
 0x558   :  { %v10072_v53 = vpop.f32.mrf.mxu2  ;;  %v10167_v13 = vadd.f32 %v16966_v52, %v10134_v30  ;;  %v13238_v52 = vld [vmem:[#allocation5 + $0x2b4] sm:$0xf] }
 0x559   :  { %v10073_v39 = vadd.f32 %v10072_v53, %v10040_v26  ;;  %v71_v53 = vld [vmem:[%s17211_s5 + $0xb] sm:$0x7] }
 0x55a   :  { %10445 = vmatpush.xpose.msra.mxu0 %v71_v53  ;;  %13682 = vmatpush.xpose.msrb.mxu1 %v71_v53 }
 0x55b   :  { %v10102_v24 = vpop.f32.mrf.mxu3 }
 0x55c   :  { %v10103_v46 = vadd.f32 %v10102_v24, %v10070_v16 }
 0x55e   :  { %v16979_v63 = vpop.f32.mrf.mxu0  ;;  %v10136_v16 = vadd.f32 %v16893_v1, %v10103_v46  ;;  %v7230_v1 = vrot.slane %v7228_v29, 4  ;;  %v12102_v46 = vor.u32 %v13238_v52, %v12099_v18  ;;  %v8106_v29 = vunpack.c.h.b16 %v16963_v57 }
 0x560   :  { %v10074_v12 = vpop.f32.mrf.mxu2  ;;  %10358 = vmatmul.bf16.vlgmr.msrb.gmra.mxu3 %v11806_v60  ;;  %7248 = vst [vmem:[#allocation5 + $0x380] sm:$0x1] %v7230_v1 }
 0x561   :  { %v10075_v45 = vadd.f32 %v10074_v12, %v10042_v6 }
 0x563   :  { %v10105_v47 = vpop.f32.mrf.mxu3 }
 0x564   :  { %v10106_v26 = vadd.f32 %v10105_v47, %v10073_v39  ;;  %v10169_v39 = vadd.f32 %v16971_v59, %v10136_v16  ;;  %v17009_v59 = vpop.f32.mrf.mxu1 }
 0x565   :  { %10330 = vmatmul.bf16.gmra.mxu2 %v11902_v36  ;;  %v12105_v36 = vld [vmem:[#allocation5 + $0x2b8] sm:$0xf] }
 0x566   :  { %v16985_v43 = vpop.f32.mrf.mxu0 }
 0x568   :  { %v10077_v6 = vpop.f32.mrf.mxu2 }
 0x569   :  { %v10078_v9 = vadd.f32 %v10077_v6, %v10045_v31  ;;  %v8231_v6 = vpack.c.b16 %v8106_v29, %v8106_v29 }
 0x56b   :  { %v10107_v51 = vpop.f32.mrf.mxu3 }
 0x56c   :  { %v10108_v11 = vadd.f32 %v10107_v51, %v10075_v45 }
 0x56e   :  { %v16990_v35 = vpop.f32.mrf.mxu0  ;;  %v10141_v23 = vadd.f32 %v16912_v27, %v10108_v11  ;;  %v7365_v27 = vld [vmem:[#allocation5 + $0x380] sm:$0x1] }
 0x570   :  { %v10079_v14 = vpop.f32.mrf.mxu2  ;;  %10363 = vmatmul.bf16.gmra.mxu3 %v11906_v55  ;;  %v8107_v55 = vunpack.c.l.b16 %v7365_v27 }
 0x571   :  { %v10080_v10 = vadd.f32 %v10079_v14, %v10047_v8  ;;  %v13226_v8 = vld [vmem:[#allocation5 + $0x250] sm:$0xf0] }
 0x572   :  { %v12006_v15 = vor.u32 %v13226_v8, %v12005_v0 }
 0x573   :  { %v10110_v48 = vpop.f32.mrf.mxu3 }
 0x574   :  { %v10111_v4 = vadd.f32 %v10110_v48, %v10078_v9 }
 0x575   :  { %10335 = vmatmul.bf16.gmra.mxu2 %v12002_v40 }
 0x576   :  { %v16995_v49 = vpop.f32.mrf.mxu0  ;;  %v10144_v9 = vadd.f32 %v16922_v17, %v10111_v4 }
 0x578   :  { %v10082_v37 = vpop.f32.mrf.mxu2  ;;  %v10177_v11 = vadd.f32 %v16985_v43, %v10144_v9 }
 0x579   :  { %v10083_v61 = vadd.f32 %v10082_v37, %v10050_v50  ;;  %v10139_v50 = vadd.f32 %v16900_v62, %v10106_v26  ;;  %v12106_v62 = vor.u32 %v13251_v56, %v12105_v36  ;;  %v10174_v26 = vadd.f32 %v16979_v63, %v10141_v23 }
 0x57b   :  { %v10112_v41 = vpop.f32.mrf.mxu3  ;;  %v10172_v42 = vadd.f32 %v16976_v38, %v10139_v50  ;;  %v10267_v38 = vpop.f32.mrf.mxu1 }
 0x57c   :  { %v10113_v32 = vadd.f32 %v10112_v41, %v10080_v10  ;;  %v8232_v10 = vpack.c.b16 %v8107_v55, %v8107_v55 }
 0x57e   :  { %v10183_v19 = vpop.f32.mrf.mxu0  ;;  %v10146_v14 = vadd.f32 %v16934_v25, %v10113_v32 }
 0x580   :  { %v10084_v24 = vpop.f32.mrf.mxu2  ;;  %10368 = vmatmul.bf16.gmra.mxu3 %v12006_v15  ;;  %v10179_v30 = vadd.f32 %v16990_v35, %v10146_v14 }
 0x583   :  { %v10115_v33 = vpop.f32.mrf.mxu3  ;;  %v10270_v63 = vpop.f32.mrf.mxu1 }
 0x584   :  { %v10116_v60 = vadd.f32 %v10115_v33, %v10083_v61 }
 0x585   :  { %10340 = vmatmul.bf16.gmra.mxu2 %v12102_v46 }
 0x586   :  { %v10293_v12 = vpop.f32.mrf.mxu0  ;;  %v10149_v48 = vadd.f32 %v16944_v28, %v10116_v60 }
 0x588   :  { %v10194_v45 = vpop.f32.mrf.mxu2 }
 0x589   :  { %v10195_v58 = vadd.f32 %v10194_v45, %v10162_v5 }
 0x58b   :  { %v10117_v44 = vpop.f32.mrf.mxu3  ;;  %v10272_v43 = vpop.f32.mrf.mxu1 }
 0x58e   :  { %v10295_v47 = vpop.f32.mrf.mxu0 }
 0x590   :  { %v10196_v31 = vpop.f32.mrf.mxu2  ;;  %10373 = vmatmul.bf16.gmra.mxu3 %v12106_v62 }
 0x591   :  { %v10197_v54 = vadd.f32 %v10196_v31, %v10164_v7 }
 0x593   :  { %v10227_v51 = vpop.f32.mrf.mxu3  ;;  %v10275_v0 = vpop.f32.mrf.mxu1 }
 0x594   :  { %v10228_v5 = vadd.f32 %v10227_v51, %v10195_v58 }
 0x595   :  { %10345 = vmatmul.bf16.gmra.mxu2 %v8231_v6 }
 0x596   :  { %v10298_v3 = vpop.f32.mrf.mxu0  ;;  %v10261_v53 = vadd.f32 %v16993_v22, %v10228_v5 }
 0x598   :  { %v10199_v20 = vpop.f32.mrf.mxu2  ;;  %v10294_v1 = vadd.f32 %v10293_v12, %v10261_v53 }
 0x599   :  { %v10200_v57 = vadd.f32 %v10199_v20, %v10167_v13  ;;  %v10182_v13 = vadd.f32 %v16995_v49, %v10149_v48 }
 0x59b   :  { %v10229_v34 = vpop.f32.mrf.mxu3  ;;  %v10277_v50 = vpop.f32.mrf.mxu1 }
 0x59c   :  { %v10230_v7 = vadd.f32 %v10229_v34, %v10197_v54 }
 0x59e   :  { %v10300_v21 = vpop.f32.mrf.mxu0  ;;  %v10263_v28 = vadd.f32 %v16999_v2, %v10230_v7 }
 0x5a0   :  { %v10201_v17 = vpop.f32.mrf.mxu2  ;;  %10378 = vmatmul.bf16.gmra.mxu3 %v8232_v10  ;;  %v10296_v46 = vadd.f32 %v10295_v47, %v10263_v28 }
 0x5a1   :  { %v10202_v40 = vadd.f32 %v10201_v17, %v10169_v39 }
 0x5a3   :  { %v10232_v4 = vpop.f32.mrf.mxu3 }
 0x5a4   :  { %v10233_v37 = vadd.f32 %v10232_v4, %v10200_v57 }
 0x5a6   :  { %v10303_v61 = vpop.f32.mrf.mxu0  ;;  %v10266_v36 = vadd.f32 %v17009_v59, %v10233_v37 }
 0x5a8   :  { %v10204_v16 = vpop.f32.mrf.mxu2  ;;  %v10299_v2 = vadd.f32 %v10298_v3, %v10266_v36 }
 0x5a9   :  { %v10205_v25 = vadd.f32 %v10204_v16, %v10172_v42 }
 0x5ab   :  { %v10234_v41 = vpop.f32.mrf.mxu3 }
 0x5ac   :  { %v10235_v8 = vadd.f32 %v10234_v41, %v10202_v40 }
 0x5ae   :  { %v10305_v32 = vpop.f32.mrf.mxu0  ;;  %v10268_v12 = vadd.f32 %v10267_v38, %v10235_v8  ;;  %v17028_v38 = vld [vmem:[%s17211_s5 + $0x4] ss:$0 sm:$0xff] }
 0x5b0   :  { %v10206_v15 = vpop.f32.mrf.mxu2  ;;  %v10301_v9 = vadd.f32 %v10300_v21, %v10268_v12 }
 0x5b1   :  { %v10207_v19 = vadd.f32 %v10206_v15, %v10174_v26 }
 0x5b3   :  { %v10237_v35 = vpop.f32.mrf.mxu3 }
 0x5b4   :  { %v10238_v39 = vadd.f32 %v10237_v35, %v10205_v25 }
 0x5b6   :  { %v10308_v24 = vpop.f32.mrf.mxu0  ;;  %v10271_v5 = vadd.f32 %v10270_v63, %v10238_v39  ;;  %v17033_v63 = vld [vmem:[%s17211_s5 + $0x5] ss:$0 sm:$0xff] }
 0x5b8   :  { %v10209_v52 = vpop.f32.mrf.mxu2  ;;  %v10304_v59 = vadd.f32 %v10303_v61, %v10271_v5 }
 0x5b9   :  { %v10210_v18 = vadd.f32 %v10209_v52, %v10177_v11 }
 0x5bb   :  { %v10239_v49 = vpop.f32.mrf.mxu3  ;;  %v10280_v58 = vpop.f32.mrf.mxu1 }
 0x5bc   :  { %v10240_v33 = vadd.f32 %v10239_v49, %v10207_v19 }
 0x5be   :  { %v10310_v60 = vpop.f32.mrf.mxu0  ;;  %v10273_v14 = vadd.f32 %v10272_v43, %v10240_v33 }
 0x5c0   :  { %v10211_v42 = vpop.f32.mrf.mxu2  ;;  %v10306_v7 = vadd.f32 %v10305_v32, %v10273_v14 }
 0x5c1   :  { %v10212_v45 = vadd.f32 %v10211_v42, %v10179_v30 }
 0x5c3   :  { %v10242_v23 = vpop.f32.mrf.mxu3  ;;  %v10282_v62 = vpop.f32.mrf.mxu1 }
 0x5c4   :  { %v10243_v44 = vadd.f32 %v10242_v23, %v10210_v18 }
 0x5c6   :  { %v10313_v22 = vpop.f32.mrf.mxu0  ;;  %v10276_v21 = vadd.f32 %v10275_v0, %v10243_v44 }
 0x5c8   :  { %v10214_v56 = vpop.f32.mrf.mxu2  ;;  %v10309_v4 = vadd.f32 %v10308_v24, %v10276_v21 }
 0x5c9   :  { %v10215_v29 = vadd.f32 %v10214_v56, %v10182_v13 }
 0x5cb   :  { %v10244_v26 = vpop.f32.mrf.mxu3 }
 0x5cc   :  { %v10245_v31 = vadd.f32 %v10244_v26, %v10212_v45 }
 0x5ce   :  { %v10278_v54 = vadd.f32 %v10277_v50, %v10245_v31  ;;  %v10315_v6 = vpop.f32.mrf.mxu0 }
 0x5d0   :  { %v10216_v47 = vpop.f32.mrf.mxu2  ;;  %v10311_v32 = vadd.f32 %v10310_v60, %v10278_v54 }
 0x5d3   :  { %v10247_v51 = vpop.f32.mrf.mxu3 }
 0x5d4   :  { %v10248_v27 = vadd.f32 %v10247_v51, %v10215_v29 }
 0x5d6   :  { %v10281_v11 = vadd.f32 %v10280_v58, %v10248_v27 }
 0x5d8   :  { %v10326_v20 = vpop.f32.mrf.mxu2  ;;  %v17023_v57 = vadd.f32 %v10313_v22, %v10281_v11 }
 0x5d9   :  { %v10327_v3 = vadd.f32 %v10326_v20, %v10294_v1 }
 0x5db   :  { %v10249_v55 = vpop.f32.mrf.mxu3 }
 0x5e0   :  { %v10328_v34 = vpop.f32.mrf.mxu2 }
 0x5e1   :  { %v10329_v37 = vadd.f32 %v10328_v34, %v10296_v46 }
 0x5e3   :  { %v10359_v10 = vpop.f32.mrf.mxu3 }
 0x5e4   :  { %v10360_v30 = vadd.f32 %v10359_v10, %v10327_v3 }
 0x5e6   :  { %v10384_v17 = vmul.f32 %v17028_v38, %v10360_v30 }
 0x5e8   :  { %v10331_v40 = vpop.f32.mrf.mxu2  ;;  %v10394_v48 = vadd.f32 %v17033_v63, %v10384_v17 }
 0x5e9   :  { %v10332_v0 = vadd.f32 %v10331_v40, %v10299_v2 }
 0x5ea   :  { %v10412_v43 = vmul.f32 0.01, %v10394_v48  ;;  %vm10403_vm5 = vcmp.ge.f32.partialorder %v10394_v48, 0.0 }
 0x5eb   :  { %v10361_v61 = vpop.f32.mrf.mxu3 }
 0x5ec   :  { %v10362_v13 = vadd.f32 %v10361_v61, %v10329_v37  ;;  %v10421_v16 = vsel %vm10403_vm5, %v10394_v48, %v10412_v43 }
 0x5ed   :  { %10446 = vmatmul.f32.vlgmr.msra.gmra.mxu0 %v10421_v16 }
 0x5ee   :  { %v10385_v25 = vmul.f32 %v17028_v38, %v10362_v13 }
 0x5f0   :  { %v10333_v41 = vpop.f32.mrf.mxu2  ;;  %v10395_v8 = vadd.f32 %v17033_v63, %v10385_v25 }
 0x5f1   :  { %v10334_v52 = vadd.f32 %v10333_v41, %v10301_v9  ;;  %v17057_v41 = vld [vmem:[%s17211_s5 + $0x6] ss:$0 sm:$0xff] }
 0x5f2   :  { %v10413_v15 = vmul.f32 0.01, %v10395_v8  ;;  %vm10404_vm7 = vcmp.ge.f32.partialorder %v10395_v8, 0.0 }
 0x5f3   :  { %v10364_v19 = vpop.f32.mrf.mxu3 }
 0x5f4   :  { %v10365_v35 = vadd.f32 %v10364_v19, %v10332_v0  ;;  %v10422_v53 = vsel %vm10404_vm7, %v10395_v8, %v10413_v15 }
 0x5f5   :  { %10449 = vmatmul.f32.vlgmr.msrb.gmra.mxu1 %v10422_v53 }
 0x5f6   :  { %v10386_v39 = vmul.f32 %v17028_v38, %v10365_v35 }
 0x5f8   :  { %v10336_v24 = vpop.f32.mrf.mxu2  ;;  %v10396_v28 = vadd.f32 %v17033_v63, %v10386_v39 }
 0x5f9   :  { %v10337_v42 = vadd.f32 %v10336_v24, %v10304_v59 }
 0x5fa   :  { %vm10405_vm2 = vcmp.ge.f32.partialorder %v10396_v28, 0.0  ;;  %v10414_v18 = vmul.f32 0.01, %v10396_v28 }
 0x5fb   :  { %v10366_v1 = vpop.f32.mrf.mxu3 }
 0x5fc   :  { %v10367_v50 = vadd.f32 %v10366_v1, %v10334_v52  ;;  %v10423_v49 = vsel %vm10405_vm2, %v10396_v28, %v10414_v18  ;;  %v13863_v28 = vmov 1   ;;  %vm10712_vm2 = vcmask 261120  }
 0x5fd   :  { %10452 = vmatmul.f32.gmra.mxu1 %v10423_v49 }
 0x5fe   :  { %v10387_v46 = vmul.f32 %v17028_v38, %v10367_v50 }
 0x600   :  { %v10338_v33 = vpop.f32.mrf.mxu2  ;;  %v10397_v60 = vadd.f32 %v17033_v63, %v10387_v46 }
 0x601   :  { %v10339_v29 = vadd.f32 %v10338_v33, %v10306_v7  ;;  %v13864_v33 = vmov 2  }
 0x602   :  { %vm10406_vm12 = vcmp.ge.f32.partialorder %v10397_v60, 0.0  ;;  %v10415_v45 = vmul.f32 0.01, %v10397_v60 }
 0x603   :  { %v10369_v58 = vpop.f32.mrf.mxu3 }
 0x604   :  { %v10370_v23 = vadd.f32 %v10369_v58, %v10337_v42  ;;  %v10424_v44 = vsel %vm10406_vm12, %v10397_v60, %v10415_v45  ;;  %vm10728_vm12 = vcmask 254976  }
 0x605   :  { %10455 = vmatmul.f32.gmra.mxu1 %v10424_v44 }
 0x606   :  { %v10388_v36 = vmul.f32 %v17028_v38, %v10370_v23  ;;  %v17336_v23 = vmov 0  }
 0x608   :  { %v10341_v22 = vpop.f32.mrf.mxu2  ;;  %v10398_v56 = vadd.f32 %v17033_v63, %v10388_v36 }
 0x609   :  { %v10342_v47 = vadd.f32 %v10341_v22, %v10309_v4 }
 0x60a   :  { %vm10407_vm15 = vcmp.ge.f32.partialorder %v10398_v56, 0.0  ;;  %v10416_v62 = vmul.f32 0.01, %v10398_v56 }
 0x60b   :  { %v10371_v2 = vpop.f32.mrf.mxu3 }
 0x60c   :  { %v10372_v26 = vadd.f32 %v10371_v2, %v10339_v29  ;;  %v10425_v31 = vsel %vm10407_vm15, %v10398_v56, %v10416_v62 }
 0x60d   :  { %10458 = vmatmul.f32.gmra.mxu1 %v10425_v31 }
 0x60e   :  { %v10389_v12 = vmul.f32 %v17028_v38, %v10372_v26 }
 0x610   :  { %v10343_v54 = vpop.f32.mrf.mxu2  ;;  %v10399_v6 = vadd.f32 %v17033_v63, %v10389_v12 }
 0x611   :  { %v10344_v55 = vadd.f32 %v10343_v54, %v10311_v32 }
 0x612   :  { %vm10408_vm0 = vcmp.ge.f32.partialorder %v10399_v6, 0.0  ;;  %v10417_v9 = vmul.f32 0.01, %v10399_v6 }
 0x613   :  { %v10374_v51 = vpop.f32.mrf.mxu3 }
 0x614   :  { %v10375_v5 = vadd.f32 %v10374_v51, %v10342_v47  ;;  %v10426_v27 = vsel %vm10408_vm0, %v10399_v6, %v10417_v9  ;;  %vm10742_vm0 = vcmask 253952  }
 0x615   :  { %10461 = vmatmul.f32.gmra.mxu1 %v10426_v27 }
 0x616   :  { %v10390_v11 = vmul.f32 %v17028_v38, %v10375_v5 }
 0x618   :  { %v10346_v20 = vpop.f32.mrf.mxu2  ;;  %v10400_v59 = vadd.f32 %v17033_v63, %v10390_v11 }
 0x619   :  { %v10347_v17 = vadd.f32 %v10346_v20, %v17023_v57  ;;  %v17062_v57 = vld [vmem:[%s17211_s5 + $0x7] ss:$0 sm:$0xff] }
 0x61a   :  { %vm10409_vm8 = vcmp.ge.f32.partialorder %v10400_v59, 0.0  ;;  %v10418_v14 = vmul.f32 0.01, %v10400_v59 }
 0x61b   :  { %v10376_v34 = vpop.f32.mrf.mxu3 }
 0x61c   :  { %v10377_v7 = vadd.f32 %v10376_v34, %v10344_v55  ;;  %v10427_v3 = vsel %vm10409_vm8, %v10400_v59, %v10418_v14  ;;  %vm10747_vm8 = vcmask 0  }
 0x61d   :  { %10464 = vmatmul.f32.gmra.mxu1 %v10427_v3 }
 0x61e   :  { %v10391_v10 = vmul.f32 %v17028_v38, %v10377_v7 }
 0x620   :  { %v10348_v21 = vpop.f32.mrf.mxu2  ;;  %v10401_v30 = vadd.f32 %v17033_v63, %v10391_v10 }
 0x622   :  { %vm10410_vm1 = vcmp.ge.f32.partialorder %v10401_v30, 0.0  ;;  %v10419_v40 = vmul.f32 0.01, %v10401_v30 }
 0x623   :  { %v10379_v48 = vpop.f32.mrf.mxu3 }
 0x624   :  { %v10380_v4 = vadd.f32 %v10379_v48, %v10347_v17  ;;  %v10428_v37 = vsel %vm10410_vm1, %v10401_v30, %v10419_v40 }
 0x625   :  { %10467 = vmatmul.f32.gmra.mxu1 %v10428_v37 }
 0x626   :  { %v10392_v43 = vmul.f32 %v17028_v38, %v10380_v4 }
 0x628   :  { %v10402_v61 = vadd.f32 %v17033_v63, %v10392_v43 }
 0x62a   :  { %vm10411_vm11 = vcmp.ge.f32.partialorder %v10402_v61, 0.0  ;;  %v10420_v13 = vmul.f32 0.01, %v10402_v61 }
 0x62b   :  { %v10381_v16 = vpop.f32.mrf.mxu3 }
 0x62c   :  { %v10429_v25 = vsel %vm10411_vm11, %v10402_v61, %v10420_v13 }
 0x62d   :  { %10470 = vmatmul.f32.gmra.mxu1 %v10429_v25 }
 0x66a   :  { %v10447_v8 = vpop.f32.mrf.mxu0 }
 0x66b   :  { %v10475_v38 = vmul.f32 %v17057_v41, %v10447_v8 }
 0x66d   :  { %v10485_v63 = vadd.f32 %v17062_v57, %v10475_v38 }
 0x66f   :  { %vm10494_vm13 = vcmp.ge.f32.partialorder %v10485_v63, 0.0  ;;  %v10503_v32 = vmul.f32 0.01, %v10485_v63 }
 0x671   :  { %v10512_v0 = vsel %vm10494_vm13, %v10485_v63, %v10503_v32  ;;  %v12907_v63 = vld [vmem:[%s17212_s6 + $0x48] sm:$0xff]  ;;  %v12909_v32 = vld [vmem:[%s17212_s6 + $0x58] sm:$0xff] }
 0x672   :  { %v10450_v15 = vpop.f32.mrf.mxu1  ;;  %10532 = vperm.xlu1 %13711, %v10512_v0  }
 0x673   :  { %v10476_v19 = vmul.f32 %v17057_v41, %v10450_v15  ;;  %v12908_v15 = vld [vmem:[%s17212_s6 + $0x50] sm:$0xff] }
 0x675   :  { %v10486_v35 = vadd.f32 %v17062_v57, %v10476_v19  ;;  %v10521_v19 = vld [vmem:[%s17212_s6] sm:$0xff] }
 0x677   :  { %vm10495_vm4 = vcmp.ge.f32.partialorder %v10486_v35, 0.0  ;;  %v10504_v53 = vmul.f32 0.01, %v10486_v35 }
 0x679   :  { %v10513_v39 = vsel %vm10495_vm4, %v10486_v35, %v10504_v53  ;;  %v12916_v35 = vld [vmem:[%s17212_s6 + $0x90] sm:$0xff] }
 0x67a   :  { %10537 = vperm.xlu2 %13712, %v10513_v39   ;;  %v10453_v24 = vpop.f32.mrf.mxu1  ;;  %13713 = vset.pattern.permute.xlu1 %v13863_v28 }
 0x67b   :  { %v10477_v52 = vmul.f32 %v17057_v41, %v10453_v24  ;;  %10595 = vperm.xlu1 %13713, %v10512_v0  }
 0x67d   :  { %v10487_v18 = vadd.f32 %v17062_v57, %v10477_v52  ;;  %v12917_v52 = vld [vmem:[%s17212_s6 + $0x98] sm:$0xff] }
 0x67f   :  { %vm10496_vm9 = vcmp.ge.f32.partialorder %v10487_v18, 0.0  ;;  %v10505_v1 = vmul.f32 0.01, %v10487_v18 }
 0x681   :  { %v10514_v50 = vsel %vm10496_vm9, %v10487_v18, %v10505_v1 }
 0x682   :  { %13715 = vset.pattern.permute.xlu2 %v13863_v28  ;;  %10542 = vperm.xlu0 %13710, %v10514_v50   ;;  %v10456_v49 = vpop.f32.mrf.mxu1 }
 0x683   :  { %v10478_v46 = vmul.f32 %v17057_v41, %v10456_v49  ;;  %10599 = vperm.xlu2 %13715, %v10513_v39   ;;  %13714 = vset.pattern.permute.xlu1 %v13864_v33 }
 0x684   :  { %10659 = vperm.xlu1 %13714, %v10512_v0  }
 0x685   :  { %v10488_v60 = vadd.f32 %v17062_v57, %v10478_v46  ;;  %v12910_v46 = vld [vmem:[%s17212_s6 + $0x60] sm:$0xff] }
 0x687   :  { %v10506_v42 = vmul.f32 0.01, %v10488_v60  ;;  %vm10497_vm6 = vcmp.ge.f32.partialorder %v10488_v60, 0.0 }
 0x689   :  { %v10515_v44 = vsel %vm10497_vm6, %v10488_v60, %v10506_v42 }
 0x68a   :  { %13717 = vset.pattern.permute.xlu0 %v13863_v28  ;;  %v10459_v45 = vpop.f32.mrf.mxu1 }
 0x68b   :  { %v10479_v58 = vmul.f32 %v17057_v41, %v10459_v45  ;;  %13716 = vset.pattern.permute.xlu2 %v13864_v33  ;;  %10603 = vperm.xlu0 %13717, %v10514_v50  }
 0x68c   :  { %10663 = vperm.xlu2 %13716, %v10513_v39   ;;  %13718 = vset.pattern.permute.xlu1 %v17336_v23  ;;  %v10523_v39 = vld [vmem:[%s17212_s6 + $0x10] sm:$0xff] }
 0x68d   :  { %v10489_v36 = vadd.f32 %v17062_v57, %v10479_v58  ;;  %10547 = vperm.xlu1 %13718, %v10515_v44   ;;  %v12918_v58 = vld [vmem:[%s17212_s6 + $0xa0] sm:$0xff] }
 0x68f   :  { %vm10498_vm14 = vcmp.ge.f32.partialorder %v10489_v36, 0.0  ;;  %v10507_v22 = vmul.f32 0.01, %v10489_v36 }
 0x691   :  { %v10516_v56 = vsel %vm10498_vm14, %v10489_v36, %v10507_v22 }
 0x692   :  { %v10462_v29 = vpop.f32.mrf.mxu1 }
 0x693   :  { %10611 = vperm.xlu0 %13717, %v10516_v56   ;;  %v10480_v62 = vmul.f32 %v17057_v41, %v10462_v29 }
 0x694   :  { %10667 = vperm.xlu2 %13716, %v10514_v50  }
 0x695   :  { %13719 = vset.pattern.permute.xlu1 %v13863_v28  ;;  %v10490_v31 = vadd.f32 %v17062_v57, %v10480_v62 }
 0x696   :  { %10607 = vperm.xlu1 %13719, %v10515_v44  }
 0x697   :  { %v10508_v54 = vmul.f32 0.01, %v10490_v31  ;;  %vm10499_vm3 = vcmp.ge.f32.partialorder %v10490_v31, 0.0 }
 0x699   :  { %v10517_v51 = vsel %vm10499_vm3, %v10490_v31, %v10508_v54 }
 0x69a   :  { %v10465_v2 = vpop.f32.mrf.mxu1 }
 0x69b   :  { %v10481_v26 = vmul.f32 %v17057_v41, %v10465_v2  ;;  %13722 = vset.pattern.permute.xlu0 %v13864_v33  ;;  %v10526_v2 = vld [vmem:[%s17212_s6 + $0x28] sm:$0xff] }
 0x69c   :  { %13721 = vset.pattern.permute.xlu2 %v17336_v23  ;;  %10675 = vperm.xlu0 %13722, %v10516_v56  }
 0x69d   :  { %10552 = vperm.xlu2 %13721, %v10516_v56   ;;  %v10491_v12 = vadd.f32 %v17062_v57, %v10481_v26 }
 0x69e   :  { %13720 = vset.pattern.permute.xlu1 %v13864_v33 }
 0x69f   :  { %10671 = vperm.xlu1 %13720, %v10515_v44   ;;  %v10509_v9 = vmul.f32 0.01, %v10491_v12  ;;  %vm10500_vm10 = vcmp.ge.f32.partialorder %v10491_v12, 0.0  ;;  %v12919_v44 = vld [vmem:[%s17212_s6 + $0xa8] sm:$0xff] }
 0x6a1   :  { %v10518_v27 = vsel %vm10500_vm10, %v10491_v12, %v10509_v9  ;;  %v12911_v9 = vld [vmem:[%s17212_s6 + $0x68] sm:$0xff] }
 0x6a2   :  { %v10468_v6 = vpop.f32.mrf.mxu1 }
 0x6a3   :  { %v10482_v47 = vmul.f32 %v17057_v41, %v10468_v6 }
 0x6a4   :  { %13723 = vset.pattern.permute.xlu0 %v17336_v23 }
 0x6a5   :  { %v10492_v5 = vadd.f32 %v17062_v57, %v10482_v47  ;;  %13724 = vset.pattern.permute.xlu2 %v13863_v28  ;;  %10557 = vperm.xlu0 %13723, %v10517_v51   ;;  %v12912_v47 = vld [vmem:[%s17212_s6 + $0x70] sm:$0xff] }
 0x6a6   :  { %10615 = vperm.xlu2 %13724, %v10517_v51  }
 0x6a7   :  { %13726 = vset.pattern.permute.xlu1 %v17336_v23  ;;  %v10510_v34 = vmul.f32 0.01, %v10492_v5  ;;  %vm10501_vm7 = vcmp.ge.f32.partialorder %v10492_v5, 0.0 }
 0x6a8   :  { %10562 = vperm.xlu1 %13726, %v10518_v27  }
 0x6a9   :  { %v10519_v7 = vsel %vm10501_vm7, %v10492_v5, %v10510_v34  ;;  %v10525_v5 = vld [vmem:[%s17212_s6 + $0x20] sm:$0xff]  ;;  %v10527_v34 = vld [vmem:[%s17212_s6 + $0x30] sm:$0xff] }
 0x6aa   :  { %v10471_v11 = vpop.f32.mrf.mxu1 }
 0x6ab   :  { %v10483_v20 = vmul.f32 %v17057_v41, %v10471_v11 }
 0x6ad   :  { %v10493_v59 = vadd.f32 %v17062_v57, %v10483_v20 }
 0x6ae   :  { %13725 = vset.pattern.permute.xlu2 %v13864_v33 }
 0x6af   :  { %10679 = vperm.xlu2 %13725, %v10517_v51   ;;  %vm10502_vm5 = vcmp.ge.f32.partialorder %v10493_v59, 0.0  ;;  %v10511_v55 = vmul.f32 0.01, %v10493_v59  ;;  %v12913_v51 = vld [vmem:[%s17212_s6 + $0x78] sm:$0xff] }
 0x6b0   :  { %13727 = vset.pattern.permute.xlu1 %v13863_v28 }
 0x6b1   :  { %10619 = vperm.xlu1 %13727, %v10518_v27   ;;  %v10520_v14 = vsel %vm10502_vm5, %v10493_v59, %v10511_v55  ;;  %v12920_v55 = vld [vmem:[%s17212_s6 + $0xb0] sm:$0xff] }
 0x6b2   :  { %10572 = vperm.xlu0 %13723, %v10520_v14  }
 0x6b7   :  { %10683 = vperm.xlu2 %13725, %v10518_v27  }
 0x6b9   :  { %10623 = vperm.xlu1 %13727, %v10519_v7  }
 0x6ba   :  { %13729 = vset.pattern.permute.xlu0 %v13863_v28  ;;  %v10522_v28 = vld [vmem:[%s17212_s6 + $0x8] sm:$0xff] }
 0x6bb   :  { %10627 = vperm.xlu0 %13729, %v10520_v14  }
 0x6bf   :  { %13728 = vset.pattern.permute.xlu2 %v17336_v23  ;;  %v10524_v23 = vld [vmem:[%s17212_s6 + $0x18] sm:$0xff] }
 0x6c0   :  { %10567 = vperm.xlu2 %13728, %v10519_v7  }
 0x6c1   :  { %13730 = vset.pattern.permute.xlu1 %v13864_v33 }
 0x6c2   :  { %10687 = vperm.xlu1 %13730, %v10519_v7  }
 0x6c3   :  { %13732 = vset.pattern.permute.xlu0 %v13864_v33 }
 0x6c8   :  { %13731 = vset.pattern.permute.xlu2 %v13864_v33 }
 0x6c9   :  { %10691 = vperm.xlu2 %13731, %v10520_v14  }
 0x6d4   :  { %v10538_v3 = vpop.permute.xlu2 %10537 }
 0x6d5   :  { %v10576_v60 = vmul.f32 %v10538_v3, %v10522_v28 }
 0x6dd   :  { %v10600_v10 = vpop.permute.xlu2 %10599 }
 0x6de   :  { %v10631_v1 = vmul.f32 %v12908_v15, %v10600_v10 }
 0x6e0   :  { %v10640_v29 = vadd.f32 %v10631_v1, %v10576_v60 }
 0x6e4   :  { %v10533_v21 = vpop.permute.xlu1 %10532 }
 0x6e5   :  { %v10575_v50 = vmul.f32 %v10533_v21, %v10521_v19  ;;  %v12914_v19 = vld [vmem:[%s17212_s6 + $0x80] sm:$0xff] }
 0x6e6   :  { %v10664_v30 = vpop.permute.xlu2 %10663 }
 0x6e7   :  { %v10695_v42 = vmul.f32 %v12917_v52, %v10664_v30 }
 0x6e9   :  { %v10704_v6 = vadd.f32 %v10695_v42, %v10640_v29 }
 0x6eb   :  { %v10714_v30 = vsel %vm10712_vm2, %v10704_v6, 0.0 }
 0x6ed   :  { %v10596_v17 = vpop.permute.xlu1 %10595 }
 0x6ee   :  { %v10668_v48 = vpop.permute.xlu2 %10667  ;;  %v10630_v53 = vmul.f32 %v12907_v63, %v10596_v17 }
 0x6ef   :  { %v10696_v31 = vmul.f32 %v12918_v58, %v10668_v48 }
 0x6f0   :  { %v10639_v45 = vadd.f32 %v10630_v53, %v10575_v50 }
 0x6f4   :  { %v10543_v40 = vpop.permute.xlu0 %10542 }
 0x6f5   :  { %v10577_v33 = vmul.f32 %v10543_v40, %v10523_v39  ;;  %v12921_v40 = vld [vmem:[%s17212_s6 + $0xb8] sm:$0xff] }
 0x6f6   :  { %v10660_v4 = vpop.permute.xlu1 %10659 }
 0x6f7   :  { %v10553_v61 = vpop.permute.xlu2 %10552  ;;  %v10694_v49 = vmul.f32 %v12916_v35, %v10660_v4 }
 0x6f8   :  { %v10579_v17 = vmul.f32 %v10553_v61, %v10525_v5 }
 0x6f9   :  { %v10703_v62 = vadd.f32 %v10694_v49, %v10639_v45  ;;  %v12924_v49 = vld [vmem:[%s17212_s6 + $0xd0] sm:$0x3] }
 0x6fb   :  { %v10713_v59 = vsel %vm10712_vm2, %v10703_v62, 0.0 }
 0x6fd   :  { %v10604_v37 = vpop.permute.xlu0 %10603 }
 0x6fe   :  { %v10632_v18 = vmul.f32 %v12909_v32, %v10604_v37 }
 0x6ff   :  { %v10548_v43 = vpop.permute.xlu1 %10547 }
 0x700   :  { %v10616_v25 = vpop.permute.xlu2 %10615  ;;  %v10641_v36 = vadd.f32 %v10632_v18, %v10577_v33  ;;  %v10578_v12 = vmul.f32 %v10548_v43, %v10524_v23  ;;  %v12923_v33 = vld [vmem:[%s17212_s6 + $0xc8] sm:$0xff] }
 0x701   :  { %v10635_v7 = vmul.f32 %v12912_v47, %v10616_v25  ;;  %v12915_v25 = vld [vmem:[%s17212_s6 + $0x88] sm:$0x3] }
 0x702   :  { %v10705_v27 = vadd.f32 %v10696_v31, %v10641_v36 }
 0x704   :  { %v10716_v48 = vsel %vm10712_vm2, %v10705_v27, 0.0 }
 0x705   :  { %v10612_v13 = vpop.permute.xlu0 %10611 }
 0x706   :  { %v10634_v3 = vmul.f32 %v12911_v9, %v10612_v13  ;;  %v12922_v13 = vld [vmem:[%s17212_s6 + $0xc0] sm:$0xff] }
 0x708   :  { %v10608_v16 = vpop.permute.xlu1 %10607  ;;  %v10643_v61 = vadd.f32 %v10634_v3, %v10579_v17 }
 0x709   :  { %v17102_v8 = vpop.permute.xlu2 %10679  ;;  %v10633_v22 = vmul.f32 %v12910_v46, %v10608_v16 }
 0x70a   :  { %v10699_v63 = vmul.f32 %v12921_v40, %v17102_v8  ;;  %v10528_v8 = vld [vmem:[%s17212_s6 + $0x38] sm:$0xff] }
 0x70b   :  { %v10642_v11 = vadd.f32 %v10633_v22, %v10578_v12 }
 0x70e   :  { %v10676_v57 = vpop.permute.xlu0 %10675 }
 0x70f   :  { %v10698_v4 = vmul.f32 %v12920_v55, %v10676_v57  ;;  %v69_v55 = vld [vmem:[%s17211_s5 + $0x9] sm:$0x1] }
 0x711   :  { %v10672_v41 = vpop.permute.xlu1 %10671  ;;  %v10684_v24 = vpop.permute.xlu2 %10683  ;;  %v10707_v35 = vadd.f32 %v10698_v4, %v10643_v61 }
 0x712   :  { %v10697_v54 = vmul.f32 %v12919_v44, %v10672_v41  ;;  %v10715_v41 = vadd.f32 %v10714_v30, %v10713_v59  ;;  %v10700_v53 = vmul.f32 %v12922_v13, %v10684_v24 }
 0x713   :  { %v10720_v24 = vsel %vm10712_vm2, %v10707_v35, 0.0 }
 0x714   :  { %v10706_v10 = vadd.f32 %v10697_v54, %v10642_v11  ;;  %v10717_v57 = vadd.f32 %v10716_v48, %v10715_v41  ;;  %v68_v11 = vld [vmem:[%s17211_s5 + $0x8] sm:$0x1] }
 0x716   :  { %v10718_v32 = vsel %vm10712_vm2, %v10706_v10, 0.0  ;;  %v70_v10 = vld [vmem:[%s17211_s5 + $0xa] sm:$0x1] }
 0x717   :  { %v10558_v0 = vpop.permute.xlu0 %10557  ;;  %v10719_v52 = vadd.f32 %v10718_v32, %v10717_v57 }
 0x718   :  { %v10580_v20 = vmul.f32 %v10558_v0, %v10526_v2 }
 0x719   :  { %v10721_v58 = vadd.f32 %v10720_v24, %v10719_v52 }
 0x71a   :  { %v10563_v38 = vpop.permute.xlu1 %10562  ;;  %v10568_v14 = vpop.permute.xlu2 %10567  ;;  %v10644_v37 = vadd.f32 %v10635_v7, %v10580_v20 }
 0x71b   :  { %v10581_v43 = vmul.f32 %v10563_v38, %v10527_v34  ;;  %v10529_v38 = vld [vmem:[%s17212_s6 + $0x40] sm:$0x3]  ;;  %v10582_v42 = vmul.f32 %v10568_v14, %v10528_v8 }
 0x71c   :  { %v10708_v39 = vadd.f32 %v10699_v63, %v10644_v37 }
 0x71e   :  { %v10722_v60 = vsel %vm10712_vm2, %v10708_v39, 0.0 }
 0x71f   :  { %v10723_v29 = vadd.f32 %v10722_v60, %v10721_v58 }
 0x723   :  { %v10620_v56 = vpop.permute.xlu1 %10619  ;;  %v10692_v46 = vpop.permute.xlu2 %10691 }
 0x724   :  { %v10573_v26 = vpop.permute.xlu0 %10572  ;;  %v10636_v21 = vmul.f32 %v12913_v51, %v10620_v56  ;;  %v10702_v36 = vmul.f32 %v12924_v49, %v10692_v46 }
 0x725   :  { %v10583_v1 = vmul.f32 %v10573_v26, %v10529_v38 }
 0x726   :  { %v10645_v0 = vadd.f32 %v10636_v21, %v10581_v43 }
 0x728   :  { %v10709_v18 = vadd.f32 %v10700_v53, %v10645_v0 }
 0x72a   :  { %v10724_v44 = vsel %vm10712_vm2, %v10709_v18, 0.0 }
 0x72b   :  { %v10624_v16 = vpop.permute.xlu1 %10623  ;;  %v10725_v26 = vadd.f32 %v10724_v44, %v10723_v29 }
 0x72c   :  { %v10637_v50 = vmul.f32 %v12914_v19, %v10624_v16 }
 0x72d   :  { %v10628_v15 = vpop.permute.xlu0 %10627 }
 0x72e   :  { %v10638_v28 = vmul.f32 %v12915_v25, %v10628_v15  ;;  %v10646_v22 = vadd.f32 %v10637_v50, %v10582_v42 }
 0x730   :  { %v10647_v45 = vadd.f32 %v10638_v28, %v10583_v1 }
 0x732   :  { %v10711_v62 = vadd.f32 %v10702_v36, %v10647_v45 }
 0x734   :  { %v10688_v23 = vpop.permute.xlu1 %10687  ;;  %v10729_v54 = vsel %vm10728_vm12, %v10711_v62, 0.0 }
 0x735   :  { %v10701_v56 = vmul.f32 %v12923_v33, %v10688_v23 }
 0x737   :  { %v10710_v2 = vadd.f32 %v10701_v56, %v10646_v22 }
 0x739   :  { %v10726_v31 = vsel %vm10712_vm2, %v10710_v2, 0.0 }
 0x73a   :  { %v10727_v12 = vadd.f32 %v10726_v31, %v10725_v26 }
 0x73c   :  { %v10730_v6 = vadd.f32 %v10729_v54, %v10727_v12 }
 0x73e   :  { %v10731_v47 = vrot.slane %v10730_v6, 4 }
 0x740   :  { %v10732_v9 = vadd.f32 %v10731_v47, %v10730_v6 }
 0x742   :  { %v10733_v51 = vrot.slane %v10732_v9, 2 }
 0x744   :  { %v10734_v5 = vadd.f32 %v10733_v51, %v10732_v9 }
 0x746   :  { %v10735_v27 = vrot.slane %v10734_v5, 1 }
 0x748   :  { %v10736_v20 = vadd.f32 %v10735_v27, %v10734_v5 }
 0x74a   :  { %v10737_v59 = vadd.f32 %v10736_v20, %v68_v11 }
 0x74c   :  { %vm10738_vm15 = vcmp.ge.f32.partialorder %v10737_v59, 0.0  ;;  %v10739_v14 = vmul.f32 0.01, %v10737_v59 }
 0x74e   :  { %v10740_v34 = vsel %vm10738_vm15, %v10737_v59, %v10739_v14 }
 0x74f   :  { %v10741_v7 = vmul.f32 %v10740_v34, %v69_v55 }
 0x751   :  { %v10743_v3 = vsel %vm10742_vm0, %v10741_v7, 0.0 }
 0x752   :  { %10744 = vadd.xlane.f32.xlu1 %v10743_v3 }
 0x7c5   :  { %v10745_v21 = vpop.xlane.xlu1 %10744 }
 0x7c6   :  { %v10746_v30 = vadd.f32 %v10745_v21, %v70_v10 }
 0x7c8   :  { %10748 = vst.msk [vmem:[#allocation11] sm:$0x1] %vm10747_vm8, %v10746_v30 }
 0x7c9   :  { %10759 = dma.vmem_to_hbm [thread:$0]  %s10755_s21, 16, %s10757_s24, [#allocation8]  }
 0x7ca   :  { %13856 = dma.done.wait [#allocation8], 16  }
 0x7cb   :  { %13857 = vsyncadd [#allocation8], 4294967280 }
 0x7cc   :  { %10764 = vsyncpa [#allocation7], 1 }
 0x7cd   :  { %10765 = vsyncpa [#allocation10], 1 }
 0x7ce   :  { %10766 = vsyncpa [#allocation8], 1 }

</bundles_post_ra>
